<compile_context>
chip_gen: v7x
topology: tpu7x:2x2x1
jax: 0.10.0
libtpu: 0.0.40
codegen_flags: <defaults>
</compile_context>

<pallas_src>
import functools

import jax
import jax.numpy as jnp
from jax.experimental import pallas as pl
from jax.experimental.pallas import tpu as pltpu

EPS = 1e-5          # nn.InstanceNorm2d default eps (affine=False, no running stats)
NEG_SLOPE = 0.01    # nn.LeakyReLU default negative_slope


def _double_conv_kernel(xf_ref, w1_ref, w2_ref, o_ref, y1f_ref, *, h, w):
    """Fused (conv3x3 -> InstanceNorm -> LeakyReLU) x 2 for one batch element.

    Flat-padded layout: the image padded by 1 is stored row-major as (P+2, C),
    P = (H+2)*(W+2), with 2 trailing zero rows absorbing the largest tap shift.
    The computed "band" is the H*(W+2) flat positions whose padded row is
    interior; band columns with (q mod (W+2)) >= W are junk -- masked out of the
    norm statistics, zeroed before reuse, and discarded by the wrapper.

    xf_ref : (P+2, Cin)      bf16  zero-padded flat input image
    w1_ref : (9, Cin, Cout)  bf16  conv1 weights, tap-major (t = dy*3 + dx)
    w2_ref : (9, Cout, Cout) bf16  conv2 weights, tap-major
    o_ref  : (Cout, band)    f32   stage-2 band, channel-major (lane-dense store)
    y1f_ref: (P+2, Cout)     bf16  VMEM scratch: zero-padded flat stage-1 output
    """
    wp = w + 2
    band = h * wp
    inv_hw = 1.0 / float(h * w)

    # Interior-column mask over band rows (hoisted; used by both stages).
    q = jax.lax.broadcasted_iota(jnp.int32, (band, 1), 0)
    interior = (q % wp) < w                                   # (band, 1)

    def conv3x3(src_ref, wt_ref):
        # 3x3 conv as 9 shifted-row matmuls over the flat padded VMEM buffer.
        acc = jnp.zeros((band, wt_ref.shape[-1]), jnp.float32)
        for dy in range(3):
            for dx in range(3):
                shift = dy * wp + dx                          # static row shift
                acc += jnp.dot(src_ref[pl.ds(shift, band), :],
                               wt_ref[dy * 3 + dx],
                               preferred_element_type=jnp.float32)
        return acc

    def inorm_lrelu(y):
        # Single-pass InstanceNorm2d(affine=False) stats over the H*W interior.
        ym = jnp.where(interior, y, 0.0)
        mean = jnp.sum(ym, axis=0, keepdims=True) * inv_hw
        var = jnp.sum(ym * ym, axis=0, keepdims=True) * inv_hw - mean * mean
        var = jnp.maximum(var, 0.0)                           # guard f32 cancellation
        z = (y - mean) * jax.lax.rsqrt(var + EPS)
        return jnp.where(z > 0, z, NEG_SLOPE * z)             # LeakyReLU(0.01)

    # ---- stage 1: conv -> IN -> LeakyReLU ----
    y1 = inorm_lrelu(conv3x3(xf_ref, w1_ref))

    # Keep the stage-1 activation resident in VMEM as a zero-padded flat image.
    y1f_ref[...] = jnp.zeros_like(y1f_ref)
    y1f_ref[pl.ds(wp + 1, band), :] = (
        jnp.where(interior, y1, 0.0).astype(y1f_ref.dtype))

    # ---- stage 2: conv -> IN -> LeakyReLU ----
    y2 = inorm_lrelu(conv3x3(y1f_ref, w2_ref))
    # Lane-dense, channel-major store: (Cout, band) so the HBM writeback uses
    # wide vector stores and the wrapper needs no output transpose pass.
    o_ref[...] = jnp.transpose(y2).astype(o_ref.dtype)


def _to_tap_layout(w_oihw):
    """(Cout, Cin, 3, 3) -> (9, Cin, Cout), tap index t = dy*3 + dx."""
    cout, cin = w_oihw.shape[0], w_oihw.shape[1]
    return jnp.transpose(w_oihw, (2, 3, 1, 0)).reshape(9, cin, cout)


def _vmem_limit_bytes(h, w, cin, cout):
    """Rough per-step VMEM budget (double-buffered blocks + scratch + temps)."""
    wp = w + 2
    p2 = (h + 2) * wp + 2
    band = h * wp
    est = 2 * p2 * cin * 2                 # input block (bf16), double-buffered
    est += 2 * band * cout * 4             # output block (f32), double-buffered
    est += 2 * 9 * cin * cout * 2          # conv1 weights (bf16)
    est += 2 * 9 * cout * cout * 2         # conv2 weights (bf16)
    est += p2 * cout * 2                   # stage-1 flat intermediate (bf16 scratch)
    est += 8 * band * max(cin, cout) * 4   # f32 temporaries (acc / norm / slices)
    return int(min(max(4 * est, 32 * 1024 * 1024), 64 * 1024 * 1024))


def double_conv(x_nchw, weights):
    """DoubleConv forward.  x_nchw: (N, Cin, H, W) f32 -> (N, Cout, H, W) f32.

    weights = (w1, w2) in PyTorch OIHW layout: (Cout, Cin, 3, 3), (Cout, Cout, 3, 3).
    Conv biases are omitted on purpose: InstanceNorm2d(affine=False) right after
    each conv subtracts the per-(sample, channel) mean, which cancels any
    per-channel bias exactly, so the forward pass is unchanged.
    """
    w1_oihw, w2_oihw = weights
    n, cin, h, w = x_nchw.shape
    cout = w1_oihw.shape[0]
    hp, wp = h + 2, w + 2
    p2 = hp * wp + 2                       # flat padded length (+2 rows of slack)
    band = h * wp

    # Layout glue (pure data movement): NCHW -> padded, flattened, channels-last.
    x_nhwc = jnp.transpose(x_nchw, (0, 2, 3, 1))
    x_pad = jnp.pad(x_nhwc, ((0, 0), (1, 1), (1, 1), (0, 0)))
    x_flat = jnp.pad(x_pad.reshape(n, hp * wp, cin), ((0, 0), (0, 2), (0, 0)))
    x_flat = x_flat.astype(jnp.bfloat16)   # bf16 matmul inputs; epilogue stays f32

    w1 = _to_tap_layout(w1_oihw).astype(jnp.bfloat16)   # (9, Cin, Cout)
    w2 = _to_tap_layout(w2_oihw).astype(jnp.bfloat16)   # (9, Cout, Cout)

    # TODO(synk): for realistic UNet sizes (large H*W, C >= 256) add a spatial
    # grid axis with a two-pass InstanceNorm so blocks fit v7x's 64 MiB VMEM.
    out_band = pl.pallas_call(
        functools.partial(_double_conv_kernel, h=h, w=w),
        out_shape=jax.ShapeDtypeStruct((n, cout, band), jnp.float32),
        grid_spec=pltpu.PrefetchScalarGridSpec(
            num_scalar_prefetch=0,
            grid=(n,),
            in_specs=[
                pl.BlockSpec((None, p2, cin), lambda i: (i, 0, 0)),
                pl.BlockSpec((9, cin, cout), lambda i: (0, 0, 0)),
                pl.BlockSpec((9, cout, cout), lambda i: (0, 0, 0)),
            ],
            out_specs=pl.BlockSpec((None, cout, band), lambda i: (i, 0, 0)),
            scratch_shapes=[pltpu.VMEM((p2, cout), jnp.bfloat16)],
        ),
        compiler_params=pltpu.CompilerParams(
            dimension_semantics=("parallel",),
            vmem_limit_bytes=_vmem_limit_bytes(h, w, cin, cout),
        ),
    )(x_flat, w1, w2)

    # Kernel output is already channel-major; just drop the two junk columns
    # of each flat row (pure glue, no transpose needed).
    return out_band.reshape(n, cout, h, wp)[:, :, :, :w]


def _ref_double_conv(x_nchw, weights):
    """Pure-JAX f32 reference (lax.conv + InstanceNorm + LeakyReLU) for checking."""
    def stage(x, w_oihw):
        y = jax.lax.conv_general_dilated(
            x, w_oihw, window_strides=(1, 1), padding=((1, 1), (1, 1)),
            dimension_numbers=("NCHW", "OIHW", "NCHW"),
            precision=jax.lax.Precision.HIGHEST)
        mean = jnp.mean(y, axis=(2, 3), keepdims=True)
        var = jnp.mean((y - mean) ** 2, axis=(2, 3), keepdims=True)
        y = (y - mean) * jax.lax.rsqrt(var + EPS)
        return jnp.where(y > 0, y, NEG_SLOPE * y)

    w1, w2 = weights
    return stage(stage(x_nchw, w1), w2)


if __name__ == "__main__":
    key = jax.random.PRNGKey(0)
    kx, k1, k2 = jax.random.split(key, 3)

    N, CIN, COUT, H, W = 2, 4, 8, 16, 16
    x = jax.random.normal(kx, (N, CIN, H, W), jnp.float32)

    # PyTorch Conv2d default init: U(+-1/sqrt(fan_in)).  Biases omitted: they are
    # exactly cancelled by the following InstanceNorm2d(affine=False).
    bound1 = 1.0 / float((CIN * 9) ** 0.5)
    bound2 = 1.0 / float((COUT * 9) ** 0.5)
    w1 = jax.random.uniform(k1, (COUT, CIN, 3, 3), jnp.float32, -bound1, bound1)
    w2 = jax.random.uniform(k2, (COUT, COUT, 3, 3), jnp.float32, -bound2, bound2)

    fwd = jax.jit(double_conv)
    out = jax.block_until_ready(fwd(x, (w1, w2)))

    assert out.shape == (N, COUT, H, W), out.shape
    assert out.dtype == jnp.float32
    assert bool(jnp.all(jnp.isfinite(out)))

    # Compare against a pure-f32 XLA reference (kernel uses bf16 matmul inputs).
    ref = _ref_double_conv(x, (w1, w2))
    max_err = float(jnp.max(jnp.abs(out - ref)))
    assert max_err < 0.2, f"max abs error vs reference: {max_err}"

    print("KERNEL_OK")
</pallas_src>

<mosaic_0001>
module attributes {stable_mosaic.version = 11 : i64} {
  func.func @_double_conv_kernel(%arg0: i32, %arg1: memref<1x326x4xbf16, #tpu.memory_space<vmem>>, %arg2: memref<9x4x8xbf16, #tpu.memory_space<vmem>>, %arg3: memref<9x8x8xbf16, #tpu.memory_space<vmem>>, %arg4: memref<1x8x288xf32, #tpu.memory_space<vmem>>, %arg5: memref<326x8xbf16, #tpu.memory_space<vmem>>) attributes {dimension_semantics = [#tpu.dimension_semantics<parallel>], iteration_bounds = array<i64: 2>, scalar_prefetch = 0 : i64, scratch_operands = 1 : i64, tpu.core_type = #tpu.core_type<tc>, window_params = [{transform_indices = @transform_0, window_bounds = array<i64: 1, 326, 4>}, {pipeline_mode = #tpu.pipeline_mode<synchronous>, transform_indices = @transform_1, window_bounds = array<i64: 9, 4, 8>}, {pipeline_mode = #tpu.pipeline_mode<synchronous>, transform_indices = @transform_2, window_bounds = array<i64: 9, 8, 8>}, {transform_indices = @transform_3, window_bounds = array<i64: 1, 8, 288>}]} {
    %0 = tpu.iota {dimensions = array<i32: 0>} : vector<288x1xi32>
    %c18_i32 = arith.constant 18 : i32
    %c0_i32 = arith.constant 0 : i32
    %1 = arith.cmpi eq, %c18_i32, %c0_i32 : i32
    %c1_i32 = arith.constant 1 : i32
    %2 = arith.select %1, %c1_i32, %c18_i32 : i32
    %3 = vector.broadcast %2 : i32 to vector<288x1xi32>
    %4 = arith.remsi %0, %3 : vector<288x1xi32>
    %c0_i32_0 = arith.constant 0 : i32
    %5 = vector.broadcast %c0_i32_0 : i32 to vector<288x1xi32>
    %6 = arith.cmpi ne, %4, %5 : vector<288x1xi32>
    %c0_i32_1 = arith.constant 0 : i32
    %7 = vector.broadcast %c0_i32_1 : i32 to vector<288x1xi32>
    %8 = arith.cmpi slt, %4, %7 : vector<288x1xi32>
    %c0_i32_2 = arith.constant 0 : i32
    %9 = arith.cmpi slt, %2, %c0_i32_2 : i32
    %10 = vector.broadcast %9 : i1 to vector<288x1xi1>
    %11 = vector.broadcast %10 : vector<288x1xi1> to vector<288x1xi1>
    %12 = arith.xori %8, %11 : vector<288x1xi1>
    %13 = arith.andi %12, %6 : vector<288x1xi1>
    %14 = vector.broadcast %2 : i32 to vector<288x1xi32>
    %15 = arith.addi %4, %14 : vector<288x1xi32>
    %16 = arith.select %13, %15, %4 : vector<288x1xi1>, vector<288x1xi32>
    %c16_i32 = arith.constant 16 : i32
    %17 = vector.broadcast %c16_i32 : i32 to vector<288x1xi32>
    %18 = arith.cmpi slt, %16, %17 : vector<288x1xi32>
    %cst = arith.constant 0.000000e+00 : f32
    %19 = vector.broadcast %cst : f32 to vector<288x8xf32>
    %c0 = arith.constant 0 : index
    %c0_3 = arith.constant 0 : index
    %c0_4 = arith.constant 0 : index
    %20 = vector.load %arg1[%c0, %c0_3, %c0_4] : memref<1x326x4xbf16, #tpu.memory_space<vmem>>, vector<1x288x4xbf16>
    %21 = vector.shape_cast %20 : vector<1x288x4xbf16> to vector<288x4xbf16>
    %c0_5 = arith.constant 0 : index
    %c0_6 = arith.constant 0 : index
    %c0_7 = arith.constant 0 : index
    %22 = vector.load %arg2[%c0_5, %c0_6, %c0_7] : memref<9x4x8xbf16, #tpu.memory_space<vmem>>, vector<1x4x8xbf16>
    %23 = vector.shape_cast %22 : vector<1x4x8xbf16> to vector<4x8xbf16>
    %cst_8 = arith.constant dense<0.000000e+00> : vector<288x8xf32>
    %24 = tpu.matmul %21, %23, %cst_8 {dimension_numbers = #tpu.dot_dimension_numbers<[1], [0], [0], [1], [0, 0, 1, 1], [], []>} : vector<288x4xbf16>, vector<4x8xbf16>, vector<288x8xf32> -> vector<288x8xf32>
    %25 = arith.addf %19, %24 : vector<288x8xf32>
    %c0_9 = arith.constant 0 : index
    %c1 = arith.constant 1 : index
    %c0_10 = arith.constant 0 : index
    %26 = vector.load %arg1[%c0_9, %c1, %c0_10] : memref<1x326x4xbf16, #tpu.memory_space<vmem>>, vector<1x288x4xbf16>
    %27 = vector.shape_cast %26 : vector<1x288x4xbf16> to vector<288x4xbf16>
    %c1_11 = arith.constant 1 : index
    %c0_12 = arith.constant 0 : index
    %c0_13 = arith.constant 0 : index
    %28 = vector.load %arg2[%c1_11, %c0_12, %c0_13] : memref<9x4x8xbf16, #tpu.memory_space<vmem>>, vector<1x4x8xbf16>
    %29 = vector.shape_cast %28 : vector<1x4x8xbf16> to vector<4x8xbf16>
    %cst_14 = arith.constant dense<0.000000e+00> : vector<288x8xf32>
    %30 = tpu.matmul %27, %29, %cst_14 {dimension_numbers = #tpu.dot_dimension_numbers<[1], [0], [0], [1], [0, 0, 1, 1], [], []>} : vector<288x4xbf16>, vector<4x8xbf16>, vector<288x8xf32> -> vector<288x8xf32>
    %31 = arith.addf %25, %30 : vector<288x8xf32>
    %c0_15 = arith.constant 0 : index
    %c2 = arith.constant 2 : index
    %c0_16 = arith.constant 0 : index
    %32 = vector.load %arg1[%c0_15, %c2, %c0_16] : memref<1x326x4xbf16, #tpu.memory_space<vmem>>, vector<1x288x4xbf16>
    %33 = vector.shape_cast %32 : vector<1x288x4xbf16> to vector<288x4xbf16>
    %c2_17 = arith.constant 2 : index
    %c0_18 = arith.constant 0 : index
    %c0_19 = arith.constant 0 : index
    %34 = vector.load %arg2[%c2_17, %c0_18, %c0_19] : memref<9x4x8xbf16, #tpu.memory_space<vmem>>, vector<1x4x8xbf16>
    %35 = vector.shape_cast %34 : vector<1x4x8xbf16> to vector<4x8xbf16>
    %cst_20 = arith.constant dense<0.000000e+00> : vector<288x8xf32>
    %36 = tpu.matmul %33, %35, %cst_20 {dimension_numbers = #tpu.dot_dimension_numbers<[1], [0], [0], [1], [0, 0, 1, 1], [], []>} : vector<288x4xbf16>, vector<4x8xbf16>, vector<288x8xf32> -> vector<288x8xf32>
    %37 = arith.addf %31, %36 : vector<288x8xf32>
    %c0_21 = arith.constant 0 : index
    %c18 = arith.constant 18 : index
    %c0_22 = arith.constant 0 : index
    %38 = vector.load %arg1[%c0_21, %c18, %c0_22] : memref<1x326x4xbf16, #tpu.memory_space<vmem>>, vector<1x288x4xbf16>
    %39 = vector.shape_cast %38 : vector<1x288x4xbf16> to vector<288x4xbf16>
    %c3 = arith.constant 3 : index
    %c0_23 = arith.constant 0 : index
    %c0_24 = arith.constant 0 : index
    %40 = vector.load %arg2[%c3, %c0_23, %c0_24] : memref<9x4x8xbf16, #tpu.memory_space<vmem>>, vector<1x4x8xbf16>
    %41 = vector.shape_cast %40 : vector<1x4x8xbf16> to vector<4x8xbf16>
    %cst_25 = arith.constant dense<0.000000e+00> : vector<288x8xf32>
    %42 = tpu.matmul %39, %41, %cst_25 {dimension_numbers = #tpu.dot_dimension_numbers<[1], [0], [0], [1], [0, 0, 1, 1], [], []>} : vector<288x4xbf16>, vector<4x8xbf16>, vector<288x8xf32> -> vector<288x8xf32>
    %43 = arith.addf %37, %42 : vector<288x8xf32>
    %c0_26 = arith.constant 0 : index
    %c19 = arith.constant 19 : index
    %c0_27 = arith.constant 0 : index
    %44 = vector.load %arg1[%c0_26, %c19, %c0_27] : memref<1x326x4xbf16, #tpu.memory_space<vmem>>, vector<1x288x4xbf16>
    %45 = vector.shape_cast %44 : vector<1x288x4xbf16> to vector<288x4xbf16>
    %c4 = arith.constant 4 : index
    %c0_28 = arith.constant 0 : index
    %c0_29 = arith.constant 0 : index
    %46 = vector.load %arg2[%c4, %c0_28, %c0_29] : memref<9x4x8xbf16, #tpu.memory_space<vmem>>, vector<1x4x8xbf16>
    %47 = vector.shape_cast %46 : vector<1x4x8xbf16> to vector<4x8xbf16>
    %cst_30 = arith.constant dense<0.000000e+00> : vector<288x8xf32>
    %48 = tpu.matmul %45, %47, %cst_30 {dimension_numbers = #tpu.dot_dimension_numbers<[1], [0], [0], [1], [0, 0, 1, 1], [], []>} : vector<288x4xbf16>, vector<4x8xbf16>, vector<288x8xf32> -> vector<288x8xf32>
    %49 = arith.addf %43, %48 : vector<288x8xf32>
    %c0_31 = arith.constant 0 : index
    %c20 = arith.constant 20 : index
    %c0_32 = arith.constant 0 : index
    %50 = vector.load %arg1[%c0_31, %c20, %c0_32] : memref<1x326x4xbf16, #tpu.memory_space<vmem>>, vector<1x288x4xbf16>
    %51 = vector.shape_cast %50 : vector<1x288x4xbf16> to vector<288x4xbf16>
    %c5 = arith.constant 5 : index
    %c0_33 = arith.constant 0 : index
    %c0_34 = arith.constant 0 : index
    %52 = vector.load %arg2[%c5, %c0_33, %c0_34] : memref<9x4x8xbf16, #tpu.memory_space<vmem>>, vector<1x4x8xbf16>
    %53 = vector.shape_cast %52 : vector<1x4x8xbf16> to vector<4x8xbf16>
    %cst_35 = arith.constant dense<0.000000e+00> : vector<288x8xf32>
    %54 = tpu.matmul %51, %53, %cst_35 {dimension_numbers = #tpu.dot_dimension_numbers<[1], [0], [0], [1], [0, 0, 1, 1], [], []>} : vector<288x4xbf16>, vector<4x8xbf16>, vector<288x8xf32> -> vector<288x8xf32>
    %55 = arith.addf %49, %54 : vector<288x8xf32>
    %c0_36 = arith.constant 0 : index
    %c36 = arith.constant 36 : index
    %c0_37 = arith.constant 0 : index
    %56 = vector.load %arg1[%c0_36, %c36, %c0_37] : memref<1x326x4xbf16, #tpu.memory_space<vmem>>, vector<1x288x4xbf16>
    %57 = vector.shape_cast %56 : vector<1x288x4xbf16> to vector<288x4xbf16>
    %c6 = arith.constant 6 : index
    %c0_38 = arith.constant 0 : index
    %c0_39 = arith.constant 0 : index
    %58 = vector.load %arg2[%c6, %c0_38, %c0_39] : memref<9x4x8xbf16, #tpu.memory_space<vmem>>, vector<1x4x8xbf16>
    %59 = vector.shape_cast %58 : vector<1x4x8xbf16> to vector<4x8xbf16>
    %cst_40 = arith.constant dense<0.000000e+00> : vector<288x8xf32>
    %60 = tpu.matmul %57, %59, %cst_40 {dimension_numbers = #tpu.dot_dimension_numbers<[1], [0], [0], [1], [0, 0, 1, 1], [], []>} : vector<288x4xbf16>, vector<4x8xbf16>, vector<288x8xf32> -> vector<288x8xf32>
    %61 = arith.addf %55, %60 : vector<288x8xf32>
    %c0_41 = arith.constant 0 : index
    %c37 = arith.constant 37 : index
    %c0_42 = arith.constant 0 : index
    %62 = vector.load %arg1[%c0_41, %c37, %c0_42] : memref<1x326x4xbf16, #tpu.memory_space<vmem>>, vector<1x288x4xbf16>
    %63 = vector.shape_cast %62 : vector<1x288x4xbf16> to vector<288x4xbf16>
    %c7 = arith.constant 7 : index
    %c0_43 = arith.constant 0 : index
    %c0_44 = arith.constant 0 : index
    %64 = vector.load %arg2[%c7, %c0_43, %c0_44] : memref<9x4x8xbf16, #tpu.memory_space<vmem>>, vector<1x4x8xbf16>
    %65 = vector.shape_cast %64 : vector<1x4x8xbf16> to vector<4x8xbf16>
    %cst_45 = arith.constant dense<0.000000e+00> : vector<288x8xf32>
    %66 = tpu.matmul %63, %65, %cst_45 {dimension_numbers = #tpu.dot_dimension_numbers<[1], [0], [0], [1], [0, 0, 1, 1], [], []>} : vector<288x4xbf16>, vector<4x8xbf16>, vector<288x8xf32> -> vector<288x8xf32>
    %67 = arith.addf %61, %66 : vector<288x8xf32>
    %c0_46 = arith.constant 0 : index
    %c38 = arith.constant 38 : index
    %c0_47 = arith.constant 0 : index
    %68 = vector.load %arg1[%c0_46, %c38, %c0_47] : memref<1x326x4xbf16, #tpu.memory_space<vmem>>, vector<1x288x4xbf16>
    %69 = vector.shape_cast %68 : vector<1x288x4xbf16> to vector<288x4xbf16>
    %c8 = arith.constant 8 : index
    %c0_48 = arith.constant 0 : index
    %c0_49 = arith.constant 0 : index
    %70 = vector.load %arg2[%c8, %c0_48, %c0_49] : memref<9x4x8xbf16, #tpu.memory_space<vmem>>, vector<1x4x8xbf16>
    %71 = vector.shape_cast %70 : vector<1x4x8xbf16> to vector<4x8xbf16>
    %cst_50 = arith.constant dense<0.000000e+00> : vector<288x8xf32>
    %72 = tpu.matmul %69, %71, %cst_50 {dimension_numbers = #tpu.dot_dimension_numbers<[1], [0], [0], [1], [0, 0, 1, 1], [], []>} : vector<288x4xbf16>, vector<4x8xbf16>, vector<288x8xf32> -> vector<288x8xf32>
    %73 = arith.addf %67, %72 : vector<288x8xf32>
    %cst_51 = arith.constant 0.000000e+00 : f32
    %74 = vector.shape_cast %18 : vector<288x1xi1> to vector<288x1xi1>
    %75 = vector.broadcast %74 : vector<288x1xi1> to vector<288x8xi1>
    %76 = vector.broadcast %cst_51 : f32 to vector<288x8xf32>
    %77 = arith.select %75, %73, %76 : vector<288x8xi1>, vector<288x8xf32>
    %cst_52 = arith.constant dense<0.000000e+00> : vector<8xf32>
    %78 = vector.multi_reduction <add>, %77, %cst_52 [0] : vector<288x8xf32> to vector<8xf32>
    %79 = vector.shape_cast %78 : vector<8xf32> to vector<1x8xf32>
    %cst_53 = arith.constant 3.906250e-03 : f32
    %80 = vector.broadcast %cst_53 : f32 to vector<1x8xf32>
    %81 = arith.mulf %79, %80 : vector<1x8xf32>
    %82 = arith.mulf %77, %77 : vector<288x8xf32>
    %cst_54 = arith.constant dense<0.000000e+00> : vector<8xf32>
    %83 = vector.multi_reduction <add>, %82, %cst_54 [0] : vector<288x8xf32> to vector<8xf32>
    %84 = vector.shape_cast %83 : vector<8xf32> to vector<1x8xf32>
    %cst_55 = arith.constant 3.906250e-03 : f32
    %85 = vector.broadcast %cst_55 : f32 to vector<1x8xf32>
    %86 = arith.mulf %84, %85 : vector<1x8xf32>
    %87 = arith.mulf %81, %81 : vector<1x8xf32>
    %88 = arith.subf %86, %87 : vector<1x8xf32>
    %cst_56 = arith.constant 0.000000e+00 : f32
    %89 = vector.broadcast %cst_56 : f32 to vector<1x8xf32>
    %90 = arith.maximumf %88, %89 : vector<1x8xf32>
    %91 = vector.broadcast %81 : vector<1x8xf32> to vector<288x8xf32>
    %92 = arith.subf %73, %91 : vector<288x8xf32>
    %cst_57 = arith.constant 9.99999974E-6 : f32
    %93 = vector.broadcast %cst_57 : f32 to vector<1x8xf32>
    %94 = arith.addf %90, %93 : vector<1x8xf32>
    %95 = math.rsqrt %94 : vector<1x8xf32>
    %96 = vector.broadcast %95 : vector<1x8xf32> to vector<288x8xf32>
    %97 = arith.mulf %92, %96 : vector<288x8xf32>
    %cst_58 = arith.constant 0.000000e+00 : f32
    %98 = vector.broadcast %cst_58 : f32 to vector<288x8xf32>
    %99 = arith.cmpf ogt, %97, %98 : vector<288x8xf32>
    %cst_59 = arith.constant 0.00999999977 : f32
    %100 = vector.broadcast %cst_59 : f32 to vector<288x8xf32>
    %101 = arith.mulf %100, %97 : vector<288x8xf32>
    %102 = arith.select %99, %97, %101 : vector<288x8xi1>, vector<288x8xf32>
    %cst_60 = arith.constant 0.000000e+00 : bf16
    %103 = vector.broadcast %cst_60 : bf16 to vector<326x8xbf16>
    %c0_61 = arith.constant 0 : index
    %c0_62 = arith.constant 0 : index
    %104 = vector.load %arg5[%c0_61, %c0_62] : memref<326x8xbf16, #tpu.memory_space<vmem>>, vector<326x8xbf16>
    tpu.vector_store %arg5[%c0_61, %c0_62], %103 {strides = array<i32>} : memref<326x8xbf16, #tpu.memory_space<vmem>>, vector<326x8xbf16>,
    %cst_63 = arith.constant 0.000000e+00 : f32
    %105 = vector.shape_cast %18 : vector<288x1xi1> to vector<288x1xi1>
    %106 = vector.broadcast %105 : vector<288x1xi1> to vector<288x8xi1>
    %107 = vector.broadcast %cst_63 : f32 to vector<288x8xf32>
    %108 = arith.select %106, %102, %107 : vector<288x8xi1>, vector<288x8xf32>
    %109 = arith.truncf %108 : vector<288x8xf32> to vector<288x8xbf16>
    %c19_64 = arith.constant 19 : index
    %c0_65 = arith.constant 0 : index
    %110 = vector.load %arg5[%c19_64, %c0_65] : memref<326x8xbf16, #tpu.memory_space<vmem>>, vector<288x8xbf16>
    tpu.vector_store %arg5[%c19_64, %c0_65], %109 {strides = array<i32>} : memref<326x8xbf16, #tpu.memory_space<vmem>>, vector<288x8xbf16>,
    %cst_66 = arith.constant 0.000000e+00 : f32
    %111 = vector.broadcast %cst_66 : f32 to vector<288x8xf32>
    %c0_67 = arith.constant 0 : index
    %c0_68 = arith.constant 0 : index
    %112 = vector.load %arg5[%c0_67, %c0_68] : memref<326x8xbf16, #tpu.memory_space<vmem>>, vector<288x8xbf16>
    %c0_69 = arith.constant 0 : index
    %c0_70 = arith.constant 0 : index
    %c0_71 = arith.constant 0 : index
    %113 = vector.load %arg3[%c0_69, %c0_70, %c0_71] : memref<9x8x8xbf16, #tpu.memory_space<vmem>>, vector<1x8x8xbf16>
    %114 = vector.shape_cast %113 : vector<1x8x8xbf16> to vector<8x8xbf16>
    %cst_72 = arith.constant dense<0.000000e+00> : vector<288x8xf32>
    %115 = tpu.matmul %112, %114, %cst_72 {dimension_numbers = #tpu.dot_dimension_numbers<[1], [0], [0], [1], [0, 0, 1, 1], [], []>} : vector<288x8xbf16>, vector<8x8xbf16>, vector<288x8xf32> -> vector<288x8xf32>
    %116 = arith.addf %111, %115 : vector<288x8xf32>
    %c1_73 = arith.constant 1 : index
    %c0_74 = arith.constant 0 : index
    %117 = vector.load %arg5[%c1_73, %c0_74] : memref<326x8xbf16, #tpu.memory_space<vmem>>, vector<288x8xbf16>
    %c1_75 = arith.constant 1 : index
    %c0_76 = arith.constant 0 : index
    %c0_77 = arith.constant 0 : index
    %118 = vector.load %arg3[%c1_75, %c0_76, %c0_77] : memref<9x8x8xbf16, #tpu.memory_space<vmem>>, vector<1x8x8xbf16>
    %119 = vector.shape_cast %118 : vector<1x8x8xbf16> to vector<8x8xbf16>
    %cst_78 = arith.constant dense<0.000000e+00> : vector<288x8xf32>
    %120 = tpu.matmul %117, %119, %cst_78 {dimension_numbers = #tpu.dot_dimension_numbers<[1], [0], [0], [1], [0, 0, 1, 1], [], []>} : vector<288x8xbf16>, vector<8x8xbf16>, vector<288x8xf32> -> vector<288x8xf32>
    %121 = arith.addf %116, %120 : vector<288x8xf32>
    %c2_79 = arith.constant 2 : index
    %c0_80 = arith.constant 0 : index
    %122 = vector.load %arg5[%c2_79, %c0_80] : memref<326x8xbf16, #tpu.memory_space<vmem>>, vector<288x8xbf16>
    %c2_81 = arith.constant 2 : index
    %c0_82 = arith.constant 0 : index
    %c0_83 = arith.constant 0 : index
    %123 = vector.load %arg3[%c2_81, %c0_82, %c0_83] : memref<9x8x8xbf16, #tpu.memory_space<vmem>>, vector<1x8x8xbf16>
    %124 = vector.shape_cast %123 : vector<1x8x8xbf16> to vector<8x8xbf16>
    %cst_84 = arith.constant dense<0.000000e+00> : vector<288x8xf32>
    %125 = tpu.matmul %122, %124, %cst_84 {dimension_numbers = #tpu.dot_dimension_numbers<[1], [0], [0], [1], [0, 0, 1, 1], [], []>} : vector<288x8xbf16>, vector<8x8xbf16>, vector<288x8xf32> -> vector<288x8xf32>
    %126 = arith.addf %121, %125 : vector<288x8xf32>
    %c18_85 = arith.constant 18 : index
    %c0_86 = arith.constant 0 : index
    %127 = vector.load %arg5[%c18_85, %c0_86] : memref<326x8xbf16, #tpu.memory_space<vmem>>, vector<288x8xbf16>
    %c3_87 = arith.constant 3 : index
    %c0_88 = arith.constant 0 : index
    %c0_89 = arith.constant 0 : index
    %128 = vector.load %arg3[%c3_87, %c0_88, %c0_89] : memref<9x8x8xbf16, #tpu.memory_space<vmem>>, vector<1x8x8xbf16>
    %129 = vector.shape_cast %128 : vector<1x8x8xbf16> to vector<8x8xbf16>
    %cst_90 = arith.constant dense<0.000000e+00> : vector<288x8xf32>
    %130 = tpu.matmul %127, %129, %cst_90 {dimension_numbers = #tpu.dot_dimension_numbers<[1], [0], [0], [1], [0, 0, 1, 1], [], []>} : vector<288x8xbf16>, vector<8x8xbf16>, vector<288x8xf32> -> vector<288x8xf32>
    %131 = arith.addf %126, %130 : vector<288x8xf32>
    %c19_91 = arith.constant 19 : index
    %c0_92 = arith.constant 0 : index
    %132 = vector.load %arg5[%c19_91, %c0_92] : memref<326x8xbf16, #tpu.memory_space<vmem>>, vector<288x8xbf16>
    %c4_93 = arith.constant 4 : index
    %c0_94 = arith.constant 0 : index
    %c0_95 = arith.constant 0 : index
    %133 = vector.load %arg3[%c4_93, %c0_94, %c0_95] : memref<9x8x8xbf16, #tpu.memory_space<vmem>>, vector<1x8x8xbf16>
    %134 = vector.shape_cast %133 : vector<1x8x8xbf16> to vector<8x8xbf16>
    %cst_96 = arith.constant dense<0.000000e+00> : vector<288x8xf32>
    %135 = tpu.matmul %132, %134, %cst_96 {dimension_numbers = #tpu.dot_dimension_numbers<[1], [0], [0], [1], [0, 0, 1, 1], [], []>} : vector<288x8xbf16>, vector<8x8xbf16>, vector<288x8xf32> -> vector<288x8xf32>
    %136 = arith.addf %131, %135 : vector<288x8xf32>
    %c20_97 = arith.constant 20 : index
    %c0_98 = arith.constant 0 : index
    %137 = vector.load %arg5[%c20_97, %c0_98] : memref<326x8xbf16, #tpu.memory_space<vmem>>, vector<288x8xbf16>
    %c5_99 = arith.constant 5 : index
    %c0_100 = arith.constant 0 : index
    %c0_101 = arith.constant 0 : index
    %138 = vector.load %arg3[%c5_99, %c0_100, %c0_101] : memref<9x8x8xbf16, #tpu.memory_space<vmem>>, vector<1x8x8xbf16>
    %139 = vector.shape_cast %138 : vector<1x8x8xbf16> to vector<8x8xbf16>
    %cst_102 = arith.constant dense<0.000000e+00> : vector<288x8xf32>
    %140 = tpu.matmul %137, %139, %cst_102 {dimension_numbers = #tpu.dot_dimension_numbers<[1], [0], [0], [1], [0, 0, 1, 1], [], []>} : vector<288x8xbf16>, vector<8x8xbf16>, vector<288x8xf32> -> vector<288x8xf32>
    %141 = arith.addf %136, %140 : vector<288x8xf32>
    %c36_103 = arith.constant 36 : index
    %c0_104 = arith.constant 0 : index
    %142 = vector.load %arg5[%c36_103, %c0_104] : memref<326x8xbf16, #tpu.memory_space<vmem>>, vector<288x8xbf16>
    %c6_105 = arith.constant 6 : index
    %c0_106 = arith.constant 0 : index
    %c0_107 = arith.constant 0 : index
    %143 = vector.load %arg3[%c6_105, %c0_106, %c0_107] : memref<9x8x8xbf16, #tpu.memory_space<vmem>>, vector<1x8x8xbf16>
    %144 = vector.shape_cast %143 : vector<1x8x8xbf16> to vector<8x8xbf16>
    %cst_108 = arith.constant dense<0.000000e+00> : vector<288x8xf32>
    %145 = tpu.matmul %142, %144, %cst_108 {dimension_numbers = #tpu.dot_dimension_numbers<[1], [0], [0], [1], [0, 0, 1, 1], [], []>} : vector<288x8xbf16>, vector<8x8xbf16>, vector<288x8xf32> -> vector<288x8xf32>
    %146 = arith.addf %141, %145 : vector<288x8xf32>
    %c37_109 = arith.constant 37 : index
    %c0_110 = arith.constant 0 : index
    %147 = vector.load %arg5[%c37_109, %c0_110] : memref<326x8xbf16, #tpu.memory_space<vmem>>, vector<288x8xbf16>
    %c7_111 = arith.constant 7 : index
    %c0_112 = arith.constant 0 : index
    %c0_113 = arith.constant 0 : index
    %148 = vector.load %arg3[%c7_111, %c0_112, %c0_113] : memref<9x8x8xbf16, #tpu.memory_space<vmem>>, vector<1x8x8xbf16>
    %149 = vector.shape_cast %148 : vector<1x8x8xbf16> to vector<8x8xbf16>
    %cst_114 = arith.constant dense<0.000000e+00> : vector<288x8xf32>
    %150 = tpu.matmul %147, %149, %cst_114 {dimension_numbers = #tpu.dot_dimension_numbers<[1], [0], [0], [1], [0, 0, 1, 1], [], []>} : vector<288x8xbf16>, vector<8x8xbf16>, vector<288x8xf32> -> vector<288x8xf32>
    %151 = arith.addf %146, %150 : vector<288x8xf32>
    %c38_115 = arith.constant 38 : index
    %c0_116 = arith.constant 0 : index
    %152 = vector.load %arg5[%c38_115, %c0_116] : memref<326x8xbf16, #tpu.memory_space<vmem>>, vector<288x8xbf16>
    %c8_117 = arith.constant 8 : index
    %c0_118 = arith.constant 0 : index
    %c0_119 = arith.constant 0 : index
    %153 = vector.load %arg3[%c8_117, %c0_118, %c0_119] : memref<9x8x8xbf16, #tpu.memory_space<vmem>>, vector<1x8x8xbf16>
    %154 = vector.shape_cast %153 : vector<1x8x8xbf16> to vector<8x8xbf16>
    %cst_120 = arith.constant dense<0.000000e+00> : vector<288x8xf32>
    %155 = tpu.matmul %152, %154, %cst_120 {dimension_numbers = #tpu.dot_dimension_numbers<[1], [0], [0], [1], [0, 0, 1, 1], [], []>} : vector<288x8xbf16>, vector<8x8xbf16>, vector<288x8xf32> -> vector<288x8xf32>
    %156 = arith.addf %151, %155 : vector<288x8xf32>
    %cst_121 = arith.constant 0.000000e+00 : f32
    %157 = vector.shape_cast %18 : vector<288x1xi1> to vector<288x1xi1>
    %158 = vector.broadcast %157 : vector<288x1xi1> to vector<288x8xi1>
    %159 = vector.broadcast %cst_121 : f32 to vector<288x8xf32>
    %160 = arith.select %158, %156, %159 : vector<288x8xi1>, vector<288x8xf32>
    %cst_122 = arith.constant dense<0.000000e+00> : vector<8xf32>
    %161 = vector.multi_reduction <add>, %160, %cst_122 [0] : vector<288x8xf32> to vector<8xf32>
    %162 = vector.shape_cast %161 : vector<8xf32> to vector<1x8xf32>
    %cst_123 = arith.constant 3.906250e-03 : f32
    %163 = vector.broadcast %cst_123 : f32 to vector<1x8xf32>
    %164 = arith.mulf %162, %163 : vector<1x8xf32>
    %165 = arith.mulf %160, %160 : vector<288x8xf32>
    %cst_124 = arith.constant dense<0.000000e+00> : vector<8xf32>
    %166 = vector.multi_reduction <add>, %165, %cst_124 [0] : vector<288x8xf32> to vector<8xf32>
    %167 = vector.shape_cast %166 : vector<8xf32> to vector<1x8xf32>
    %cst_125 = arith.constant 3.906250e-03 : f32
    %168 = vector.broadcast %cst_125 : f32 to vector<1x8xf32>
    %169 = arith.mulf %167, %168 : vector<1x8xf32>
    %170 = arith.mulf %164, %164 : vector<1x8xf32>
    %171 = arith.subf %169, %170 : vector<1x8xf32>
    %cst_126 = arith.constant 0.000000e+00 : f32
    %172 = vector.broadcast %cst_126 : f32 to vector<1x8xf32>
    %173 = arith.maximumf %171, %172 : vector<1x8xf32>
    %174 = vector.broadcast %164 : vector<1x8xf32> to vector<288x8xf32>
    %175 = arith.subf %156, %174 : vector<288x8xf32>
    %cst_127 = arith.constant 9.99999974E-6 : f32
    %176 = vector.broadcast %cst_127 : f32 to vector<1x8xf32>
    %177 = arith.addf %173, %176 : vector<1x8xf32>
    %178 = math.rsqrt %177 : vector<1x8xf32>
    %179 = vector.broadcast %178 : vector<1x8xf32> to vector<288x8xf32>
    %180 = arith.mulf %175, %179 : vector<288x8xf32>
    %cst_128 = arith.constant 0.000000e+00 : f32
    %181 = vector.broadcast %cst_128 : f32 to vector<288x8xf32>
    %182 = arith.cmpf ogt, %180, %181 : vector<288x8xf32>
    %cst_129 = arith.constant 0.00999999977 : f32
    %183 = vector.broadcast %cst_129 : f32 to vector<288x8xf32>
    %184 = arith.mulf %183, %180 : vector<288x8xf32>
    %185 = arith.select %182, %180, %184 : vector<288x8xi1>, vector<288x8xf32>
    %186 = tpu.transpose %185, [1, 0] : vector<288x8xf32> -> vector<8x288xf32>
    %c0_130 = arith.constant 0 : index
    %c0_131 = arith.constant 0 : index
    %c0_132 = arith.constant 0 : index
    %187 = vector.load %arg4[%c0_130, %c0_131, %c0_132] : memref<1x8x288xf32, #tpu.memory_space<vmem>>, vector<1x8x288xf32>
    %188 = vector.shape_cast %187 : vector<1x8x288xf32> to vector<8x288xf32>
    %189 = vector.shape_cast %186 : vector<8x288xf32> to vector<1x8x288xf32>
    tpu.vector_store %arg4[%c0_130, %c0_131, %c0_132], %189 {strides = array<i32>} : memref<1x8x288xf32, #tpu.memory_space<vmem>>, vector<1x8x288xf32>,
    return
  }
  func.func @transform_0(%arg0: i32) -> (i32, i32, i32) {
    %c0_i32 = arith.constant 0 : i32
    %c0_i32_0 = arith.constant 0 : i32
    %c0_i32_1 = arith.constant 0 : i32
    return %arg0, %c0_i32, %c0_i32_0 : i32, i32, i32
  }
  func.func @transform_1(%arg0: i32) -> (i32, i32, i32) {
    %c0_i32 = arith.constant 0 : i32
    %c0_i32_0 = arith.constant 0 : i32
    %c0_i32_1 = arith.constant 0 : i32
    %c0_i32_2 = arith.constant 0 : i32
    return %c0_i32, %c0_i32_0, %c0_i32_1 : i32, i32, i32
  }
  func.func @transform_2(%arg0: i32) -> (i32, i32, i32) {
    %c0_i32 = arith.constant 0 : i32
    %c0_i32_0 = arith.constant 0 : i32
    %c0_i32_1 = arith.constant 0 : i32
    %c0_i32_2 = arith.constant 0 : i32
    return %c0_i32, %c0_i32_0, %c0_i32_1 : i32, i32, i32
  }
  func.func @transform_3(%arg0: i32) -> (i32, i32, i32) {
    %c0_i32 = arith.constant 0 : i32
    %c0_i32_0 = arith.constant 0 : i32
    %c0_i32_1 = arith.constant 0 : i32
    return %arg0, %c0_i32, %c0_i32_0 : i32, i32, i32
  }
}

</mosaic_0001>

<bundles_post_ra>
// kernel: double_conv.1
= control target key start
LH: loop header
LB: loop body
LE: loop exit
PB: predicated region body
PF: predicated region fallthrough
CT: control target
= control target key end

     0   :  { %s11809_s12 = smov 0   ;;  %s16341_s0 = inlined_call_operand.vmem [shape: bf16[2,326,4], index: 0, kind: input, shape index: {}]   ;;  %s16342_s1 = inlined_call_operand.vmem [shape: bf16[9,4,8], index: 1, kind: input, shape index: {}]   ;;  %s16343_s2 = inlined_call_operand.vmem [shape: bf16[9,8,8], index: 2, kind: input, shape index: {}]   ;;  %s16344_s3 = inlined_call_operand.vmem [shape: f32[2,8,288], index: 3, kind: output, shape index: {}]  }
   0x1 LB: > { %s9396_s13 = sadd.s32 4294967295, %s11786_s12   ;;  %p9400_p0 = scmp.ge.s32.totalorder %s11786_s12, 1  ;;  %s11786_s12 = sphi %s11809_s12, %s13_s12  }
   0x2   : > { %p137_p1 = scmp.lt.s32.totalorder %s11786_s12, 3 }
   0x4   : > { %p138_p2 = pnand %p9400_p0, %p137_p1 }
   0x6   : > { %141 = sbr.rel (%p138_p2) target bundleno = 2202 (0x89a), region = 32 }
   0xd   : > { %v9403_v0 = vld [vmem:[%s16342_s1 + $0x2] sm:$0x3]  ;;  %vm1158_vm0 = vcmask 1041408   ;;  %p161_p3 = scmp.lt.s32.totalorder %s9396_s13, 1  ;;  %v857_v2 = vld [vmem:[%s16342_s1] sm:$0x3] }
   0xe   : > { %11543 = vmatprep.subr.msk.bf16.mxu0 %vm1158_vm0, %v9403_v0  ;;  %v1160_v1 = vsel %vm1158_vm0, %v9403_v0, 0  ;;  %vm16350_vm1 = vsmask.f32 7424  ;;  %vm1103_vm2 = vcmask 31744   ;;  %v1376_v24 = vsel %vm1158_vm0, %v857_v2, 0 }
   0xf   : > { %10284 = vmatpush3.bf16.msra.mxu0 %v1160_v1  ;;  %s17674_s13 = smov (!%p161_p3, %s9396_s13), 1  ;;  %v11875_v33 = vld [vmem:[%s16342_s1 + $0x4] sm:$0x3]  ;;  %vm16345_vm3 = vcmask 1046528   ;;  %vm16349_vm4 = vsmask.f32 6400 }
  0x10   : > { %11544 = vmatprep.subr.msk.bf16.mxu0 %vm1158_vm0, %v857_v2  ;;  %s11561_s18 = smul.u32 164, %s17674_s13  ;;  %vm16348_vm5 = vcmask 1045504   ;;  %vm16347_vm6 = vsmask.f32 5376  ;;  %vm16346_vm7 = vcmask 1044480   ;;  %vm16351_vm8 = vcmask 60416  }
  0x11   : > { %s11562_s4 = smul.u32 24, %s17674_s13 }
  0x12   : > { %s11832_s21 = scalar_lea.vmem %s16341_s0, %s11561_s18 }
  0x13   : > { %v821_v3 = vld [vmem:[%s11832_s21] sm:$0xf]  ;;  %v11836_v4 = vld [vmem:[%s11832_s21 + $0x4] sm:$0xf]  ;;  %v11842_v6 = vld [vmem:[%s11832_s21 + $0x8] sm:$0xff]   ;;  %s170_s7 = scalar_lea.vmem %s16344_s3, %s11562_s4 }
  0x14   : > { %v11839_v5 = vcombine.low %v821_v3, %v11836_v4  ;;  %v11845_v7 = vld [vmem:[%s11832_s21 + $0x10] sm:$0xff]   ;;  %v963_v10 = vshll.u32 %v11842_v6, 16  ;;  %v967_v11 = vshrl.u32 %v11842_v6, 16  ;;  %v11853_v13 = vld [vmem:[%s11832_s21 + $0x18] sm:$0xff]   ;;  %v11857_v15 = vld [vmem:[%s11832_s21 + $0x20] sm:$0xff]  }
  0x15   : > { %v971_v12 = vshll.u32 %v11845_v7, 16  ;;  %v975_v14 = vshrl.u32 %v11845_v7, 16  ;;  %v979_v19 = vshll.u32 %v11853_v13, 16  ;;  %v987_v22 = vshll.u32 %v11857_v15, 16  ;;  %v11862_v23 = vld [vmem:[%s11832_s21 + $0x28] sm:$0xff]   ;;  %v11879_v35 = vld [vmem:[%s11832_s21 + $0x30] sm:$0xff]  }
  0x16   : > { %v956_v8 = vshrl.u32 %v11839_v5, 16  ;;  %v958_v9 = vshll.u32 %v11839_v5, 16  ;;  %v965_v17 = vrot.slane %v963_v10, 1  ;;  %v983_v27 = vshrl.u32 %v11853_v13, 16  ;;  %v11883_v39 = vld [vmem:[%s11832_s21 + $0x38] sm:$0xff]   ;;  %v11895_v47 = vld [vmem:[%s11832_s21 + $0x40] sm:$0xff]  }
  0x17   : > { %v973_v18 = vrot.slane %v971_v12, 1  ;;  %v981_v26 = vrot.slane %v979_v19, 1  ;;  %v991_v30 = vshrl.u32 %v11857_v15, 16  ;;  %v995_v31 = vshll.u32 %v11862_v23, 16  ;;  %v11898_v48 = vld [vmem:[%s11832_s21 + $0x48] sm:$0xff]   ;;  %v11902_v50 = vld [vmem:[%s11832_s21 + $0x50] sm:$0xff]  }
  0x18   : > { %v960_v16 = vrot.slane %v958_v9, 1  ;;  %v969_v21 = vor.u32 %v967_v11, %v965_v17  ;;  %v989_v34 = vrot.slane %v987_v22, 1  ;;  %v1003_v40 = vshll.u32 %v11879_v35, 16  ;;  %v11905_v53 = vld [vmem:[%s11832_s21 + $0x58] sm:$0xff]   ;;  %v11916_v62 = vld [vmem:[%s11832_s21 + $0x60] sm:$0xff]  }
  0x19   : > { %v977_v25 = vor.u32 %v975_v14, %v973_v18  ;;  %v985_v36 = vor.u32 %v983_v27, %v981_v26  ;;  %v997_v38 = vrot.slane %v995_v31, 1  ;;  %v999_v42 = vshrl.u32 %v11862_v23, 16  ;;  %v11925_v14 = vld [vmem:[%s11832_s21 + $0x68] sm:$0xff]  }
  0x1a   : > { %v961_v20 = vor.u32 %v960_v16, %v956_v8  ;;  %v974_v29 = vsel %vm16350_vm1, %v969_v21, %v973_v18  ;;  %v993_v37 = vor.u32 %v991_v30, %v989_v34  ;;  %v1007_v44 = vshrl.u32 %v11879_v35, 16 }
  0x1b   : > { %v982_v32 = vsel %vm16350_vm1, %v977_v25, %v981_v26  ;;  %v990_v41 = vsel %vm16350_vm1, %v985_v36, %v989_v34  ;;  %v1011_v45 = vshll.u32 %v11883_v39, 16  ;;  %v1005_v46 = vrot.slane %v1003_v40, 1  ;;  %v11935_v25 = vld [vmem:[%s11832_s21 + $0x70] sm:$0xff]   ;;  %v11938_v26 = vld [vmem:[%s11832_s21 + $0x78] sm:$0xff]  }
  0x1c   : > { %v966_v28 = vsel %vm16350_vm1, %v961_v20, %v965_v17  ;;  %v998_v43 = vsel %vm16350_vm1, %v993_v37, %v997_v38  ;;  %v1001_v49 = vor.u32 %v999_v42, %v997_v38  ;;  %v1015_v54 = vshrl.u32 %v11883_v39, 16 }
  0x1d   : > { %10285 = vmatprep.mubr.msk.bf16.mxu0 %vm1103_vm2, %v966_v28  ;;  %v1009_v51 = vor.u32 %v1007_v44, %v1005_v46  ;;  %v1013_v52 = vrot.slane %v1011_v45, 1  ;;  %v1019_v55 = vshll.u32 %v11895_v47, 16  ;;  %v1027_v57 = vshll.u32 %v11898_v48, 16  ;;  %v11955_v45 = vld [vmem:[%s11832_s21 + $0x88] sm:$0xff]  }
  0x1e   : > { %10286 = vmatmul.mubr.msk.bf16.vlgmr.msra.gmra.mrb[0].mxu0 %vm1103_vm2, %v974_v29  ;;  %v1006_v56 = vsel %vm16350_vm1, %v1001_v49, %v1005_v46  ;;  %v1035_v58 = vshll.u32 %v11902_v50, 16  ;;  %v1023_v60 = vshrl.u32 %v11895_v47, 16  ;;  %v1043_v61 = vshll.u32 %v11905_v53, 16 }
  0x1f   : > { %10322 = vmatpush3.bf16.msra.mxu0 %v1376_v24  ;;  %10289 = vmatprep.mubr.msk.bf16.mxu0 %vm1103_vm2, %v982_v32  ;;  %v1014_v59 = vsel %vm16350_vm1, %v1009_v51, %v1013_v52  ;;  %v1017_v63 = vor.u32 %v1015_v54, %v1013_v52  ;;  %v1021_v0 = vrot.slane %v1019_v55, 1  ;;  %v1031_v1 = vshrl.u32 %v11898_v48, 16 }
  0x20   : > { %11545 = vmatprep.subr.msk.bf16.mxu0 %vm1158_vm0, %v11875_v33  ;;  %v1029_v2 = vrot.slane %v1027_v57, 1  ;;  %v1037_v3 = vrot.slane %v1035_v58, 1  ;;  %v1039_v8 = vshrl.u32 %v11902_v50, 16  ;;  %v1047_v9 = vshrl.u32 %v11905_v53, 16 }
  0x21   : > { %v1025_v10 = vor.u32 %v1023_v60, %v1021_v0  ;;  %v1045_v11 = vrot.slane %v1043_v61, 1  ;;  %v1051_v12 = vshll.u32 %v11916_v62, 16  ;;  %v1022_v16 = vsel %vm16350_vm1, %v1017_v63, %v1021_v0  ;;  %v11966_v58 = vld [vmem:[%s11832_s21 + $0x90] ss:$0 sps:$4 sm:$0x11]  }
  0x22   : > { %v1055_v18 = vshrl.u32 %v11916_v62, 16  ;;  %v1059_v19 = vshll.u32 %v11925_v14, 16  ;;  %v1033_v20 = vor.u32 %v1031_v1, %v1029_v2  ;;  %v1063_v22 = vshrl.u32 %v11925_v14, 16 }
  0x23   : > { %v1030_v17 = vsel %vm16350_vm1, %v1025_v10, %v1029_v2  ;;  %v1053_v21 = vrot.slane %v1051_v12, 1  ;;  %v1041_v24 = vor.u32 %v1039_v8, %v1037_v3  ;;  %v1067_v30 = vshll.u32 %v11935_v25, 16  ;;  %v9479_v10 = vld [vmem:[%s16342_s1 + $0x6] sm:$0x3] }
  0x24   : > { %v1038_v27 = vsel %vm16350_vm1, %v1033_v20, %v1037_v3  ;;  %v1061_v29 = vrot.slane %v1059_v19, 1  ;;  %v1049_v31 = vor.u32 %v1047_v9, %v1045_v11  ;;  %v1071_v32 = vshrl.u32 %v11935_v25, 16 }
  0x25   : > { %v1046_v28 = vsel %vm16350_vm1, %v1041_v24, %v1045_v11  ;;  %v1075_v34 = vshll.u32 %v11938_v26, 16  ;;  %v1057_v36 = vor.u32 %v1055_v18, %v1053_v21  ;;  %v1069_v40 = vrot.slane %v1067_v30, 1 }
  0x26   : > { %10290 = vmatmul.mubr.msk.bf16.gmra.mrb[4].mxu0 %vm1103_vm2, %v990_v41  ;;  %v1054_v37 = vsel %vm16350_vm1, %v1049_v31, %v1053_v21  ;;  %v11951_v41 = vld [vmem:[%s11832_s21 + $0x80] sm:$0xff]   ;;  %v1065_v42 = vor.u32 %v1063_v22, %v1061_v29  ;;  %v1079_v51 = vshrl.u32 %v11938_v26, 16  ;;  %v1091_v55 = vshll.u32 %v11955_v45, 16 }
  0x27   : > { %10293 = vmatprep.mubr.msk.bf16.mxu0 %vm1103_vm2, %v998_v43  ;;  %v1062_v38 = vsel %vm16350_vm1, %v1057_v36, %v1061_v29  ;;  %v1073_v43 = vor.u32 %v1071_v32, %v1069_v40  ;;  %v1077_v44 = vrot.slane %v1075_v34, 1  ;;  %v1083_v46 = vshll.u32 %v11951_v41, 16 }
  0x28   : > { %v1070_v49 = vsel %vm16350_vm1, %v1065_v42, %v1069_v40  ;;  %v1087_v54 = vshrl.u32 %v11951_v41, 16  ;;  %v1093_v60 = vrot.slane %v1091_v55, 1  ;;  %v1095_v63 = vshrl.u32 %v11955_v45, 16  ;;  %v1869_v42 = vld [vmem:[%s11832_s21 + $0x8] sm:$0xe]  ;;  %v12098_v55 = vld [vmem:[%s11832_s21 + $0x20] sm:$0xff]  }
  0x29   : > { %v1078_v52 = vsel %vm16350_vm1, %v1073_v43, %v1077_v44  ;;  %v1081_v57 = vor.u32 %v1079_v51, %v1077_v44  ;;  %v1099_v0 = vshll.u32 %v11966_v58, 16  ;;  %v1654_v9 = vsel %vm1158_vm0, %v11875_v33, 0  ;;  %v12077_v43 = vld [vmem:[%s11832_s21 + $0xc] sm:$0xf] }
  0x2a   : > { %v1097_v2 = vor.u32 %v1095_v63, %v1093_v60  ;;  %v1563_v12 = vrot.slane %v11842_v6, 1  ;;  %v2093_v19 = vsel %vm1158_vm0, %v9479_v10, 0  ;;  %v1573_v24 = vrot.slane %v11879_v35, 1  ;;  %v12112_v63 = vld [vmem:[%s11832_s21 + $0x30] sm:$0xff]  }
  0x2b   : > { %v1101_v3 = vrot.slane %v1099_v0, 1  ;;  %v1579_v29 = vrot.slane %v11898_v48, 1  ;;  %v12082_v44 = vcombine.low %v1869_v42, %v12077_v43  ;;  %v12117_v0 = vld [vmem:[%s16342_s1 + $0xa] sm:$0x3] }
  0x2d   : > { %v1102_v8 = vsel %vm16350_vm1, %v1097_v2, %v1101_v3  ;;  %v2010_v2 = vrot.slane %v12112_v63, 1 }
  0x2e   : > { %10294 = vmatmul.mubr.msk.bf16.gmra.mrb[8].mxu0 %vm1103_vm2, %v1006_v56  ;;  %v1085_v56 = vrot.slane %v1083_v46, 1  ;;  %v12085_v46 = vld [vmem:[%s11832_s21 + $0x10] sm:$0xff]  }
  0x2f   : > { %10297 = vmatprep.mubr.msk.bf16.mxu0 %vm1103_vm2, %v1014_v59 }
  0x30   : > { %v1089_v59 = vor.u32 %v1087_v54, %v1085_v56  ;;  %v1086_v61 = vsel %vm16350_vm1, %v1081_v57, %v1085_v56  ;;  %v2006_v57 = vrot.slane %v12098_v55, 1 }
  0x32   : > { %v1094_v1 = vsel %vm16350_vm1, %v1089_v59, %v1093_v60  ;;  %v12106_v59 = vld [vmem:[%s11832_s21 + $0x28] sm:$0xff]  }
  0x36   : > { %10298 = vmatmul.mubr.msk.bf16.gmra.mrb[12].mxu0 %vm1103_vm2, %v1022_v16 }
  0x37   : > { %10301 = vmatprep.mubr.msk.bf16.mxu0 %vm1103_vm2, %v1030_v17  ;;  %v1565_v17 = vrot.slane %v11845_v7, 1 }
  0x39   : > { %v1566_v18 = vsel %vm16345_vm3, %v1563_v12, %v1565_v17 }
  0x3e   : > { %10302 = vmatmul.mubr.msk.bf16.gmra.mrb[16].mxu0 %vm1103_vm2, %v1038_v27  ;;  %v1575_v27 = vrot.slane %v11883_v39, 1 }
  0x3f   : > { %10305 = vmatprep.mubr.msk.bf16.mxu0 %vm1103_vm2, %v1046_v28 }
  0x46   : > { %10306 = vmatmul.mubr.msk.bf16.gmra.mrb[20].mxu0 %vm1103_vm2, %v1054_v37  ;;  %v1591_v37 = vrot.slane %v11938_v26, 1 }
  0x47   : > { %10309 = vmatprep.mubr.msk.bf16.mxu0 %vm1103_vm2, %v1062_v38 }
  0x4e   : > { %10310 = vmatmul.mubr.msk.bf16.gmra.mrb[24].mxu0 %vm1103_vm2, %v1070_v49  ;;  %v2002_v49 = vrot.slane %v12085_v46, 1 }
  0x4f   : > { %10313 = vmatprep.mubr.msk.bf16.mxu0 %vm1103_vm2, %v1078_v52  ;;  %v12094_v52 = vld [vmem:[%s11832_s21 + $0x18] sm:$0xff]  }
  0x50   : > { %v2004_v56 = vrot.slane %v12094_v52, 1 }
  0x56   : > { %10314 = vmatmul.mubr.msk.bf16.gmra.mrb[28].mxu0 %vm1103_vm2, %v1086_v61  ;;  %v2007_v61 = vsel %vm16345_vm3, %v2004_v56, %v2006_v57 }
  0x57   : > { %10317 = vmatprep.mubr.msk.bf16.mxu0 %vm1103_vm2, %v1094_v1  ;;  %v2008_v1 = vrot.slane %v12106_v59, 1 }
  0x59   : > { %v2009_v3 = vsel %vm16345_vm3, %v2006_v57, %v2008_v1 }
  0x5e   : > { %10318 = vmatmul.mubr.msk.bf16.gmra.mrb[32].mxu0 %vm1103_vm2, %v1102_v8  ;;  %v12127_v8 = vld [vmem:[%s11832_s21 + $0x38] sm:$0xff]  }
  0x5f   : > { %10323 = vmatprep.mubr.msk.bf16.mxu0 %vm1103_vm2, %v11839_v5  ;;  %v1555_v5 = vld [vmem:[%s11832_s21] sm:$0xe] }
  0x60   : > { %v9460_v33 = vcombine.low %v1555_v5, %v11836_v4  ;;  %v1567_v4 = vrot.slane %v11853_v13, 1  ;;  %v2012_v5 = vrot.slane %v12127_v8, 1 }
  0x62   : > { %v1562_v11 = vrot.slane %v9460_v33, 1  ;;  %v1568_v20 = vsel %vm16345_vm3, %v1565_v17, %v1567_v4  ;;  %v12143_v17 = vld [vmem:[%s11832_s21 + $0x50] sm:$0xff]  }
  0x64   : > { %v1564_v16 = vsel %vm16345_vm3, %v1562_v11, %v1563_v12  ;;  %v2013_v11 = vsel %vm16345_vm3, %v2010_v2, %v2012_v5  ;;  %v12139_v12 = vld [vmem:[%s11832_s21 + $0x48] sm:$0xff]  }
  0x66   : > { %10324 = vmatmul.mubr.msk.bf16.vlgmr.msra.gmra.mrb[0].mxu0 %vm1103_vm2, %v11842_v6  ;;  %v12031_v6 = vld [vmem:[%s16342_s1 + $0x8] sm:$0x3] }
  0x67   : > { %10360 = vmatpush3.bf16.msra.mxu0 %v1654_v9  ;;  %10327 = vmatprep.mubr.msk.bf16.mxu0 %vm1103_vm2, %v11845_v7  ;;  %v1569_v7 = vrot.slane %v11857_v15, 1  ;;  %v2540_v60 = vsel %vm1158_vm0, %v12031_v6, 0  ;;  %v2011_v9 = vsel %vm16345_vm3, %v2008_v1, %v2010_v2 }
  0x68   : > { %11546 = vmatprep.subr.msk.bf16.mxu0 %vm1158_vm0, %v9479_v10  ;;  %v12131_v10 = vld [vmem:[%s11832_s21 + $0x40] sm:$0xff]  }
  0x69   : > { %v1570_v21 = vsel %vm16345_vm3, %v1567_v4, %v1569_v7  ;;  %v2014_v33 = vrot.slane %v12131_v10, 1  ;;  %v2016_v4 = vrot.slane %v12139_v12, 1 }
  0x6e   : > { %10328 = vmatmul.mubr.msk.bf16.gmra.mrb[4].mxu0 %vm1103_vm2, %v11853_v13  ;;  %v1571_v13 = vrot.slane %v11862_v23, 1 }
  0x6f   : > { %10331 = vmatprep.mubr.msk.bf16.mxu0 %vm1103_vm2, %v11857_v15  ;;  %v1576_v15 = vsel %vm16345_vm3, %v1573_v24, %v1575_v27 }
  0x70   : > { %v1572_v22 = vsel %vm16345_vm3, %v1569_v7, %v1571_v13  ;;  %v1574_v28 = vsel %vm16345_vm3, %v1571_v13, %v1573_v24  ;;  %v12155_v7 = vld [vmem:[%s11832_s21 + $0x60] sm:$0xff]   ;;  %v12163_v24 = vld [vmem:[%s11832_s21 + $0x68] sm:$0xff]  }
  0x76   : > { %10332 = vmatmul.mubr.msk.bf16.gmra.mrb[8].mxu0 %vm1103_vm2, %v11862_v23  ;;  %v1577_v23 = vrot.slane %v11895_v47, 1 }
  0x77   : > { %10335 = vmatprep.mubr.msk.bf16.mxu0 %vm1103_vm2, %v11879_v35  ;;  %v1581_v35 = vrot.slane %v11902_v50, 1 }
  0x78   : > { %v1578_v30 = vsel %vm16345_vm3, %v1575_v27, %v1577_v23  ;;  %v1580_v31 = vsel %vm16345_vm3, %v1577_v23, %v1579_v29 }
  0x79   : > { %v1582_v32 = vsel %vm16345_vm3, %v1579_v29, %v1581_v35 }
  0x7e   : > { %10336 = vmatmul.mubr.msk.bf16.gmra.mrb[12].mxu0 %vm1103_vm2, %v11883_v39  ;;  %v1583_v39 = vrot.slane %v11905_v53, 1 }
  0x7f   : > { %10339 = vmatprep.mubr.msk.bf16.mxu0 %vm1103_vm2, %v11895_v47  ;;  %v1585_v47 = vrot.slane %v11916_v62, 1 }
  0x80   : > { %v1584_v34 = vsel %vm16345_vm3, %v1581_v35, %v1583_v39  ;;  %v12179_v35 = vld [vmem:[%s11832_s21 + $0x80] sm:$0xff]  }
  0x81   : > { %v1586_v36 = vsel %vm16345_vm3, %v1583_v39, %v1585_v47 }
  0x86   : > { %10340 = vmatmul.mubr.msk.bf16.gmra.mrb[16].mxu0 %vm1103_vm2, %v11898_v48  ;;  %v1587_v48 = vrot.slane %v11925_v14, 1 }
  0x87   : > { %10343 = vmatprep.mubr.msk.bf16.mxu0 %vm1103_vm2, %v11902_v50 }
  0x88   : > { %v1588_v50 = vsel %vm16345_vm3, %v1585_v47, %v1587_v48  ;;  %v12187_v47 = vld [vmem:[%s11832_s21 + $0x88] sm:$0xff]  }
  0x8e   : > { %10344 = vmatmul.mubr.msk.bf16.gmra.mrb[20].mxu0 %vm1103_vm2, %v11905_v53  ;;  %v1589_v53 = vrot.slane %v11935_v25, 1 }
  0x8f   : > { %10347 = vmatprep.mubr.msk.bf16.mxu0 %vm1103_vm2, %v11916_v62  ;;  %v1593_v62 = vrot.slane %v11951_v41, 1 }
  0x90   : > { %v1590_v38 = vsel %vm16345_vm3, %v1587_v48, %v1589_v53  ;;  %v1592_v40 = vsel %vm16345_vm3, %v1589_v53, %v1591_v37  ;;  %v12190_v48 = vld [vmem:[%s11832_s21 + $0x90] sm:$0xff]  }
  0x91   : > { %v2034_v53 = vrot.slane %v12190_v48, 1 }
  0x96   : > { %10348 = vmatmul.mubr.msk.bf16.gmra.mrb[24].mxu0 %vm1103_vm2, %v11925_v14  ;;  %v1595_v14 = vrot.slane %v11955_v45, 1 }
  0x97   : > { %10351 = vmatprep.mubr.msk.bf16.mxu0 %vm1103_vm2, %v11935_v25  ;;  %v1594_v25 = vsel %vm16345_vm3, %v1591_v37, %v1593_v62  ;;  %v2316_v37 = vshrl.u32 %v12082_v44, 16 }
  0x9e   : > { %10352 = vmatmul.mubr.msk.bf16.gmra.mrb[28].mxu0 %vm1103_vm2, %v11938_v26  ;;  %v1596_v26 = vsel %vm16345_vm3, %v1593_v62, %v1595_v14  ;;  %v2327_v62 = vshll.u32 %v12085_v46, 16 }
  0x9f   : > { %10355 = vmatprep.mubr.msk.bf16.mxu0 %vm1103_vm2, %v11951_v41  ;;  %v1597_v41 = vrot.slane %v11966_v58, 1  ;;  %v2005_v58 = vsel %vm16345_vm3, %v2002_v49, %v2004_v56 }
  0xa1   : > { %v1598_v51 = vsel %vm16345_vm3, %v1595_v14, %v1597_v41 }
  0xa6   : > { %10356 = vmatmul.mubr.msk.bf16.gmra.mrb[32].mxu0 %vm1103_vm2, %v11955_v45  ;;  %v2001_v45 = vrot.slane %v12082_v44, 1 }
  0xa7   : > { %10361 = vmatprep.mubr.msk.bf16.mxu0 %vm1103_vm2, %v1564_v16  ;;  %v2015_v16 = vsel %vm16345_vm3, %v2012_v5, %v2014_v33 }
  0xa8   : > { %v2003_v54 = vsel %vm16345_vm3, %v2001_v45, %v2002_v49  ;;  %v2329_v49 = vrot.slane %v2327_v62, 2 }
  0xae   : > { %10362 = vmatmul.mubr.msk.bf16.vlgmr.msra.gmra.mrb[0].mxu0 %vm1103_vm2, %v1566_v18  ;;  %v2018_v18 = vrot.slane %v12143_v17, 1 }
  0xaf   : > { %10398 = vmatpush3.bf16.msra.mxu0 %v2093_v19  ;;  %10365 = vmatprep.mubr.msk.bf16.mxu0 %vm1103_vm2, %v1568_v20  ;;  %v2017_v19 = vsel %vm16345_vm3, %v2014_v33, %v2016_v4  ;;  %v12151_v20 = vld [vmem:[%s11832_s21 + $0x58] sm:$0xff]  }
  0xb0   : > { %11547 = vmatprep.subr.msk.bf16.mxu0 %vm1158_vm0, %v12031_v6  ;;  %v2019_v6 = vsel %vm16345_vm3, %v2016_v4, %v2018_v18  ;;  %v2020_v13 = vrot.slane %v12151_v20, 1 }
  0xb6   : > { %10366 = vmatmul.mubr.msk.bf16.gmra.mrb[4].mxu0 %vm1103_vm2, %v1570_v21  ;;  %v2022_v21 = vrot.slane %v12155_v7, 1 }
  0xb7   : > { %10369 = vmatprep.mubr.msk.bf16.mxu0 %vm1103_vm2, %v1572_v22  ;;  %v2021_v22 = vsel %vm16345_vm3, %v2018_v18, %v2020_v13  ;;  %v2360_v18 = vshrl.u32 %v12112_v63, 16 }
  0xb8   : > { %v2023_v27 = vsel %vm16345_vm3, %v2020_v13, %v2022_v21 }
  0xbe   : > { %10370 = vmatmul.mubr.msk.bf16.gmra.mrb[8].mxu0 %vm1103_vm2, %v1574_v28  ;;  %v12167_v28 = vld [vmem:[%s11832_s21 + $0x70] sm:$0xff]  }
  0xbf   : > { %10373 = vmatprep.mubr.msk.bf16.mxu0 %vm1103_vm2, %v1576_v15  ;;  %v2024_v15 = vrot.slane %v12163_v24, 1  ;;  %v2026_v23 = vrot.slane %v12167_v28, 1 }
  0xc1   : > { %v2025_v29 = vsel %vm16345_vm3, %v2022_v21, %v2024_v15 }
  0xc6   : > { %10374 = vmatmul.mubr.msk.bf16.gmra.mrb[12].mxu0 %vm1103_vm2, %v1578_v30  ;;  %v12175_v30 = vld [vmem:[%s11832_s21 + $0x78] sm:$0xff]  }
  0xc7   : > { %10377 = vmatprep.mubr.msk.bf16.mxu0 %vm1103_vm2, %v1580_v31  ;;  %v2027_v31 = vsel %vm16345_vm3, %v2024_v15, %v2026_v23  ;;  %v2028_v39 = vrot.slane %v12175_v30, 1  ;;  %v2362_v15 = vrot.slane %v2360_v18, 1 }
  0xce   : > { %10378 = vmatmul.mubr.msk.bf16.gmra.mrb[16].mxu0 %vm1103_vm2, %v1582_v32  ;;  %v2030_v32 = vrot.slane %v12179_v35, 1 }
  0xcf   : > { %10381 = vmatprep.mubr.msk.bf16.mxu0 %vm1103_vm2, %v1584_v34  ;;  %v2029_v34 = vsel %vm16345_vm3, %v2026_v23, %v2028_v39 }
  0xd6   : > { %10382 = vmatmul.mubr.msk.bf16.gmra.mrb[20].mxu0 %vm1103_vm2, %v1586_v36  ;;  %v2031_v36 = vsel %vm16345_vm3, %v2028_v39, %v2030_v32  ;;  %v2369_v39 = vshrl.u32 %v12127_v8, 16 }
  0xd7   : > { %10385 = vmatprep.mubr.msk.bf16.mxu0 %vm1103_vm2, %v1588_v50  ;;  %v2032_v50 = vrot.slane %v12187_v47, 1 }
  0xd9   : > { %v2033_v14 = vsel %vm16345_vm3, %v2030_v32, %v2032_v50  ;;  %v2035_v42 = vsel %vm16345_vm3, %v2032_v50, %v2034_v53  ;;  %v2372_v32 = vshll.u32 %v12127_v8, 16 }
  0xde   : > { %10386 = vmatmul.mubr.msk.bf16.gmra.mrb[24].mxu0 %vm1103_vm2, %v1590_v38  ;;  %v2319_v38 = vshll.u32 %v12082_v44, 16  ;;  %v2333_v44 = vshrl.u32 %v12094_v52, 16 }
  0xdf   : > { %10389 = vmatprep.mubr.msk.bf16.mxu0 %vm1103_vm2, %v1592_v40  ;;  %v2324_v40 = vshrl.u32 %v12085_v46, 16 }
  0xe0   : > { %v2321_v41 = vrot.slane %v2319_v38, 2  ;;  %v2335_v1 = vrot.slane %v2333_v44, 1 }
  0xe1   : > { %v2326_v45 = vrot.slane %v2324_v40, 1 }
  0xe3   : > { %v2330_v57 = vor.u32 %v2329_v49, %v2326_v45  ;;  %v2399_v45 = vshll.u32 %v12143_v17, 16 }
  0xe6   : > { %10390 = vmatmul.mubr.msk.bf16.gmra.mrb[28].mxu0 %vm1103_vm2, %v1594_v25  ;;  %v11683_v25 = vld [vmem:[%s11832_s21 + $0x98] ss:$0 sps:$4 sm:$0x11]  }
  0xe7   : > { %10393 = vmatprep.mubr.msk.bf16.mxu0 %vm1103_vm2, %v1596_v26  ;;  %v2318_v26 = vrot.slane %v2316_v37, 1  ;;  %v2374_v37 = vrot.slane %v2372_v32, 2 }
  0xe9   : > { %v2322_v56 = vor.u32 %v2321_v41, %v2318_v26  ;;  %v2396_v41 = vshrl.u32 %v12143_v17, 16 }
  0xee   : > { %10394 = vmatmul.mubr.msk.bf16.gmra.mrb[32].mxu0 %vm1103_vm2, %v1598_v51  ;;  %v2036_v51 = vrot.slane %v11683_v25, 1  ;;  %v2390_v25 = vshll.u32 %v12139_v12, 16 }
  0xef   : > { %10399 = vmatprep.mubr.msk.bf16.mxu0 %vm1103_vm2, %v2003_v54  ;;  %v2336_v54 = vshll.u32 %v12094_v52, 16 }
  0xf0   : > { %v2392_v44 = vrot.slane %v2390_v25, 2 }
  0xf1   : > { %v2338_v2 = vrot.slane %v2336_v54, 2 }
  0xf3   : > { %v2339_v33 = vor.u32 %v2338_v2, %v2335_v1  ;;  %v2414_v2 = vshrl.u32 %v12155_v7, 16 }
  0xf6   : > { %10400 = vmatmul.mubr.msk.bf16.vlgmr.msra.gmra.mrb[0].mxu0 %vm1103_vm2, %v2005_v58  ;;  %v2342_v58 = vshrl.u32 %v12098_v55, 16 }
  0xf7   : > { %10436 = vmatpush3.bf16.msra.mxu0 %v2540_v60  ;;  %10403 = vmatprep.mubr.msk.bf16.mxu0 %vm1103_vm2, %v2007_v61  ;;  %v2345_v60 = vshll.u32 %v12098_v55, 16  ;;  %v2037_v61 = vsel %vm16345_vm3, %v2034_v53, %v2036_v51  ;;  %v2371_v53 = vrot.slane %v2369_v39, 1 }
  0xf8   : > { %11548 = vmatprep.subr.msk.bf16.mxu0 %vm1158_vm0, %v12117_v0 }
  0xf9   : > { %v2347_v5 = vrot.slane %v2345_v60, 2  ;;  %v2405_v60 = vshrl.u32 %v12151_v20, 16 }
  0xfe   : > { %10404 = vmatmul.mubr.msk.bf16.gmra.mrb[4].mxu0 %vm1103_vm2, %v2009_v3  ;;  %v2331_v3 = vsel %vm16349_vm4, %v2322_v56, %v2330_v57  ;;  %v2398_v56 = vrot.slane %v2396_v41, 1  ;;  %v2459_v41 = vshrl.u32 %v12187_v47, 16 }
  0xff   : > { %10407 = vmatprep.mubr.msk.bf16.mxu0 %vm1103_vm2, %v2011_v9  ;;  %v2344_v9 = vrot.slane %v2342_v58, 1 }
 0x101   : > { %v2348_v4 = vor.u32 %v2347_v5, %v2344_v9  ;;  %v2407_v5 = vrot.slane %v2405_v60, 1 }
 0x106   : > { %10408 = vmatmul.mubr.msk.bf16.gmra.mrb[8].mxu0 %vm1103_vm2, %v2013_v11  ;;  %v2351_v11 = vshrl.u32 %v12106_v59, 16 }
 0x107   : > { %10411 = vmatprep.mubr.msk.bf16.mxu0 %vm1103_vm2, %v2015_v16  ;;  %v2354_v16 = vshll.u32 %v12106_v59, 16 }
 0x108   : > { %v2353_v13 = vrot.slane %v2351_v11, 1 }
 0x109   : > { %v2356_v21 = vrot.slane %v2354_v16, 2  ;;  %v2416_v16 = vrot.slane %v2414_v2, 1 }
 0x10e   : > { %10412 = vmatmul.mubr.msk.bf16.gmra.mrb[12].mxu0 %vm1103_vm2, %v2017_v19  ;;  %v2363_v19 = vshll.u32 %v12112_v63, 16 }
 0x10f   : > { %10415 = vmatprep.mubr.msk.bf16.mxu0 %vm1103_vm2, %v2019_v6  ;;  %v2340_v6 = vsel %vm16349_vm4, %v2330_v57, %v2339_v33  ;;  %v2401_v57 = vrot.slane %v2399_v45, 2  ;;  %v2462_v45 = vshll.u32 %v12187_v47, 16 }
 0x110   : > { %v2365_v23 = vrot.slane %v2363_v19, 2  ;;  %v2423_v19 = vshrl.u32 %v12163_v24, 16 }
 0x111   : > { %v2402_v1 = vor.u32 %v2401_v57, %v2398_v56  ;;  %v2461_v56 = vrot.slane %v2459_v41, 1  ;;  %v2464_v57 = vrot.slane %v2462_v45, 2  ;;  %v12350_v41 = vld [vmem:[%s11832_s21 + $0x14] sm:$0xf] }
 0x113   : > { %v2465_v2 = vor.u32 %v2464_v57, %v2461_v56  ;;  %v12371_v57 = vld [vmem:[%s11832_s21 + $0x28] sm:$0xff]  }
 0x116   : > { %10416 = vmatmul.mubr.msk.bf16.gmra.mrb[16].mxu0 %vm1103_vm2, %v2021_v22  ;;  %v2854_v22 = vsel %vm1158_vm0, %v12117_v0, 0  ;;  %v2366_v0 = vor.u32 %v2365_v23, %v2362_v15  ;;  %v2425_v15 = vrot.slane %v2423_v19, 1 }
 0x117   : > { %10419 = vmatprep.mubr.msk.bf16.mxu0 %vm1103_vm2, %v2023_v27  ;;  %v2349_v27 = vsel %vm16349_vm4, %v2339_v33, %v2348_v4 }
 0x11e   : > { %10420 = vmatmul.mubr.msk.bf16.gmra.mrb[20].mxu0 %vm1103_vm2, %v2025_v29  ;;  %v12225_v29 = vld [vmem:[%s16342_s1 + $0xc] sm:$0x3] }
 0x11f   : > { %10423 = vmatprep.mubr.msk.bf16.mxu0 %vm1103_vm2, %v2027_v31  ;;  %v2357_v31 = vor.u32 %v2356_v21, %v2353_v13  ;;  %v2432_v21 = vshrl.u32 %v12167_v28, 16 }
 0x121   : > { %v2358_v50 = vsel %vm16349_vm4, %v2348_v4, %v2357_v31  ;;  %v2367_v38 = vsel %vm16349_vm4, %v2357_v31, %v2366_v0  ;;  %v2434_v39 = vrot.slane %v2432_v21, 1  ;;  %v2763_v21 = vrot.slane %v12085_v46, 2 }
 0x126   : > { %10424 = vmatmul.mubr.msk.bf16.gmra.mrb[24].mxu0 %vm1103_vm2, %v2029_v34  ;;  %v2378_v34 = vshrl.u32 %v12131_v10, 16 }
 0x127   : > { %10427 = vmatprep.mubr.msk.bf16.mxu0 %vm1103_vm2, %v2031_v36  ;;  %v2381_v36 = vshll.u32 %v12131_v10, 16 }
 0x128   : > { %v2380_v40 = vrot.slane %v2378_v34, 1  ;;  %v2441_v34 = vshrl.u32 %v12175_v30, 16 }
 0x129   : > { %v2383_v62 = vrot.slane %v2381_v36, 2  ;;  %v2444_v36 = vshll.u32 %v12175_v30, 16 }
 0x12b   : > { %v2384_v26 = vor.u32 %v2383_v62, %v2380_v40  ;;  %v2443_v40 = vrot.slane %v2441_v34, 1  ;;  %v2446_v62 = vrot.slane %v2444_v36, 2  ;;  %v2775_v34 = vrot.slane %v12131_v10, 2 }
 0x12c   : > { %v2783_v10 = vrot.slane %v12155_v7, 2 }
 0x12e   : > { %10428 = vmatmul.mubr.msk.bf16.gmra.mrb[28].mxu0 %vm1103_vm2, %v2033_v14  ;;  %v2375_v14 = vor.u32 %v2374_v37, %v2371_v53  ;;  %v2450_v53 = vshrl.u32 %v12179_v35, 16  ;;  %v2453_v37 = vshll.u32 %v12179_v35, 16 }
 0x12f   : > { %10431 = vmatprep.mubr.msk.bf16.mxu0 %vm1103_vm2, %v2035_v42  ;;  %v2387_v42 = vshrl.u32 %v12139_v12, 16 }
 0x130   : > { %v2376_v49 = vsel %vm16349_vm4, %v2366_v0, %v2375_v14  ;;  %v2385_v54 = vsel %vm16349_vm4, %v2375_v14, %v2384_v26  ;;  %v2455_v25 = vrot.slane %v2453_v37, 2 }
 0x131   : > { %v2389_v51 = vrot.slane %v2387_v42, 1  ;;  %v2452_v42 = vrot.slane %v2450_v53, 1 }
 0x133   : > { %v2393_v58 = vor.u32 %v2392_v44, %v2389_v51  ;;  %v2468_v51 = vshrl.u32 %v12190_v48, 16  ;;  %v2471_v44 = vshll.u32 %v12190_v48, 16 }
 0x135   : > { %v2394_v9 = vsel %vm16349_vm4, %v2384_v26, %v2393_v58  ;;  %v2403_v11 = vsel %vm16349_vm4, %v2393_v58, %v2402_v1  ;;  %v2447_v26 = vor.u32 %v2446_v62, %v2443_v40  ;;  %v12277_v58 = vld [vmem:[%s11832_s21 + $0x98] ss:$0 sps:$4 sm:$0x33]  }
 0x136   : > { %10432 = vmatmul.mubr.msk.bf16.gmra.mrb[32].mxu0 %vm1103_vm2, %v2037_v61  ;;  %v2408_v61 = vshll.u32 %v12151_v20, 16 }
 0x137   : > { %10437 = vmatprep.mubr.msk.bf16.mxu0 %vm1103_vm2, %v2331_v3  ;;  %v2417_v3 = vshll.u32 %v12155_v7, 16  ;;  %v2789_v7 = vrot.slane %v12175_v30, 2 }
 0x138   : > { %v2410_v33 = vrot.slane %v2408_v61, 2  ;;  %v2470_v61 = vrot.slane %v2468_v51, 1 }
 0x139   : > { %v2419_v4 = vrot.slane %v2417_v3, 2  ;;  %v2477_v3 = vshrl.u32 %v12277_v58, 16 }
 0x13a   : > { %v2411_v18 = vor.u32 %v2410_v33, %v2407_v5  ;;  %v2755_v33 = vld [vmem:[%s11832_s21 + $0x8] sm:$0xc] }
 0x13b   : > { %v2420_v13 = vor.u32 %v2419_v4, %v2416_v16  ;;  %v2479_v16 = vrot.slane %v2477_v3, 1  ;;  %v9538_v19 = vcombine.low %v2755_v33, %v12077_v43  ;;  %v2767_v43 = vrot.slane %v12098_v55, 2 }
 0x13c   : > { %v2771_v55 = vrot.slane %v12112_v63, 2  ;;  %v2777_v63 = vrot.slane %v12139_v12, 2  ;;  %v2785_v12 = vrot.slane %v12163_v24, 2 }
 0x13d   : > { %v2421_v31 = vsel %vm16349_vm4, %v2411_v18, %v2420_v13 }
 0x13e   : > { %10438 = vmatmul.mubr.msk.bf16.vlgmr.msra.gmra.mrb[0].mxu0 %vm1103_vm2, %v2340_v6  ;;  %v2426_v6 = vshll.u32 %v12163_v24, 16  ;;  %v2778_v53 = vsel %vm16348_vm5, %v2775_v34, %v2777_v63  ;;  %v2786_v62 = vsel %vm16348_vm5, %v2783_v10, %v2785_v12  ;;  %v2793_v24 = vrot.slane %v12187_v47, 2 }
 0x13f   : > { %10474 = vmatpush3.bf16.msra.mxu0 %v2854_v22  ;;  %10441 = vmatprep.mubr.msk.bf16.mxu0 %vm1103_vm2, %v2349_v27  ;;  %v2435_v22 = vshll.u32 %v12167_v28, 16  ;;  %v2412_v27 = vsel %vm16349_vm4, %v2402_v1, %v2411_v18  ;;  %v2473_v1 = vrot.slane %v2471_v44, 2  ;;  %v2797_v47 = vrot.slane %v12277_v58, 2 }
 0x140   : > { %11549 = vmatprep.subr.msk.bf16.mxu0 %vm1158_vm0, %v12225_v29  ;;  %v2428_v23 = vrot.slane %v2426_v6, 2 }
 0x141   : > { %v2437_v32 = vrot.slane %v2435_v22, 2  ;;  %v2474_v5 = vor.u32 %v2473_v1, %v2470_v61  ;;  %v12379_v1 = vld [vmem:[%s11832_s21 + $0x30] sm:$0xff]  }
 0x142   : > { %v2429_v0 = vor.u32 %v2428_v23, %v2425_v15  ;;  %v2765_v15 = vrot.slane %v12094_v52, 2  ;;  %v2769_v52 = vrot.slane %v12106_v59, 2  ;;  %v3208_v33 = vrot.slane %v12379_v1, 2 }
 0x143   : > { %v2475_v18 = vsel %vm16349_vm4, %v2465_v2, %v2474_v5 }
 0x144   : > { %v2766_v23 = vsel %vm16348_vm5, %v2763_v21, %v2765_v15  ;;  %v2768_v46 = vsel %vm16348_vm5, %v2765_v15, %v2767_v43  ;;  %v12416_v15 = vld [vmem:[%s11832_s21 + $0x58] sm:$0xff]  }
 0x146   : > { %10442 = vmatmul.mubr.msk.bf16.gmra.mrb[4].mxu0 %vm1103_vm2, %v2358_v50  ;;  %v2438_v50 = vor.u32 %v2437_v32, %v2434_v39  ;;  %v12304_v39 = vld [vmem:[%s16342_s1 + $0xe] sm:$0x3]  ;;  %v2772_v32 = vsel %vm16348_vm5, %v2769_v52, %v2771_v55 }
 0x147   : > { %10445 = vmatprep.mubr.msk.bf16.mxu0 %vm1103_vm2, %v2367_v38  ;;  %v2430_v38 = vsel %vm16349_vm4, %v2420_v13, %v2429_v0  ;;  %v2762_v13 = vrot.slane %v9538_v19, 2  ;;  %v12404_v19 = vld [vmem:[%s11832_s21 + $0x48] sm:$0xff]  }
 0x148   : > { %v2439_v14 = vsel %vm16349_vm4, %v2429_v0, %v2438_v50  ;;  %v2773_v0 = vrot.slane %v12127_v8, 2  ;;  %v2781_v8 = vrot.slane %v12151_v20, 2 }
 0x14a   : > { %v2774_v36 = vsel %vm16348_vm5, %v2771_v55, %v2773_v0  ;;  %v2776_v59 = vsel %vm16348_vm5, %v2773_v0, %v2775_v34  ;;  %v2784_v40 = vsel %vm16348_vm5, %v2781_v8, %v2783_v10  ;;  %v12436_v0 = vld [vmem:[%s11832_s21 + $0x70] sm:$0xff]  }
 0x14e   : > { %10446 = vmatmul.mubr.msk.bf16.gmra.mrb[8].mxu0 %vm1103_vm2, %v2376_v49  ;;  %v2456_v49 = vor.u32 %v2455_v25, %v2452_v42 }
 0x14f   : > { %10449 = vmatprep.mubr.msk.bf16.mxu0 %vm1103_vm2, %v2385_v54  ;;  %v2448_v54 = vsel %vm16349_vm4, %v2438_v50, %v2447_v26  ;;  %v2779_v50 = vrot.slane %v12143_v17, 2  ;;  %v2787_v17 = vrot.slane %v12167_v28, 2  ;;  %v2795_v28 = vrot.slane %v12190_v48, 2 }
 0x150   : > { %v2457_v60 = vsel %vm16349_vm4, %v2447_v26, %v2456_v49  ;;  %v3069_v26 = vld [vmem:[%s11832_s21 + $0x10] sm:$0xc] }
 0x151   : > { %v2780_v37 = vsel %vm16348_vm5, %v2777_v63, %v2779_v50  ;;  %v2788_v20 = vsel %vm16348_vm5, %v2785_v12, %v2787_v17  ;;  %v2790_v42 = vsel %vm16348_vm5, %v2787_v17, %v2789_v7  ;;  %v12355_v45 = vcombine.low %v3069_v26, %v12350_v41  ;;  %v12460_v12 = vld [vmem:[%s11832_s21 + $0x90] sm:$0xff]   ;;  %v12463_v17 = vld [vmem:[%s11832_s21 + $0x98] sm:$0xff]  }
 0x152   : > { %v2798_v44 = vsel %vm16348_vm5, %v2795_v28, %v2797_v47 }
 0x153   : > { %v3201_v48 = vrot.slane %v12355_v45, 2 }
 0x156   : > { %10450 = vmatmul.mubr.msk.bf16.gmra.mrb[12].mxu0 %vm1103_vm2, %v2394_v9  ;;  %v2480_v9 = vshll.u32 %v12277_v58, 16  ;;  %v3206_v58 = vrot.slane %v12371_v57, 2 }
 0x157   : > { %10453 = vmatprep.mubr.msk.bf16.mxu0 %vm1103_vm2, %v2403_v11  ;;  %v2466_v11 = vsel %vm16349_vm4, %v2456_v49, %v2465_v2  ;;  %v12358_v49 = vld [vmem:[%s11832_s21 + $0x18] sm:$0xff]   ;;  %v3740_v2 = vsel %vm1158_vm0, %v12304_v39, 0 }
 0x158   : > { %v2482_v4 = vrot.slane %v2480_v9, 2  ;;  %v3202_v51 = vrot.slane %v12358_v49, 2  ;;  %v12385_v9 = vld [vmem:[%s11832_s21 + $0x38] sm:$0xff]  }
 0x15a   : > { %v2483_v6 = vor.u32 %v2482_v4, %v2479_v16  ;;  %v3203_v56 = vsel %vm16348_vm5, %v3201_v48, %v3202_v51  ;;  %v3209_v16 = vsel %vm16348_vm5, %v3206_v58, %v3208_v33  ;;  %v12400_v4 = vld [vmem:[%s11832_s21 + $0x40] sm:$0xff]  }
 0x15c   : > { %v2484_v22 = vsel %vm16349_vm4, %v2474_v5, %v2483_v6  ;;  %v12390_v5 = vld [vmem:[%s16342_s1 + $0x10] sm:$0x3]  ;;  %v3212_v6 = vrot.slane %v12400_v4, 2 }
 0x15e   : > { %10454 = vmatmul.mubr.msk.bf16.gmra.mrb[16].mxu0 %vm1103_vm2, %v2412_v27  ;;  %v2764_v27 = vsel %vm16348_vm5, %v2762_v13, %v2763_v21  ;;  %v3214_v13 = vrot.slane %v12404_v19, 2 }
 0x15f   : > { %10457 = vmatprep.mubr.msk.bf16.mxu0 %vm1103_vm2, %v2421_v31  ;;  %v3293_v31 = vsel %vm1158_vm0, %v12225_v29, 0  ;;  %v2770_v29 = vsel %vm16348_vm5, %v2767_v43, %v2769_v52  ;;  %v12428_v52 = vld [vmem:[%s11832_s21 + $0x68] sm:$0xff]  }
 0x166   : > { %10458 = vmatmul.mubr.msk.bf16.gmra.mrb[20].mxu0 %vm1103_vm2, %v2430_v38  ;;  %v2782_v38 = vsel %vm16348_vm5, %v2779_v50, %v2781_v8  ;;  %v12452_v8 = vld [vmem:[%s11832_s21 + $0x88] sm:$0xff]  }
 0x167   : > { %10461 = vmatprep.mubr.msk.bf16.mxu0 %vm1103_vm2, %v2439_v14  ;;  %v2791_v14 = vrot.slane %v12179_v35, 2  ;;  %v2796_v35 = vsel %vm16348_vm5, %v2793_v24, %v2795_v28 }
 0x169   : > { %v2792_v25 = vsel %vm16348_vm5, %v2789_v7, %v2791_v14  ;;  %v2794_v30 = vsel %vm16348_vm5, %v2791_v14, %v2793_v24  ;;  %v3234_v7 = vrot.slane %v12463_v17, 2  ;;  %v3516_v14 = vshrl.u32 %v12355_v45, 16 }
 0x16a   : > { %v3527_v24 = vshll.u32 %v12358_v49, 16 }
 0x16e   : > { %10462 = vmatmul.mubr.msk.bf16.gmra.mrb[24].mxu0 %vm1103_vm2, %v2448_v54  ;;  %v12367_v54 = vld [vmem:[%s11832_s21 + $0x20] sm:$0xff]  }
 0x16f   : > { %10465 = vmatprep.mubr.msk.bf16.mxu0 %vm1103_vm2, %v2457_v60  ;;  %v3204_v60 = vrot.slane %v12367_v54, 2 }
 0x171   : > { %v3205_v61 = vsel %vm16348_vm5, %v3202_v51, %v3204_v60  ;;  %v3207_v3 = vsel %vm16348_vm5, %v3204_v60, %v3206_v58  ;;  %v3529_v51 = vrot.slane %v3527_v24, 3 }
 0x176   : > { %10466 = vmatmul.mubr.msk.bf16.gmra.mrb[28].mxu0 %vm1103_vm2, %v2466_v11  ;;  %v3210_v11 = vrot.slane %v12385_v9, 2 }
 0x177   : > { %10469 = vmatprep.mubr.msk.bf16.mxu0 %vm1103_vm2, %v2475_v18 }
 0x178   : > { %v3211_v18 = vsel %vm16348_vm5, %v3208_v33, %v3210_v11  ;;  %v3213_v21 = vsel %vm16348_vm5, %v3210_v11, %v3212_v6 }
 0x17e   : > { %10470 = vmatmul.mubr.msk.bf16.gmra.mrb[32].mxu0 %vm1103_vm2, %v2484_v22  ;;  %v12412_v22 = vld [vmem:[%s11832_s21 + $0x50] sm:$0xff]  }
 0x17f   : > { %10475 = vmatprep.mubr.msk.bf16.mxu0 %vm1103_vm2, %v2764_v27  ;;  %v3215_v27 = vsel %vm16348_vm5, %v3212_v6, %v3214_v13  ;;  %v3216_v43 = vrot.slane %v12412_v22, 2 }
 0x186   : > { %10476 = vmatmul.mubr.msk.bf16.vlgmr.msra.gmra.mrb[0].mxu0 %vm1103_vm2, %v2766_v23  ;;  %v3218_v23 = vrot.slane %v12416_v15, 2 }
 0x187   : > { %10512 = vmatpush3.bf16.msra.mxu0 %v3293_v31  ;;  %10479 = vmatprep.mubr.msk.bf16.mxu0 %vm1103_vm2, %v2768_v46  ;;  %v3217_v31 = vsel %vm16348_vm5, %v3214_v13, %v3216_v43  ;;  %v12424_v46 = vld [vmem:[%s11832_s21 + $0x60] sm:$0xff]  }
 0x188   : > { %11550 = vmatprep.subr.msk.bf16.mxu0 %vm1158_vm0, %v12304_v39  ;;  %v3219_v39 = vsel %vm16348_vm5, %v3216_v43, %v3218_v23  ;;  %v3220_v55 = vrot.slane %v12424_v46, 2 }
 0x18e   : > { %10480 = vmatmul.mubr.msk.bf16.gmra.mrb[4].mxu0 %vm1103_vm2, %v2770_v29  ;;  %v3222_v29 = vrot.slane %v12428_v52, 2 }
 0x18f   : > { %10483 = vmatprep.mubr.msk.bf16.mxu0 %vm1103_vm2, %v2772_v32  ;;  %v3221_v32 = vsel %vm16348_vm5, %v3218_v23, %v3220_v55  ;;  %v3560_v23 = vshrl.u32 %v12385_v9, 16 }
 0x190   : > { %v3223_v34 = vsel %vm16348_vm5, %v3220_v55, %v3222_v29 }
 0x196   : > { %10484 = vmatmul.mubr.msk.bf16.gmra.mrb[8].mxu0 %vm1103_vm2, %v2774_v36  ;;  %v12440_v36 = vld [vmem:[%s11832_s21 + $0x78] sm:$0xff]  }
 0x197   : > { %10487 = vmatprep.mubr.msk.bf16.mxu0 %vm1103_vm2, %v2776_v59  ;;  %v3224_v59 = vrot.slane %v12436_v0, 2  ;;  %v3226_v63 = vrot.slane %v12440_v36, 2 }
 0x199   : > { %v3225_v50 = vsel %vm16348_vm5, %v3222_v29, %v3224_v59 }
 0x19e   : > { %10488 = vmatmul.mubr.msk.bf16.gmra.mrb[12].mxu0 %vm1103_vm2, %v2778_v53  ;;  %v12448_v53 = vld [vmem:[%s11832_s21 + $0x80] sm:$0xff]  }
 0x19f   : > { %10491 = vmatprep.mubr.msk.bf16.mxu0 %vm1103_vm2, %v2780_v37  ;;  %v3227_v37 = vsel %vm16348_vm5, %v3224_v59, %v3226_v63  ;;  %v3228_v10 = vrot.slane %v12448_v53, 2  ;;  %v3562_v59 = vrot.slane %v3560_v23, 2  ;;  %v3623_v23 = vshrl.u32 %v12436_v0, 16 }
 0x1a6   : > { %10492 = vmatmul.mubr.msk.bf16.gmra.mrb[16].mxu0 %vm1103_vm2, %v2782_v38  ;;  %v3230_v38 = vrot.slane %v12452_v8, 2 }
 0x1a7   : > { %10495 = vmatprep.mubr.msk.bf16.mxu0 %vm1103_vm2, %v2784_v40  ;;  %v3229_v40 = vsel %vm16348_vm5, %v3226_v63, %v3228_v10 }
 0x1ae   : > { %10496 = vmatmul.mubr.msk.bf16.gmra.mrb[20].mxu0 %vm1103_vm2, %v2786_v62  ;;  %v3231_v62 = vsel %vm16348_vm5, %v3228_v10, %v3230_v38  ;;  %v3572_v10 = vshll.u32 %v12400_v4, 16 }
 0x1af   : > { %10499 = vmatprep.mubr.msk.bf16.mxu0 %vm1103_vm2, %v2788_v20  ;;  %v3232_v20 = vrot.slane %v12460_v12, 2 }
 0x1b1   : > { %v3233_v28 = vsel %vm16348_vm5, %v3230_v38, %v3232_v20  ;;  %v3235_v26 = vsel %vm16348_vm5, %v3232_v20, %v3234_v7 }
 0x1b6   : > { %10500 = vmatmul.mubr.msk.bf16.gmra.mrb[24].mxu0 %vm1103_vm2, %v2790_v42  ;;  %v3519_v42 = vshll.u32 %v12355_v45, 16  ;;  %v3533_v45 = vshrl.u32 %v12367_v54, 16 }
 0x1b7   : > { %10503 = vmatprep.mubr.msk.bf16.mxu0 %vm1103_vm2, %v2792_v25  ;;  %v3524_v25 = vshrl.u32 %v12358_v49, 16 }
 0x1b8   : > { %v3521_v47 = vrot.slane %v3519_v42, 3  ;;  %v3535_v33 = vrot.slane %v3533_v45, 2 }
 0x1b9   : > { %v3526_v48 = vrot.slane %v3524_v25, 2 }
 0x1bb   : > { %v3530_v58 = vor.u32 %v3529_v51, %v3526_v48 }
 0x1be   : > { %10504 = vmatmul.mubr.msk.bf16.gmra.mrb[28].mxu0 %vm1103_vm2, %v2794_v30  ;;  %v11704_v30 = vld [vmem:[%s11832_s21 + $0xa0] ss:$0 sps:$4 sm:$0x33]  }
 0x1bf   : > { %10507 = vmatprep.mubr.msk.bf16.mxu0 %vm1103_vm2, %v2796_v35  ;;  %v3518_v35 = vrot.slane %v3516_v14, 2 }
 0x1c1   : > { %v3522_v60 = vor.u32 %v3521_v47, %v3518_v35  ;;  %v3596_v35 = vshrl.u32 %v12416_v15, 16  ;;  %v3599_v47 = vshll.u32 %v12416_v15, 16 }
 0x1c6   : > { %10508 = vmatmul.mubr.msk.bf16.gmra.mrb[32].mxu0 %vm1103_vm2, %v2798_v44  ;;  %v3236_v44 = vrot.slane %v11704_v30, 2 }
 0x1c7   : > { %10513 = vmatprep.mubr.msk.bf16.mxu0 %vm1103_vm2, %v3203_v56  ;;  %v3536_v56 = vshll.u32 %v12367_v54, 16 }
 0x1c9   : > { %v3538_v11 = vrot.slane %v3536_v56, 3  ;;  %v3598_v56 = vrot.slane %v3596_v35, 2  ;;  %v3662_v35 = vshll.u32 %v12460_v12, 16 }
 0x1cb   : > { %v3539_v13 = vor.u32 %v3538_v11, %v3535_v33  ;;  %v3614_v33 = vshrl.u32 %v12428_v52, 16  ;;  %v3617_v11 = vshll.u32 %v12428_v52, 16 }
 0x1ce   : > { %10514 = vmatmul.mubr.msk.bf16.vlgmr.msra.gmra.mrb[0].mxu0 %vm1103_vm2, %v3205_v61  ;;  %v3542_v61 = vshrl.u32 %v12371_v57, 16 }
 0x1cf   : > { %10550 = vmatpush3.bf16.msra.mxu0 %v3740_v2  ;;  %10517 = vmatprep.mubr.msk.bf16.mxu0 %vm1103_vm2, %v3207_v3  ;;  %v3545_v2 = vshll.u32 %v12371_v57, 16  ;;  %v3237_v3 = vsel %vm16348_vm5, %v3234_v7, %v3236_v44  ;;  %v3574_v7 = vrot.slane %v3572_v10, 3 }
 0x1d0   : > { %11551 = vmatprep.subr.msk.bf16.mxu0 %vm1158_vm0, %v12390_v5 }
 0x1d1   : > { %v3547_v6 = vrot.slane %v3545_v2, 3  ;;  %v3608_v2 = vshll.u32 %v12424_v46, 16 }
 0x1d6   : > { %10518 = vmatmul.mubr.msk.bf16.gmra.mrb[4].mxu0 %vm1103_vm2, %v3209_v16  ;;  %v3531_v16 = vsel %vm16347_vm6, %v3522_v60, %v3530_v58  ;;  %v3601_v60 = vrot.slane %v3599_v47, 3 }
 0x1d7   : > { %10521 = vmatprep.mubr.msk.bf16.mxu0 %vm1103_vm2, %v3211_v18  ;;  %v3544_v18 = vrot.slane %v3542_v61, 2  ;;  %v3605_v61 = vshrl.u32 %v12424_v46, 16 }
 0x1d9   : > { %v3548_v43 = vor.u32 %v3547_v6, %v3544_v18  ;;  %v3607_v18 = vrot.slane %v3605_v61, 2  ;;  %v3610_v6 = vrot.slane %v3608_v2, 3 }
 0x1de   : > { %10522 = vmatmul.mubr.msk.bf16.gmra.mrb[8].mxu0 %vm1103_vm2, %v3213_v21  ;;  %v3551_v21 = vshrl.u32 %v12379_v1, 16 }
 0x1df   : > { %10525 = vmatprep.mubr.msk.bf16.mxu0 %vm1103_vm2, %v3215_v27  ;;  %v3554_v27 = vshll.u32 %v12379_v1, 16 }
 0x1e0   : > { %v3553_v55 = vrot.slane %v3551_v21, 2  ;;  %v3616_v21 = vrot.slane %v3614_v33, 2 }
 0x1e1   : > { %v3556_v29 = vrot.slane %v3554_v27, 3  ;;  %v3619_v27 = vrot.slane %v3617_v11, 3 }
 0x1e6   : > { %10526 = vmatmul.mubr.msk.bf16.gmra.mrb[12].mxu0 %vm1103_vm2, %v3217_v31  ;;  %v3563_v31 = vshll.u32 %v12385_v9, 16 }
 0x1e7   : > { %10529 = vmatprep.mubr.msk.bf16.mxu0 %vm1103_vm2, %v3219_v39  ;;  %v3540_v39 = vsel %vm16347_vm6, %v3530_v58, %v3539_v13 }
 0x1e8   : > { %v3565_v63 = vrot.slane %v3563_v31, 3  ;;  %v3626_v31 = vshll.u32 %v12436_v0, 16 }
 0x1ea   : > { %v3566_v38 = vor.u32 %v3565_v63, %v3562_v59  ;;  %v3628_v59 = vrot.slane %v3626_v31, 3 }
 0x1ee   : > { %10530 = vmatmul.mubr.msk.bf16.gmra.mrb[16].mxu0 %vm1103_vm2, %v3221_v32  ;;  %v4054_v32 = vsel %vm1158_vm0, %v12390_v5, 0 }
 0x1ef   : > { %10533 = vmatprep.mubr.msk.bf16.mxu0 %vm1103_vm2, %v3223_v34  ;;  %v3549_v34 = vsel %vm16347_vm6, %v3539_v13, %v3548_v43 }
 0x1f6   : > { %10534 = vmatmul.mubr.msk.bf16.gmra.mrb[20].mxu0 %vm1103_vm2, %v3225_v50  ;;  %v3557_v50 = vor.u32 %v3556_v29, %v3553_v55  ;;  %v3632_v55 = vshrl.u32 %v12440_v36, 16  ;;  %v3635_v29 = vshll.u32 %v12440_v36, 16 }
 0x1f7   : > { %10537 = vmatprep.mubr.msk.bf16.mxu0 %vm1103_vm2, %v3227_v37  ;;  %v3569_v37 = vshrl.u32 %v12400_v4, 16 }
 0x1f8   : > { %v3558_v5 = vsel %vm16347_vm6, %v3548_v43, %v3557_v50  ;;  %v3567_v14 = vsel %vm16347_vm6, %v3557_v50, %v3566_v38  ;;  %v3611_v43 = vor.u32 %v3610_v6, %v3607_v18  ;;  %v3634_v50 = vrot.slane %v3632_v55, 2  ;;  %v3955_v18 = vld [vmem:[%s11832_s21 + $0x10] sm:$0x8] }
 0x1f9   : > { %v3571_v20 = vrot.slane %v3569_v37, 2  ;;  %v3637_v37 = vrot.slane %v3635_v29, 3 }
 0x1fb   : > { %v3575_v24 = vor.u32 %v3574_v7, %v3571_v20  ;;  %v3653_v20 = vshll.u32 %v12452_v8, 16 }
 0x1fd   : > { %v3576_v48 = vsel %vm16347_vm6, %v3566_v38, %v3575_v24  ;;  %v3641_v38 = vshrl.u32 %v12448_v53, 16 }
 0x1fe   : > { %10538 = vmatmul.mubr.msk.bf16.gmra.mrb[24].mxu0 %vm1103_vm2, %v3229_v40  ;;  %v3578_v40 = vshrl.u32 %v12404_v19, 16 }
 0x1ff   : > { %10541 = vmatprep.mubr.msk.bf16.mxu0 %vm1103_vm2, %v3231_v62  ;;  %v3581_v62 = vshll.u32 %v12404_v19, 16 }
 0x200   : > { %v3580_v42 = vrot.slane %v3578_v40, 2  ;;  %v3644_v40 = vshll.u32 %v12448_v53, 16 }
 0x201   : > { %v3583_v25 = vrot.slane %v3581_v62, 3  ;;  %v3638_v62 = vor.u32 %v3637_v37, %v3634_v50 }
 0x203   : > { %v3584_v30 = vor.u32 %v3583_v25, %v3580_v42  ;;  %v3646_v42 = vrot.slane %v3644_v40, 3 }
 0x205   : > { %v3585_v45 = vsel %vm16347_vm6, %v3575_v24, %v3584_v30 }
 0x206   : > { %10542 = vmatmul.mubr.msk.bf16.gmra.mrb[28].mxu0 %vm1103_vm2, %v3233_v28  ;;  %v3587_v28 = vshrl.u32 %v12412_v22, 16 }
 0x207   : > { %10545 = vmatprep.mubr.msk.bf16.mxu0 %vm1103_vm2, %v3235_v26  ;;  %v3590_v26 = vshll.u32 %v12412_v22, 16 }
 0x208   : > { %v3589_v51 = vrot.slane %v3587_v28, 2  ;;  %v3655_v28 = vrot.slane %v3653_v20, 3 }
 0x209   : > { %v3592_v44 = vrot.slane %v3590_v26, 3 }
 0x20b   : > { %v3593_v58 = vor.u32 %v3592_v44, %v3589_v51  ;;  %v3671_v51 = vshll.u32 %v12463_v17, 16 }
 0x20d   : > { %v3673_v2 = vrot.slane %v3671_v51, 3 }
 0x20e   : > { %10546 = vmatmul.mubr.msk.bf16.gmra.mrb[32].mxu0 %vm1103_vm2, %v3237_v3  ;;  %v3602_v3 = vor.u32 %v3601_v60, %v3598_v56  ;;  %v3664_v56 = vrot.slane %v3662_v35, 3  ;;  %v12543_v60 = vld [vmem:[%s11832_s21 + $0xa0] ss:$0 sps:$4 sm:$0x77]  }
 0x20f   : > { %10551 = vmatprep.mubr.msk.bf16.mxu0 %vm1103_vm2, %v3531_v16  ;;  %v3594_v16 = vsel %vm16347_vm6, %v3584_v30, %v3593_v58  ;;  %v3659_v30 = vshrl.u32 %v12460_v12, 16  ;;  %v3677_v33 = vshrl.u32 %v12543_v60, 16  ;;  %v3680_v11 = vshll.u32 %v12543_v60, 16 }
 0x210   : > { %v3603_v13 = vsel %vm16347_vm6, %v3593_v58, %v3602_v3 }
 0x216   : > { %10552 = vmatmul.mubr.msk.bf16.vlgmr.msra.gmra.mrb[0].mxu0 %vm1103_vm2, %v3540_v39  ;;  %v3620_v39 = vor.u32 %v3619_v27, %v3616_v21  ;;  %v3682_v21 = vrot.slane %v3680_v11, 3 }
 0x217   : > { %10588 = vmatpush3.bf16.msra.mxu0 %v4054_v32  ;;  %10555 = vmatprep.mubr.msk.bf16.mxu0 %vm1103_vm2, %v3549_v34  ;;  %v3612_v32 = vsel %vm16347_vm6, %v3602_v3, %v3611_v43  ;;  %v3625_v34 = vrot.slane %v3623_v23, 2 }
 0x218   : > { %v3621_v63 = vsel %vm16347_vm6, %v3611_v43, %v3620_v39  ;;  %v9616_v43 = vcombine.low %v3955_v18, %v12350_v41  ;;  %v3967_v41 = vrot.slane %v12371_v57, 3  ;;  %v3975_v57 = vrot.slane %v12404_v19, 3 }
 0x219   : > { %v3629_v10 = vor.u32 %v3628_v59, %v3625_v34  ;;  %v3983_v19 = vrot.slane %v12428_v52, 3  ;;  %v3991_v52 = vrot.slane %v12452_v8, 3 }
 0x21a   : > { %v3962_v31 = vrot.slane %v9616_v43, 3 }
 0x21b   : > { %v3630_v7 = vsel %vm16347_vm6, %v3620_v39, %v3629_v10  ;;  %v3639_v25 = vsel %vm16347_vm6, %v3629_v10, %v3638_v62  ;;  %v3963_v39 = vrot.slane %v12358_v49, 3  ;;  %v3969_v49 = vrot.slane %v12379_v1, 3 }
 0x21c   : > { %v3977_v1 = vrot.slane %v12412_v22, 3  ;;  %v3985_v22 = vrot.slane %v12436_v0, 3  ;;  %v3993_v0 = vrot.slane %v12460_v12, 3  ;;  %v172_v12 = vlaneseq }
 0x21d   : > { %v3964_v29 = vsel %vm16346_vm7, %v3962_v31, %v3963_v39  ;;  %v3970_v50 = vsel %vm16346_vm7, %v3967_v41, %v3969_v49 }
 0x21e   : > { %10556 = vmatmul.mubr.msk.bf16.gmra.mrb[4].mxu0 %vm1103_vm2, %v3558_v5  ;;  %v3650_v5 = vshrl.u32 %v12452_v8, 16  ;;  %v3978_v40 = vsel %vm16346_vm7, %v3975_v57, %v3977_v1 }
 0x21f   : > { %10559 = vmatprep.mubr.msk.bf16.mxu0 %vm1103_vm2, %v3567_v14  ;;  %v3643_v14 = vrot.slane %v3641_v38, 2 }
 0x220   : > { %v3652_v24 = vrot.slane %v3650_v5, 2 }
 0x221   : > { %v3647_v26 = vor.u32 %v3646_v42, %v3643_v14 }
 0x222   : > { %v3656_v47 = vor.u32 %v3655_v28, %v3652_v24  ;;  %v3994_v24 = vsel %vm16346_vm7, %v3991_v52, %v3993_v0 }
 0x223   : > { %v3648_v44 = vsel %vm16347_vm6, %v3638_v62, %v3647_v26 }
 0x224   : > { %v3657_v58 = vsel %vm16347_vm6, %v3647_v26, %v3656_v47  ;;  %v16352_v26 = vmov 0  }
 0x225   : > { %4758 = vst.msk [vmem:[#allocation2 + $0x8] sm:$0xf] %vm16351_vm8, %v16352_v26  ;;  %4756 = vst.msk [vmem:[#allocation2] sm:$0xf] %vm16351_vm8, %v16352_v26 }
 0x226   : > { %10560 = vmatmul.mubr.msk.bf16.gmra.mrb[8].mxu0 %vm1103_vm2, %v3576_v48  ;;  %v3668_v48 = vshrl.u32 %v12463_v17, 16  ;;  %4757 = vst.msk [vmem:[#allocation2 + $0x4] sm:$0xf] %vm16351_vm8, %v16352_v26  ;;  %4759 = vst.msk [vmem:[#allocation2 + $0xc] sm:$0xf] %vm16351_vm8, %v16352_v26 }
 0x227   : > { %10563 = vmatprep.mubr.msk.bf16.mxu0 %vm1103_vm2, %v3585_v45  ;;  %v3661_v45 = vrot.slane %v3659_v30, 2  ;;  %4760 = vst.msk [vmem:[#allocation2 + $0x10] sm:$0xf] %vm16351_vm8, %v16352_v26  ;;  %4761 = vst.msk [vmem:[#allocation2 + $0x14] sm:$0xf] %vm16351_vm8, %v16352_v26 }
 0x228   : > { %v3670_v61 = vrot.slane %v3668_v48, 2  ;;  %4762 = vst.msk [vmem:[#allocation2 + $0x18] sm:$0xf] %vm16351_vm8, %v16352_v26  ;;  %4763 = vst.msk [vmem:[#allocation2 + $0x1c] sm:$0xf] %vm16351_vm8, %v16352_v26 }
 0x229   : > { %v3665_v3 = vor.u32 %v3664_v56, %v3661_v45  ;;  %4764 = vst.msk [vmem:[#allocation2 + $0x20] sm:$0xf] %vm16351_vm8, %v16352_v26  ;;  %4765 = vst.msk [vmem:[#allocation2 + $0x24] sm:$0xf] %vm16351_vm8, %v16352_v26 }
 0x22a   : > { %4766 = vst.msk [vmem:[#allocation2 + $0x28] sm:$0xf] %vm16351_vm8, %v16352_v26  ;;  %4767 = vst.msk [vmem:[#allocation2 + $0x2c] sm:$0xf] %vm16351_vm8, %v16352_v26 }
 0x22b   : > { %v3666_v6 = vsel %vm16347_vm6, %v3656_v47, %v3665_v3  ;;  %4768 = vst.msk [vmem:[#allocation2 + $0x30] sm:$0xf] %vm16351_vm8, %v16352_v26  ;;  %4769 = vst.msk [vmem:[#allocation2 + $0x34] sm:$0xf] %vm16351_vm8, %v16352_v26 }
 0x22c   : > { %4770 = vst.msk [vmem:[#allocation2 + $0x38] sm:$0xf] %vm16351_vm8, %v16352_v26  ;;  %4771 = vst.msk [vmem:[#allocation2 + $0x3c] sm:$0xf] %vm16351_vm8, %v16352_v26 }
 0x22d   : > { %4772 = vst.msk [vmem:[#allocation2 + $0x40] sm:$0xf] %vm16351_vm8, %v16352_v26  ;;  %4773 = vst.msk [vmem:[#allocation2 + $0x44] sm:$0xf] %vm16351_vm8, %v16352_v26 }
 0x22e   : > { %10564 = vmatmul.mubr.msk.bf16.gmra.mrb[12].mxu0 %vm1103_vm2, %v3594_v16  ;;  %v3674_v16 = vor.u32 %v3673_v2, %v3670_v61  ;;  %4774 = vst.msk [vmem:[#allocation2 + $0x48] sm:$0xf] %vm16351_vm8, %v16352_v26  ;;  %4775 = vst.msk [vmem:[#allocation2 + $0x4c] sm:$0xf] %vm16351_vm8, %v16352_v26 }
 0x22f   : > { %10567 = vmatprep.mubr.msk.bf16.mxu0 %vm1103_vm2, %v3603_v13  ;;  %v3679_v13 = vrot.slane %v3677_v33, 2  ;;  %4776 = vst.msk [vmem:[#allocation2 + $0x50] sm:$0xf] %vm16351_vm8, %v16352_v26  ;;  %4777 = vst.msk [vmem:[#allocation2 + $0x54] sm:$0xf] %vm16351_vm8, %v16352_v26 }
 0x230   : > { %v3675_v27 = vsel %vm16347_vm6, %v3665_v3, %v3674_v16  ;;  %4778 = vst.msk [vmem:[#allocation2 + $0x58] sm:$0xf] %vm16351_vm8, %v16352_v26  ;;  %4779 = vst.msk [vmem:[#allocation2 + $0x5c] sm:$0xf] %vm16351_vm8, %v16352_v26 }
 0x231   : > { %v3683_v23 = vor.u32 %v3682_v21, %v3679_v13  ;;  %4780 = vst.msk [vmem:[#allocation2 + $0x60] sm:$0xf] %vm16351_vm8, %v16352_v26  ;;  %4781 = vst.msk [vmem:[#allocation2 + $0x64] sm:$0xf] %vm16351_vm8, %v16352_v26 }
 0x232   : > { %4782 = vst.msk [vmem:[#allocation2 + $0x68] sm:$0xf] %vm16351_vm8, %v16352_v26  ;;  %4783 = vst.msk [vmem:[#allocation2 + $0x6c] sm:$0xf] %vm16351_vm8, %v16352_v26 }
 0x233   : > { %v3684_v55 = vsel %vm16347_vm6, %v3674_v16, %v3683_v23  ;;  %4784 = vst.msk [vmem:[#allocation2 + $0x70] sm:$0xf] %vm16351_vm8, %v16352_v26  ;;  %4785 = vst.msk [vmem:[#allocation2 + $0x74] sm:$0xf] %vm16351_vm8, %v16352_v26 }
 0x234   : > { %4786 = vst.msk [vmem:[#allocation2 + $0x78] sm:$0xf] %vm16351_vm8, %v16352_v26  ;;  %4787 = vst.msk [vmem:[#allocation2 + $0x7c] sm:$0xf] %vm16351_vm8, %v16352_v26 }
 0x235   : > { %4788 = vst.msk [vmem:[#allocation2 + $0x80] sm:$0xf] %vm16351_vm8, %v16352_v26  ;;  %4789 = vst.msk [vmem:[#allocation2 + $0x84] sm:$0xf] %vm16351_vm8, %v16352_v26 }
 0x236   : > { %10568 = vmatmul.mubr.msk.bf16.gmra.mrb[16].mxu0 %vm1103_vm2, %v3612_v32  ;;  %v3965_v32 = vrot.slane %v12367_v54, 3  ;;  %v3973_v54 = vrot.slane %v12400_v4, 3  ;;  %v3981_v4 = vrot.slane %v12424_v46, 3  ;;  %v3989_v46 = vrot.slane %v12448_v53, 3  ;;  %4790 = vst.msk [vmem:[#allocation2 + $0x88] sm:$0xf] %vm16351_vm8, %v16352_v26 }
 0x237   : > { %10571 = vmatprep.mubr.msk.bf16.mxu0 %vm1103_vm2, %v3621_v63  ;;  %v3971_v63 = vrot.slane %v12385_v9, 3  ;;  %v3979_v9 = vrot.slane %v12416_v15, 3  ;;  %v3987_v15 = vrot.slane %v12440_v36, 3  ;;  %v3995_v36 = vrot.slane %v12463_v17, 3  ;;  %4791 = vst.msk [vmem:[#allocation2 + $0x8c] sm:$0xf] %vm16351_vm8, %v16352_v26 }
 0x238   : > { %v3966_v34 = vsel %vm16346_vm7, %v3963_v39, %v3965_v32  ;;  %v3968_v59 = vsel %vm16346_vm7, %v3965_v32, %v3967_v41  ;;  %v3976_v38 = vsel %vm16346_vm7, %v3973_v54, %v3975_v57  ;;  %v3984_v20 = vsel %vm16346_vm7, %v3981_v4, %v3983_v19  ;;  %4792 = vst.msk [vmem:[#allocation2 + $0x90] sm:$0xf] %vm16351_vm8, %v16352_v26 }
 0x239   : > { %v3972_v37 = vsel %vm16346_vm7, %v3969_v49, %v3971_v63  ;;  %v3974_v10 = vsel %vm16346_vm7, %v3971_v63, %v3973_v54  ;;  %v3980_v62 = vsel %vm16346_vm7, %v3977_v1, %v3979_v9  ;;  %v3982_v5 = vsel %vm16346_vm7, %v3979_v9, %v3981_v4  ;;  %4793 = vst.msk [vmem:[#allocation2 + $0x94] sm:$0xf] %vm16351_vm8, %v16352_v26 }
 0x23a   : > { %v3988_v14 = vsel %vm16346_vm7, %v3985_v22, %v3987_v15  ;;  %v3990_v42 = vsel %vm16346_vm7, %v3987_v15, %v3989_v46  ;;  %v3996_v28 = vsel %vm16346_vm7, %v3993_v0, %v3995_v36  ;;  %v3997_v53 = vrot.slane %v12543_v60, 3  ;;  %4794 = vst.msk [vmem:[#allocation2 + $0x98] sm:$0xf] %vm16351_vm8, %v16352_v26  ;;  %4795 = vst.msk [vmem:[#allocation2 + $0x9c] sm:$0xf] %vm16351_vm8, %v16352_v26 }
 0x23b   : > { %v12692_v17 = vshrl.u32 %v172_v12, 7 }
 0x23c   : > { %v3998_v8 = vsel %vm16346_vm7, %v3995_v36, %v3997_v53 }
 0x23d   : > { %v175_v30 = vadd.s32 16, %v12692_v17  ;;  %v12699_v48 = vmul.u32.u64.low 3817748708, %v12692_v17  ;;  %v12700_v51 = vmul.u32.u64.high 3817748708, %v12692_v17, %v12699_v48  ;;  %v174_v45 = vadd.s32 8, %v12692_v17 }
 0x23e   : > { %10572 = vmatmul.mubr.msk.bf16.gmra.mrb[20].mxu0 %vm1103_vm2, %v3630_v7  ;;  %v3986_v7 = vsel %vm16346_vm7, %v3983_v19, %v3985_v22  ;;  %v179_v56 = vadd.s32 48, %v12692_v17  ;;  %v177_v2 = vadd.s32 32, %v12692_v17  ;;  %v180_v11 = vadd.s32 56, %v12692_v17 }
 0x23f   : > { %10575 = vmatprep.mubr.msk.bf16.mxu0 %vm1103_vm2, %v3639_v25  ;;  %v3992_v25 = vsel %vm16346_vm7, %v3989_v46, %v3991_v52  ;;  %v12695_v35 = vmul.u32.u64.low 3817748708, %v175_v30  ;;  %v12696_v47 = vmul.u32.u64.high 3817748708, %v175_v30, %v12695_v35  ;;  %v215_v21 = vshrl.u32 %v12700_v51, 4 }
 0x240   : > { %v12710_v3 = vmul.u32.u64.low 3817748708, %v174_v45  ;;  %v12711_v33 = vmul.u32.u64.high 3817748708, %v174_v45, %v12710_v3  ;;  %v12714_v16 = vmul.u32.u64.low 3817748708, %v179_v56  ;;  %v12715_v18 = vmul.u32.u64.high 3817748708, %v179_v56, %v12714_v16 }
 0x241   : > { %v237_v60 = vshrl.u32 %v12696_v47, 4  ;;  %v12722_v23 = vmul.u32.u64.low 3817748708, %v180_v11  ;;  %v12723_v31 = vmul.u32.u64.high 3817748708, %v180_v11, %v12722_v23  ;;  %v216_v32 = vmul.u32 18, %v215_v21 }
 0x242   : > { %v12734_v49 = vadd.s32 80, %v12692_v17  ;;  %v12737_v63 = vadd.s32 64, %v12692_v17  ;;  %v12750_v1 = vadd.s32 88, %v12692_v17  ;;  %v12765_v22 = vadd.s32 112, %v12692_v17 }
 0x243   : > { %v238_v13 = vmul.u32 18, %v237_v60  ;;  %v12799_v35 = vadd.s32 120, %v12692_v17  ;;  %v12844_v16 = vadd.s32 104, %v12692_v17  ;;  %v13046_v26 = vadd.s32 208, %v12692_v17 }
 0x244   : > { %v13383_v21 = vadd.s32 248, %v12692_v17  ;;  %v13434_v60 = vadd.s32 232, %v12692_v17 }
 0x246   : > { %10576 = vmatmul.mubr.msk.bf16.gmra.mrb[24].mxu0 %vm1103_vm2, %v3648_v44  ;;  %v176_v44 = vadd.s32 24, %v12692_v17  ;;  %16690 = vst [vmem:[#allocation40_spill] sm:$0xff] %v13434_v60 }
 0x247   : > { %10579 = vmatprep.mubr.msk.bf16.mxu0 %vm1103_vm2, %v3657_v58 }
 0x248   : > { %v12706_v58 = vmul.u32.u64.low 3817748708, %v176_v44  ;;  %v12707_v61 = vmul.u32.u64.high 3817748708, %v176_v44, %v12706_v58 }
 0x24a   : > { %v248_v41 = vshrl.u32 %v12707_v61, 4 }
 0x24e   : > { %10580 = vmatmul.mubr.msk.bf16.gmra.mrb[28].mxu0 %vm1103_vm2, %v3666_v6  ;;  %v178_v6 = vadd.s32 40, %v12692_v17 }
 0x24f   : > { %10583 = vmatprep.mubr.msk.bf16.mxu0 %vm1103_vm2, %v3675_v27  ;;  %v12719_v27 = vmul.u32.u64.low 3817748708, %v177_v2  ;;  %v12720_v43 = vmul.u32.u64.high 3817748708, %v177_v2, %v12719_v27 }
 0x251   : > { %v259_v54 = vshrl.u32 %v12720_v43, 4  ;;  %v16581_v43 = vmov 0 }
 0x256   : > { %10584 = vmatmul.mubr.msk.bf16.gmra.mrb[32].mxu0 %vm1103_vm2, %v3684_v55  ;;  %v12725_v39 = vmul.u32.u64.low 3817748708, %v178_v6  ;;  %v12726_v55 = vmul.u32.u64.high 3817748708, %v178_v6, %v12725_v39 }
 0x257   : > { %10589 = vmatprep.mubr.msk.bf16.mxu0 %vm1103_vm2, %v3964_v29  ;;  %v12728_v29 = vsub.s32 %v175_v30, %v238_v13  ;;  %v12858_v13 = vadd.s32 144, %v12692_v17 }
 0x259   : > { %vm607_vm9 = vcmp.ne.s32.totalorder %v12728_v29, 0  ;;  %vm643_vm10 = vcmp.lt.s32.totalorder %v12728_v29, 0  ;;  %v12746_v57 = vadd.s32 18, %v12728_v29 }
 0x25e   : > { %10590 = vmatmul.mubr.msk.bf16.vlgmr.msra.gmra.mrb[0].mxu0 %vm1103_vm2, %v3966_v34  ;;  %v226_v34 = vshrl.u32 %v12711_v33, 4 }
 0x25f   : > { %10593 = vmatprep.mubr.msk.bf16.mxu0 %vm1103_vm2, %v3968_v59  ;;  %v281_v59 = vshrl.u32 %v12715_v18, 4  ;;  %v16666_v18 = vmov 0 }
 0x261   : > { %v282_v9 = vmul.u32 18, %v281_v59 }
 0x263   : > { %v12780_v0 = vsub.s32 %v179_v56, %v282_v9 }
 0x265   : > { %16568 = vst [vmem:[#allocation3_spill] sm:$0xff] %v12780_v0  ;;  %vm611_vm3 = vcmp.ne.s32.totalorder %v12780_v0, 0  ;;  %vm647_vm7 = vcmp.lt.s32.totalorder %v12780_v0, 0  ;;  %v12837_v3 = vadd.s32 18, %v12780_v0 }
 0x266   : > { %10594 = vmatmul.mubr.msk.bf16.gmra.mrb[4].mxu0 %vm1103_vm2, %v3970_v50  ;;  %v12742_v50 = vsub.s32 %v12692_v17, %v216_v32  ;;  %vm12875_vm4 = vmand %vm647_vm7, %vm611_vm3 }
 0x267   : > { %10597 = vmatprep.mubr.msk.bf16.mxu0 %vm1103_vm2, %v3972_v37  ;;  %v249_v37 = vmul.u32 18, %v248_v41  ;;  %16576 = vst [vmem:[#allocation7_spill] sm:$0xff] %v12837_v3  ;;  %v16582_v43 = vsel %vm12875_vm4, 4294967295, %v16581_v43 }
 0x268   : > { %vm605_vm11 = vcmp.ne.s32.totalorder %v12742_v50, 0  ;;  %vm641_vm12 = vcmp.lt.s32.totalorder %v12742_v50, 0  ;;  %16583 = vst [vmem:[#allocation8_spill] sm:$0xff] %v16582_v43 }
 0x269   : > { %v12769_v15 = vsub.s32 %v176_v44, %v249_v37  ;;  %vm12832_vm6 = vmand %vm641_vm12, %vm605_vm11  ;;  %v16587_v37 = vmov 0 }
 0x26b   : > { %vm608_vm13 = vcmp.ne.s32.totalorder %v12769_v15, 0  ;;  %vm644_vm14 = vcmp.lt.s32.totalorder %v12769_v15, 0  ;;  %v12796_v30 = vadd.s32 18, %v12769_v15 }
 0x26e   : > { %10598 = vmatmul.mubr.msk.bf16.gmra.mrb[8].mxu0 %vm1103_vm2, %v3974_v10  ;;  %v227_v10 = vmul.u32 18, %v226_v34  ;;  %v12895_v34 = vmul.u32.u64.low 3817748708, %v12844_v16  ;;  %v12896_v59 = vmul.u32.u64.high 3817748708, %v12844_v16, %v12895_v34 }
 0x26f   : > { %10601 = vmatprep.mubr.msk.bf16.mxu0 %vm1103_vm2, %v3976_v38  ;;  %v292_v38 = vshrl.u32 %v12723_v31, 4 }
 0x271   : > { %v293_v46 = vmul.u32 18, %v292_v38  ;;  %v12908_v38 = vmul.u32.u64.low 3817748708, %v12858_v13  ;;  %v12909_v9 = vmul.u32.u64.high 3817748708, %v12858_v13, %v12908_v38 }
 0x272   : > { %v13008_v38 = vadd.s32 176, %v12692_v17 }
 0x273   : > { %v12805_v48 = vsub.s32 %v180_v11, %v293_v46  ;;  %v12840_v33 = vmul.u32.u64.low 3817748708, %v12799_v35  ;;  %v12841_v11 = vmul.u32.u64.high 3817748708, %v12799_v35, %v12840_v33 }
 0x275   : > { %16570 = vst [vmem:[#allocation5_spill] sm:$0xff] %v12805_v48  ;;  %v12892_v41 = vadd.s32 18, %v12805_v48 }
 0x276   : > { %10602 = vmatmul.mubr.msk.bf16.gmra.mrb[12].mxu0 %vm1103_vm2, %v3978_v40  ;;  %v270_v40 = vshrl.u32 %v12726_v55, 4  ;;  %v16584_v55 = vmov 0 }
 0x277   : > { %10605 = vmatprep.mubr.msk.bf16.mxu0 %vm1103_vm2, %v3980_v62  ;;  %v12754_v62 = vmul.u32.u64.low 3817748708, %v12734_v49  ;;  %v12755_v4 = vmul.u32.u64.high 3817748708, %v12734_v49, %v12754_v62  ;;  %16586 = vst [vmem:[#allocation9_spill] sm:$0xff] %v12892_v41 }
 0x278   : > { %v271_v36 = vmul.u32 18, %v270_v40 }
 0x279   : > { %v325_v44 = vshrl.u32 %v12755_v4, 4  ;;  %v16591_v4 = vmov 0 }
 0x27a   : > { %v12807_v51 = vsub.s32 %v178_v6, %v271_v36 }
 0x27b   : > { %v326_v27 = vmul.u32 18, %v325_v44 }
 0x27c   : > { %16571 = vst [vmem:[#allocation6_spill] sm:$0xff] %v12807_v51  ;;  %vm610_vm5 = vcmp.ne.s32.totalorder %v12807_v51, 0 }
 0x27e   : > { %10606 = vmatmul.mubr.msk.bf16.gmra.mrb[16].mxu0 %vm1103_vm2, %v3982_v5  ;;  %v12758_v19 = vmul.u32.u64.low 3817748708, %v12737_v63  ;;  %v12759_v5 = vmul.u32.u64.high 3817748708, %v12737_v63, %v12758_v19 }
 0x27f   : > { %10609 = vmatprep.mubr.msk.bf16.mxu0 %vm1103_vm2, %v3984_v20  ;;  %v12762_v20 = vadd.s32 72, %v12692_v17  ;;  %v12928_v19 = vsub.s32 %v12734_v49, %v326_v27 }
 0x280   : > { %v303_v61 = vshrl.u32 %v12759_v5, 4 }
 0x282   : > { %v304_v23 = vmul.u32 18, %v303_v61  ;;  %v12971_v61 = vadd.s32 152, %v12692_v17 }
 0x284   : > { %v12936_v46 = vsub.s32 %v12737_v63, %v304_v23 }
 0x286   : > { %10610 = vmatmul.mubr.msk.bf16.gmra.mrb[20].mxu0 %vm1103_vm2, %v3986_v7  ;;  %v260_v7 = vmul.u32 18, %v259_v54  ;;  %v12905_v54 = vadd.s32 18, %v12807_v51 }
 0x287   : > { %10613 = vmatprep.mubr.msk.bf16.mxu0 %vm1103_vm2, %v3988_v14  ;;  %v12771_v14 = vsub.s32 %v174_v45, %v227_v10 }
 0x288   : > { %v12803_v47 = vsub.s32 %v177_v2, %v260_v7  ;;  %16590 = vst [vmem:[#allocation11_spill] sm:$0xff] %v12905_v54  ;;  %v13096_v7 = vadd.s32 216, %v12692_v17  ;;  %v16662_v2 = vmov 0 }
 0x289   : > { %vm606_vm15 = vcmp.ne.s32.totalorder %v12771_v14, 0  ;;  %vm642_vm0 = vcmp.lt.s32.totalorder %v12771_v14, 0  ;;  %v12823_v58 = vadd.s32 18, %v12771_v14 }
 0x28a   : > { %16569 = vst [vmem:[#allocation4_spill] sm:$0xff] %v12803_v47  ;;  %vm645_vm11 = vcmp.lt.s32.totalorder %v12803_v47, 0  ;;  %vm12864_vm12 = vmand %vm642_vm0, %vm606_vm15  ;;  %vm646_vm15 = vcmp.lt.s32.totalorder %v12807_v51, 0  ;;  %v12889_v32 = vadd.s32 18, %v12803_v47 }
 0x28b   : > { %vm12923_vm7 = vmand %vm646_vm15, %vm610_vm5  ;;  %vm615_vm5 = vcmp.ne.s32.totalorder %v12928_v19, 0  ;;  %v13110_v51 = vmul.u32.u64.low 3817748708, %v13046_v26  ;;  %v13111_v54 = vmul.u32.u64.high 3817748708, %v13046_v26, %v13110_v51 }
 0x28c   : > { %v16592_v4 = vsel %vm12923_vm7, 4294967295, %v16591_v4  ;;  %v16616_v51 = vmov 0  ;;  %v13151_v3 = vmul.u32.u64.low 3817748708, %v13096_v7  ;;  %v13152_v43 = vmul.u32.u64.high 3817748708, %v13096_v7, %v13151_v3 }
 0x28d   : > { %16593 = vst [vmem:[#allocation12_spill] sm:$0xff] %v16592_v4  ;;  %v16624_v3 = vmov 0 }
 0x28e   : > { %10614 = vmatmul.mubr.msk.bf16.gmra.mrb[24].mxu0 %vm1103_vm2, %v3990_v42  ;;  %v12774_v52 = vmul.u32.u64.low 3817748708, %v12750_v1  ;;  %v12775_v42 = vmul.u32.u64.high 3817748708, %v12750_v1, %v12774_v52 }
 0x28f   : > { %10617 = vmatprep.mubr.msk.bf16.mxu0 %vm1103_vm2, %v3992_v25  ;;  %v12778_v25 = vadd.s32 18, %v12742_v50 }
 0x290   : > { %v336_v6 = vshrl.u32 %v12775_v42, 4 }
 0x292   : > { %v337_v10 = vmul.u32 18, %v336_v6  ;;  %v358_v6 = vshrl.u32 %v12896_v59, 4  ;;  %v12999_v34 = vmul.u32.u64.low 3817748708, %v12971_v61  ;;  %v13000_v59 = vmul.u32.u64.high 3817748708, %v12971_v61, %v12999_v34 }
 0x293   : > { %v13030_v34 = vadd.s32 184, %v12692_v17 }
 0x294   : > { %v12963_v44 = vsub.s32 %v12750_v1, %v337_v10  ;;  %v424_v36 = vshrl.u32 %v13000_v59, 4 }
 0x296   : > { %10618 = vmatmul.mubr.msk.bf16.gmra.mrb[28].mxu0 %vm1103_vm2, %v3994_v24  ;;  %v12783_v24 = vadd.s32 96, %v12692_v17  ;;  %16594 = vst [vmem:[#allocation13_spill] sm:$0xff] %v12963_v44  ;;  %v13003_v10 = vadd.s32 18, %v12963_v44 }
 0x297   : > { %10621 = vmatprep.mubr.msk.bf16.mxu0 %vm1103_vm2, %v3996_v28  ;;  %v12786_v28 = vmul.u32.u64.low 3817748708, %v12762_v20  ;;  %v12787_v53 = vmul.u32.u64.high 3817748708, %v12762_v20, %v12786_v28 }
 0x298   : > { %v12811_v45 = vmul.u32.u64.low 3817748708, %v12783_v24  ;;  %v12812_v56 = vmul.u32.u64.high 3817748708, %v12783_v24, %v12811_v45  ;;  %v380_v28 = vshrl.u32 %v12841_v11, 4  ;;  %16596 = vst [vmem:[#allocation15_spill] sm:$0xff] %v13003_v10 }
 0x299   : > { %v314_v31 = vshrl.u32 %v12787_v53, 4  ;;  %v12948_v53 = vadd.s32 128, %v12692_v17  ;;  %v12968_v45 = vadd.s32 18, %v12928_v19 }
 0x29a   : > { %v347_v5 = vshrl.u32 %v12812_v56, 4  ;;  %v381_v11 = vmul.u32 18, %v380_v28 }
 0x29b   : > { %v315_v52 = vmul.u32 18, %v314_v31  ;;  %v12983_v27 = vmul.u32.u64.low 3817748708, %v12948_v53  ;;  %v12984_v23 = vmul.u32.u64.high 3817748708, %v12948_v53, %v12983_v27  ;;  %v12987_v31 = vadd.s32 18, %v12936_v46 }
 0x29c   : > { %v348_v56 = vmul.u32 18, %v347_v5  ;;  %v359_v5 = vmul.u32 18, %v358_v6  ;;  %v13038_v6 = vadd.s32 168, %v12692_v17 }
 0x29d   : > { %v12976_v33 = vsub.s32 %v12762_v20, %v315_v52  ;;  %v12992_v20 = vadd.s32 136, %v12692_v17 }
 0x29e   : > { %10622 = vmatmul.mubr.msk.bf16.gmra.mrb[32].mxu0 %vm1103_vm2, %v3998_v8  ;;  %v12790_v8 = vmul.u32.u64.low 3817748708, %v12765_v22  ;;  %v12791_v12 = vmul.u32.u64.high 3817748708, %v12765_v22, %v12790_v8  ;;  %vm12818_vm2 = vmand %vm643_vm10, %vm607_vm9  ;;  %vm609_vm10 = vcmp.ne.s32.totalorder %v12803_v47, 0 }
 0x29f   : > { %vm12850_vm9 = vmand %vm644_vm14, %vm608_vm13  ;;  %vm612_vm13 = vcmp.ne.s32.totalorder %v12805_v48, 0  ;;  %vm648_vm14 = vcmp.lt.s32.totalorder %v12805_v48, 0  ;;  %vm16607_vm1 = vcmp.lt.s32.totalorder %v12976_v33, 0  ;;  %v425_v48 = vmul.u32 18, %v424_v36 }
 0x2a0   : > { %v369_v39 = vshrl.u32 %v12791_v12, 4  ;;  %vm12884_vm0 = vmand %vm645_vm11, %vm609_vm10  ;;  %vm651_vm10 = vcmp.lt.s32.totalorder %v12928_v19, 0  ;;  %vm613_vm11 = vcmp.ne.s32.totalorder %v12936_v46, 0 }
 0x2a1   : > { %v16585_v55 = vsel %vm12884_vm0, 4294967295, %v16584_v55  ;;  %vm12900_vm3 = vmand %vm648_vm14, %vm612_vm13  ;;  %vm649_vm13 = vcmp.lt.s32.totalorder %v12936_v46, 0  ;;  %vm616_vm14 = vcmp.ne.s32.totalorder %v12963_v44, 0 }
 0x2a2   : > { %v16588_v37 = vsel %vm12900_vm3, 4294967295, %v16587_v37  ;;  %v370_v42 = vmul.u32 18, %v369_v39  ;;  %v413_v39 = vshrl.u32 %v12909_v9, 4  ;;  %v13011_v9 = vadd.s32 18, %v12976_v33  ;;  %vm13052_vm15 = vmand %vm651_vm10, %vm615_vm5 }
 0x2a3   : > { %16589 = vst [vmem:[#allocation10_spill] sm:$0xff] %v16588_v37  ;;  %vm13070_vm8 = vmand %vm649_vm13, %vm613_vm11  ;;  %vm16603_vm5 = vcmp.lt.s32.totalorder %v12963_v44, 0  ;;  %vm16606_vm13 = vcmp.ne.s32.totalorder %v12976_v33, 0 }
 0x2a4   : > { %v12979_v1 = vsub.s32 %v12765_v22, %v370_v42  ;;  %v12996_v22 = vsub.s32 %v12783_v24, %v348_v56  ;;  %v13015_v24 = vsub.s32 %v12799_v35, %v381_v11  ;;  %v414_v52 = vmul.u32 18, %v413_v39  ;;  %vm13086_vm10 = vmand %vm16603_vm5, %vm616_vm14 }
 0x2a5   : > { %v13018_v42 = vmul.u32.u64.low 3817748708, %v12992_v20  ;;  %v13019_v28 = vmul.u32.u64.high 3817748708, %v12992_v20, %v13018_v42  ;;  %v13022_v56 = vadd.s32 160, %v12692_v17  ;;  %vm13102_vm7 = vmand %vm16607_vm1, %vm16606_vm13 }
 0x2a6   : > { %16595 = vst [vmem:[#allocation14_spill] sm:$0xff] %v12996_v22  ;;  %16597 = vst [vmem:[#allocation16_spill] sm:$0xff] %v13015_v24  ;;  %v13026_v27 = vadd.s32 18, %v12979_v1  ;;  %v13034_v35 = vmul.u32.u64.low 3817748708, %v13008_v38  ;;  %v13035_v11 = vmul.u32.u64.high 3817748708, %v13008_v38, %v13034_v35  ;;  %v13041_v39 = vadd.s32 18, %v12996_v22 }
 0x2a7   : > { %v391_v42 = vshrl.u32 %v12984_v23, 4  ;;  %v13057_v35 = vsub.s32 %v12844_v16, %v359_v5  ;;  %v13060_v8 = vsub.s32 %v12858_v13, %v414_v52  ;;  %v13080_v13 = vadd.s32 192, %v12692_v17 }
 0x2a8   : > { %v13063_v49 = vmul.u32.u64.low 3817748708, %v13022_v56  ;;  %v13064_v23 = vmul.u32.u64.high 3817748708, %v13022_v56, %v13063_v49  ;;  %v13076_v16 = vmul.u32.u64.low 3817748708, %v13030_v34  ;;  %v13077_v5 = vmul.u32.u64.high 3817748708, %v13030_v34, %v13076_v16 }
 0x2a9   : > { %16600 = vst [vmem:[#allocation17_spill] sm:$0xff] %v13060_v8  ;;  %v16604_v49 = vmov 0  ;;  %v13092_v52 = vmul.u32.u64.low 3817748708, %v13038_v6  ;;  %v13093_v59 = vmul.u32.u64.high 3817748708, %v13038_v6, %v13092_v52  ;;  %v16608_v16 = vmov 0 }
 0x2aa   : > { %v16605_v49 = vsel %vm13086_vm10, 4294967295, %v16604_v49  ;;  %v16609_v16 = vsel %vm13102_vm7, 4294967295, %v16608_v16  ;;  %v13107_v62 = vadd.s32 18, %v13015_v24  ;;  %v392_v40 = vmul.u32 18, %v391_v42 }
 0x2ab   : > { %vm16610_vm14 = vcmp.ne.s32.totalorder %v12979_v1, 0  ;;  %vm16611_vm5 = vcmp.lt.s32.totalorder %v12979_v1, 0  ;;  %v16612_v52 = vmov 0  ;;  %v13124_v4 = vadd.s32 18, %v13057_v35 }
 0x2ac   : > { %vm13117_vm11 = vmand %vm16611_vm5, %vm16610_vm14  ;;  %v402_v42 = vshrl.u32 %v13019_v28, 4  ;;  %vm16614_vm3 = vcmp.ne.s32.totalorder %v12996_v22, 0  ;;  %vm16615_vm4 = vcmp.lt.s32.totalorder %v12996_v22, 0  ;;  %vm623_vm14 = vcmp.ne.s32.totalorder %v13060_v8, 0 }
 0x2ad   : > { %v16613_v52 = vsel %vm13117_vm11, 4294967295, %v16612_v52  ;;  %vm13131_vm0 = vmand %vm16615_vm4, %vm16614_vm3  ;;  %v13137_v41 = vmul.u32.u64.low 3817748708, %v13080_v13  ;;  %v13138_v37 = vmul.u32.u64.high 3817748708, %v13080_v13, %v13137_v41  ;;  %vm16618_vm5 = vcmp.ne.s32.totalorder %v13015_v24, 0 }
 0x2ae   : > { %v16617_v51 = vsel %vm13131_vm0, 4294967295, %v16616_v51  ;;  %vm16619_vm13 = vcmp.lt.s32.totalorder %v13015_v24, 0  ;;  %v16620_v28 = vmov 0  ;;  %vm659_vm4 = vcmp.lt.s32.totalorder %v13060_v8, 0 }
 0x2af   : > { %vm13144_vm1 = vmand %vm16619_vm13, %vm16618_vm5  ;;  %v457_v0 = vshrl.u32 %v13035_v11, 4  ;;  %vm16622_vm3 = vcmp.ne.s32.totalorder %v13057_v35, 0  ;;  %vm16623_vm13 = vcmp.lt.s32.totalorder %v13057_v35, 0  ;;  %v13175_v11 = vsub.s32 %v12948_v53, %v392_v40 }
 0x2b0   : > { %v16621_v28 = vsel %vm13144_vm1, 4294967295, %v16620_v28  ;;  %vm13170_vm5 = vmand %vm16623_vm13, %vm16622_vm3  ;;  %v13182_v41 = vadd.s32 18, %v13060_v8  ;;  %v403_v47 = vmul.u32 18, %v402_v42  ;;  %v435_v44 = vshrl.u32 %v13064_v23, 4 }
 0x2b1   : > { %v16625_v3 = vsel %vm13170_vm5, 4294967295, %v16624_v3  ;;  %vm13197_vm3 = vmand %vm659_vm4, %vm623_vm14  ;;  %v16627_v53 = vmov 0  ;;  %v13202_v23 = vsub.s32 %v12971_v61, %v425_v48  ;;  %v468_v42 = vshrl.u32 %v13077_v5, 4 }
 0x2b2   : > { %16626 = vst [vmem:[#allocation18_spill] sm:$0xff] %v13182_v41  ;;  %v16628_v53 = vsel %vm13197_vm3, 4294967295, %v16627_v53  ;;  %v458_v36 = vmul.u32 18, %v457_v0  ;;  %v446_v22 = vshrl.u32 %v13093_v59, 4  ;;  %vm621_vm14 = vcmp.ne.s32.totalorder %v13175_v11, 0 }
 0x2b3   : > { %16629 = vst [vmem:[#allocation19_spill] sm:$0xff] %v16628_v53  ;;  %16630 = vst [vmem:[#allocation20_spill] sm:$0xff] %v13202_v23  ;;  %v501_v48 = vshrl.u32 %v13111_v54, 4  ;;  %v13218_v61 = vadd.s32 200, %v12692_v17  ;;  %v13225_v10 = vadd.s32 18, %v13175_v11  ;;  %v13228_v0 = vsub.s32 %v12992_v20, %v403_v47 }
 0x2b4   : > { %v436_v59 = vmul.u32 18, %v435_v44  ;;  %v469_v40 = vmul.u32 18, %v468_v42  ;;  %v479_v54 = vshrl.u32 %v13138_v37, 4  ;;  %v13233_v24 = vadd.s32 240, %v12692_v17 }
 0x2b5   : > { %v13237_v53 = vsub.s32 %v13008_v38, %v458_v36  ;;  %v447_v5 = vmul.u32 18, %v446_v22  ;;  %v512_v8 = vshrl.u32 %v13152_v43, 4  ;;  %v13241_v47 = vadd.s32 18, %v13202_v23 }
 0x2b6   : > { %v502_v44 = vmul.u32 18, %v501_v48  ;;  %v13244_v20 = vmul.u32.u64.low 3817748708, %v13218_v61  ;;  %v13245_v42 = vmul.u32.u64.high 3817748708, %v13218_v61, %v13244_v20  ;;  %vm16632_vm13 = vcmp.lt.s32.totalorder %v13175_v11, 0 }
 0x2b7   : > { %16631 = vst [vmem:[#allocation21_spill] sm:$0xff] %v13237_v53  ;;  %vm13251_vm3 = vmand %vm16632_vm13, %vm621_vm14  ;;  %v16633_v37 = vmov 0  ;;  %v13258_v43 = vsub.s32 %v13022_v56, %v436_v59  ;;  %v13261_v22 = vadd.s32 224, %v12692_v17  ;;  %v13264_v38 = vsub.s32 %v13030_v34, %v469_v40 }
 0x2b8   : > { %v16634_v37 = vsel %vm13251_vm3, 4294967295, %v16633_v37  ;;  %v480_v36 = vmul.u32 18, %v479_v54  ;;  %v13267_v48 = vmul.u32.u64.low 3817748708, %v13233_v24  ;;  %v13268_v20 = vmul.u32.u64.high 3817748708, %v13233_v24, %v13267_v48 }
 0x2b9   : > { %16635 = vst [vmem:[#allocation22_spill] sm:$0xff] %v13258_v43  ;;  %16636 = vst [vmem:[#allocation23_spill] sm:$0xff] %v13264_v38  ;;  %vm16637_vm14 = vcmp.ne.s32.totalorder %v13202_v23, 0  ;;  %vm16638_vm13 = vcmp.lt.s32.totalorder %v13202_v23, 0  ;;  %v16639_v41 = vmov 0  ;;  %v13281_v56 = vsub.s32 %v13038_v6, %v447_v5 }
 0x2ba   : > { %vm13274_vm4 = vmand %vm16638_vm13, %vm16637_vm14  ;;  %v513_v34 = vmul.u32 18, %v512_v8  ;;  %v13288_v59 = vadd.s32 18, %v13228_v0  ;;  %v13291_v54 = vadd.s32 18, %v13237_v53  ;;  %v13294_v48 = vsub.s32 %v13046_v26, %v502_v44 }
 0x2bb   : > { %v16640_v41 = vsel %vm13274_vm4, 4294967295, %v16639_v41  ;;  %16641 = vst [vmem:[#allocation24_spill] sm:$0xff] %v13281_v56  ;;  %v16644_v6 = vsel %vm12818_vm2, %v12746_v57, %v12728_v29  ;;  %v16645_v8 = vmov 0  ;;  %v16648_v5 = vsel %vm12832_vm6, %v12778_v25, %v12742_v50 }
 0x2bc   : > { %16642 = vst [vmem:[#allocation25_spill] sm:$0xff] %v13291_v54  ;;  %16643 = vst [vmem:[#allocation26_spill] sm:$0xff] %v13294_v48  ;;  %vm13301_vm14 = vcmp.lt.s32.totalorder %v16644_v6, 16  ;;  %vm13310_vm13 = vcmp.lt.s32.totalorder %v16648_v5, 16  ;;  %v16649_v40 = vmov 0  ;;  %vm16652_vm5 = vcmp.ne.s32.totalorder %v13228_v0, 0 }
 0x2bd   : > { %v16646_v8 = vsel %vm13301_vm14, 4294967295, %v16645_v8  ;;  %v16650_v40 = vsel %vm13310_vm13, 4294967295, %v16649_v40  ;;  %vm16653_vm1 = vcmp.lt.s32.totalorder %v13228_v0, 0  ;;  %v16654_v26 = vmov 0  ;;  %v16703_v54 = vld [vmem:[#allocation3_spill] sm:$0xff] }
 0x2be   : > { %16647 = vst [vmem:[#allocation27_spill] sm:$0xff] %v16646_v8  ;;  %16651 = vst [vmem:[#allocation28_spill] sm:$0xff] %v16650_v40  ;;  %v13325_v29 = vmul.u32.u64.low 3817748708, %v13261_v22  ;;  %v13326_v57 = vmul.u32.u64.high 3817748708, %v13261_v22, %v13325_v29  ;;  %v16656_v50 = vsel %vm12850_vm9, %v12796_v30, %v12769_v15  ;;  %v16657_v25 = vmov 0  ;;  %v16726_v8 = vld [vmem:[#allocation6_spill] sm:$0xff] }
 0x2bf   : > { %vm13318_vm3 = vmand %vm16653_vm1, %vm16652_vm5  ;;  %vm13333_vm6 = vcmp.lt.s32.totalorder %v16656_v50, 16  ;;  %vm16660_vm1 = vcmp.ne.s32.totalorder %v13237_v53, 0  ;;  %vm16661_vm5 = vcmp.lt.s32.totalorder %v13237_v53, 0  ;;  %v13352_v15 = vsub.s32 %v13080_v13, %v480_v36 }
 0x2c0   : > { %v16655_v26 = vsel %vm13318_vm3, 4294967295, %v16654_v26  ;;  %v16658_v25 = vsel %vm13333_vm6, 4294967295, %v16657_v25  ;;  %vm13345_vm0 = vmand %vm16661_vm5, %vm16660_vm1  ;;  %v16665_v30 = vsel %vm12864_vm12, %v12823_v58, %v12771_v14  ;;  %v13364_v44 = vadd.s32 18, %v13258_v43 }
 0x2c1   : > { %16659 = vst [vmem:[#allocation29_spill] sm:$0xff] %v16658_v25  ;;  %v16663_v2 = vsel %vm13345_vm0, 4294967295, %v16662_v2  ;;  %vm13359_vm4 = vcmp.lt.s32.totalorder %v16665_v30, 16  ;;  %vm626_vm1 = vcmp.ne.s32.totalorder %v13281_v56, 0  ;;  %vm662_vm5 = vcmp.lt.s32.totalorder %v13281_v56, 0 }
 0x2c2   : > { %16664 = vst [vmem:[#allocation30_spill] sm:$0xff] %v16663_v2  ;;  %v16667_v18 = vsel %vm13359_vm4, 4294967295, %v16666_v18  ;;  %16669 = vst [vmem:[#allocation32_spill] sm:$0xff] %v13364_v44  ;;  %v13369_v6 = vsub.s32 %v13096_v7, %v513_v34  ;;  %vm16670_vm2 = vcmp.ne.s32.totalorder %v13258_v43, 0  ;;  %vm16671_vm11 = vcmp.lt.s32.totalorder %v13258_v43, 0  ;;  %v16692_v44 = vld [vmem:[#allocation4_spill] sm:$0xff] }
 0x2c3   : > { %16668 = vst [vmem:[#allocation31_spill] sm:$0xff] %v16667_v18  ;;  %vm13375_vm12 = vmand %vm16671_vm11, %vm16670_vm2  ;;  %v16672_v14 = vmov 0  ;;  %vm631_vm10 = vcmp.ne.s32.totalorder %v13294_v48, 0  ;;  %v490_v58 = vshrl.u32 %v13245_v42, 4  ;;  %vm16675_vm11 = vcmp.ne.s32.totalorder %v13264_v38, 0 }
 0x2c4   : > { %v16673_v14 = vsel %vm13375_vm12, 4294967295, %v16672_v14  ;;  %vm16676_vm2 = vcmp.lt.s32.totalorder %v13264_v38, 0  ;;  %v16677_v36 = vmov 0  ;;  %v13402_v42 = vadd.s32 18, %v13264_v38  ;;  %vm13409_vm7 = vmand %vm662_vm5, %vm626_vm1 }
 0x2c5   : > { %16674 = vst [vmem:[#allocation33_spill] sm:$0xff] %v16673_v14  ;;  %vm13397_vm9 = vmand %vm16676_vm2, %vm16675_vm11  ;;  %v13405_v34 = vadd.s32 18, %v13281_v56  ;;  %v16682_v5 = vmov 0  ;;  %v13414_v29 = vadd.s32 18, %v13294_v48  ;;  %vm629_vm11 = vcmp.ne.s32.totalorder %v13352_v15, 0 }
 0x2c6   : > { %v16678_v36 = vsel %vm13397_vm9, 4294967295, %v16677_v36  ;;  %16680 = vst [vmem:[#allocation35_spill] sm:$0xff] %v13402_v42  ;;  %v16683_v5 = vsel %vm13409_vm7, 4294967295, %v16682_v5  ;;  %vm665_vm2 = vcmp.lt.s32.totalorder %v13352_v15, 0  ;;  %v545_v50 = vshrl.u32 %v13268_v20, 4 }
 0x2c7   : > { %16679 = vst [vmem:[#allocation34_spill] sm:$0xff] %v16678_v36  ;;  %16681 = vst [vmem:[#allocation36_spill] sm:$0xff] %v13405_v34  ;;  %vm16686_vm1 = vcmp.lt.s32.totalorder %v13294_v48, 0  ;;  %v16687_v13 = vmov 0  ;;  %vm668_vm3 = vcmp.lt.s32.totalorder %v13369_v6, 0  ;;  %v13437_v20 = vadd.s32 18, %v13352_v15 }
 0x2c8   : > { %16684 = vst [vmem:[#allocation37_spill] sm:$0xff] %v16683_v5  ;;  %16685 = vst [vmem:[#allocation38_spill] sm:$0xff] %v13414_v29  ;;  %v491_v7 = vmul.u32 18, %v490_v58  ;;  %v13440_v30 = vmul.u32.u64.low 3817748708, %v13383_v21  ;;  %v13441_v43 = vmul.u32.u64.high 3817748708, %v13383_v21, %v13440_v30  ;;  %v16694_v53 = vmov 0 }
 0x2c9   : > { %vm13427_vm5 = vmand %vm16686_vm1, %vm631_vm10  ;;  %vm16691_vm10 = vnez %v16585_v55  ;;  %v16697_v30 = vmov 0  ;;  %v13465_v55 = vadd.s32 18, %v13369_v6  ;;  %v16702_v36 = vld [vmem:[#allocation7_spill] sm:$0xff]  ;;  %v16705_v42 = vmov 0  ;;  %v16715_v5 = vld [vmem:[#allocation10_spill] sm:$0xff] }
 0x2ca   : > { %v16688_v13 = vsel %vm13427_vm5, 4294967295, %v16687_v13  ;;  %v16693_v14 = vsel %vm16691_vm10, %v12889_v32, %v16692_v44  ;;  %vm13460_vm0 = vmand %vm665_vm2, %vm629_vm11  ;;  %v523_v32 = vshrl.u32 %v13326_v57, 4  ;;  %vm16708_vm11 = vcmp.ne.s32.totalorder %v13369_v6, 0 }
 0x2cb   : > { %16689 = vst [vmem:[#allocation39_spill] sm:$0xff] %v16688_v13  ;;  %vm13448_vm1 = vcmp.lt.s32.totalorder %v16693_v14, 16  ;;  %v16698_v30 = vsel %vm13460_vm0, 4294967295, %v16697_v30  ;;  %v16700_v14 = vld [vmem:[#allocation8_spill] sm:$0xff]  ;;  %vm13485_vm2 = vmand %vm668_vm3, %vm16708_vm11  ;;  %v16709_v57 = vmov 0  ;;  %v546_v56 = vmul.u32 18, %v545_v50 }
 0x2cc   : > { %v16695_v53 = vsel %vm13448_vm1, 4294967295, %v16694_v53  ;;  %vm16701_vm10 = vnez %v16700_v14  ;;  %v16710_v57 = vsel %vm13485_vm2, 4294967295, %v16709_v57  ;;  %v13490_v14 = vadd.s32 272, %v12692_v17 }
 0x2cd   : > { %16696 = vst [vmem:[#allocation4_spill] sm:$0xff] %v16695_v53  ;;  %v16704_v38 = vsel %vm16701_vm10, %v16702_v36, %v16703_v54  ;;  %v13498_v36 = vmul.u32.u64.low 3817748708, %v13434_v60  ;;  %v13499_v34 = vmul.u32.u64.high 3817748708, %v13434_v60, %v13498_v36  ;;  %v13503_v58 = vadd.s32 280, %v12692_v17  ;;  %v16717_v60 = vld [vmem:[#allocation9_spill] sm:$0xff] }
 0x2ce   : > { %vm13475_vm9 = vcmp.lt.s32.totalorder %v16704_v38, 16  ;;  %v13493_v38 = vadd.s32 256, %v12692_v17  ;;  %v13506_v48 = vadd.s32 264, %v12692_v17  ;;  %vm16716_vm3 = vnez %v16715_v5  ;;  %v16718_v36 = vld [vmem:[#allocation5_spill] sm:$0xff]  ;;  %v16723_v17 = vld [vmem:[#allocation12_spill] sm:$0xff] }
 0x2cf   : > { %v16706_v42 = vsel %vm13475_vm9, 4294967295, %v16705_v42  ;;  %16712 = vst [vmem:[#allocation3_spill] sm:$0xff] %v13503_v58  ;;  %v16719_v2 = vsel %vm16716_vm3, %v16717_v60, %v16718_v36  ;;  %v16720_v58 = vmov 0  ;;  %vm16724_vm11 = vnez %v16723_v17 }
 0x2d0   : > { %16707 = vst [vmem:[#allocation8_spill] sm:$0xff] %v16706_v42  ;;  %16713 = vst [vmem:[#allocation42_spill] sm:$0xff] %v13506_v48  ;;  %vm13521_vm10 = vcmp.lt.s32.totalorder %v16719_v2, 16  ;;  %v16725_v48 = vld [vmem:[#allocation11_spill] sm:$0xff]  ;;  %v16728_v23 = vmov 0  ;;  %v13539_v60 = vsub.s32 %v13218_v61, %v491_v7  ;;  %v13554_v61 = vsub.s32 %v13233_v24, %v546_v56 }
 0x2d1   : > { %v16721_v58 = vsel %vm13521_vm10, 4294967295, %v16720_v58  ;;  %v13557_v7 = vmul.u32.u64.low 3817748708, %v13490_v14  ;;  %v13558_v5 = vmul.u32.u64.high 3817748708, %v13490_v14, %v13557_v7  ;;  %vm16732_vm3 = vcmask 64512   ;;  %v16804_v42 = vld [vmem:[#allocation19_spill] sm:$0xff] }
 0x2d2   : > { %16722 = vst [vmem:[#allocation10_spill] sm:$0xff] %v16721_v58  ;;  %v556_v18 = vshrl.u32 %v13441_v43, 4  ;;  %vm16736_vm2 = vmmov %vm16732_vm3  ;;  %v16738_v7 = vmov 0  ;;  %v16741_v43 = vsel %vm13070_vm8, %v12987_v31, %v12936_v46  ;;  %vm16746_vm8 = vnez %v16609_v16  ;;  %v16754_v16 = vld [vmem:[#allocation15_spill] sm:$0xff] }
 0x2d3   : > { %v16747_v46 = vsel %vm16746_vm8, %v13011_v9, %v12976_v33  ;;  %v16748_v31 = vmov 0  ;;  %vm16753_vm8 = vnez %v16605_v49  ;;  %v16763_v49 = vmov 0 }
 0x331   : > { %v13468_v44 = vpop.f32.mrb[0].mxu0 }
 0x332   : > { %16699 = vst [vmem:[#allocation41_spill] sm:$0xff] %v13468_v44  ;;  %v13495_v54 = vpop.f32.mrb[1].mxu0  ;;  %v4343_v50 = vsel %vm13301_vm14, %v13468_v44, 0.0  ;;  %v16727_v44 = vsel %vm16724_vm11, %v16725_v48, %v16726_v8  ;;  %v524_v8 = vmul.u32 18, %v523_v32  ;;  %vm16733_vm11 = vmmov %vm16732_vm3 }
 0x333   : > { %16711 = vst [vmem:[#allocation7_spill] sm:$0xff] %v13495_v54  ;;  %v4341_v29 = vsel %vm13310_vm13, %v13495_v54, 0.0  ;;  %v13514_v13 = vpop.f32.mrb[2].mxu0  ;;  %vm13530_vm14 = vcmp.lt.s32.totalorder %v16727_v44, 16  ;;  %v4458_v25 = vmul.f32 %v4343_v50, %v4343_v50  ;;  %vm16735_vm13 = vmmov %vm16732_vm3 }
 0x334   : > { %16714 = vst [vmem:[#allocation43_spill] sm:$0xff] %v13514_v13  ;;  %v16729_v23 = vsel %vm13530_vm14, 4294967295, %v16728_v23  ;;  %v4456_v2 = vmul.f32 %v4341_v29, %v4341_v29  ;;  %v4344_v36 = vsel %vm13333_vm6, %v13514_v13, 0.0  ;;  %v13544_v17 = vpop.f32.mrb[3].mxu0  ;;  %v4378_v40 = vsel %vm16732_vm3, %v4341_v29, 0.0  ;;  %vm16751_vm6 = vmmov %vm16736_vm2 }
 0x335   : > { %16730 = vst [vmem:[#allocation9_spill] sm:$0xff] %v16729_v23  ;;  %16731 = vst [vmem:[#allocation5_spill] sm:$0xff] %v13544_v17  ;;  %v4342_v44 = vsel %vm13359_vm4, %v13544_v17, 0.0  ;;  %v4459_v48 = vmul.f32 %v4344_v36, %v4344_v36  ;;  %v16737_v29 = vsel %vm13052_vm15, %v12968_v45, %v12928_v19  ;;  %v13590_v19 = vadd.s32 18, %v13539_v60 }
 0x336   : > { %v4379_v13 = vsel %vm16733_vm11, %v4342_v44, 0.0  ;;  %v4457_v54 = vmul.f32 %v4342_v44, %v4342_v44  ;;  %vm16734_vm4 = vmmov %vm16732_vm3  ;;  %v4492_v56 = vsel %vm16735_vm13, %v4456_v2, 0.0  ;;  %vm13573_vm3 = vcmp.lt.s32.totalorder %v16737_v29, 16 }
 0x337   : > { %v4380_v32 = vadd.f32 %v4379_v13, %v4378_v40  ;;  %v4381_v24 = vsel %vm16734_vm4, %v4343_v50, 0.0  ;;  %v16739_v7 = vsel %vm13573_vm3, 4294967295, %v16738_v7  ;;  %vm13582_vm11 = vcmp.lt.s32.totalorder %v16741_v43, 16  ;;  %vm16745_vm15 = vmmov %vm16736_vm2 }
 0x338   : > { %v4493_v17 = vsel %vm16736_vm2, %v4457_v54, 0.0  ;;  %16740 = vst [vmem:[#allocation12_spill] sm:$0xff] %v16739_v7  ;;  %v16742_v40 = vmov 0  ;;  %v13593_v45 = vsub.s32 %v13261_v22, %v524_v8  ;;  %v4495_v63 = vsel %vm16745_vm15, %v4458_v25, 0.0  ;;  %vm16752_vm15 = vmmov %vm16736_vm2  ;;  %v16755_v8 = vld [vmem:[#allocation13_spill] sm:$0xff] }
 0x339   : > { %v16743_v40 = vsel %vm13582_vm11, 4294967295, %v16742_v40  ;;  %v4382_v13 = vadd.f32 %v4381_v24, %v4380_v32  ;;  %v4494_v12 = vadd.f32 %v4493_v17, %v4492_v56  ;;  %v13587_v54 = vpop.f32.mrb[4].mxu0  ;;  %vm13603_vm13 = vcmp.lt.s32.totalorder %v16747_v46, 16 }
 0x33a   : > { %16744 = vst [vmem:[#allocation11_spill] sm:$0xff] %v16743_v40  ;;  %v13596_v50 = vpop.f32.mrb[5].mxu0  ;;  %v16749_v31 = vsel %vm13603_vm13, 4294967295, %v16748_v31  ;;  %v13610_v22 = vadd.s32 18, %v13554_v61  ;;  %v4383_v25 = vsel %vm16751_vm6, %v4344_v36, 0.0  ;;  %v4497_v2 = vsel %vm16752_vm15, %v4459_v48, 0.0  ;;  %vm16760_vm6 = vmmov %vm16736_vm2 }
 0x33b   : > { %16750 = vst [vmem:[#allocation6_spill] sm:$0xff] %v16749_v31  ;;  %v4496_v17 = vadd.f32 %v4495_v63, %v4494_v12  ;;  %v4345_v33 = vsel %vm13448_vm1, %v13596_v50, 0.0  ;;  %v13617_v9 = vpop.f32.mrb[6].mxu0  ;;  %v16756_v44 = vsel %vm16753_vm8, %v16754_v16, %v16755_v8  ;;  %v16757_v32 = vmov 0 }
 0x33c   : > { %vm13624_vm4 = vcmp.lt.s32.totalorder %v16756_v44, 16  ;;  %v4347_v36 = vsel %vm13475_vm9, %v13587_v54, 0.0  ;;  %v4384_v48 = vadd.f32 %v4383_v25, %v4382_v13  ;;  %v4385_v24 = vsel %vm16760_vm6, %v4345_v33, 0.0  ;;  %v13632_v29 = vpop.f32.mrb[7].mxu0  ;;  %vm16765_vm9 = vmmov %vm16760_vm6 }
 0x33d   : > { %v16758_v32 = vsel %vm13624_vm4, 4294967295, %v16757_v32  ;;  %v4460_v56 = vmul.f32 %v4345_v33, %v4345_v33  ;;  %v4498_v43 = vadd.f32 %v4497_v2, %v4496_v17  ;;  %vm16761_vm15 = vcmp.ne.s32.totalorder %v13539_v60, 0 }
 0x33e   : > { %16759 = vst [vmem:[#allocation15_spill] sm:$0xff] %v16758_v32  ;;  %vm16762_vm2 = vcmp.lt.s32.totalorder %v13539_v60, 0  ;;  %v557_v12 = vmul.u32 18, %v556_v18  ;;  %v4386_v13 = vadd.f32 %v4385_v24, %v4384_v48  ;;  %v4348_v46 = vsel %vm13521_vm10, %v13617_v9, 0.0  ;;  %v16777_v24 = vld [vmem:[#allocation14_spill] sm:$0xff] }
 0x33f   : > { %vm13638_vm8 = vmand %vm16762_vm2, %vm16761_vm15  ;;  %v4499_v63 = vsel %vm16765_vm9, %v4460_v56, 0.0  ;;  %v4346_v25 = vsel %vm13530_vm14, %v13632_v29, 0.0  ;;  %v4462_v2 = vmul.f32 %v4347_v36, %v4347_v36  ;;  %vm16768_vm15 = vcmp.lt.s32.totalorder %v13554_v61, 0 }
 0x340   : > { %v16764_v49 = vsel %vm13638_vm8, 4294967295, %v16763_v49  ;;  %v4500_v17 = vadd.f32 %v4499_v63, %v4498_v43  ;;  %vm16766_vm2 = vmmov %vm16760_vm6  ;;  %v4461_v16 = vmul.f32 %v4346_v25, %v4346_v25  ;;  %vm16767_vm6 = vcmp.ne.s32.totalorder %v13554_v61, 0 }
 0x341   : > { %v4387_v33 = vsel %vm16766_vm2, %v4346_v25, 0.0  ;;  %vm13656_vm0 = vmand %vm16768_vm15, %vm16767_vm6  ;;  %vm16771_vm9 = vnez %v16613_v52  ;;  %v16773_v48 = vmov 0  ;;  %vm16776_vm2 = vnez %v16617_v51  ;;  %v13688_v25 = vpop.f32.mrb[8].mxu0 }
 0x342   : > { %v4388_v8 = vadd.f32 %v4387_v33, %v4386_v13  ;;  %v16772_v44 = vsel %vm16771_vm9, %v13026_v27, %v12979_v1  ;;  %v16778_v56 = vsel %vm16776_vm2, %v13041_v39, %v16777_v24  ;;  %v16779_v43 = vmov 0  ;;  %v13693_v24 = vpop.f32.mrb[9].mxu0 }
 0x343   : > { %vm13665_vm1 = vcmp.lt.s32.totalorder %v16772_v44, 16  ;;  %vm13674_vm10 = vcmp.lt.s32.totalorder %v16778_v56, 16  ;;  %v13683_v1 = vmul.u32.u64.low 3817748708, %v13493_v38  ;;  %v13684_v27 = vmul.u32.u64.high 3817748708, %v13493_v38, %v13683_v1 }
 0x344   : > { %v16774_v48 = vsel %vm13665_vm1, 4294967295, %v16773_v48  ;;  %v16780_v43 = vsel %vm13674_vm10, 4294967295, %v16779_v43  ;;  %vm16782_vm6 = vcmask 64512   ;;  %v4463_v63 = vmul.f32 %v4348_v46, %v4348_v46 }
 0x345   : > { %16775 = vst [vmem:[#allocation13_spill] sm:$0xff] %v16774_v48  ;;  %16781 = vst [vmem:[#allocation14_spill] sm:$0xff] %v16780_v43  ;;  %v4389_v13 = vsel %vm16782_vm6, %v4347_v36, 0.0  ;;  %v13691_v39 = vadd.s32 18, %v13593_v45  ;;  %vm16784_vm9 = vnez %v16625_v3  ;;  %v16786_v1 = vmov 0  ;;  %v16849_v48 = vld [vmem:[#allocation32_spill] sm:$0xff] }
 0x346   : > { %vm16783_vm15 = vmmov %vm16782_vm6  ;;  %v4390_v33 = vadd.f32 %v4389_v13, %v4388_v8  ;;  %v16785_v56 = vsel %vm16784_vm9, %v13124_v4, %v13057_v35  ;;  %vm16789_vm6 = vcmp.ne.s32.totalorder %v13593_v45, 0  ;;  %v13717_v3 = vsub.s32 %v13383_v21, %v557_v12  ;;  %v13727_v13 = vpop.f32.mrb[10].mxu0 }
 0x347   : > { %v4501_v51 = vsel %vm16783_vm15, %v4461_v16, 0.0  ;;  %vm13700_vm2 = vcmp.lt.s32.totalorder %v16785_v56, 16  ;;  %vm16790_vm15 = vcmp.lt.s32.totalorder %v13593_v45, 0  ;;  %vm16793_vm9 = vcmask 64512   ;;  %v13739_v52 = vpop.f32.mrb[11].mxu0 }
 0x348   : > { %v4502_v44 = vadd.f32 %v4501_v51, %v4500_v17  ;;  %v16787_v1 = vsel %vm13700_vm2, 4294967295, %v16786_v1  ;;  %vm13712_vm14 = vmand %vm16790_vm15, %vm16789_vm6  ;;  %v4503_v4 = vsel %vm16793_vm9, %v4462_v2, 0.0  ;;  %v4351_v16 = vsel %vm13573_vm3, %v13688_v25, 0.0  ;;  %v16796_v51 = vld [vmem:[#allocation16_spill] sm:$0xff] }
 0x349   : > { %16788 = vst [vmem:[#allocation44_spill] sm:$0xff] %v16787_v1  ;;  %vm16794_vm8 = vmmov %vm16793_vm9  ;;  %v4349_v8 = vsel %vm13582_vm11, %v13693_v24, 0.0  ;;  %vm16795_vm6 = vnez %v16621_v28  ;;  %v16798_v12 = vmov 0  ;;  %v4350_v28 = vsel %vm13603_vm13, %v13739_v52, 0.0  ;;  %v16850_v1 = vld [vmem:[#allocation22_spill] sm:$0xff] }
 0x34a   : > { %v4391_v35 = vsel %vm16794_vm8, %v4348_v46, 0.0  ;;  %v16797_v21 = vsel %vm16795_vm6, %v13107_v62, %v16796_v51  ;;  %v4504_v46 = vadd.f32 %v4503_v4, %v4502_v44  ;;  %v4393_v56 = vsel %vm16794_vm8, %v4349_v8, 0.0  ;;  %vm16801_vm9 = vmmov %vm16794_vm8  ;;  %v16806_v62 = vld [vmem:[#allocation18_spill] sm:$0xff] }
 0x34b   : > { %vm13734_vm15 = vcmp.lt.s32.totalorder %v16797_v21, 16  ;;  %v4392_v2 = vadd.f32 %v4391_v35, %v4390_v33  ;;  %v4464_v36 = vmul.f32 %v4349_v8, %v4349_v8  ;;  %v4505_v7 = vsel %vm16801_vm9, %v4463_v63, 0.0  ;;  %vm16802_vm6 = vmmov %vm16794_vm8 }
 0x34c   : > { %v16799_v12 = vsel %vm13734_vm15, 4294967295, %v16798_v12  ;;  %v534_v51 = vshrl.u32 %v13499_v34, 4  ;;  %v4506_v33 = vadd.f32 %v4505_v7, %v4504_v46  ;;  %v4352_v35 = vsel %vm13624_vm4, %v13727_v13, 0.0  ;;  %vm16803_vm8 = vmmov %vm16802_vm6  ;;  %v16807_v34 = vld [vmem:[#allocation17_spill] sm:$0xff] }
 0x34d   : > { %16800 = vst [vmem:[#allocation16_spill] sm:$0xff] %v16799_v12  ;;  %v4394_v44 = vadd.f32 %v4393_v56, %v4392_v2  ;;  %v4507_v4 = vsel %vm16802_vm6, %v4464_v36, 0.0  ;;  %v4466_v63 = vmul.f32 %v4351_v16, %v4351_v16  ;;  %v4395_v8 = vsel %vm16803_vm8, %v4350_v28, 0.0 }
 0x34e   : > { %v4465_v21 = vmul.f32 %v4350_v28, %v4350_v28  ;;  %v589_v31 = vshrl.u32 %v13558_v5, 4  ;;  %v4508_v40 = vadd.f32 %v4507_v4, %v4506_v33  ;;  %vm16805_vm9 = vnez %v16804_v42 }
 0x34f   : > { %v4396_v58 = vadd.f32 %v4395_v8, %v4394_v44  ;;  %v16808_v2 = vsel %vm16805_vm9, %v16806_v62, %v16807_v34  ;;  %v16809_v7 = vmov 0  ;;  %vm16812_vm6 = vnez %v16634_v37  ;;  %v13778_v62 = vpop.f32.mrb[12].mxu0 }
 0x350   : > { %vm13761_vm3 = vcmp.lt.s32.totalorder %v16808_v2, 16  ;;  %v16813_v36 = vsel %vm16812_vm6, %v13225_v10, %v13175_v11  ;;  %v16814_v46 = vmov 0  ;;  %v567_v42 = vshrl.u32 %v13684_v27, 4  ;;  %v13781_v10 = vpop.f32.mrb[13].mxu0 }
 0x351   : > { %v16810_v7 = vsel %vm13761_vm3, 4294967295, %v16809_v7  ;;  %vm13770_vm8 = vcmp.lt.s32.totalorder %v16813_v36, 16  ;;  %vm16817_vm13 = vcmask 64512   ;;  %v4467_v56 = vmul.f32 %v4352_v35, %v4352_v35 }
 0x352   : > { %16811 = vst [vmem:[#allocation19_spill] sm:$0xff] %v16810_v7  ;;  %v16815_v46 = vsel %vm13770_vm8, 4294967295, %v16814_v46  ;;  %v4397_v5 = vsel %vm16817_vm13, %v4351_v16, 0.0  ;;  %vm16818_vm9 = vmmov %vm16817_vm13  ;;  %vm16819_vm6 = vnez %v16655_v26  ;;  %v16821_v27 = vmov 0  ;;  %v16827_v26 = vld [vmem:[#allocation20_spill] sm:$0xff] }
 0x353   : > { %16816 = vst [vmem:[#allocation18_spill] sm:$0xff] %v16815_v46  ;;  %v4509_v28 = vsel %vm16818_vm9, %v4465_v21, 0.0  ;;  %v4398_v37 = vadd.f32 %v4397_v5, %v4396_v58  ;;  %v16820_v11 = vsel %vm16819_vm6, %v13288_v59, %v13228_v0  ;;  %v13793_v16 = vadd.s32 18, %v13717_v3  ;;  %vm16824_vm13 = vmmov %vm16818_vm9  ;;  %v13803_v59 = vpop.f32.mrb[14].mxu0  ;;  %v16833_v5 = vld [vmem:[#allocation3_spill] sm:$0xff] }
 0x354   : > { %v4510_v44 = vadd.f32 %v4509_v28, %v4508_v40  ;;  %vm13788_vm4 = vcmp.lt.s32.totalorder %v16820_v11, 16  ;;  %v535_v33 = vmul.u32 18, %v534_v51  ;;  %v4511_v4 = vsel %vm16824_vm13, %v4466_v63, 0.0  ;;  %16825 = vst [vmem:[#allocation45_spill] sm:$0xff] %v13803_v59  ;;  %vm16832_vm13 = vmmov %vm16818_vm9  ;;  %v13815_v2 = vpop.f32.mrb[15].mxu0 }
 0x355   : > { %v16822_v27 = vsel %vm13788_vm4, 4294967295, %v16821_v27  ;;  %v4399_v58 = vsel %vm16818_vm9, %v4352_v35, 0.0  ;;  %v4355_v40 = vsel %vm13665_vm1, %v13778_v62, 0.0  ;;  %v4353_v0 = vsel %vm13674_vm10, %v13781_v10, 0.0 }
 0x356   : > { %16823 = vst [vmem:[#allocation17_spill] sm:$0xff] %v16822_v27  ;;  %vm16826_vm6 = vnez %v16640_v41  ;;  %v16829_v51 = vmov 0  ;;  %v4512_v35 = vadd.f32 %v4511_v4, %v4510_v44  ;;  %v4400_v63 = vadd.f32 %v4399_v58, %v4398_v37 }
 0x357   : > { %v16828_v8 = vsel %vm16826_vm6, %v13241_v47, %v16827_v26  ;;  %v4401_v21 = vsel %vm16832_vm13, %v4353_v0, 0.0  ;;  %v4468_v34 = vmul.f32 %v4353_v0, %v4353_v0  ;;  %v4513_v36 = vsel %vm16818_vm9, %v4467_v56, 0.0  ;;  %vm16834_vm6 = vmmov %vm16818_vm9 }
 0x358   : > { %vm13810_vm11 = vcmp.lt.s32.totalorder %v16828_v8, 16  ;;  %v4354_v41 = vsel %vm13700_vm2, %v13815_v2, 0.0  ;;  %v13822_v28 = vmul.u32.u64.low 3817748708, %v16833_v5  ;;  %v13823_v47 = vmul.u32.u64.high 3817748708, %v16833_v5, %v13822_v28  ;;  %vm16835_vm13 = vmmov %vm16834_vm6 }
 0x359   : > { %v16830_v51 = vsel %vm13810_vm11, 4294967295, %v16829_v51  ;;  %v4402_v11 = vadd.f32 %v4401_v21, %v4400_v63  ;;  %v4514_v26 = vadd.f32 %v4513_v36, %v4512_v35  ;;  %v4515_v44 = vsel %vm16834_vm6, %v4468_v34, 0.0  ;;  %v16840_v21 = vld [vmem:[#allocation30_spill] sm:$0xff]  ;;  %v16842_v34 = vld [vmem:[#allocation25_spill] sm:$0xff] }
 0x35a   : > { %16831 = vst [vmem:[#allocation20_spill] sm:$0xff] %v16830_v51  ;;  %v4356_v37 = vsel %vm13734_vm15, %v13803_v59, 0.0  ;;  %v4470_v4 = vmul.f32 %v4355_v40, %v4355_v40  ;;  %v4403_v58 = vsel %vm16835_vm13, %v4354_v41, 0.0  ;;  %v4469_v56 = vmul.f32 %v4354_v41, %v4354_v41  ;;  %v16843_v36 = vld [vmem:[#allocation21_spill] sm:$0xff] }
 0x35b   : > { %vm16836_vm9 = vcmp.ne.s32.totalorder %v13717_v3, 0  ;;  %vm16837_vm1 = vcmp.lt.s32.totalorder %v13717_v3, 0  ;;  %v590_v8 = vmul.u32 18, %v589_v31  ;;  %v4516_v35 = vadd.f32 %v4515_v44, %v4514_v26  ;;  %v16855_v31 = vld [vmem:[#allocation42_spill] sm:$0xff] }
 0x35c   : > { %vm13834_vm2 = vmand %vm16837_vm1, %vm16836_vm9  ;;  %v4404_v63 = vadd.f32 %v4403_v58, %v4402_v11  ;;  %vm16841_vm6 = vnez %v16840_v21  ;;  %v16845_v12 = vmov 0  ;;  %v16851_v43 = vsel %vm13375_vm12, %v16849_v48, %v16850_v1  ;;  %v16860_v1 = vld [vmem:[#allocation24_spill] sm:$0xff]  ;;  %v16870_v48 = vld [vmem:[#allocation35_spill] sm:$0xff] }
 0x35d   : > { %v16844_v28 = vsel %vm16841_vm6, %v16842_v34, %v16843_v36  ;;  %vm13852_vm1 = vcmp.lt.s32.totalorder %v16851_v43, 16  ;;  %v16852_v32 = vmov 0  ;;  %v4405_v44 = vsel %vm16835_vm13, %v4355_v40, 0.0  ;;  %vm16856_vm9 = vmmov %vm16835_vm13  ;;  %v13862_v34 = vpop.f32.mrb[16].mxu0  ;;  %v16859_v43 = vld [vmem:[#allocation36_spill] sm:$0xff] }
 0x35e   : > { %vm13843_vm15 = vcmp.lt.s32.totalorder %v16844_v28, 16  ;;  %v16853_v32 = vsel %vm13852_vm1, 4294967295, %v16852_v32  ;;  %v13857_v11 = vmul.u32.u64.low 3817748708, %v16855_v31  ;;  %v13858_v26 = vmul.u32.u64.high 3817748708, %v16855_v31, %v13857_v11  ;;  %16857 = vst [vmem:[#allocation25_spill] sm:$0xff] %v13862_v34  ;;  %v13864_v23 = vpop.f32.mrb[17].mxu0  ;;  %vm16866_vm6 = vmmov %vm16856_vm9 }
 0x35f   : > { %v16846_v12 = vsel %vm13843_vm15, 4294967295, %v16845_v12  ;;  %16854 = vst [vmem:[#allocation30_spill] sm:$0xff] %v16853_v32  ;;  %v4471_v58 = vmul.f32 %v4356_v37, %v4356_v37  ;;  %v4517_v21 = vsel %vm16856_vm9, %v4469_v56, 0.0  ;;  %v568_v36 = vmul.u32 18, %v567_v42  ;;  %v16865_v56 = vld [vmem:[#allocation40_spill] sm:$0xff]  ;;  %vm16867_vm13 = vmmov %vm16866_vm6 }
 0x360   : > { %16847 = vst [vmem:[#allocation3_spill] sm:$0xff] %v16846_v12  ;;  %v4406_v28 = vadd.f32 %v4405_v44, %v4404_v63  ;;  %v4518_v41 = vadd.f32 %v4517_v21, %v4516_v35  ;;  %v16861_v53 = vsel %vm13409_vm7, %v16859_v43, %v16860_v1  ;;  %v16862_v59 = vmov 0  ;;  %v13890_v44 = vpop.f32.mrb[18].mxu0  ;;  %v16868_v21 = vld [vmem:[#allocation34_spill] sm:$0xff]  ;;  %v16871_v43 = vld [vmem:[#allocation23_spill] sm:$0xff] }
 0x361   : > { %vm13871_vm12 = vcmp.lt.s32.totalorder %v16861_v53, 16  ;;  %v13880_v42 = vsub.s32 %v16865_v56, %v535_v33  ;;  %v4519_v35 = vsel %vm16866_vm6, %v4470_v4, 0.0  ;;  %v4407_v63 = vsel %vm16867_vm13, %v4356_v37, 0.0  ;;  %v13902_v7 = vpop.f32.mrb[19].mxu0  ;;  %vm16876_vm13 = vmmov %vm16866_vm6 }
 0x362   : > { %v16863_v59 = vsel %vm13871_vm12, 4294967295, %v16862_v59  ;;  %v4359_v11 = vsel %vm13761_vm3, %v13862_v34, 0.0  ;;  %v4357_v53 = vsel %vm13770_vm8, %v13864_v23, 0.0  ;;  %vm16869_vm7 = vnez %v16868_v21 }
 0x363   : > { %16864 = vst [vmem:[#allocation21_spill] sm:$0xff] %v16863_v59  ;;  %v16872_v33 = vsel %vm16869_vm7, %v16870_v48, %v16871_v43  ;;  %v16873_v1 = vmov 0  ;;  %v4520_v37 = vadd.f32 %v4519_v35, %v4518_v41  ;;  %v4408_v4 = vadd.f32 %v4407_v63, %v4406_v28  ;;  %vm16877_vm7 = vmmov %vm16866_vm6 }
 0x364   : > { %vm13897_vm9 = vcmp.lt.s32.totalorder %v16872_v33, 16  ;;  %v4409_v56 = vsel %vm16866_vm6, %v4357_v53, 0.0  ;;  %v4472_v40 = vmul.f32 %v4357_v53, %v4357_v53  ;;  %v4521_v46 = vsel %vm16876_vm13, %v4471_v58, 0.0 }
 0x365   : > { %v16874_v1 = vsel %vm13897_vm9, 4294967295, %v16873_v1  ;;  %v4358_v21 = vsel %vm13788_vm4, %v13902_v7, 0.0  ;;  %v13909_v34 = vsub.s32 %v13490_v14, %v590_v8  ;;  %v13912_v48 = vsub.s32 %v13493_v38, %v568_v36  ;;  %v16879_v38 = vld [vmem:[#allocation38_spill] sm:$0xff] }
 0x366   : > { %16875 = vst [vmem:[#allocation33_spill] sm:$0xff] %v16874_v1  ;;  %v4410_v43 = vadd.f32 %v4409_v56, %v4408_v4  ;;  %v4522_v41 = vadd.f32 %v4521_v46, %v4520_v37  ;;  %v4523_v28 = vsel %vm16877_vm7, %v4472_v40, 0.0  ;;  %v4360_v35 = vsel %vm13810_vm11, %v13890_v44, 0.0  ;;  %v16880_v36 = vld [vmem:[#allocation26_spill] sm:$0xff]  ;;  %vm16890_vm11 = vmmov %vm16876_vm13 }
 0x367   : > { %v4474_v63 = vmul.f32 %v4359_v11, %v4359_v11  ;;  %v4411_v58 = vsel %vm16866_vm6, %v4358_v21, 0.0  ;;  %v4473_v53 = vmul.f32 %v4358_v21, %v4358_v21  ;;  %v16881_v4 = vsel %vm13427_vm5, %v16879_v38, %v16880_v36  ;;  %vm16891_vm5 = vmmov %vm16890_vm11 }
 0x368   : > { %v4524_v33 = vadd.f32 %v4523_v28, %v4522_v41  ;;  %v4412_v14 = vadd.f32 %v4411_v58, %v4410_v43  ;;  %vm13925_vm3 = vcmp.lt.s32.totalorder %v16881_v4, 16  ;;  %v16882_v46 = vmov 0  ;;  %v13942_v28 = vpop.f32.mrb[20].mxu0 }
 0x369   : > { %v16883_v46 = vsel %vm13925_vm3, 4294967295, %v16882_v46  ;;  %vm16885_vm7 = vnez %v16698_v30  ;;  %v16887_v37 = vmov 0  ;;  %v600_v56 = vshrl.u32 %v13823_v47, 4 }
 0x36a   : > { %16884 = vst [vmem:[#allocation32_spill] sm:$0xff] %v16883_v46  ;;  %v16886_v40 = vsel %vm16885_vm7, %v13437_v20, %v13352_v15  ;;  %v4413_v21 = vsel %vm16890_vm11, %v4359_v11, 0.0  ;;  %v4475_v43 = vmul.f32 %v4360_v35, %v4360_v35  ;;  %v4525_v41 = vsel %vm16891_vm5, %v4473_v53, 0.0  ;;  %v13945_v15 = vpop.f32.mrb[21].mxu0  ;;  %vm16897_vm11 = vmmov %vm16891_vm5 }
 0x36b   : > { %vm13934_vm6 = vcmp.lt.s32.totalorder %v16886_v40, 16  ;;  %v578_v30 = vshrl.u32 %v13858_v26, 4  ;;  %v4414_v58 = vadd.f32 %v4413_v21, %v4412_v14  ;;  %v4526_v8 = vadd.f32 %v4525_v41, %v4524_v33 }
 0x36c   : > { %v16888_v37 = vsel %vm13934_vm6, 4294967295, %v16887_v37  ;;  %vm16892_vm7 = vnez %v16764_v49  ;;  %v16894_v47 = vmov 0  ;;  %v742_v11 = vadd.s32 18, %v13880_v42 }
 0x36d   : > { %16889 = vst [vmem:[#allocation22_spill] sm:$0xff] %v16888_v37  ;;  %v16893_v20 = vsel %vm16892_vm7, %v13590_v19, %v13539_v60  ;;  %v13958_v53 = vadd.s32 18, %v13909_v34  ;;  %v4527_v26 = vsel %vm16897_vm11, %v4474_v63, 0.0  ;;  %v4415_v33 = vsel %vm16891_vm5, %v4360_v35, 0.0  ;;  %v13968_v19 = vpop.f32.mrb[22].mxu0  ;;  %vm16903_vm11 = vmmov %vm16891_vm5 }
 0x36e   : > { %vm13952_vm13 = vcmp.lt.s32.totalorder %v16893_v20, 16  ;;  %v4363_v49 = vsel %vm13843_vm15, %v13942_v28, 0.0  ;;  %v4361_v60 = vsel %vm13852_vm1, %v13945_v15, 0.0  ;;  %vm16898_vm7 = vnez %v16710_v57  ;;  %v13980_v40 = vpop.f32.mrb[23].mxu0  ;;  %vm16904_vm1 = vmmov %vm16903_vm11 }
 0x36f   : > { %v16895_v47 = vsel %vm13952_vm13, 4294967295, %v16894_v47  ;;  %v16899_v14 = vsel %vm16898_vm7, %v13465_v55, %v13369_v6  ;;  %v16900_v38 = vmov 0  ;;  %v4528_v35 = vadd.f32 %v4527_v26, %v4526_v8 }
 0x370   : > { %16896 = vst [vmem:[#allocation42_spill] sm:$0xff] %v16895_v47  ;;  %vm13975_vm4 = vcmp.lt.s32.totalorder %v16899_v14, 16  ;;  %v4416_v63 = vadd.f32 %v4415_v33, %v4414_v58  ;;  %v4417_v36 = vsel %vm16903_vm11, %v4361_v60, 0.0  ;;  %v4476_v4 = vmul.f32 %v4361_v60, %v4361_v60  ;;  %vm16909_vm11 = vmmov %vm16904_vm1 }
 0x371   : > { %v16901_v38 = vsel %vm13975_vm4, 4294967295, %v16900_v38  ;;  %vm639_vm5 = vcmp.ne.s32.totalorder %v13909_v34, 0  ;;  %v4529_v57 = vsel %vm16904_vm1, %v4475_v43, 0.0  ;;  %v4362_v6 = vsel %vm13871_vm12, %v13980_v40, 0.0 }
 0x372   : > { %16902 = vst [vmem:[#allocation37_spill] sm:$0xff] %v16901_v38  ;;  %vm16905_vm7 = vcmp.ne.s32.totalorder %v13880_v42, 0  ;;  %vm16906_vm8 = vcmp.lt.s32.totalorder %v13880_v42, 0  ;;  %v601_v21 = vmul.u32 18, %v600_v56  ;;  %v579_v41 = vmul.u32 18, %v578_v30 }
 0x373   : > { %vm13992_vm10 = vmand %vm16906_vm8, %vm16905_vm7  ;;  %v4418_v58 = vadd.f32 %v4417_v36, %v4416_v63  ;;  %v4530_v8 = vadd.f32 %v4529_v57, %v4528_v35  ;;  %v4531_v20 = vsel %vm16909_vm11, %v4476_v4, 0.0  ;;  %v4364_v43 = vsel %vm13897_vm9, %v13968_v19, 0.0  ;;  %v14026_v4 = vpop.f32.mrb[24].mxu0 }
 0x374   : > { %v4478_v26 = vmul.f32 %v4363_v49, %v4363_v49  ;;  %v4419_v33 = vsel %vm16904_vm1, %v4362_v6, 0.0  ;;  %v4477_v60 = vmul.f32 %v4362_v6, %v4362_v6  ;;  %v16910_v56 = vsel %vm13656_vm0, %v13610_v22, %v13554_v61  ;;  %vm16918_vm0 = vmmov %vm16904_vm1  ;;  %v14031_v57 = vpop.f32.mrb[25].mxu0 }
 0x375   : > { %v4532_v14 = vadd.f32 %v4531_v20, %v4530_v8  ;;  %v4420_v12 = vadd.f32 %v4419_v33, %v4418_v58  ;;  %vm14007_vm8 = vcmp.lt.s32.totalorder %v16910_v56, 16  ;;  %v16911_v30 = vmov 0  ;;  %vm16919_vm1 = vmmov %vm16918_vm0 }
 0x376   : > { %v16912_v30 = vsel %vm14007_vm8, 4294967295, %v16911_v30  ;;  %v16914_v35 = vsel %vm13712_vm14, %v13691_v39, %v13593_v45  ;;  %v16915_v63 = vmov 0  ;;  %v778_v18 = vsel %vm13992_vm10, %v742_v11, %v13880_v42  ;;  %vm16920_vm14 = vmmov %vm16918_vm0 }
 0x377   : > { %16913 = vst [vmem:[#allocation36_spill] sm:$0xff] %v16912_v30  ;;  %vm14016_vm7 = vcmp.lt.s32.totalorder %v16914_v35, 16  ;;  %v4421_v61 = vsel %vm16918_vm0, %v4363_v49, 0.0  ;;  %v4479_v22 = vmul.f32 %v4364_v43, %v4364_v43  ;;  %v4533_v36 = vsel %vm16919_vm1, %v4477_v60, 0.0  ;;  %vm16921_vm10 = vmmov %vm16918_vm0 }
 0x378   : > { %v16916_v63 = vsel %vm14016_vm7, 4294967295, %v16915_v63  ;;  %v14029_v17 = vsub.s32 %v16833_v5, %v601_v21  ;;  %v4422_v45 = vadd.f32 %v4421_v61, %v4420_v12  ;;  %v4534_v39 = vadd.f32 %v4533_v36, %v4532_v14  ;;  %v14047_v5 = vpop.f32.mrb[26].mxu0  ;;  %vm16930_vm11 = vmmov %vm16919_vm1 }
 0x379   : > { %16917 = vst [vmem:[#allocation24_spill] sm:$0xff] %v16916_v63  ;;  %v14034_v6 = vadd.s32 18, %v13912_v48  ;;  %v14037_v42 = vsub.s32 %v16855_v31, %v579_v41  ;;  %v4535_v11 = vsel %vm16920_vm14, %v4478_v26, 0.0  ;;  %v4423_v49 = vsel %vm16921_vm10, %v4364_v43, 0.0  ;;  %v14059_v43 = vpop.f32.mrb[27].mxu0  ;;  %vm16926_vm14 = vmmov %vm16919_vm1 }
 0x37a   : > { %v4367_v55 = vsel %vm13925_vm3, %v14026_v4, 0.0  ;;  %v4365_v12 = vsel %vm13934_vm6, %v14031_v57, 0.0  ;;  %v16922_v31 = vsel %vm13834_vm2, %v13793_v16, %v13717_v3  ;;  %v16923_v21 = vmov 0 }
 0x37b   : > { %vm14054_vm0 = vcmp.lt.s32.totalorder %v16922_v31, 16  ;;  %v4536_v41 = vadd.f32 %v4535_v11, %v4534_v39  ;;  %v4424_v58 = vadd.f32 %v4423_v49, %v4422_v45  ;;  %v4425_v8 = vsel %vm16919_vm1, %v4365_v12, 0.0 }
 0x37c   : > { %v16924_v21 = vsel %vm14054_vm0, 4294967295, %v16923_v21  ;;  %v4480_v20 = vmul.f32 %v4365_v12, %v4365_v12  ;;  %v4537_v26 = vsel %vm16926_vm14, %v4479_v22, 0.0  ;;  %v4366_v0 = vsel %vm13952_vm13, %v14059_v43, 0.0  ;;  %v14088_v12 = vpop.f32.mrb[28].mxu0 }
 0x37d   : > { %16925 = vst [vmem:[#allocation40_spill] sm:$0xff] %v16924_v21  ;;  %vm14065_vm10 = vcmp.lt.s32.totalorder %v778_v18, 16  ;;  %v16927_v33 = vmov 0  ;;  %v4426_v3 = vadd.f32 %v4425_v8, %v4424_v58  ;;  %v4538_v16 = vadd.f32 %v4537_v26, %v4536_v41  ;;  %v14099_v8 = vpop.f32.mrb[29].mxu0 }
 0x37e   : > { %v16928_v33 = vsel %vm14065_vm10, 4294967295, %v16927_v33  ;;  %v4539_v60 = vsel %vm16930_vm11, %v4480_v20, 0.0  ;;  %v4368_v14 = vsel %vm13975_vm4, %v14047_v5, 0.0  ;;  %v4482_v56 = vmul.f32 %v4367_v55, %v4367_v55  ;;  %vm16934_vm4 = vmmov %vm16919_vm1 }
 0x37f   : > { %16929 = vst [vmem:[#allocation34_spill] sm:$0xff] %v16928_v33  ;;  %v4427_v35 = vsel %vm16919_vm1, %v4366_v0, 0.0  ;;  %v4481_v61 = vmul.f32 %v4366_v0, %v4366_v0  ;;  %vm16931_vm14 = vcmp.lt.s32.totalorder %v13909_v34, 0  ;;  %v4540_v22 = vadd.f32 %v4539_v60, %v4538_v16 }
 0x380   : > { %vm14079_vm15 = vmand %vm16931_vm14, %vm639_vm5  ;;  %v4428_v36 = vadd.f32 %v4427_v35, %v4426_v3  ;;  %v748_v45 = vadd.s32 18, %v14029_v17  ;;  %v4429_v39 = vsel %vm16934_vm4, %v4367_v55, 0.0  ;;  %v4483_v11 = vmul.f32 %v4368_v14, %v4368_v14 }
 0x381   : > { %v4541_v49 = vsel %vm16919_vm1, %v4481_v61, 0.0  ;;  %vm16935_vm5 = vcmp.ne.s32.totalorder %v13912_v48, 0  ;;  %vm16936_vm14 = vcmp.lt.s32.totalorder %v13912_v48, 0  ;;  %vm674_vm2 = vcmp.lt.s32.totalorder %v14037_v42, 0 }
 0x382   : > { %vm14094_vm3 = vmand %vm16936_vm14, %vm16935_vm5  ;;  %v4430_v41 = vadd.f32 %v4429_v39, %v4428_v36  ;;  %v4542_v58 = vadd.f32 %v4541_v49, %v4540_v22  ;;  %v783_v55 = vsel %vm14079_vm15, %v13958_v53, %v13909_v34  ;;  %vm16939_vm4 = vcmp.ne.s32.totalorder %v14029_v17, 0  ;;  %v14122_v53 = vpop.f32.mrb[30].mxu0 }
 0x383   : > { %vm16940_vm1 = vcmp.lt.s32.totalorder %v14029_v17, 0  ;;  %v746_v26 = vadd.s32 18, %v14037_v42  ;;  %vm16943_vm5 = vcmask 64512   ;;  %v4371_v16 = vsel %vm14007_vm8, %v14088_v12, 0.0  ;;  %v14125_v22 = vpop.f32.mrb[31].mxu0 }
 0x384   : > { %vm14109_vm11 = vmand %vm16940_vm1, %vm16939_vm4  ;;  %v4543_v0 = vsel %vm16943_vm5, %v4482_v56, 0.0  ;;  %v4369_v34 = vsel %vm14016_vm7, %v14099_v8, 0.0  ;;  %vm16946_vm4 = vcmp.ne.s32.totalorder %v14037_v42, 0  ;;  %v4545_v56 = vsel %vm16943_vm5, %v4483_v11, 0.0 }
 0x385   : > { %vm16944_vm14 = vmmov %vm16943_vm5  ;;  %v4544_v60 = vadd.f32 %v4543_v0, %v4542_v58  ;;  %v4484_v18 = vmul.f32 %v4369_v34, %v4369_v34  ;;  %v4370_v36 = vsel %vm14065_vm10, %v14125_v22, 0.0  ;;  %v781_v39 = vsel %vm14094_vm3, %v14034_v6, %v13912_v48 }
 0x386   : > { %v4431_v3 = vsel %vm16944_vm14, %v4368_v14, 0.0  ;;  %vm16945_vm15 = vmmov %vm16943_vm5  ;;  %v784_v49 = vsel %vm14109_vm11, %v748_v45, %v14029_v17  ;;  %v4372_v11 = vsel %vm14054_vm0, %v14122_v53, 0.0  ;;  %v4485_v30 = vmul.f32 %v4370_v36, %v4370_v36 }
 0x387   : > { %v4432_v35 = vadd.f32 %v4431_v3, %v4430_v41  ;;  %v4433_v61 = vsel %vm16945_vm15, %v4369_v34, 0.0  ;;  %vm14131_vm1 = vmand %vm674_vm2, %vm16946_vm4  ;;  %v4546_v58 = vadd.f32 %v4545_v56, %v4544_v60  ;;  %v4486_v3 = vmul.f32 %v4371_v16, %v4371_v16 }
 0x388   : > { %vm16949_vm2 = vmmov %vm16943_vm5  ;;  %v782_v48 = vsel %vm14131_vm1, %v746_v26, %v14037_v42  ;;  %vm14154_vm3 = vcmp.lt.s32.totalorder %v783_v55, 16  ;;  %v16951_v17 = vmov 0  ;;  %vm14158_vm11 = vcmp.lt.s32.totalorder %v781_v39, 16 }
 0x389   : > { %v4434_v41 = vadd.f32 %v4433_v61, %v4432_v35  ;;  %v4547_v0 = vsel %vm16949_vm2, %v4484_v18, 0.0  ;;  %vm16950_vm14 = vmmov %vm16949_vm2  ;;  %v16952_v17 = vsel %vm14154_vm3, 4294967295, %v16951_v17  ;;  %v16954_v45 = vmov 0  ;;  %v14164_v61 = vpop.f32.mrb[32].mxu0 }
 0x38a   : > { %v4435_v34 = vsel %vm16950_vm14, %v4370_v36, 0.0  ;;  %v4548_v6 = vadd.f32 %v4547_v0, %v4546_v58  ;;  %16953 = vst [vmem:[#allocation35_spill] sm:$0xff] %v16952_v17  ;;  %v16955_v45 = vsel %vm14158_vm11, 4294967295, %v16954_v45  ;;  %vm16957_vm15 = vmmov %vm16949_vm2  ;;  %v4487_v60 = vmul.f32 %v4372_v11, %v4372_v11  ;;  %v14166_v42 = vpop.f32.mrb[33].mxu0 }
 0x38b   : > { %v4436_v31 = vadd.f32 %v4435_v34, %v4434_v41  ;;  %16956 = vst [vmem:[#allocation23_spill] sm:$0xff] %v16955_v45  ;;  %v4437_v20 = vsel %vm16957_vm15, %v4371_v16, 0.0  ;;  %vm16958_vm4 = vmmov %vm16949_vm2  ;;  %vm14168_vm1 = vcmp.lt.s32.totalorder %v784_v49, 16  ;;  %v16959_v55 = vmov 0  ;;  %v14184_v39 = vpop.f32.mrb[34].mxu0 }
 0x38c   : > { %v4549_v35 = vsel %vm16958_vm4, %v4485_v30, 0.0  ;;  %v16960_v55 = vsel %vm14168_vm1, 4294967295, %v16959_v55  ;;  %vm14172_vm5 = vcmp.lt.s32.totalorder %v782_v48, 16  ;;  %v16962_v26 = vmov 0  ;;  %vm16965_vm14 = vmmov %vm16949_vm2  ;;  %v14187_v34 = vpop.f32.mrb[35].mxu0 }
 0x38d   : > { %v4438_v18 = vadd.f32 %v4437_v20, %v4436_v31  ;;  %v4550_v14 = vadd.f32 %v4549_v35, %v4548_v6  ;;  %16961 = vst [vmem:[#allocation39_spill] sm:$0xff] %v16960_v55  ;;  %v16963_v26 = vsel %vm14172_vm5, 4294967295, %v16962_v26  ;;  %v4551_v56 = vsel %vm16949_vm2, %v4486_v3, 0.0  ;;  %vm16966_vm15 = vmmov %vm16949_vm2 }
 0x38e   : > { %16964 = vst [vmem:[#allocation38_spill] sm:$0xff] %v16963_v26  ;;  %v4439_v16 = vsel %vm16965_vm14, %v4372_v11, 0.0  ;;  %v4375_v30 = vsel %vm14154_vm3, %v14164_v61, 0.0  ;;  %v4373_v36 = vsel %vm14158_vm11, %v14166_v42, 0.0  ;;  %vm16967_vm4 = vmmov %vm16949_vm2  ;;  %v4374_v11 = vsel %vm14172_vm5, %v14187_v34, 0.0 }
 0x38f   : > { %v4552_v49 = vadd.f32 %v4551_v56, %v4550_v14  ;;  %v4440_v41 = vadd.f32 %v4439_v16, %v4438_v18  ;;  %v4441_v58 = vsel %vm16966_vm15, %v4373_v36, 0.0  ;;  %v4488_v0 = vmul.f32 %v4373_v36, %v4373_v36  ;;  %vm16968_vm14 = vmmov %vm16949_vm2 }
 0x390   : > { %v4553_v3 = vsel %vm16967_vm4, %v4487_v60, 0.0  ;;  %v4376_v20 = vsel %vm14168_vm1, %v14184_v39, 0.0  ;;  %v4490_v35 = vmul.f32 %v4375_v30, %v4375_v30  ;;  %v4443_v18 = vsel %vm16968_vm14, %v4374_v11, 0.0  ;;  %vm16969_vm15 = vmmov %vm16949_vm2 }
 0x391   : > { %v4442_v48 = vadd.f32 %v4441_v58, %v4440_v41  ;;  %v4554_v6 = vadd.f32 %v4553_v3, %v4552_v49  ;;  %v4555_v31 = vsel %vm16949_vm2, %v4488_v0, 0.0  ;;  %v4489_v14 = vmul.f32 %v4374_v11, %v4374_v11  ;;  %vm16970_vm4 = vmmov %vm16949_vm2 }
 0x392   : > { %v4445_v60 = vsel %vm16969_vm15, %v4375_v30, 0.0  ;;  %v4491_v36 = vmul.f32 %v4376_v20, %v4376_v20  ;;  %vm16971_vm0 = vmmov %vm16949_vm2  ;;  %vm4943_vm14 = vsmask.f32 5392 }
 0x393   : > { %v4556_v56 = vadd.f32 %v4555_v31, %v4554_v6  ;;  %v4444_v16 = vadd.f32 %v4443_v18, %v4442_v48  ;;  %v4557_v21 = vsel %vm16970_vm4, %v4489_v14, 0.0  ;;  %v4559_v49 = vsel %vm16971_vm0, %v4490_v35, 0.0  ;;  %vm16972_vm2 = vmmov %vm16971_vm0 }
 0x394   : > { %v4447_v58 = vsel %vm16972_vm2, %v4376_v20, 0.0  ;;  %vm16973_vm1 = vmmov %vm16971_vm0  ;;  %vm16520_vm0 = vcmask 1043456  }
 0x395   : > { %v4446_v33 = vadd.f32 %v4445_v60, %v4444_v16  ;;  %v4558_v41 = vadd.f32 %v4557_v21, %v4556_v56  ;;  %v4561_v55 = vsel %vm16973_vm1, %v4491_v36, 0.0  ;;  %v16974_v60 = vld [vmem:[#allocation7_spill] sm:$0xff]  ;;  %v16975_v36 = vld [vmem:[#allocation5_spill] sm:$0xff]  ;;  %vm16521_vm1 = vsmask.f32 1280 }
 0x397   : > { %v4448_v0 = vadd.f32 %v4447_v58, %v4446_v33  ;;  %v4560_v3 = vadd.f32 %v4559_v49, %v4558_v41  ;;  %v16976_v49 = vld [vmem:[#allocation41_spill] sm:$0xff] }
 0x399   : > { %v4449_v63 = vrot.slane %v4448_v0, 4  ;;  %v4562_v38 = vadd.f32 %v4561_v55, %v4560_v3  ;;  %v16977_v3 = vld [vmem:[#allocation43_spill] sm:$0xff] }
 0x39b   : > { %v4450_v11 = vadd.f32 %v4449_v63, %v4448_v0  ;;  %v4563_v6 = vrot.slane %v4562_v38, 4 }
 0x39d   : > { %v4451_v48 = vrot.slane %v4450_v11, 2  ;;  %v4564_v31 = vadd.f32 %v4563_v6, %v4562_v38 }
 0x39f   : > { %v4452_v30 = vadd.f32 %v4451_v48, %v4450_v11  ;;  %v4565_v18 = vrot.slane %v4564_v31, 2 }
 0x3a1   : > { %v4453_v46 = vrot.slane %v4452_v30, 1  ;;  %v4566_v14 = vadd.f32 %v4565_v18, %v4564_v31 }
 0x3a3   : > { %v4454_v16 = vadd.f32 %v4453_v46, %v4452_v30  ;;  %v4567_v21 = vrot.slane %v4566_v14, 1 }
 0x3a5   : > { %v14203_v56 = vmul.f32 0.00390625, %v4454_v16  ;;  %v4568_v35 = vadd.f32 %v4567_v21, %v4566_v14 }
 0x3a7   : > { %v4569_v20 = vmul.f32 0.00390625, %v4568_v35  ;;  %v4570_v33 = vmul.f32 %v14203_v56, %v14203_v56  ;;  %v4605_v55 = vsub.f32 %v14166_v42, %v14203_v56  ;;  %v4606_v63 = vsub.f32 %v14187_v34, %v14203_v56 }
 0x3a8   : > { %v4607_v38 = vsub.f32 %v14164_v61, %v14203_v56  ;;  %v4573_v46 = vsub.f32 %v16974_v60, %v14203_v56  ;;  %v4574_v41 = vsub.f32 %v16975_v36, %v14203_v56  ;;  %v4575_v58 = vsub.f32 %v16976_v49, %v14203_v56 }
 0x3a9   : > { %v4571_v0 = vsub.f32 %v4569_v20, %v4570_v33  ;;  %v4576_v11 = vsub.f32 %v16977_v3, %v14203_v56  ;;  %v4577_v42 = vsub.f32 %v13596_v50, %v14203_v56  ;;  %v4578_v34 = vsub.f32 %v13632_v29, %v14203_v56  ;;  %v9671_v3 = vld [vmem:[%s16343_s2 + $0x4] sm:$0xf] }
 0x3aa   : > { %v4579_v61 = vsub.f32 %v13587_v54, %v14203_v56  ;;  %v4580_v6 = vsub.f32 %v13617_v9, %v14203_v56  ;;  %v4581_v48 = vsub.f32 %v13693_v24, %v14203_v56  ;;  %v4582_v31 = vsub.f32 %v13739_v52, %v14203_v56  ;;  %v16978_v24 = vld [vmem:[#allocation45_spill] sm:$0xff]  ;;  %11552 = vmatprep.subr.msk.bf16.mxu1 %vm16520_vm0, %v9671_v3 }
 0x3ab   : > { %v4572_v30 = vmax.f32 %v4571_v0, 0.0  ;;  %v4583_v18 = vsub.f32 %v13688_v25, %v14203_v56  ;;  %v4584_v50 = vsub.f32 %v13727_v13, %v14203_v56  ;;  %v4585_v29 = vsub.f32 %v13781_v10, %v14203_v56  ;;  %v16979_v13 = vld [vmem:[#allocation25_spill] sm:$0xff] }
 0x3ac   : > { %v4586_v54 = vsub.f32 %v13815_v2, %v14203_v56  ;;  %v4587_v9 = vsub.f32 %v13778_v62, %v14203_v56  ;;  %v4588_v14 = vsub.f32 %v16978_v24, %v14203_v56  ;;  %v5724_v33 = vsel %vm16520_vm0, %v9671_v3, 0 }
 0x3ad   : > { %v4609_v16 = vadd.f32 1e-05, %v4572_v30  ;;  %10626 = vmatpush3.bf16.msra.mxu1 %v5724_v33 }
 0x3af   : > { %11768 = vrsqrt.f32 %v4609_v16 }
 0x3b9   : > { %v14284_v60 = vpop.eup %11768 }
 0x3ba   : > { %v4643_v16 = vmul.f32 %v14284_v60, %v4605_v55  ;;  %v4644_v30 = vmul.f32 %v14284_v60, %v4606_v63  ;;  %v4645_v49 = vmul.f32 %v14284_v60, %v4607_v38  ;;  %v14290_v0 = vmul.f32 %v14284_v60, %v4573_v46  ;;  %v5423_v55 = vld [vmem:[%s16343_s2] sm:$0xf] }
 0x3bb   : > { %v14293_v36 = vmul.f32 %v14284_v60, %v4574_v41  ;;  %v14296_v20 = vmul.f32 %v14284_v60, %v4575_v58  ;;  %v14299_v3 = vmul.f32 %v14284_v60, %v4576_v11  ;;  %v14302_v33 = vmul.f32 %v14284_v60, %v4577_v42  ;;  %11553 = vmatprep.subr.msk.bf16.mxu1 %vm16520_vm0, %v5423_v55 }
 0x3bc   : > { %vm4679_vm15 = vcmp.gt.f32.partialorder %v4643_v16, 0.0  ;;  %vm4680_vm4 = vcmp.gt.f32.partialorder %v4644_v30, 0.0  ;;  %vm4681_vm2 = vcmp.gt.f32.partialorder %v4645_v49, 0.0  ;;  %v4715_v63 = vmul.f32 0.01, %v4643_v16 }
 0x3bd   : > { %v4716_v38 = vmul.f32 0.01, %v4644_v30  ;;  %v4717_v46 = vmul.f32 0.01, %v4645_v49  ;;  %v14309_v41 = vmul.f32 %v14284_v60, %v4578_v34  ;;  %v14312_v58 = vmul.f32 %v14284_v60, %v4579_v61 }
 0x3be   : > { %v4751_v11 = vsel %vm4679_vm15, %v4643_v16, %v4715_v63  ;;  %v14315_v42 = vmul.f32 %v14284_v60, %v4580_v6  ;;  %v14318_v35 = vmul.f32 %v14284_v60, %v4581_v48  ;;  %v14321_v21 = vmul.f32 %v14284_v60, %v4582_v31  ;;  %vm14393_vm15 = vmor %vm16521_vm1, %vm4943_vm14 }
 0x3bf   : > { %v4752_v25 = vsel %vm4680_vm4, %v4644_v30, %v4716_v38  ;;  %v4753_v55 = vsel %vm4681_vm2, %v4645_v49, %v4717_v46  ;;  %v4830_v52 = vsel %vm14158_vm11, %v4751_v11, 0.0  ;;  %v14326_v34 = vmul.f32 %v14284_v60, %v4583_v18 }
 0x3c0   : > { %v4831_v61 = vsel %vm14172_vm5, %v4752_v25, 0.0  ;;  %v4832_v6 = vsel %vm14154_vm3, %v4753_v55, 0.0  ;;  %v9937_v16 = vpack.c.bf16 %v4830_v52, %v4830_v52  ;;  %v14333_v48 = vmul.f32 %v14284_v60, %v4584_v50 }
 0x3c1   : > { %v9938_v31 = vpack.c.bf16 %v4831_v61, %v4831_v61  ;;  %v9939_v63 = vpack.c.bf16 %v4832_v6, %v4832_v6  ;;  %v14339_v49 = vmul.f32 %v14284_v60, %v4585_v29  ;;  %v14345_v18 = vmul.f32 %v14284_v60, %v4586_v54 }
 0x3c2   : > { %v5265_v25 = vshrl.u32 %v9937_v16, 16  ;;  %v5268_v30 = vshll.u32 %v9937_v16, 16  ;;  %v14351_v50 = vmul.f32 %v14284_v60, %v4587_v9  ;;  %v14357_v10 = vmul.f32 %v14284_v60, %v4588_v14 }
 0x3c3   : > { %v5275_v29 = vshrl.u32 %v9938_v31, 16  ;;  %v5278_v52 = vshll.u32 %v9938_v31, 16  ;;  %v5285_v2 = vshrl.u32 %v9939_v63, 16  ;;  %v5288_v38 = vshll.u32 %v9939_v63, 16 }
 0x3c4   : > { %v5267_v54 = vrot.slane %v5265_v25, 6  ;;  %v5270_v46 = vrot.slane %v5268_v30, 7  ;;  %v16980_v11 = vsub.f32 %v13864_v23, %v14203_v56  ;;  %v16981_v9 = vsub.f32 %v13902_v7, %v14203_v56 }
 0x3c5   : > { %v5277_v14 = vrot.slane %v5275_v29, 6  ;;  %v5280_v55 = vrot.slane %v5278_v52, 7  ;;  %v5287_v61 = vrot.slane %v5285_v2, 6  ;;  %v5290_v6 = vrot.slane %v5288_v38, 7 }
 0x3c6   : > { %v14363_v62 = vmul.f32 %v14284_v60, %v16980_v11  ;;  %v14369_v24 = vmul.f32 %v14284_v60, %v16981_v9  ;;  %v14371_v16 = vor.u32 %v5270_v46, %v5267_v54  ;;  %v16983_v31 = vsub.f32 %v16979_v13, %v14203_v56 }
 0x3c7   : > { %v16984_v63 = vsub.f32 %v13890_v44, %v14203_v56  ;;  %v16985_v25 = vsub.f32 %v13945_v15, %v14203_v56  ;;  %v16986_v29 = vmov 0  ;;  %v5281_v13 = vor.u32 %v5280_v55, %v5277_v14 }
 0x3c8   : > { %16982 = vst [vmem:[#allocation26_spill] sm:$0xff] %v14371_v16  ;;  %v14377_v23 = vmul.f32 %v14284_v60, %v16983_v31  ;;  %v16987_v29 = vsel %vm14393_vm15, 4294967295, %v16986_v29  ;;  %v16989_v52 = vsub.f32 %v13980_v40, %v14203_v56  ;;  %v16990_v2 = vsub.f32 %v13942_v28, %v14203_v56 }
 0x3c9   : > { %v14383_v7 = vmul.f32 %v14284_v60, %v16984_v63  ;;  %v14389_v30 = vmul.f32 %v14284_v60, %v16985_v25  ;;  %16988 = vst [vmem:[#allocation7_spill] sm:$0xff] %v16987_v29  ;;  %v5273_v38 = vrot.slane %v14371_v16, 4  ;;  %v16991_v54 = vsub.f32 %v13968_v19, %v14203_v56 }
 0x3ca   : > { %v14401_v44 = vmul.f32 %v14284_v60, %v16989_v52  ;;  %v14407_v15 = vmul.f32 %v14284_v60, %v16990_v2  ;;  %v16992_v40 = vsub.f32 %v14031_v57, %v14203_v56  ;;  %v16993_v28 = vsub.f32 %v14059_v43, %v14203_v56 }
 0x3cb   : > { %v14414_v46 = vmul.f32 %v14284_v60, %v16991_v54  ;;  %v5283_v14 = vrot.slane %v5281_v13, 4  ;;  %v14428_v55 = vor.u32 %v5290_v6, %v5287_v61  ;;  %v16995_v19 = vsub.f32 %v14026_v4, %v14203_v56  ;;  %v5388_v54 = vld [vmem:[#allocation2 + $0x4] sm:$0xf] }
 0x3cc   : > { %v14420_v11 = vmul.f32 %v14284_v60, %v16992_v40  ;;  %v14426_v9 = vmul.f32 %v14284_v60, %v16993_v28  ;;  %v16996_v57 = vsub.f32 %v14047_v5, %v14203_v56  ;;  %v5282_v43 = vsel %vm14393_vm15, %v5273_v38, %v5281_v13  ;;  %v5387_v38 = vld [vmem:[#allocation2] sm:$0xf] }
 0x3cd   : > { %16994 = vst [vmem:[#allocation5_spill] sm:$0xff] %v14428_v55  ;;  %v14434_v31 = vmul.f32 %v14284_v60, %v16995_v19  ;;  %v16997_v25 = vsub.f32 %v14099_v8, %v14203_v56  ;;  %v16998_v4 = vsub.f32 %v14125_v22, %v14203_v56  ;;  %v16999_v5 = vsub.f32 %v14088_v12, %v14203_v56 }
 0x3ce   : > { %v14440_v63 = vmul.f32 %v14284_v60, %v16996_v57  ;;  %v5292_v13 = vsel %vm14393_vm15, %v5283_v14, %v14428_v55  ;;  %vm17000_vm14 = vcmask 60416   ;;  %v17001_v8 = vsub.f32 %v14122_v53, %v14203_v56 }
 0x3cf   : > { %v14448_v61 = vmul.f32 %v14284_v60, %v16997_v25  ;;  %v14454_v6 = vmul.f32 %v14284_v60, %v16998_v4  ;;  %v14460_v52 = vmul.f32 %v14284_v60, %v16999_v5  ;;  %5379 = vst.msk [vmem:[#allocation2 + $0x8c] sm:$0xf] %vm17000_vm14, %v5282_v43  ;;  %v17002_v2 = vsub.f32 %v14184_v39, %v14203_v56  ;;  %vm17003_vm4 = vmmov %vm17000_vm14 }
 0x3d0   : > { %v14470_v22 = vmul.f32 %v14284_v60, %v17001_v8  ;;  %5380 = vst.msk [vmem:[#allocation2 + $0x90] sm:$0xf] %vm17003_vm4, %v5292_v13  ;;  %vm4650_vm1 = vcmp.gt.f32.partialorder %v14299_v3, 0.0  ;;  %vm4651_vm5 = vcmp.gt.f32.partialorder %v14302_v33, 0.0  ;;  %vm4652_vm11 = vcmp.gt.f32.partialorder %v14309_v41, 0.0 }
 0x3d1   : > { %v14476_v12 = vmul.f32 %v14284_v60, %v17002_v2  ;;  %vm4657_vm8 = vcmp.gt.f32.partialorder %v14326_v34, 0.0  ;;  %v4683_v53 = vmul.f32 0.01, %v14290_v0  ;;  %v4684_v39 = vmul.f32 0.01, %v14293_v36 }
 0x3d2   : > { %v4685_v56 = vmul.f32 0.01, %v14296_v20  ;;  %v4686_v60 = vmul.f32 0.01, %v14299_v3  ;;  %v4687_v40 = vmul.f32 0.01, %v14302_v33  ;;  %v14502_v14 = vcombine.low %v5387_v38, %v5388_v54 }
 0x3d3   : > { %v4688_v28 = vmul.f32 0.01, %v14309_v41  ;;  %v4689_v19 = vmul.f32 0.01, %v14312_v58  ;;  %v4690_v57 = vmul.f32 0.01, %v14315_v42 }
 0x3d4   : > { %17004 = vst [vmem:[#allocation41_spill] sm:$0xff] %v14502_v14  ;;  %v4691_v43 = vmul.f32 0.01, %v14318_v35  ;;  %vm17005_vm2 = vcmp.gt.f32.partialorder %v14290_v0, 0.0  ;;  %v4692_v4 = vmul.f32 0.01, %v14321_v21  ;;  %v4722_v26 = vsel %vm4650_vm1, %v14299_v3, %v4686_v60 }
 0x3d5   : > { %v14514_v25 = vsel %vm17005_vm2, %v14290_v0, %v4683_v53  ;;  %v4693_v5 = vmul.f32 0.01, %v14326_v34  ;;  %v4694_v13 = vmul.f32 0.01, %v14333_v48  ;;  %vm17006_vm15 = vcmp.gt.f32.partialorder %v14293_v36, 0.0 }
 0x3d6   : > { %v4720_v8 = vsel %vm17006_vm15, %v14293_v36, %v4684_v39  ;;  %vm4675_vm14 = vcmp.gt.f32.partialorder %v14448_v61, 0.0  ;;  %v4695_v0 = vmul.f32 0.01, %v14339_v49  ;;  %v4696_v2 = vmul.f32 0.01, %v14345_v18 }
 0x3d7   : > { %v4697_v38 = vmul.f32 0.01, %v14351_v50  ;;  %vm17007_vm3 = vcmp.gt.f32.partialorder %v14296_v20, 0.0  ;;  %vm4676_vm15 = vcmp.gt.f32.partialorder %v14454_v6, 0.0  ;;  %vm4677_vm2 = vcmp.gt.f32.partialorder %v14460_v52, 0.0 }
 0x3d8   : > { %v4721_v54 = vsel %vm17007_vm3, %v14296_v20, %v4685_v56  ;;  %vm4678_vm4 = vcmp.gt.f32.partialorder %v14470_v22, 0.0  ;;  %v4698_v36 = vmul.f32 0.01, %v14357_v10  ;;  %v4699_v53 = vmul.f32 0.01, %v14363_v62 }
 0x3d9   : > { %v4700_v39 = vmul.f32 0.01, %v14369_v24  ;;  %v4701_v20 = vmul.f32 0.01, %v14377_v23  ;;  %v4702_v56 = vmul.f32 0.01, %v14383_v7  ;;  %v4723_v17 = vsel %vm4651_vm5, %v14302_v33, %v4687_v40 }
 0x3da   : > { %v4703_v45 = vmul.f32 0.01, %v14389_v30  ;;  %v4704_v16 = vmul.f32 0.01, %v14401_v44  ;;  %v4705_v14 = vmul.f32 0.01, %v14407_v15  ;;  %v4724_v3 = vsel %vm4652_vm11, %v14309_v41, %v4688_v28 }
 0x3db   : > { %v4706_v55 = vmul.f32 0.01, %v14414_v46  ;;  %v4707_v60 = vmul.f32 0.01, %v14420_v11  ;;  %v4708_v29 = vmul.f32 0.01, %v14426_v9  ;;  %v4729_v51 = vsel %vm4657_vm8, %v14326_v34, %v4693_v5 }
 0x3dc   : > { %v4709_v47 = vmul.f32 0.01, %v14434_v31  ;;  %vm17008_vm3 = vcmp.gt.f32.partialorder %v14312_v58, 0.0  ;;  %v4710_v40 = vmul.f32 0.01, %v14440_v63  ;;  %vm17009_vm5 = vcmp.gt.f32.partialorder %v14315_v42, 0.0 }
 0x3dd   : > { %v4725_v33 = vsel %vm17008_vm3, %v14312_v58, %v4689_v19  ;;  %v4711_v37 = vmul.f32 0.01, %v14448_v61  ;;  %v4712_v1 = vmul.f32 0.01, %v14454_v6  ;;  %v4726_v41 = vsel %vm17009_vm5, %v14315_v42, %v4690_v57  ;;  %v17048_v5 = vld [vmem:[#allocation6_spill] sm:$0xff] }
 0x3de   : > { %v4713_v28 = vmul.f32 0.01, %v14460_v52  ;;  %v4714_v59 = vmul.f32 0.01, %v14470_v22  ;;  %v4718_v32 = vmul.f32 0.01, %v14476_v12 }
 0x3df   : > { %vm17010_vm11 = vcmp.gt.f32.partialorder %v14318_v35, 0.0  ;;  %vm17011_vm1 = vcmp.gt.f32.partialorder %v14321_v21, 0.0  ;;  %vm17012_vm3 = vcmp.gt.f32.partialorder %v14333_v48, 0.0  ;;  %vm17013_vm5 = vcmp.gt.f32.partialorder %v14339_v49, 0.0 }
 0x3e0   : > { %v4727_v58 = vsel %vm17010_vm11, %v14318_v35, %v4691_v43  ;;  %v4728_v19 = vsel %vm17011_vm1, %v14321_v21, %v4692_v4  ;;  %v4730_v42 = vsel %vm17012_vm3, %v14333_v48, %v4694_v13  ;;  %v4731_v57 = vsel %vm17013_vm5, %v14339_v49, %v4695_v0  ;;  %v17052_v0 = vld [vmem:[#allocation15_spill] sm:$0xff] }
 0x3e1   : > { %vm17014_vm0 = vcmp.gt.f32.partialorder %v14345_v18, 0.0  ;;  %vm17015_vm11 = vcmp.gt.f32.partialorder %v14351_v50, 0.0  ;;  %vm17016_vm1 = vcmp.gt.f32.partialorder %v14357_v10, 0.0  ;;  %vm17017_vm8 = vcmp.gt.f32.partialorder %v14363_v62, 0.0 }
 0x3e2   : > { %v4732_v35 = vsel %vm17014_vm0, %v14345_v18, %v4696_v2  ;;  %v4733_v21 = vsel %vm17015_vm11, %v14351_v50, %v4697_v38  ;;  %v4734_v34 = vsel %vm17016_vm1, %v14357_v10, %v4698_v36  ;;  %v4735_v48 = vsel %vm17017_vm8, %v14363_v62, %v4699_v53  ;;  %v17054_v2 = vld [vmem:[#allocation14_spill] sm:$0xff]  ;;  %v17058_v53 = vld [vmem:[#allocation13_spill] sm:$0xff] }
 0x3e3   : > { %vm17018_vm3 = vcmp.gt.f32.partialorder %v14369_v24, 0.0  ;;  %vm17019_vm5 = vcmp.gt.f32.partialorder %v14377_v23, 0.0  ;;  %vm17020_vm0 = vcmp.gt.f32.partialorder %v14383_v7, 0.0  ;;  %vm17021_vm11 = vcmp.gt.f32.partialorder %v14389_v30, 0.0 }
 0x3e4   : > { %v4736_v49 = vsel %vm17018_vm3, %v14369_v24, %v4700_v39  ;;  %v4737_v18 = vsel %vm17019_vm5, %v14377_v23, %v4701_v20  ;;  %v4738_v50 = vsel %vm17020_vm0, %v14383_v7, %v4702_v56  ;;  %v4739_v10 = vsel %vm17021_vm11, %v14389_v30, %v4703_v45  ;;  %v17060_v20 = vld [vmem:[#allocation16_spill] sm:$0xff] }
 0x3e5   : > { %vm17022_vm1 = vcmp.gt.f32.partialorder %v14401_v44, 0.0  ;;  %vm17023_vm8 = vcmp.gt.f32.partialorder %v14407_v15, 0.0  ;;  %vm17024_vm3 = vcmp.gt.f32.partialorder %v14414_v46, 0.0  ;;  %vm17025_vm5 = vcmp.gt.f32.partialorder %v14420_v11, 0.0 }
 0x3e6   : > { %v4740_v62 = vsel %vm17022_vm1, %v14401_v44, %v4704_v16  ;;  %v4741_v24 = vsel %vm17023_vm8, %v14407_v15, %v4705_v14  ;;  %v4742_v23 = vsel %vm17024_vm3, %v14414_v46, %v4706_v55  ;;  %v4743_v7 = vsel %vm17025_vm5, %v14420_v11, %v4707_v60  ;;  %v17030_v11 = vld [vmem:[#allocation28_spill] sm:$0xff]  ;;  %v17044_v14 = vld [vmem:[#allocation10_spill] sm:$0xff] }
 0x3e7   : > { %vm17026_vm0 = vcmp.gt.f32.partialorder %v14426_v9, 0.0  ;;  %vm17027_vm11 = vcmp.gt.f32.partialorder %v14434_v31, 0.0  ;;  %vm17028_vm1 = vcmp.gt.f32.partialorder %v14440_v63, 0.0  ;;  %v4747_v44 = vsel %vm4675_vm14, %v14448_v61, %v4711_v37 }
 0x3e8   : > { %v4744_v45 = vsel %vm17026_vm0, %v14426_v9, %v4708_v29  ;;  %v4745_v16 = vsel %vm17027_vm11, %v14434_v31, %v4709_v47  ;;  %v4746_v30 = vsel %vm17028_vm1, %v14440_v63, %v4710_v40  ;;  %v4748_v15 = vsel %vm4676_vm15, %v14454_v6, %v4712_v1  ;;  %v17032_v9 = vld [vmem:[#allocation31_spill] sm:$0xff]  ;;  %v17036_v63 = vld [vmem:[#allocation29_spill] sm:$0xff]  ;;  %v17038_v6 = vld [vmem:[#allocation4_spill] sm:$0xff] }
 0x3e9   : > { %v4749_v29 = vsel %vm4677_vm2, %v14460_v52, %v4713_v28  ;;  %v4750_v47 = vsel %vm4678_vm4, %v14470_v22, %v4714_v59  ;;  %vm17029_vm8 = vcmp.gt.f32.partialorder %v14476_v12, 0.0  ;;  %vm17031_vm3 = vnez %v17030_v11  ;;  %v17034_v1 = vld [vmem:[#allocation27_spill] sm:$0xff]  ;;  %v17040_v52 = vld [vmem:[#allocation9_spill] sm:$0xff] }
 0x3ea   : > { %v4754_v46 = vsel %vm17029_vm8, %v14476_v12, %v4718_v32  ;;  %v4798_v37 = vsel %vm17031_vm3, %v14514_v25, 0.0  ;;  %vm17033_vm14 = vnez %v17032_v9  ;;  %vm17035_vm15 = vnez %v17034_v1  ;;  %v17042_v32 = vld [vmem:[#allocation8_spill] sm:$0xff]  ;;  %v17046_v25 = vld [vmem:[#allocation11_spill] sm:$0xff] }
 0x3eb   : > { %v4799_v55 = vsel %vm17033_vm14, %v4720_v8, 0.0  ;;  %v4800_v31 = vsel %vm17035_vm15, %v4721_v54, 0.0  ;;  %vm17037_vm2 = vnez %v17036_v63  ;;  %vm17039_vm5 = vnez %v17038_v6  ;;  %v17050_v8 = vld [vmem:[#allocation12_spill] sm:$0xff] }
 0x3ec   : > { %v4801_v61 = vsel %vm17037_vm2, %v4722_v26, 0.0  ;;  %v4802_v59 = vsel %vm17039_vm5, %v4723_v17, 0.0  ;;  %vm17041_vm4 = vnez %v17040_v52  ;;  %vm17043_vm0 = vnez %v17042_v32  ;;  %v17056_v54 = vld [vmem:[#allocation44_spill] sm:$0xff] }
 0x3ed   : > { %v4803_v22 = vsel %vm17041_vm4, %v4724_v3, 0.0  ;;  %v4804_v12 = vsel %vm17043_vm0, %v4725_v33, 0.0  ;;  %vm17045_vm11 = vnez %v17044_v14  ;;  %vm17047_vm1 = vnez %v17046_v25  ;;  %v17062_v3 = vld [vmem:[#allocation18_spill] sm:$0xff]  ;;  %v17065_v33 = vld [vmem:[#allocation19_spill] sm:$0xff] }
 0x3ee   : > { %v4805_v43 = vsel %vm17045_vm11, %v4726_v41, 0.0  ;;  %v4806_v4 = vsel %vm17047_vm1, %v4727_v58, 0.0  ;;  %vm17049_vm8 = vnez %v17048_v5  ;;  %vm17051_vm14 = vnez %v17050_v8  ;;  %v17067_v41 = vld [vmem:[#allocation20_spill] sm:$0xff]  ;;  %v17069_v58 = vld [vmem:[#allocation30_spill] sm:$0xff] }
 0x3ef   : > { %v4807_v13 = vsel %vm17049_vm8, %v4728_v19, 0.0  ;;  %v4808_v26 = vsel %vm17051_vm14, %v4729_v51, 0.0  ;;  %vm17053_vm5 = vnez %v17052_v0  ;;  %vm17055_vm4 = vnez %v17054_v2 }
 0x3f0   : > { %v4809_v17 = vsel %vm17053_vm5, %v4730_v42, 0.0  ;;  %v4810_v38 = vsel %vm17055_vm4, %v4731_v57, 0.0  ;;  %vm17057_vm0 = vnez %v17056_v54  ;;  %vm17059_vm11 = vnez %v17058_v53 }
 0x3f1   : > { %v4811_v36 = vsel %vm17057_vm0, %v4732_v35, 0.0  ;;  %v4812_v39 = vsel %vm17059_vm11, %v4733_v21, 0.0  ;;  %vm17061_vm1 = vnez %v17060_v20  ;;  %vm17063_vm8 = vnez %v17062_v3  ;;  %v17072_v35 = vld [vmem:[#allocation3_spill] sm:$0xff] }
 0x3f2   : > { %v4813_v56 = vsel %vm17061_vm1, %v4734_v34, 0.0  ;;  %v4814_v60 = vsel %vm17063_vm8, %v4735_v48, 0.0  ;;  %vm17064_vm14 = vnez %v16822_v27  ;;  %vm17066_vm5 = vnez %v17065_v33  ;;  %v17083_v34 = vld [vmem:[#allocation36_spill] sm:$0xff]  ;;  %v17087_v3 = vld [vmem:[#allocation39_spill] sm:$0xff] }
 0x3f3   : > { %v4815_v51 = vsel %vm17064_vm14, %v4736_v49, 0.0  ;;  %v4816_v40 = vsel %vm17066_vm5, %v4737_v18, 0.0  ;;  %vm17068_vm4 = vnez %v17067_v41  ;;  %vm17070_vm0 = vnez %v17069_v58  ;;  %v17077_v41 = vld [vmem:[#allocation32_spill] sm:$0xff]  ;;  %v17079_v58 = vld [vmem:[#allocation37_spill] sm:$0xff] }
 0x3f4   : > { %v4817_v28 = vsel %vm17068_vm4, %v4738_v50, 0.0  ;;  %v4818_v19 = vsel %vm17070_vm0, %v4739_v10, 0.0  ;;  %v4819_v57 = vsel %vm13871_vm12, %v4740_v62, 0.0  ;;  %vm17073_vm1 = vnez %v17072_v35  ;;  %v17085_v27 = vld [vmem:[#allocation40_spill] sm:$0xff] }
 0x3f5   : > { %v4820_v21 = vsel %vm17073_vm1, %v4741_v24, 0.0  ;;  %v4821_v48 = vsel %vm13897_vm9, %v4742_v23, 0.0  ;;  %v4822_v49 = vsel %vm13934_vm6, %v4743_v7, 0.0  ;;  %v4823_v18 = vsel %vm13952_vm13, %v4744_v45, 0.0 }
 0x3f6   : > { %vm17078_vm4 = vnez %v17077_v41  ;;  %vm17080_vm0 = vnez %v17079_v58  ;;  %v4826_v62 = vsel %vm14016_vm7, %v4747_v44, 0.0  ;;  %v4827_v24 = vsel %vm14065_vm10, %v4748_v15, 0.0 }
 0x3f7   : > { %v4824_v50 = vsel %vm17078_vm4, %v4745_v16, 0.0  ;;  %v4825_v10 = vsel %vm17080_vm0, %v4746_v30, 0.0  ;;  %vm17084_vm9 = vnez %v17083_v34  ;;  %vm17086_vm6 = vnez %v17085_v27 }
 0x3f8   : > { %v4828_v23 = vsel %vm17084_vm9, %v4749_v29, 0.0  ;;  %v4829_v7 = vsel %vm17086_vm6, %v4750_v47, 0.0  ;;  %vm17088_vm13 = vnez %v17087_v3  ;;  %v9905_v41 = vpack.c.bf16 %v4798_v37, %v4798_v37 }
 0x3f9   : > { %v4833_v45 = vsel %vm17088_vm13, %v4754_v46, 0.0  ;;  %v9906_v16 = vpack.c.bf16 %v4799_v55, %v4799_v55  ;;  %v9907_v33 = vpack.c.bf16 %v4800_v31, %v4800_v31  ;;  %v9908_v58 = vpack.c.bf16 %v4801_v61, %v4801_v61 }
 0x3fa   : > { %v9909_v30 = vpack.c.bf16 %v4802_v59, %v4802_v59  ;;  %v9910_v20 = vpack.c.bf16 %v4803_v22, %v4803_v22  ;;  %v14715_v42 = vpack.c.bf16 %v4804_v12, %v4804_v12  ;;  %v14717_v44 = vpack.c.bf16 %v4805_v43, %v4805_v43 }
 0x3fb   : > { %v14719_v15 = vpack.c.bf16 %v4806_v4, %v4806_v4  ;;  %v14721_v35 = vpack.c.bf16 %v4807_v13, %v4807_v13  ;;  %v14723_v29 = vpack.c.bf16 %v4808_v26, %v4808_v26  ;;  %v14725_v47 = vpack.c.bf16 %v4809_v17, %v4809_v17 }
 0x3fc   : > { %v14727_v3 = vpack.c.bf16 %v4810_v38, %v4810_v38  ;;  %v14729_v46 = vpack.c.bf16 %v4811_v36, %v4811_v36  ;;  %v14731_v37 = vpack.c.bf16 %v4812_v39, %v4812_v39  ;;  %v14733_v55 = vpack.c.bf16 %v4813_v56, %v4813_v56 }
 0x3fd   : > { %v14735_v31 = vpack.c.bf16 %v4814_v60, %v4814_v60  ;;  %v14737_v61 = vpack.c.bf16 %v4815_v51, %v4815_v51  ;;  %v14739_v59 = vpack.c.bf16 %v4816_v40, %v4816_v40  ;;  %v14741_v22 = vpack.c.bf16 %v4817_v28, %v4817_v28 }
 0x3fe   : > { %v14743_v12 = vpack.c.bf16 %v4818_v19, %v4818_v19  ;;  %v14745_v43 = vpack.c.bf16 %v4819_v57, %v4819_v57  ;;  %v14747_v4 = vpack.c.bf16 %v4820_v21, %v4820_v21  ;;  %v14749_v13 = vpack.c.bf16 %v4821_v48, %v4821_v48 }
 0x3ff   : > { %v14751_v26 = vpack.c.bf16 %v4822_v49, %v4822_v49  ;;  %v14753_v17 = vpack.c.bf16 %v4823_v18, %v4823_v18  ;;  %v14755_v38 = vpack.c.bf16 %v4824_v50, %v4824_v50  ;;  %v14757_v36 = vpack.c.bf16 %v4825_v10, %v4825_v10 }
 0x400   : > { %v14759_v39 = vpack.c.bf16 %v4826_v62, %v4826_v62  ;;  %v14761_v56 = vpack.c.bf16 %v4827_v24, %v4827_v24  ;;  %v14763_v60 = vpack.c.bf16 %v4828_v23, %v4828_v23  ;;  %v14765_v51 = vpack.c.bf16 %v4829_v7, %v4829_v7 }
 0x401   : > { %v14767_v40 = vpack.c.bf16 %v4833_v45, %v4833_v45  ;;  %v4946_v28 = vshrl.u32 %v9905_v41, 16  ;;  %v4949_v19 = vshll.u32 %v9905_v41, 16  ;;  %v4955_v57 = vshrl.u32 %v9906_v16, 16 }
 0x402   : > { %v4958_v21 = vshll.u32 %v9906_v16, 16  ;;  %v4965_v48 = vshrl.u32 %v9907_v33, 16  ;;  %v4968_v49 = vshll.u32 %v9907_v33, 16  ;;  %v4975_v10 = vshrl.u32 %v9908_v58, 16 }
 0x403   : > { %v4948_v18 = vrot.slane %v4946_v28, 6  ;;  %v4951_v50 = vrot.slane %v4949_v19, 7  ;;  %v4978_v27 = vshll.u32 %v9908_v58, 16  ;;  %v4957_v62 = vrot.slane %v4955_v57, 6 }
 0x404   : > { %v4960_v34 = vrot.slane %v4958_v21, 7  ;;  %v4967_v24 = vrot.slane %v4965_v48, 6  ;;  %v4970_v54 = vrot.slane %v4968_v49, 7  ;;  %v4977_v7 = vrot.slane %v4975_v10, 6  ;;  %v17089_v48 = vld [vmem:[#allocation7_spill] sm:$0xff] }
 0x405   : > { %v14769_v23 = vor.u32 %v4951_v50, %v4948_v18  ;;  %v4980_v2 = vrot.slane %v4978_v27, 7  ;;  %v4985_v45 = vshrl.u32 %v9909_v30, 16  ;;  %v4988_v41 = vshll.u32 %v9909_v30, 16 }
 0x406   : > { %v4961_v53 = vor.u32 %v4960_v34, %v4957_v62  ;;  %v4971_v0 = vor.u32 %v4970_v54, %v4967_v24  ;;  %v4995_v5 = vshrl.u32 %v9910_v20, 16  ;;  %v4998_v19 = vshll.u32 %v9910_v20, 16 }
 0x407   : > { %v4953_v16 = vrot.slane %v14769_v23, 4  ;;  %v4981_v33 = vor.u32 %v4980_v2, %v4977_v7  ;;  %v4987_v28 = vrot.slane %v4985_v45, 6  ;;  %v4990_v57 = vrot.slane %v4988_v41, 7 }
 0x408   : > { %v4963_v25 = vrot.slane %v4961_v53, 4  ;;  %v4973_v58 = vrot.slane %v4971_v0, 4  ;;  %v4997_v21 = vrot.slane %v4995_v5, 6  ;;  %vm17090_vm13 = vnez %v17089_v48 }
 0x409   : > { %v4962_v49 = vsel %vm17090_vm13, %v4953_v16, %v4961_v53  ;;  %v4983_v18 = vrot.slane %v4981_v33, 4  ;;  %v5000_v50 = vrot.slane %v4998_v19, 7  ;;  %v5005_v27 = vshrl.u32 %v14715_v42, 16 }
 0x40a   : > { %v4972_v54 = vsel %vm17090_vm13, %v4963_v25, %v4971_v0  ;;  %v4982_v34 = vsel %vm17090_vm13, %v4973_v58, %v4981_v33  ;;  %v4991_v2 = vor.u32 %v4990_v57, %v4987_v28  ;;  %v5008_v20 = vshll.u32 %v14715_v42, 16 }
 0x40b   : > { %vm17091_vm6 = vcmask 60416   ;;  %v5001_v30 = vor.u32 %v5000_v50, %v4997_v21  ;;  %v5007_v5 = vrot.slane %v5005_v27, 6  ;;  %v5015_v10 = vshrl.u32 %v14717_v44, 16 }
 0x40c   : > { %5347 = vst.msk [vmem:[#allocation2 + $0xc] sm:$0xf] %vm17091_vm6, %v4962_v49  ;;  %v5018_v53 = vshll.u32 %v14717_v44, 16  ;;  %vm17092_vm10 = vmmov %vm17091_vm6  ;;  %v4992_v25 = vsel %vm17090_vm13, %v4983_v18, %v4991_v2  ;;  %v4993_v0 = vrot.slane %v4991_v2, 4  ;;  %v5010_v62 = vrot.slane %v5008_v20, 7 }
 0x40d   : > { %5348 = vst.msk [vmem:[#allocation2 + $0x10] sm:$0xf] %vm17092_vm10, %v4972_v54  ;;  %vm17093_vm7 = vmmov %vm17091_vm6  ;;  %v5025_v24 = vshrl.u32 %v14719_v15, 16  ;;  %v5003_v42 = vrot.slane %v5001_v30, 4  ;;  %v5017_v7 = vrot.slane %v5015_v10, 6  ;;  %v5028_v41 = vshll.u32 %v14719_v15, 16 }
 0x40e   : > { %5349 = vst.msk [vmem:[#allocation2 + $0x14] sm:$0xf] %vm17093_vm7, %v4982_v34  ;;  %v5020_v45 = vrot.slane %v5018_v53, 7  ;;  %v5002_v44 = vsel %vm17090_vm13, %v4993_v0, %v5001_v30  ;;  %v5011_v16 = vor.u32 %v5010_v62, %v5007_v5  ;;  %v5035_v28 = vshrl.u32 %v14721_v35, 16  ;;  %vm17094_vm7 = vmmov %vm17091_vm6 }
 0x40f   : > { %5350 = vst.msk [vmem:[#allocation2 + $0x18] sm:$0xf] %vm17091_vm6, %v4992_v25  ;;  %v5027_v33 = vrot.slane %v5025_v24, 6  ;;  %v5030_v58 = vrot.slane %v5028_v41, 7  ;;  %v5038_v57 = vshll.u32 %v14721_v35, 16  ;;  %v5045_v21 = vshrl.u32 %v14723_v29, 16  ;;  %vm17095_vm10 = vmmov %vm17091_vm6 }
 0x410   : > { %v5021_v19 = vor.u32 %v5020_v45, %v5017_v7  ;;  %5351 = vst.msk [vmem:[#allocation2 + $0x1c] sm:$0xf] %vm17094_vm7, %v5002_v44  ;;  %v5012_v15 = vsel %vm17090_vm13, %v5003_v42, %v5011_v16  ;;  %v5013_v49 = vrot.slane %v5011_v16, 4  ;;  %v5037_v18 = vrot.slane %v5035_v28, 6  ;;  %vm17096_vm7 = vmmov %vm17091_vm6 }
 0x411   : > { %v5048_v50 = vshll.u32 %v14723_v29, 16  ;;  %v5031_v54 = vor.u32 %v5030_v58, %v5027_v33  ;;  %v5040_v34 = vrot.slane %v5038_v57, 7  ;;  %v5047_v2 = vrot.slane %v5045_v21, 6  ;;  %5352 = vst.msk [vmem:[#allocation2 + $0x20] sm:$0xf] %vm17095_vm10, %v5012_v15  ;;  %vm17097_vm10 = vmmov %vm17091_vm6 }
 0x412   : > { %v5023_v27 = vrot.slane %v5021_v19, 4  ;;  %v5022_v35 = vsel %vm17090_vm13, %v5013_v49, %v5021_v19  ;;  %v5055_v30 = vshrl.u32 %v14725_v47, 16  ;;  %v5058_v5 = vshll.u32 %v14725_v47, 16 }
 0x413   : > { %v5050_v20 = vrot.slane %v5048_v50, 7  ;;  %v5033_v53 = vrot.slane %v5031_v54, 4  ;;  %v5041_v25 = vor.u32 %v5040_v34, %v5037_v18  ;;  %v5065_v29 = vshrl.u32 %v14727_v3, 16  ;;  %5353 = vst.msk [vmem:[#allocation2 + $0x24] sm:$0xf] %vm17091_vm6, %v5022_v35 }
 0x414   : > { %v5032_v10 = vsel %vm17090_vm13, %v5023_v27, %v5031_v54  ;;  %v5057_v62 = vrot.slane %v5055_v30, 6  ;;  %v5060_v24 = vrot.slane %v5058_v5, 7  ;;  %v5068_v42 = vshll.u32 %v14727_v3, 16 }
 0x415   : > { %v5051_v0 = vor.u32 %v5050_v20, %v5047_v2  ;;  %5354 = vst.msk [vmem:[#allocation2 + $0x28] sm:$0xf] %vm17096_vm7, %v5032_v10  ;;  %v5042_v7 = vsel %vm17090_vm13, %v5033_v53, %v5041_v25  ;;  %v5043_v47 = vrot.slane %v5041_v25, 4  ;;  %v5067_v45 = vrot.slane %v5065_v29, 6  ;;  %vm17098_vm7 = vmmov %vm17091_vm6 }
 0x416   : > { %v5075_v41 = vshrl.u32 %v14729_v46, 16  ;;  %v5061_v16 = vor.u32 %v5060_v24, %v5057_v62  ;;  %v5070_v33 = vrot.slane %v5068_v42, 7  ;;  %v5078_v28 = vshll.u32 %v14729_v46, 16  ;;  %5355 = vst.msk [vmem:[#allocation2 + $0x2c] sm:$0xf] %vm17097_vm10, %v5042_v7  ;;  %vm17099_vm10 = vmmov %vm17091_vm6 }
 0x417   : > { %v5053_v44 = vrot.slane %v5051_v0, 4  ;;  %v5052_v19 = vsel %vm17090_vm13, %v5043_v47, %v5051_v0  ;;  %v5085_v58 = vshrl.u32 %v14731_v37, 16  ;;  %v5088_v57 = vshll.u32 %v14731_v37, 16 }
 0x418   : > { %v5077_v3 = vrot.slane %v5075_v41, 6  ;;  %v5063_v15 = vrot.slane %v5061_v16, 4  ;;  %v5071_v49 = vor.u32 %v5070_v33, %v5067_v45  ;;  %v5080_v18 = vrot.slane %v5078_v28, 7  ;;  %5356 = vst.msk [vmem:[#allocation2 + $0x30] sm:$0xf] %vm17091_vm6, %v5052_v19 }
 0x419   : > { %v5062_v21 = vsel %vm17090_vm13, %v5053_v44, %v5061_v16  ;;  %v5087_v50 = vrot.slane %v5085_v58, 6  ;;  %v5090_v46 = vrot.slane %v5088_v57, 7  ;;  %v5095_v27 = vshrl.u32 %v14733_v55, 16 }
 0x41a   : > { %v5098_v54 = vshll.u32 %v14733_v55, 16  ;;  %5357 = vst.msk [vmem:[#allocation2 + $0x34] sm:$0xf] %vm17098_vm7, %v5062_v21  ;;  %v5072_v34 = vsel %vm17090_vm13, %v5063_v15, %v5071_v49  ;;  %v5073_v37 = vrot.slane %v5071_v49, 4  ;;  %v5081_v2 = vor.u32 %v5080_v18, %v5077_v3  ;;  %vm17100_vm7 = vmmov %vm17091_vm6 }
 0x41b   : > { %v5105_v35 = vshrl.u32 %v14735_v31, 16  ;;  %v5091_v20 = vor.u32 %v5090_v46, %v5087_v50  ;;  %v5097_v30 = vrot.slane %v5095_v27, 6  ;;  %v5108_v10 = vshll.u32 %v14735_v31, 16  ;;  %5358 = vst.msk [vmem:[#allocation2 + $0x38] sm:$0xf] %vm17099_vm10, %v5072_v34  ;;  %vm17101_vm10 = vmmov %vm17091_vm6 }
 0x41c   : > { %v5100_v5 = vrot.slane %v5098_v54, 7  ;;  %v5082_v53 = vsel %vm17090_vm13, %v5073_v37, %v5081_v2  ;;  %v5083_v55 = vrot.slane %v5081_v2, 4  ;;  %v5115_v29 = vshrl.u32 %v14737_v61, 16 }
 0x41d   : > { %v5107_v25 = vrot.slane %v5105_v35, 6  ;;  %v5093_v0 = vrot.slane %v5091_v20, 4  ;;  %v5110_v24 = vrot.slane %v5108_v10, 7  ;;  %v5118_v42 = vshll.u32 %v14737_v61, 16  ;;  %5359 = vst.msk [vmem:[#allocation2 + $0x3c] sm:$0xf] %vm17091_vm6, %v5082_v53 }
 0x41e   : > { %v5101_v62 = vor.u32 %v5100_v5, %v5097_v30  ;;  %v5092_v7 = vsel %vm17090_vm13, %v5083_v55, %v5091_v20  ;;  %v5117_v31 = vrot.slane %v5115_v29, 6  ;;  %v5125_v47 = vshrl.u32 %v14739_v59, 16 }
 0x41f   : > { %v5128_v45 = vshll.u32 %v14739_v59, 16  ;;  %v5111_v16 = vor.u32 %v5110_v24, %v5107_v25  ;;  %v5120_v33 = vrot.slane %v5118_v42, 7  ;;  %5360 = vst.msk [vmem:[#allocation2 + $0x40] sm:$0xf] %vm17100_vm7, %v5092_v7  ;;  %v5135_v19 = vshrl.u32 %v14741_v22, 16  ;;  %vm17102_vm7 = vmmov %vm17091_vm6 }
 0x420   : > { %v5102_v41 = vsel %vm17090_vm13, %v5093_v0, %v5101_v62  ;;  %v5103_v44 = vrot.slane %v5101_v62, 4  ;;  %v5127_v28 = vrot.slane %v5125_v47, 6  ;;  %v5138_v3 = vshll.u32 %v14741_v22, 16 }
 0x421   : > { %v5130_v61 = vrot.slane %v5128_v45, 7  ;;  %5361 = vst.msk [vmem:[#allocation2 + $0x44] sm:$0xf] %vm17101_vm10, %v5102_v41  ;;  %v5113_v59 = vrot.slane %v5111_v16, 4  ;;  %v5121_v57 = vor.u32 %v5120_v33, %v5117_v31  ;;  %v5145_v21 = vshrl.u32 %v14743_v12, 16  ;;  %vm17103_vm10 = vmmov %vm17091_vm6 }
 0x422   : > { %v5112_v58 = vsel %vm17090_vm13, %v5103_v44, %v5111_v16  ;;  %v5137_v49 = vrot.slane %v5135_v19, 6  ;;  %v5140_v18 = vrot.slane %v5138_v3, 7  ;;  %v5148_v50 = vshll.u32 %v14743_v12, 16 }
 0x423   : > { %v5131_v15 = vor.u32 %v5130_v61, %v5127_v28  ;;  %5362 = vst.msk [vmem:[#allocation2 + $0x48] sm:$0xf] %vm17091_vm6, %v5112_v58  ;;  %v5122_v46 = vsel %vm17090_vm13, %v5113_v59, %v5121_v57  ;;  %v5123_v22 = vrot.slane %v5121_v57, 4  ;;  %v5147_v27 = vrot.slane %v5145_v21, 6 }
 0x424   : > { %v5155_v54 = vshrl.u32 %v14745_v43, 16  ;;  %v5141_v37 = vor.u32 %v5140_v18, %v5137_v49  ;;  %v5150_v2 = vrot.slane %v5148_v50, 7  ;;  %v5158_v35 = vshll.u32 %v14745_v43, 16  ;;  %5363 = vst.msk [vmem:[#allocation2 + $0x4c] sm:$0xf] %vm17102_vm7, %v5122_v46  ;;  %vm17104_vm7 = vmmov %vm17091_vm6 }
 0x425   : > { %v5133_v34 = vrot.slane %v5131_v15, 4  ;;  %v5132_v20 = vsel %vm17090_vm13, %v5123_v22, %v5131_v15  ;;  %v5165_v30 = vshrl.u32 %v14747_v4, 16  ;;  %v5168_v5 = vshll.u32 %v14747_v4, 16 }
 0x426   : > { %v5157_v12 = vrot.slane %v5155_v54, 6  ;;  %v5143_v53 = vrot.slane %v5141_v37, 4  ;;  %v5151_v55 = vor.u32 %v5150_v2, %v5147_v27  ;;  %v5160_v25 = vrot.slane %v5158_v35, 7  ;;  %5364 = vst.msk [vmem:[#allocation2 + $0x50] sm:$0xf] %vm17103_vm10, %v5132_v20 }
 0x427   : > { %v5142_v10 = vsel %vm17090_vm13, %v5133_v34, %v5141_v37  ;;  %v5167_v29 = vrot.slane %v5165_v30, 6  ;;  %v5170_v43 = vrot.slane %v5168_v5, 7  ;;  %v5175_v0 = vshrl.u32 %v14749_v13, 16 }
 0x428   : > { %v5178_v62 = vshll.u32 %v14749_v13, 16  ;;  %5365 = vst.msk [vmem:[#allocation2 + $0x54] sm:$0xf] %vm17091_vm6, %v5142_v10  ;;  %v5152_v24 = vsel %vm17090_vm13, %v5143_v53, %v5151_v55  ;;  %v5153_v4 = vrot.slane %v5151_v55, 4  ;;  %v5161_v42 = vor.u32 %v5160_v25, %v5157_v12 }
 0x429   : > { %v5185_v7 = vshrl.u32 %v14751_v26, 16  ;;  %v5171_v31 = vor.u32 %v5170_v43, %v5167_v29  ;;  %v5177_v47 = vrot.slane %v5175_v0, 6  ;;  %v5188_v41 = vshll.u32 %v14751_v26, 16  ;;  %5366 = vst.msk [vmem:[#allocation2 + $0x58] sm:$0xf] %vm17104_vm7, %v5152_v24  ;;  %vm17105_vm7 = vmmov %vm17091_vm6 }
 0x42a   : > { %v5180_v45 = vrot.slane %v5178_v62, 7  ;;  %vm5342_vm9 = vsmask.f32 7942  ;;  %v5162_v13 = vsel %vm17090_vm13, %v5153_v4, %v5161_v42  ;;  %v5163_v44 = vrot.slane %v5161_v42, 4  ;;  %v5344_v29 = vld [vmem:[#allocation2 + $0x8] sm:$0xe] }
 0x42b   : > { %v5187_v16 = vrot.slane %v5185_v7, 6  ;;  %v5195_v33 = vshrl.u32 %v14753_v17, 16  ;;  %v5173_v28 = vrot.slane %v5171_v31, 4  ;;  %v5190_v19 = vrot.slane %v5188_v41, 7  ;;  %5367 = vst.msk [vmem:[#allocation2 + $0x5c] sm:$0xf] %vm17091_vm6, %v5162_v13 }
 0x42c   : > { %v5181_v61 = vor.u32 %v5180_v45, %v5177_v47  ;;  %v5198_v3 = vshll.u32 %v14753_v17, 16  ;;  %v5172_v26 = vsel %vm17090_vm13, %v5163_v44, %v5171_v31  ;;  %v5205_v59 = vshrl.u32 %v14755_v38, 16 }
 0x42d   : > { %v5197_v58 = vrot.slane %v5195_v33, 6  ;;  %v5208_v57 = vshll.u32 %v14755_v38, 16  ;;  %v5191_v49 = vor.u32 %v5190_v19, %v5187_v16  ;;  %5368 = vst.msk [vmem:[#allocation2 + $0x60] sm:$0xf] %vm17105_vm7, %v5172_v26  ;;  %v5215_v46 = vshrl.u32 %v14757_v36, 16  ;;  %vm17106_vm7 = vmmov %vm17091_vm6 }
 0x42e   : > { %v5182_v21 = vsel %vm17090_vm13, %v5173_v28, %v5181_v61  ;;  %v5183_v15 = vrot.slane %v5181_v61, 4  ;;  %v5200_v18 = vrot.slane %v5198_v3, 7  ;;  %v5207_v50 = vrot.slane %v5205_v59, 6  ;;  %v14916_v3 = vld [vmem:[#allocation2 + $0x10] sm:$0xff]  }
 0x42f   : > { %v5210_v17 = vrot.slane %v5208_v57, 7  ;;  %v5218_v22 = vshll.u32 %v14757_v36, 16  ;;  %5369 = vst.msk [vmem:[#allocation2 + $0x64] sm:$0xf] %vm17091_vm6, %v5182_v21  ;;  %v5193_v38 = vrot.slane %v5191_v49, 4  ;;  %v5225_v34 = vshrl.u32 %v14759_v39, 16 }
 0x430   : > { %v5192_v27 = vsel %vm17090_vm13, %v5183_v15, %v5191_v49  ;;  %v5201_v54 = vor.u32 %v5200_v18, %v5197_v58  ;;  %v5217_v2 = vrot.slane %v5215_v46, 6  ;;  %v5228_v20 = vshll.u32 %v14759_v39, 16  ;;  %v17113_v57 = vld [vmem:[#allocation5_spill] sm:$0xff] }
 0x431   : > { %v5211_v37 = vor.u32 %v5210_v17, %v5207_v50  ;;  %v5220_v35 = vrot.slane %v5218_v22, 7  ;;  %5370 = vst.msk [vmem:[#allocation2 + $0x68] sm:$0xf] %vm17106_vm7, %v5192_v27  ;;  %v5227_v30 = vrot.slane %v5225_v34, 6  ;;  %v5235_v5 = vshrl.u32 %v14761_v56, 16  ;;  %vm17107_vm7 = vmmov %vm17091_vm6  ;;  %v17114_v50 = vld [vmem:[#allocation41_spill] sm:$0xff] }
 0x432   : > { %v5202_v36 = vsel %vm17090_vm13, %v5193_v38, %v5201_v54  ;;  %v5203_v12 = vrot.slane %v5201_v54, 4  ;;  %v5230_v55 = vrot.slane %v5228_v20, 7  ;;  %v5238_v25 = vshll.u32 %v14761_v56, 16  ;;  %vm17111_vm0 = vmmov %vm17107_vm7  ;;  %v5384_v38 = vld [vmem:[#allocation2 + $0x98] sm:$0x3]  ;;  %v17119_v54 = vld [vmem:[#allocation26_spill] sm:$0xff] }
 0x433   : > { %v5213_v10 = vrot.slane %v5211_v37, 4  ;;  %v5221_v53 = vor.u32 %v5220_v35, %v5217_v2  ;;  %5371 = vst.msk [vmem:[#allocation2 + $0x6c] sm:$0xf] %vm17091_vm6, %v5202_v36  ;;  %v5237_v43 = vrot.slane %v5235_v5, 6  ;;  %v5245_v0 = vshrl.u32 %v14763_v60, 16  ;;  %vm17118_vm4 = vmmov %vm17111_vm0  ;;  %v14940_v35 = vld [vmem:[#allocation2 + $0x18] sm:$0xff]  }
 0x434   : > { %v5212_v39 = vsel %vm17090_vm13, %v5203_v12, %v5211_v37  ;;  %v5248_v62 = vshll.u32 %v14763_v60, 16  ;;  %v5231_v42 = vor.u32 %v5230_v55, %v5227_v30  ;;  %v5240_v7 = vrot.slane %v5238_v25, 7 }
 0x435   : > { %v5222_v24 = vsel %vm17090_vm13, %v5213_v10, %v5221_v53  ;;  %v5223_v4 = vrot.slane %v5221_v53, 4  ;;  %5372 = vst.msk [vmem:[#allocation2 + $0x70] sm:$0xf] %vm17107_vm7, %v5212_v39  ;;  %vm17108_vm10 = vcmask 60417   ;;  %v5247_v31 = vrot.slane %v5245_v0, 6  ;;  %v14949_v53 = vld [vmem:[#allocation2 + $0x20] sm:$0xff]  }
 0x436   : > { %vm14904_vm6 = vmand %vm17108_vm10, %vm5342_vm9  ;;  %v5250_v47 = vrot.slane %v5248_v62, 7  ;;  %v5255_v45 = vshrl.u32 %v14765_v51, 16  ;;  %v5258_v60 = vshll.u32 %v14765_v51, 16  ;;  %5373 = vst.msk [vmem:[#allocation2 + $0x74] sm:$0xf] %vm17111_vm0, %v5222_v24  ;;  %v5233_v13 = vrot.slane %v5231_v42, 4 }
 0x437   : > { %v5232_v41 = vsel %vm17090_vm13, %v5223_v4, %v5231_v42  ;;  %v5241_v44 = vor.u32 %v5240_v7, %v5237_v43  ;;  %v5295_v16 = vshrl.u32 %v14767_v40, 16  ;;  %v5298_v19 = vshll.u32 %v14767_v40, 16  ;;  %vm17112_vm9 = vmmov %vm17111_vm0  ;;  %v11772_v42 = vld [vmem:[%s16343_s2] sm:$0xf] }
 0x438   : > { %v5251_v33 = vor.u32 %v5250_v47, %v5247_v31  ;;  %v5257_v28 = vrot.slane %v5255_v45, 6  ;;  %v5260_v61 = vrot.slane %v5258_v60, 7  ;;  %5374 = vst.msk [vmem:[#allocation2 + $0x78] sm:$0xf] %vm17112_vm9, %v5232_v41  ;;  %v5345_v59 = vsel %vm14904_vm6, %v14769_v23, %v5344_v29  ;;  %vm17115_vm10 = vmmov %vm17111_vm0  ;;  %v14961_v31 = vld [vmem:[#allocation2 + $0x28] sm:$0xff]   ;;  %v14970_v41 = vld [vmem:[#allocation2 + $0x30] sm:$0xff]  }
 0x439   : > { %v5242_v51 = vsel %vm17090_vm13, %v5233_v13, %v5241_v44  ;;  %v5243_v26 = vrot.slane %v5241_v44, 4  ;;  %v5297_v58 = vrot.slane %v5295_v16, 6  ;;  %v5293_v21 = vrot.slane %v17113_v57, 4  ;;  %5346 = vst [vmem:[#allocation2 + $0x8] sm:$0xe] %v5345_v59  ;;  %v14984_v57 = vld [vmem:[#allocation2 + $0x40] sm:$0xff]  }
 0x43a   : > { %v5253_v15 = vrot.slane %v5251_v33, 4  ;;  %v5261_v49 = vor.u32 %v5260_v61, %v5257_v28  ;;  %v5300_v18 = vrot.slane %v5298_v19, 7  ;;  %5375 = vst.msk [vmem:[#allocation2 + $0x7c] sm:$0xf] %vm17111_vm0, %v5242_v51  ;;  %v5523_v17 = vshll.u32 %v17114_v50, 16  ;;  %v14979_v51 = vld [vmem:[#allocation2 + $0x38] sm:$0xff]  }
 0x43b   : > { %v5252_v40 = vsel %vm17090_vm13, %v5243_v26, %v5251_v33  ;;  %v5536_v23 = vshll.u32 %v14916_v3, 16  ;;  %vm17116_vm7 = vsmask.f32 1280  ;;  %vm17117_vm6 = vcmask 58368   ;;  %v14967_v45 = vld [vmem:[%s16343_s2 + $0x8] sm:$0xf] }
 0x43c   : > { %v5262_v46 = vsel %vm17090_vm13, %v5253_v15, %v5261_v49  ;;  %v5263_v22 = vrot.slane %v5261_v49, 4  ;;  %v5301_v27 = vor.u32 %v5300_v18, %v5297_v58  ;;  %5376 = vst.msk [vmem:[#allocation2 + $0x80] sm:$0xf] %vm17115_vm10, %v5252_v40  ;;  %vm5383_vm9 = vmand %vm17117_vm6, %vm17116_vm7  ;;  %v5521_v20 = vshrl.u32 %v17114_v50, 16  ;;  %v14990_v49 = vld [vmem:[#allocation2 + $0x50] sm:$0xff]   ;;  %v14992_v18 = vld [vmem:[#allocation2 + $0x58] sm:$0xff]  }
 0x43d   : > { %5377 = vst.msk [vmem:[#allocation2 + $0x84] sm:$0xf] %vm17118_vm4, %v5262_v46  ;;  %vm17120_vm10 = vmmov %vm17111_vm0  ;;  %v5525_v36 = vrot.slane %v5523_v17, 1  ;;  %v5538_v30 = vrot.slane %v5536_v23, 1  ;;  %v5540_v10 = vshrl.u32 %v14916_v3, 16  ;;  %v5544_v48 = vshll.u32 %v14940_v35, 16 }
 0x43e   : > { %v5272_v34 = vsel %vm17090_vm13, %v5263_v22, %v17119_v54  ;;  %v5302_v37 = vsel %vm17090_vm13, %v5293_v21, %v5301_v27  ;;  %v5303_v2 = vrot.slane %v5301_v27, 4  ;;  %v5552_v62 = vshll.u32 %v14949_v53, 16  ;;  %v14986_v21 = vld [vmem:[#allocation2 + $0x48] sm:$0xff]   ;;  %v14996_v46 = vld [vmem:[#allocation2 + $0x60] sm:$0xff]   ;;  %v15000_v23 = vld [vmem:[#allocation2 + $0x70] sm:$0xff]  }
 0x43f   : > { %5378 = vst.msk [vmem:[#allocation2 + $0x88] sm:$0xf] %vm17111_vm0, %v5272_v34  ;;  %v5526_v55 = vor.u32 %v5525_v36, %v5521_v20  ;;  %v5542_v29 = vor.u32 %v5540_v10, %v5538_v30  ;;  %v5546_v0 = vrot.slane %v5544_v48, 1  ;;  %vm17121_vm13 = vsmask.f32 7424  ;;  %v14998_v22 = vld [vmem:[#allocation2 + $0x68] sm:$0xff]  }
 0x440   : > { %5381 = vst.msk [vmem:[#allocation2 + $0x94] sm:$0xf] %vm17120_vm10, %v5302_v37  ;;  %v5385_v12 = vsel %vm5383_vm9, %v5303_v2, %v5384_v38  ;;  %v14945_v5 = vld [vmem:[#allocation2 + $0x8] sm:$0xff]   ;;  %vm17122_vm4 = vcmask 64512   ;;  %vm17123_vm7 = vcmask 1043456   ;;  %vm17124_vm6 = vmmov %vm17121_vm13  ;;  %v5554_v60 = vrot.slane %v5552_v62, 1 }
 0x441   : > { %5386 = vst [vmem:[#allocation2 + $0x98] sm:$0x3] %v5385_v12  ;;  %v5528_v25 = vshll.u32 %v14945_v5, 16  ;;  %v5532_v43 = vshrl.u32 %v14945_v5, 16  ;;  %v5940_v7 = vsel %vm17123_vm7, %v11772_v42, 0  ;;  %v5547_v56 = vsel %vm17124_vm6, %v5542_v29, %v5546_v0  ;;  %vm17125_vm9 = vmmov %vm17124_vm6  ;;  %v15007_v12 = vld [vmem:[#allocation2 + $0x78] sm:$0xff]  }
 0x442   : > { %vm17126_vm0 = vmmov %vm17122_vm4  ;;  %v5548_v13 = vshrl.u32 %v14940_v35, 16  ;;  %v5556_v44 = vshrl.u32 %v14949_v53, 16  ;;  %v5560_v16 = vshll.u32 %v14961_v31, 16  ;;  %v5568_v61 = vshll.u32 %v14970_v41, 16 }
 0x443   : > { %v5530_v39 = vrot.slane %v5528_v25, 1  ;;  %vm17127_vm10 = vmmov %vm17126_vm0  ;;  %v5564_v15 = vshrl.u32 %v14961_v31, 16  ;;  %v5572_v40 = vshrl.u32 %v14970_v41, 16  ;;  %v5576_v17 = vshll.u32 %v14979_v51, 16 }
 0x444   : > { %v5550_v33 = vor.u32 %v5548_v13, %v5546_v0  ;;  %v5558_v28 = vor.u32 %v5556_v44, %v5554_v60  ;;  %v5562_v19 = vrot.slane %v5560_v16, 1  ;;  %v5570_v59 = vrot.slane %v5568_v61, 1  ;;  %v15018_v62 = vld [vmem:[#allocation2 + $0x80] sm:$0xff]   ;;  %v15023_v44 = vld [vmem:[#allocation2 + $0xc] sm:$0xf] }
 0x445   : > { %v5531_v24 = vsel %vm17121_vm13, %v5526_v55, %v5530_v39  ;;  %v5534_v4 = vor.u32 %v5532_v43, %v5530_v39  ;;  %vm17128_vm13 = vmmov %vm17123_vm7  ;;  %v5584_v54 = vshll.u32 %v14984_v57, 16  ;;  %v5592_v34 = vshll.u32 %v14986_v21, 16 }
 0x446   : > { %10627 = vmatprep.mubr.msk.bf16.mxu1 %vm17122_vm4, %v5531_v24  ;;  %vm17129_vm4 = vmmov %vm17124_vm6  ;;  %v5566_v27 = vor.u32 %v5564_v15, %v5562_v19  ;;  %v5574_v38 = vor.u32 %v5572_v40, %v5570_v59  ;;  %v5578_v37 = vrot.slane %v5576_v17, 1  ;;  %v5600_v2 = vshll.u32 %v14990_v49, 16 }
 0x447   : > { %v5539_v47 = vsel %vm17125_vm9, %v5534_v4, %v5538_v30  ;;  %v5555_v26 = vsel %vm17129_vm4, %v5550_v33, %v5554_v60  ;;  %vm17130_vm7 = vmmov %vm17126_vm0  ;;  %v5608_v20 = vshll.u32 %v14992_v18, 16  ;;  %v5616_v36 = vshll.u32 %v14996_v46, 16 }
 0x448   : > { %10628 = vmatmul.mubr.msk.bf16.vlgmr.msra.gmra.mrb[0].mxu1 %vm17126_vm0, %v5539_v47  ;;  %vm17131_vm6 = vmmov %vm17129_vm4  ;;  %v5624_v10 = vshll.u32 %v14998_v22, 16  ;;  %v5632_v48 = vshll.u32 %v15000_v23, 16  ;;  %v5586_v25 = vrot.slane %v5584_v54, 1  ;;  %v5594_v29 = vrot.slane %v5592_v34, 1  ;;  %v6432_v34 = vld [vmem:[#allocation2 + $0x8] sm:$0xe] }
 0x449   : > { %10664 = vmatpush3.bf16.msra.mxu1 %v5940_v7  ;;  %10631 = vmatprep.mubr.msk.bf16.mxu1 %vm17127_vm10, %v5547_v56  ;;  %v5563_v58 = vsel %vm17131_vm6, %v5558_v28, %v5562_v19  ;;  %vm17132_vm9 = vmmov %vm17126_vm0  ;;  %v5580_v39 = vshrl.u32 %v14979_v51, 16  ;;  %v5588_v43 = vshrl.u32 %v14984_v57, 16  ;;  %v5596_v0 = vshrl.u32 %v14986_v21, 16  ;;  %v15021_v56 = vld [vmem:[#allocation2 + $0x88] sm:$0xff]  }
 0x44a   : > { %11554 = vmatprep.subr.msk.bf16.mxu1 %vm17128_vm13, %v14967_v45  ;;  %vm17133_vm0 = vmmov %vm17129_vm4  ;;  %v5602_v24 = vrot.slane %v5600_v2, 1  ;;  %v5604_v4 = vshrl.u32 %v14990_v49, 16  ;;  %v5610_v42 = vrot.slane %v5608_v20, 1  ;;  %v5618_v7 = vrot.slane %v5616_v36, 1 }
 0x44b   : > { %v5571_v30 = vsel %vm17133_vm0, %v5566_v27, %v5570_v59  ;;  %vm17134_vm10 = vmmov %vm17130_vm7  ;;  %v5582_v47 = vor.u32 %v5580_v39, %v5578_v37  ;;  %v5626_v60 = vrot.slane %v5624_v10, 1  ;;  %v5634_v13 = vrot.slane %v5632_v48, 1  ;;  %v15042_v48 = vld [vmem:[#allocation2 + $0x10] sm:$0xff]  }
 0x44c   : > { %vm17135_vm13 = vmmov %vm17133_vm0  ;;  %v5590_v16 = vor.u32 %v5588_v43, %v5586_v25  ;;  %v5598_v33 = vor.u32 %v5596_v0, %v5594_v29  ;;  %v5612_v28 = vshrl.u32 %v14992_v18, 16  ;;  %v5640_v61 = vshll.u32 %v15007_v12, 16  ;;  %v15052_v0 = vld [vmem:[#allocation2 + $0x20] sm:$0xff]  }
 0x44d   : > { %v5579_v55 = vsel %vm17135_vm13, %v5574_v38, %v5578_v37  ;;  %vm17136_vm4 = vmmov %vm17130_vm7  ;;  %v5620_v19 = vshrl.u32 %v14996_v46, 16  ;;  %v5648_v59 = vshll.u32 %v15018_v62, 16  ;;  %v5606_v15 = vor.u32 %v5604_v4, %v5602_v24 }
 0x44e   : > { %v5614_v40 = vor.u32 %v5612_v28, %v5610_v42  ;;  %vm17138_vm6 = vmmov %vm17136_vm4  ;;  %v5642_v2 = vrot.slane %v5640_v61, 1  ;;  %v5656_v20 = vshll.u32 %v15021_v56, 16  ;;  %v15036_v36 = vcombine.low %v6432_v34, %v15023_v44 }
 0x44f   : > { %v5622_v27 = vor.u32 %v5620_v19, %v5618_v7  ;;  %v15040_v10 = vrot.slane %v5648_v59, 1  ;;  %v5644_v39 = vshrl.u32 %v15007_v12, 16  ;;  %v5652_v43 = vshrl.u32 %v15018_v62, 16  ;;  %v15080_v59 = vld [vmem:[#allocation2 + $0x38] sm:$0xff]  }
 0x450   : > { %10632 = vmatmul.mubr.msk.bf16.gmra.mrb[4].mxu1 %vm17130_vm7, %v5555_v26  ;;  %v5628_v26 = vshrl.u32 %v14998_v22, 16  ;;  %vm17137_vm7 = vmmov %vm17133_vm0  ;;  %17140 = vst [vmem:[#allocation43_spill] sm:$0xff] %v15036_v36  ;;  %v6878_v28 = vshrl.u32 %v15036_v36, 16  ;;  %v6881_v61 = vshll.u32 %v15036_v36, 16  ;;  %v6886_v19 = vshrl.u32 %v15042_v48, 16 }
 0x451   : > { %10635 = vmatprep.mubr.msk.bf16.mxu1 %vm17132_vm9, %v5563_v58  ;;  %v5636_v58 = vshrl.u32 %v15000_v23, 16  ;;  %v5587_v17 = vsel %vm17137_vm7, %v5582_v47, %v5586_v25  ;;  %vm17139_vm9 = vmmov %vm17133_vm0  ;;  %v7317_v36 = vld [vmem:[#allocation2 + $0x8] sm:$0xc] }
 0x452   : > { %v5630_v38 = vor.u32 %v5628_v26, %v5626_v60  ;;  %v5595_v37 = vsel %vm17139_vm9, %v5590_v16, %v5594_v29  ;;  %vm17141_vm0 = vmmov %vm17136_vm4  ;;  %v15064_v16 = vor.u32 %v5644_v39, %v5642_v2  ;;  %v6889_v26 = vshll.u32 %v15042_v48, 16 }
 0x453   : > { %v5638_v54 = vor.u32 %v5636_v58, %v5634_v13  ;;  %vm17143_vm13 = vmmov %vm17137_vm7 }
 0x454   : > { %v5611_v25 = vsel %vm17143_vm13, %v5606_v15, %v5610_v42  ;;  %v6880_v15 = vrot.slane %v6878_v28, 1  ;;  %v15088_v28 = vld [vmem:[#allocation2 + $0x40] sm:$0xff]   ;;  %vm17149_vm13 = vsmask.f32 6400 }
 0x455   : > { %v6940_v6 = vshrl.u32 %v15088_v28, 16 }
 0x458   : > { %10636 = vmatmul.mubr.msk.bf16.gmra.mrb[8].mxu1 %vm17134_vm10, %v5571_v30  ;;  %vm17142_vm10 = vmmov %vm17137_vm7 }
 0x459   : > { %10639 = vmatprep.mubr.msk.bf16.mxu1 %vm17136_vm4, %v5579_v55  ;;  %v5603_v30 = vsel %vm17142_vm10, %v5598_v33, %v5602_v24  ;;  %v15044_v55 = vld [vmem:[#allocation2 + $0x18] sm:$0xff]   ;;  %vm17144_vm4 = vmmov %vm17137_vm7  ;;  %v15068_v33 = vld [vmem:[#allocation2 + $0x28] sm:$0xff]  }
 0x45a   : > { %v15048_v29 = vsel %vm17144_vm4, %v5614_v40, %v5618_v7  ;;  %vm17145_vm7 = vmmov %vm17144_vm4  ;;  %v15066_v7 = vrot.slane %v5656_v20, 1  ;;  %v6895_v58 = vshrl.u32 %v15044_v55, 16  ;;  %v6883_v40 = vrot.slane %v6881_v61, 2 }
 0x45b   : > { %v15055_v4 = vsel %vm17145_vm7, %v5622_v27, %v5626_v60  ;;  %vm17147_vm9 = vmmov %vm17144_vm4  ;;  %v15073_v60 = vor.u32 %v5652_v43, %v15040_v10  ;;  %v6904_v27 = vshrl.u32 %v15052_v0, 16  ;;  %v6913_v43 = vshrl.u32 %v15068_v33, 16 }
 0x45c   : > { %v15061_v47 = vsel %vm17147_vm9, %v5638_v54, %v5642_v2  ;;  %v6891_v54 = vrot.slane %v6889_v26, 2  ;;  %v6897_v34 = vrot.slane %v6895_v58, 1  ;;  %v6884_v2 = vor.u32 %v6883_v40, %v6880_v15  ;;  %vm17148_vm10 = vmmov %vm17141_vm0  ;;  %v15092_v26 = vld [vmem:[#allocation2 + $0x48] sm:$0xff]   ;;  %v15096_v40 = vld [vmem:[#allocation2 + $0x50] sm:$0xff]  }
 0x45d   : > { %v6906_v39 = vrot.slane %v6904_v27, 1  ;;  %v6916_v8 = vshll.u32 %v15068_v33, 16  ;;  %v6915_v52 = vrot.slane %v6913_v43, 1  ;;  %v6931_v15 = vshrl.u32 %v15080_v59, 16  ;;  %vm17158_vm9 = vmmov %vm17141_vm0 }
 0x45e   : > { %v6961_v63 = vshll.u32 %v15096_v40, 16 }
 0x45f   : > { %v6918_v27 = vrot.slane %v6916_v8, 2  ;;  %v6933_v14 = vrot.slane %v6931_v15, 1  ;;  %v6942_v15 = vrot.slane %v6940_v6, 1 }
 0x460   : > { %10640 = vmatmul.mubr.msk.bf16.gmra.mrb[12].mxu1 %vm17138_vm6, %v5587_v17  ;;  %vm17146_vm6 = vmmov %vm17144_vm4  ;;  %v6898_v17 = vshll.u32 %v15044_v55, 16 }
 0x461   : > { %10643 = vmatprep.mubr.msk.bf16.mxu1 %vm17141_vm0, %v5595_v37  ;;  %v15058_v24 = vsel %vm17146_vm6, %v5630_v38, %v5634_v13  ;;  %v15075_v13 = vld [vmem:[#allocation2 + $0x30] sm:$0xff]   ;;  %v6888_v38 = vrot.slane %v6886_v19, 1  ;;  %v6907_v37 = vshll.u32 %v15052_v0, 16  ;;  %vm17151_vm4 = vmmov %vm17149_vm13  ;;  %v6919_v32 = vor.u32 %v6918_v27, %v6915_v52  ;;  %v15122_v52 = vld [vmem:[#allocation2 + $0x68] sm:$0xff]  }
 0x462   : > { %v6900_v20 = vrot.slane %v6898_v17, 2  ;;  %v6922_v19 = vshrl.u32 %v15075_v13, 16  ;;  %vm17153_vm7 = vmmov %vm17151_vm4  ;;  %17159 = vst [vmem:[#allocation26_spill] sm:$0xff] %v15122_v52 }
 0x463   : > { %v6892_v61 = vor.u32 %v6891_v54, %v6888_v38  ;;  %v6909_v42 = vrot.slane %v6907_v37, 2  ;;  %vm17156_vm6 = vmmov %vm17151_vm4 }
 0x464   : > { %v6901_v58 = vor.u32 %v6900_v20, %v6897_v34  ;;  %v6924_v38 = vrot.slane %v6922_v19, 1  ;;  %v6934_v34 = vshll.u32 %v15080_v59, 16  ;;  %v15105_v20 = vld [vmem:[#allocation2 + $0x58] sm:$0xff]   ;;  %v6952_v19 = vshll.u32 %v15092_v26, 16 }
 0x465   : > { %v6910_v17 = vor.u32 %v6909_v42, %v6906_v39  ;;  %v15112_v42 = vld [vmem:[#allocation2 + $0x60] sm:$0xff]   ;;  %v6967_v11 = vshrl.u32 %v15105_v20, 16 }
 0x466   : > { %v15102_v54 = vsel %vm17151_vm4, %v6892_v61, %v6901_v58  ;;  %17155 = vst [vmem:[#allocation5_spill] sm:$0xff] %v15112_v42  ;;  %v6936_v39 = vrot.slane %v6934_v34, 2  ;;  %v6954_v34 = vrot.slane %v6952_v19, 2  ;;  %v6979_v19 = vshll.u32 %v15112_v42, 16 }
 0x467   : > { %17152 = vst [vmem:[#allocation25_spill] sm:$0xff] %v15102_v54  ;;  %v15108_v43 = vsel %vm17153_vm7, %v6901_v58, %v6910_v17  ;;  %v6958_v58 = vshrl.u32 %v15096_v40, 16  ;;  %v15169_v54 = vld [vmem:[#allocation2 + $0x90] ss:$0 sps:$4 sm:$0x11]  }
 0x468   : > { %10644 = vmatmul.mubr.msk.bf16.gmra.mrb[16].mxu1 %vm17141_vm0, %v5603_v30  ;;  %v6925_v30 = vshll.u32 %v15075_v13, 16  ;;  %17154 = vst [vmem:[#allocation7_spill] sm:$0xff] %v15108_v43  ;;  %vm17160_vm0 = vmmov %vm17151_vm4 }
 0x469   : > { %10647 = vmatprep.mubr.msk.bf16.mxu1 %vm17148_vm10, %v5611_v25  ;;  %v15099_v25 = vsel %vm17149_vm13, %v6884_v2, %v6892_v61  ;;  %v6943_v2 = vshll.u32 %v15088_v28, 16  ;;  %v6949_v61 = vshrl.u32 %v15092_v26, 16  ;;  %vm17162_vm10 = vmmov %vm17158_vm9 }
 0x46a   : > { %17150 = vst [vmem:[#allocation45_spill] sm:$0xff] %v15099_v25  ;;  %v6927_v37 = vrot.slane %v6925_v30, 2  ;;  %v15117_v30 = vsel %vm17156_vm6, %v6910_v17, %v6919_v32  ;;  %v15129_v17 = vld [vmem:[#allocation2 + $0x70] sm:$0xff]   ;;  %vm17165_vm13 = vmmov %vm17160_vm0 }
 0x46b   : > { %17157 = vst [vmem:[#allocation41_spill] sm:$0xff] %v15117_v30  ;;  %v6945_v9 = vrot.slane %v6943_v2, 2  ;;  %17163 = vst [vmem:[#allocation47_spill] sm:$0xff] %v15129_v17  ;;  %v6960_v2 = vrot.slane %v6958_v58, 1  ;;  %v6988_v30 = vshll.u32 %v15122_v52, 16  ;;  %v6997_v43 = vshll.u32 %v15129_v17, 16 }
 0x46c   : > { %v6928_v8 = vor.u32 %v6927_v37, %v6924_v38  ;;  %v6937_v38 = vor.u32 %v6936_v39, %v6933_v14  ;;  %v6951_v37 = vrot.slane %v6949_v61, 1  ;;  %v6970_v14 = vshll.u32 %v15105_v20, 16  ;;  %vm17167_vm4 = vmmov %vm17160_vm0 }
 0x46d   : > { %v6946_v6 = vor.u32 %v6945_v9, %v6942_v15  ;;  %v6976_v39 = vshrl.u32 %v15112_v42, 16  ;;  %v6963_v61 = vrot.slane %v6961_v63, 2  ;;  %v6969_v9 = vrot.slane %v6967_v11, 1  ;;  %vm17169_vm7 = vmmov %vm17160_vm0 }
 0x46e   : > { %v15125_v27 = vsel %vm17160_vm0, %v6919_v32, %v6928_v8  ;;  %v15136_v1 = vsel %vm17165_vm13, %v6928_v8, %v6937_v38  ;;  %v6955_v32 = vor.u32 %v6954_v34, %v6951_v37  ;;  %v6972_v58 = vrot.slane %v6970_v14, 2  ;;  %v15156_v14 = vld [vmem:[#allocation2 + $0x90] sm:$0xff]   ;;  %vm17174_vm6 = vmmov %vm17160_vm0 }
 0x46f   : > { %17161 = vst [vmem:[#allocation46_spill] sm:$0xff] %v15125_v27  ;;  %17166 = vst [vmem:[#allocation49_spill] sm:$0xff] %v15136_v1  ;;  %v6978_v27 = vrot.slane %v6976_v39, 1  ;;  %v6985_v8 = vshrl.u32 %v15122_v52, 16  ;;  %v15148_v1 = vld [vmem:[#allocation2 + $0x80] sm:$0xff]   ;;  %v6964_v37 = vor.u32 %v6963_v61, %v6960_v2  ;;  %v6981_v34 = vrot.slane %v6979_v19, 2 }
 0x470   : > { %10648 = vmatmul.mubr.msk.bf16.gmra.mrb[20].mxu1 %vm17158_vm9, %v15048_v29  ;;  %v15133_v29 = vld [vmem:[#allocation2 + $0x78] sm:$0xff]   ;;  %v15145_v15 = vsel %vm17169_vm7, %v6946_v6, %v6955_v32  ;;  %17171 = vst [vmem:[#allocation52_spill] sm:$0xff] %v15148_v1  ;;  %v6973_v11 = vor.u32 %v6972_v58, %v6969_v9  ;;  %17173 = vst [vmem:[#allocation54_spill] sm:$0xff] %v15156_v14  ;;  %v6990_v2 = vrot.slane %v6988_v30, 2  ;;  %v6999_v9 = vrot.slane %v6997_v43, 2 }
 0x471   : > { %10651 = vmatprep.mubr.msk.bf16.mxu1 %vm17162_vm10, %v15055_v4  ;;  %17164 = vst [vmem:[#allocation48_spill] sm:$0xff] %v15133_v29  ;;  %v15141_v4 = vsel %vm17167_vm4, %v6937_v38, %v6946_v6  ;;  %17170 = vst [vmem:[#allocation51_spill] sm:$0xff] %v15145_v15  ;;  %v6994_v38 = vshrl.u32 %v15129_v17, 16  ;;  %v6987_v63 = vrot.slane %v6985_v8, 1  ;;  %v7003_v6 = vshrl.u32 %v15133_v29, 16 }
 0x472   : > { %17168 = vst [vmem:[#allocation50_spill] sm:$0xff] %v15141_v4  ;;  %v15152_v4 = vld [vmem:[#allocation2 + $0x88] sm:$0xff]   ;;  %v15159_v39 = vsel %vm17174_vm6, %v6955_v32, %v6964_v37  ;;  %v6982_v15 = vor.u32 %v6981_v34, %v6978_v27  ;;  %v15164_v19 = vsel %vm17160_vm0, %v6964_v37, %v6973_v11  ;;  %v7006_v8 = vshll.u32 %v15133_v29, 16  ;;  %vm17177_vm10 = vmmov %vm17158_vm9 }
 0x473   : > { %17172 = vst [vmem:[#allocation53_spill] sm:$0xff] %v15152_v4  ;;  %17175 = vst [vmem:[#allocation55_spill] sm:$0xff] %v15159_v39  ;;  %v6996_v61 = vrot.slane %v6994_v38, 1  ;;  %v7005_v58 = vrot.slane %v7003_v6, 1  ;;  %v6991_v30 = vor.u32 %v6990_v2, %v6987_v63  ;;  %v7012_v27 = vshrl.u32 %v15148_v1, 16 }
 0x474   : > { %17176 = vst [vmem:[#allocation56_spill] sm:$0xff] %v15164_v19  ;;  %vm17178_vm13 = vmmov %vm17160_vm0  ;;  %v7008_v37 = vrot.slane %v7006_v8, 2  ;;  %v7021_v43 = vshrl.u32 %v15152_v4, 16  ;;  %v7024_v38 = vshll.u32 %v15152_v4, 16  ;;  %v7030_v39 = vshrl.u32 %v15156_v14, 16 }
 0x475   : > { %v15172_v32 = vsel %vm17178_vm13, %v6973_v11, %v6982_v15  ;;  %v7000_v34 = vor.u32 %v6999_v9, %v6996_v61  ;;  %vm17180_vm4 = vmmov %vm17160_vm0  ;;  %v5664_v61 = vshll.u32 %v15169_v54, 16  ;;  %v7033_v25 = vshll.u32 %v15156_v14, 16 }
 0x476   : > { %17179 = vst [vmem:[#allocation57_spill] sm:$0xff] %v15172_v32  ;;  %v15179_v6 = vsel %vm17180_vm4, %v6982_v15, %v6991_v30  ;;  %vm17182_vm7 = vmmov %vm17160_vm0  ;;  %v7009_v63 = vor.u32 %v7008_v37, %v7005_v58  ;;  %v7023_v2 = vrot.slane %v7021_v43, 1  ;;  %v7026_v32 = vrot.slane %v7024_v38, 2 }
 0x477   : > { %17181 = vst [vmem:[#allocation58_spill] sm:$0xff] %v15179_v6  ;;  %v15183_v11 = vsel %vm17182_vm7, %v6991_v30, %v7000_v34  ;;  %v7032_v8 = vrot.slane %v7030_v39, 1  ;;  %vm17184_vm6 = vsmask.f32 7424  ;;  %v9806_v30 = vcombine.low %v7317_v36, %v15023_v44  ;;  %vm17190_vm4 = vmmov %vm17160_vm0 }
 0x478   : > { %10652 = vmatmul.mubr.msk.bf16.gmra.mrb[24].mxu1 %vm17158_vm9, %v15058_v24  ;;  %v7015_v24 = vshll.u32 %v15148_v1, 16  ;;  %17183 = vst [vmem:[#allocation59_spill] sm:$0xff] %v15183_v11  ;;  %v5651_v15 = vsel %vm17184_vm6, %v15064_v16, %v15040_v10  ;;  %vm17185_vm9 = vmmov %vm17160_vm0  ;;  %v17187_v58 = vshrl.u32 %v15021_v56, 16  ;;  %v7035_v39 = vrot.slane %v7033_v25, 2  ;;  %v15356_v11 = vld [vmem:[#allocation2 + $0x60] sm:$0xff]  }
 0x479   : > { %10655 = vmatprep.mubr.msk.bf16.mxu1 %vm17177_vm10, %v15061_v47  ;;  %v7014_v47 = vrot.slane %v7012_v27, 1  ;;  %v15191_v27 = vsel %vm17185_vm9, %v7000_v34, %v7009_v63  ;;  %v7324_v43 = vrot.slane %v15042_v48, 2  ;;  %vm17189_vm13 = vmmov %vm17184_vm6  ;;  %v7323_v44 = vrot.slane %v9806_v30, 2  ;;  %v15236_v30 = vld [vmem:[#allocation2 + $0x98] ss:$0 sps:$4 sm:$0x33]  }
 0x47a   : > { %v7017_v19 = vrot.slane %v7015_v24, 2  ;;  %17186 = vst [vmem:[#allocation60_spill] sm:$0xff] %v15191_v27  ;;  %v7027_v24 = vor.u32 %v7026_v32, %v7023_v2  ;;  %v5662_v37 = vor.u32 %v17187_v58, %v15066_v7  ;;  %v5659_v10 = vsel %vm17189_vm13, %v15073_v60, %v15066_v7  ;;  %vm17192_vm7 = vmmov %vm17177_vm10 }
 0x47b   : > { %v7326_v36 = vrot.slane %v15044_v55, 2  ;;  %v15210_v32 = vor.u32 %v7035_v39, %v7032_v8  ;;  %v7328_v25 = vrot.slane %v15052_v0, 2  ;;  %v7330_v34 = vrot.slane %v15068_v33, 2  ;;  %17206 = vst [vmem:[#allocation70_spill] sm:$0xff] %v15236_v30 }
 0x47c   : > { %v7018_v9 = vor.u32 %v7017_v19, %v7014_v47  ;;  %v7332_v38 = vrot.slane %v15075_v13, 2  ;;  %v5666_v47 = vrot.slane %v5664_v61, 1  ;;  %vm17194_vm6 = vcmask 1045504  }
 0x47d   : > { %17193 = vst [vmem:[#allocation63_spill] sm:$0xff] %v15210_v32  ;;  %vm17196_vm9 = vmmov %vm17194_vm6  ;;  %v7334_v60 = vrot.slane %v15080_v59, 2  ;;  %v15224_v2 = vsel %vm17160_vm0, %v7027_v24, %v15210_v32  ;;  %v7336_v39 = vrot.slane %v15088_v28, 2 }
 0x47e   : > { %v15198_v19 = vsel %vm17160_vm0, %v7009_v63, %v7018_v9  ;;  %v15206_v16 = vsel %vm17190_vm4, %v7018_v9, %v7027_v24  ;;  %v15216_v63 = vsel %vm17194_vm6, %v7323_v44, %v7324_v43  ;;  %v15219_v7 = vsel %vm17196_vm9, %v7324_v43, %v7326_v36  ;;  %17198 = vst [vmem:[#allocation66_spill] sm:$0xff] %v15224_v2  ;;  %vm17201_vm13 = vmmov %vm17194_vm6 }
 0x47f   : > { %17188 = vst [vmem:[#allocation61_spill] sm:$0xff] %v15198_v19  ;;  %17191 = vst [vmem:[#allocation62_spill] sm:$0xff] %v15206_v16  ;;  %v15230_v8 = vsel %vm17201_vm13, %v7328_v25, %v7330_v34  ;;  %v7338_v24 = vrot.slane %v15092_v26, 2  ;;  %v7340_v43 = vrot.slane %v15096_v40, 2  ;;  %v7344_v44 = vrot.slane %v15112_v42, 2  ;;  %v15350_v19 = vld [vmem:[#allocation2 + $0x58] sm:$0xff]  }
 0x480   : > { %10656 = vmatmul.mubr.msk.bf16.gmra.mrb[28].mxu1 %vm17177_vm10, %v5651_v15  ;;  %17195 = vst [vmem:[#allocation64_spill] sm:$0xff] %v15216_v63  ;;  %17197 = vst [vmem:[#allocation65_spill] sm:$0xff] %v15219_v7  ;;  %v8156_v6 = vshrl.u32 %v15350_v19, 16 }
 0x481   : > { %10659 = vmatprep.mubr.msk.bf16.mxu1 %vm17192_vm7, %v5659_v10  ;;  %vm17199_vm10 = vmmov %vm17194_vm6  ;;  %17202 = vst [vmem:[#allocation68_spill] sm:$0xff] %v15230_v8  ;;  %vm17205_vm7 = vsmask.f32 7424  ;;  %v7342_v10 = vrot.slane %v15105_v20, 2 }
 0x482   : > { %v15227_v9 = vsel %vm17199_vm10, %v7326_v36, %v7328_v25  ;;  %vm17203_vm4 = vmmov %vm17194_vm6  ;;  %v5667_v15 = vsel %vm17205_vm7, %v5662_v37, %v5666_v47  ;;  %v7346_v36 = vrot.slane %v15122_v52, 2 }
 0x483   : > { %17200 = vst [vmem:[#allocation67_spill] sm:$0xff] %v15227_v9  ;;  %v15233_v61 = vsel %vm17203_vm4, %v7330_v34, %v7332_v38  ;;  %vm17207_vm6 = vmmov %vm17203_vm4  ;;  %v7348_v34 = vrot.slane %v15129_v17, 2 }
 0x484   : > { %17204 = vst [vmem:[#allocation69_spill] sm:$0xff] %v15233_v61  ;;  %v15239_v58 = vsel %vm17207_vm6, %v7332_v38, %v7334_v60  ;;  %vm17209_vm9 = vmmov %vm17203_vm4  ;;  %v7350_v38 = vrot.slane %v15133_v29, 2  ;;  %vm17221_vm6 = vcmask 64512  }
 0x485   : > { %17208 = vst [vmem:[#allocation71_spill] sm:$0xff] %v15239_v58  ;;  %v15248_v25 = vsel %vm17209_vm9, %v7334_v60, %v7336_v39  ;;  %vm17211_vm0 = vmmov %vm17203_vm4 }
 0x486   : > { %17210 = vst [vmem:[#allocation72_spill] sm:$0xff] %v15248_v25  ;;  %v15251_v37 = vsel %vm17211_vm0, %v7336_v39, %v7338_v24  ;;  %vm17213_vm10 = vmmov %vm17211_vm0  ;;  %v15272_v39 = vsel %vm17211_vm0, %v7348_v34, %v7350_v38 }
 0x487   : > { %17212 = vst [vmem:[#allocation73_spill] sm:$0xff] %v15251_v37  ;;  %v15256_v47 = vsel %vm17213_vm10, %v7338_v24, %v7340_v43  ;;  %vm17215_vm13 = vmmov %vm17211_vm0  ;;  %v7352_v24 = vrot.slane %v15148_v1, 2 }
 0x488   : > { %17214 = vst [vmem:[#allocation74_spill] sm:$0xff] %v15256_v47  ;;  %v15259_v58 = vsel %vm17215_vm13, %v7340_v43, %v7342_v10  ;;  %vm17217_vm4 = vmmov %vm17211_vm0  ;;  %10660 = vmatmul.mubr.msk.bf16.gmra.mrb[32].mxu1 %vm17221_vm6, %v5667_v15  ;;  %v7354_v47 = vrot.slane %v15152_v4, 2  ;;  %v7356_v43 = vrot.slane %v15156_v14, 2 }
 0x489   : > { %17216 = vst [vmem:[#allocation75_spill] sm:$0xff] %v15259_v58  ;;  %v15262_v61 = vsel %vm17217_vm4, %v7342_v10, %v7344_v44  ;;  %vm17219_vm7 = vmmov %vm17211_vm0  ;;  %v7358_v10 = vrot.slane %v15236_v30, 2 }
 0x48a   : > { %17218 = vst [vmem:[#allocation76_spill] sm:$0xff] %v15262_v61  ;;  %v15265_v8 = vsel %vm17219_vm7, %v7344_v44, %v7346_v36  ;;  %vm17222_vm9 = vmmov %vm17211_vm0 }
 0x48b   : > { %17220 = vst [vmem:[#allocation77_spill] sm:$0xff] %v15265_v8  ;;  %v15269_v60 = vsel %vm17222_vm9, %v7346_v36, %v7348_v34  ;;  %17224 = vst [vmem:[#allocation79_spill] sm:$0xff] %v15272_v39  ;;  %v7630_v39 = vld [vmem:[#allocation2 + $0x10] sm:$0xc]  ;;  %vm17234_vm9 = vcmask 1043456  }
 0x48c   : > { %17223 = vst [vmem:[#allocation78_spill] sm:$0xff] %v15269_v60  ;;  %vm17225_vm10 = vmmov %vm17221_vm6  ;;  %v15292_v60 = vld [vmem:[#allocation2 + $0x14] sm:$0xf] }
 0x48d   : > { %10665 = vmatprep.mubr.msk.bf16.mxu1 %vm17225_vm10, %v17114_v50  ;;  %vm17226_vm13 = vmmov %vm17211_vm0  ;;  %v6217_v50 = vsel %vm17234_vm9, %v14967_v45, 0  ;;  %v15312_v45 = vld [vmem:[#allocation2 + $0x28] sm:$0xff]  }
 0x48e   : > { %v15281_v44 = vsel %vm17226_vm13, %v7350_v38, %v7352_v24  ;;  %vm17228_vm4 = vmmov %vm17211_vm0  ;;  %v15299_v38 = vld [vmem:[%s16343_s2 + $0xc] sm:$0xf] }
 0x48f   : > { %17227 = vst [vmem:[#allocation80_spill] sm:$0xff] %v15281_v44  ;;  %v15284_v15 = vsel %vm17228_vm4, %v7352_v24, %v7354_v47  ;;  %vm17230_vm7 = vmmov %vm17211_vm0  ;;  %v15302_v24 = vcombine.low %v7630_v39, %v15292_v60  ;;  %vm4796_vm4 = vcmask 59392   ;;  %v17239_v39 = vmov 0   ;;  %v15326_v44 = vld [vmem:[#allocation2 + $0x40] sm:$0xff]  }
 0x490   : > { %17229 = vst [vmem:[#allocation81_spill] sm:$0xff] %v15284_v15  ;;  %v15287_v36 = vsel %vm17230_vm7, %v7354_v47, %v7356_v43  ;;  %vm17232_vm6 = vmmov %vm17211_vm0  ;;  %v15306_v47 = vld [vmem:[#allocation2 + $0x18] sm:$0xff]  }
 0x491   : > { %17231 = vst [vmem:[#allocation82_spill] sm:$0xff] %v15287_v36  ;;  %v15290_v34 = vsel %vm17232_vm6, %v7356_v43, %v7358_v10  ;;  %17235 = vst [vmem:[#allocation84_spill] sm:$0xff] %v15302_v24  ;;  %v15308_v43 = vld [vmem:[#allocation2 + $0x20] sm:$0xff]   ;;  %v15316_v10 = vld [vmem:[#allocation2 + $0x30] sm:$0xff]  }
 0x492   : > { %17233 = vst [vmem:[#allocation83_spill] sm:$0xff] %v15290_v34  ;;  %vm17236_vm0 = vmmov %vm17225_vm10  ;;  %v8079_v34 = vshll.u32 %v15302_v24, 16  ;;  %v15321_v36 = vld [vmem:[#allocation2 + $0x38] sm:$0xff]   ;;  %v8093_v15 = vshrl.u32 %v15308_v43, 16  ;;  %v8096_v58 = vshll.u32 %v15308_v43, 16  ;;  %v8111_v2 = vshrl.u32 %v15316_v10, 16 }
 0x493   : > { %10666 = vmatmul.mubr.msk.bf16.vlgmr.msra.gmra.mrb[0].mxu1 %vm17236_vm0, %v14945_v5  ;;  %vm17237_vm10 = vmmov %vm17236_vm0  ;;  %4797 = vst.msk [vmem:[#allocation2 + $0xa0] sm:$0x7] %vm4796_vm4, %v17239_v39  ;;  %v8076_v5 = vshrl.u32 %v15302_v24, 16  ;;  %v8102_v39 = vshrl.u32 %v15312_v45, 16  ;;  %v8105_v24 = vshll.u32 %v15312_v45, 16  ;;  %v8120_v30 = vshrl.u32 %v15321_v36, 16 }
 0x494   : > { %10702 = vmatpush3.bf16.msra.mxu1 %v6217_v50  ;;  %10669 = vmatprep.mubr.msk.bf16.mxu1 %vm17237_vm10, %v14916_v3  ;;  %vm17238_vm13 = vmmov %vm17234_vm9  ;;  %v8084_v50 = vshrl.u32 %v15306_v47, 16  ;;  %v8087_v3 = vshll.u32 %v15306_v47, 16  ;;  %v8081_v61 = vrot.slane %v8079_v34, 3  ;;  %v8095_v9 = vrot.slane %v8093_v15, 2  ;;  %v15338_v15 = vld [vmem:[#allocation2 + $0x48] sm:$0xff]  }
 0x495   : > { %11555 = vmatprep.subr.msk.bf16.mxu1 %vm17238_vm13, %v15299_v38  ;;  %v8078_v8 = vrot.slane %v8076_v5, 2  ;;  %v8098_v63 = vrot.slane %v8096_v58, 3  ;;  %v8104_v32 = vrot.slane %v8102_v39, 2  ;;  %vm17240_vm7 = vmmov %vm17236_vm0  ;;  %v8107_v5 = vrot.slane %v8105_v24, 3 }
 0x496   : > { %v8086_v37 = vrot.slane %v8084_v50, 2  ;;  %v8089_v25 = vrot.slane %v8087_v3, 3  ;;  %v8114_v34 = vshll.u32 %v15316_v10, 16  ;;  %vm17241_vm6 = vmmov %vm17236_vm0  ;;  %v15340_v50 = vld [vmem:[#allocation2 + $0x50] sm:$0xff]   ;;  %v8123_v58 = vshll.u32 %v15321_v36, 16 }
 0x497   : > { %v8082_v7 = vor.u32 %v8081_v61, %v8078_v8  ;;  %v8099_v8 = vor.u32 %v8098_v63, %v8095_v9  ;;  %v8113_v61 = vrot.slane %v8111_v2, 2  ;;  %v8129_v3 = vshrl.u32 %v15326_v44, 16 }
 0x498   : > { %v8090_v16 = vor.u32 %v8089_v25, %v8086_v37  ;;  %vm17242_vm9 = vsmask.f32 5376  ;;  %v8108_v25 = vor.u32 %v8107_v5, %v8104_v32  ;;  %v8116_v37 = vrot.slane %v8114_v34, 3  ;;  %v15363_v34 = vld [vmem:[#allocation2 + $0x68] sm:$0xff]  }
 0x499   : > { %vm17244_vm0 = vmmov %vm17242_vm9  ;;  %v8122_v39 = vrot.slane %v8120_v30, 2  ;;  %v8131_v2 = vrot.slane %v8129_v3, 2  ;;  %v8132_v9 = vshll.u32 %v15326_v44, 16  ;;  %v8138_v32 = vshrl.u32 %v15338_v15, 16  ;;  %v15361_v30 = vld [vmem:[#allocation2 + $0x10] sm:$0x8] }
 0x49a   : > { %v15348_v24 = vsel %vm17244_vm0, %v8090_v16, %v8099_v8  ;;  %vm17246_vm10 = vmmov %vm17244_vm0  ;;  %v8117_v63 = vor.u32 %v8116_v37, %v8113_v61  ;;  %v8141_v5 = vshll.u32 %v15338_v15, 16  ;;  %v8177_v14 = vshll.u32 %v15363_v34, 16 }
 0x49b   : > { %10670 = vmatmul.mubr.msk.bf16.gmra.mrb[4].mxu1 %vm17240_vm7, %v14940_v35  ;;  %v15345_v35 = vsel %vm17242_vm9, %v8082_v7, %v8090_v16  ;;  %17245 = vst [vmem:[#allocation86_spill] sm:$0xff] %v15348_v24  ;;  %v15353_v27 = vsel %vm17246_vm10, %v8099_v8, %v8108_v25  ;;  %v8147_v16 = vshrl.u32 %v15340_v50, 16  ;;  %vm17248_vm13 = vmmov %vm17244_vm0  ;;  %v8134_v61 = vrot.slane %v8132_v9, 3 }
 0x49c   : > { %10673 = vmatprep.mubr.msk.bf16.mxu1 %vm17241_vm6, %v14949_v53  ;;  %17243 = vst [vmem:[#allocation85_spill] sm:$0xff] %v15345_v35  ;;  %v8125_v53 = vrot.slane %v8123_v58, 3  ;;  %17247 = vst [vmem:[#allocation87_spill] sm:$0xff] %v15353_v27  ;;  %v15366_v8 = vsel %vm17248_vm13, %v8108_v25, %v8117_v63  ;;  %v8150_v58 = vshll.u32 %v15340_v50, 16  ;;  %v8140_v37 = vrot.slane %v8138_v32, 2  ;;  %v15374_v27 = vld [vmem:[#allocation2 + $0x70] sm:$0xff]  }
 0x49d   : > { %17249 = vst [vmem:[#allocation88_spill] sm:$0xff] %v15366_v8  ;;  %vm17250_vm4 = vmmov %vm17244_vm0  ;;  %v8135_v24 = vor.u32 %v8134_v61, %v8131_v2  ;;  %v9884_v25 = vcombine.low %v15361_v30, %v15292_v60  ;;  %v8159_v32 = vshll.u32 %v15350_v19, 16  ;;  %v8174_v60 = vshrl.u32 %v15363_v34, 16 }
 0x49e   : > { %v8126_v7 = vor.u32 %v8125_v53, %v8122_v39  ;;  %v8143_v39 = vrot.slane %v8141_v5, 3  ;;  %v8149_v53 = vrot.slane %v8147_v16, 2  ;;  %vm17252_vm7 = vmmov %vm17241_vm6  ;;  %v8152_v35 = vrot.slane %v8150_v58, 3  ;;  %v15386_v16 = vld [vmem:[#allocation2 + $0x80] sm:$0xff]  }
 0x49f   : > { %v8165_v5 = vshrl.u32 %v15356_v11, 16  ;;  %vm17253_vm9 = vmmov %vm17244_vm0  ;;  %v8158_v58 = vrot.slane %v8156_v6, 2  ;;  %v8161_v30 = vrot.slane %v8159_v32, 3  ;;  %v8176_v8 = vrot.slane %v8174_v60, 2 }
 0x4a0   : > { %v15370_v3 = vsel %vm17250_vm4, %v8117_v63, %v8126_v7  ;;  %v15381_v63 = vld [vmem:[#allocation2 + $0x78] sm:$0xff]   ;;  %v8144_v9 = vor.u32 %v8143_v39, %v8140_v37  ;;  %v15389_v2 = vsel %vm17253_vm9, %v8126_v7, %v8135_v24  ;;  %v8153_v61 = vor.u32 %v8152_v35, %v8149_v53  ;;  %vm17256_vm10 = vmmov %vm17244_vm0  ;;  %v15400_v7 = vld [vmem:[#allocation2 + $0x88] sm:$0xff]  }
 0x4a1   : > { %17251 = vst [vmem:[#allocation89_spill] sm:$0xff] %v15370_v3  ;;  %17254 = vst [vmem:[#allocation90_spill] sm:$0xff] %v15389_v2  ;;  %v8167_v37 = vrot.slane %v8165_v5, 2  ;;  %v8183_v4 = vshrl.u32 %v15374_v27, 16  ;;  %v15402_v35 = vld [vmem:[#allocation2 + $0x90] sm:$0xff]   ;;  %v8162_v6 = vor.u32 %v8161_v30, %v8158_v58  ;;  %v8192_v32 = vshrl.u32 %v15381_v63, 16 }
 0x4a2   : > { %v15396_v3 = vsel %vm17256_vm10, %v8144_v9, %v8153_v61  ;;  %v8179_v5 = vrot.slane %v8177_v14, 3  ;;  %v8201_v60 = vshrl.u32 %v15386_v16, 16  ;;  %vm17258_vm13 = vmmov %vm17244_vm0  ;;  %v15416_v58 = vld [vmem:[#allocation2 + $0x98] sm:$0xff]  }
 0x4a3   : > { %10674 = vmatmul.mubr.msk.bf16.gmra.mrb[8].mxu1 %vm17252_vm7, %v14961_v31  ;;  %v8168_v31 = vshll.u32 %v15356_v11, 16  ;;  %17257 = vst [vmem:[#allocation92_spill] sm:$0xff] %v15396_v3  ;;  %v15409_v3 = vsel %vm17258_vm13, %v8153_v61, %v8162_v6  ;;  %vm17260_vm4 = vmmov %vm17244_vm0  ;;  %v8194_v1 = vrot.slane %v8192_v32, 2  ;;  %v8228_v52 = vshrl.u32 %v15416_v58, 16 }
 0x4a4   : > { %10677 = vmatprep.mubr.msk.bf16.mxu1 %vm17241_vm6, %v14970_v41  ;;  %v15393_v41 = vsel %vm17244_vm0, %v8135_v24, %v8144_v9  ;;  %v8186_v24 = vshll.u32 %v15374_v27, 16  ;;  %v8195_v9 = vshll.u32 %v15381_v63, 16  ;;  %17259 = vst [vmem:[#allocation93_spill] sm:$0xff] %v15409_v3  ;;  %vm17262_vm7 = vmmov %vm17241_vm6  ;;  %v8180_v30 = vor.u32 %v8179_v5, %v8176_v8 }
 0x4a5   : > { %17255 = vst [vmem:[#allocation91_spill] sm:$0xff] %v15393_v41  ;;  %v8170_v39 = vrot.slane %v8168_v31, 3  ;;  %v8185_v31 = vrot.slane %v8183_v4, 2  ;;  %v8203_v4 = vrot.slane %v8201_v60, 2  ;;  %vm17263_vm9 = vmmov %vm17244_vm0  ;;  %v8222_v8 = vshll.u32 %v15402_v35, 16 }
 0x4a6   : > { %v8188_v2 = vrot.slane %v8186_v24, 3  ;;  %v8197_v14 = vrot.slane %v8195_v9, 3  ;;  %v8219_v24 = vshrl.u32 %v15402_v35, 16  ;;  %vm17264_vm10 = vmmov %vm17244_vm0 }
 0x4a7   : > { %v8171_v53 = vor.u32 %v8170_v39, %v8167_v37  ;;  %v8204_v37 = vshll.u32 %v15386_v16, 16  ;;  %v8210_v39 = vshrl.u32 %v15400_v7, 16  ;;  %v8224_v17 = vrot.slane %v8222_v8, 3  ;;  %vm17265_vm13 = vmmov %vm17244_vm0 }
 0x4a8   : > { %v8189_v61 = vor.u32 %v8188_v2, %v8185_v31  ;;  %v8221_v29 = vrot.slane %v8219_v24, 2  ;;  %v8532_v8 = vrot.slane %v15326_v44, 3 }
 0x4a9   : > { %v15412_v41 = vsel %vm17260_vm4, %v8162_v6, %v8171_v53  ;;  %v8213_v6 = vshll.u32 %v15400_v7, 16  ;;  %v15425_v32 = vsel %vm17263_vm9, %v8171_v53, %v8180_v30  ;;  %v8206_v3 = vrot.slane %v8204_v37, 3  ;;  %vm17266_vm4 = vmmov %vm17244_vm0 }
 0x4aa   : > { %17261 = vst [vmem:[#allocation94_spill] sm:$0xff] %v15412_v41  ;;  %v8198_v41 = vor.u32 %v8197_v14, %v8194_v1  ;;  %v15429_v5 = vsel %vm17244_vm0, %v8180_v30, %v8189_v61  ;;  %v8212_v9 = vrot.slane %v8210_v39, 2  ;;  %v8231_v53 = vshll.u32 %v15416_v58, 16 }
 0x4ab   : > { %10678 = vmatmul.mubr.msk.bf16.gmra.mrb[12].mxu1 %vm17262_vm7, %v14979_v51  ;;  %v8215_v60 = vrot.slane %v8213_v6, 3  ;;  %v8207_v31 = vor.u32 %v8206_v3, %v8203_v4  ;;  %v8225_v14 = vor.u32 %v8224_v17, %v8221_v29  ;;  %v8230_v37 = vrot.slane %v8228_v52, 2  ;;  %vm17267_vm7 = vmmov %vm17241_vm6 }
 0x4ac   : > { %10681 = vmatprep.mubr.msk.bf16.mxu1 %vm17241_vm6, %v14984_v57  ;;  %v15432_v2 = vsel %vm17264_vm10, %v8189_v61, %v8198_v41  ;;  %v8521_v30 = vrot.slane %v9884_v25, 3  ;;  %v8233_v6 = vrot.slane %v8231_v53, 3  ;;  %vm17268_vm6 = vmmov %vm17244_vm0  ;;  %v8522_v4 = vrot.slane %v15306_v47, 3  ;;  %v15476_v53 = vld [vmem:[#allocation2 + $0xa0] ss:$0 sps:$4 sm:$0x77]  }
 0x4ad   : > { %v8216_v42 = vor.u32 %v8215_v60, %v8212_v9  ;;  %v15437_v1 = vsel %vm17265_vm13, %v8198_v41, %v8207_v31  ;;  %v8524_v61 = vrot.slane %v15308_v43, 3  ;;  %v8526_v41 = vrot.slane %v15312_v45, 3  ;;  %vm17269_vm9 = vmmov %vm17267_vm7 }
 0x4ae   : > { %v15452_v52 = vor.u32 %v8233_v6, %v8230_v37  ;;  %v8528_v17 = vrot.slane %v15316_v10, 3  ;;  %v8530_v29 = vrot.slane %v15321_v36, 3  ;;  %vm17270_vm0 = vcmask 1044480  }
 0x4af   : > { %v15440_v39 = vsel %vm17266_vm4, %v8207_v31, %v8216_v42  ;;  %v15445_v3 = vsel %vm17268_vm6, %v8216_v42, %v8225_v14  ;;  %v15457_v25 = vsel %vm17270_vm0, %v8521_v30, %v8522_v4  ;;  %vm17272_vm10 = vmmov %vm17270_vm0  ;;  %v8534_v30 = vrot.slane %v15338_v15, 3 }
 0x4b0   : > { %17271 = vst [vmem:[#allocation95_spill] sm:$0xff] %v15457_v25  ;;  %v15460_v42 = vsel %vm17272_vm10, %v8522_v4, %v8524_v61  ;;  %vm17274_vm13 = vmmov %vm17270_vm0  ;;  %v15468_v9 = vsel %vm17266_vm4, %v8225_v14, %v15452_v52  ;;  %v8536_v6 = vrot.slane %v15340_v50, 3  ;;  %v8538_v4 = vrot.slane %v15350_v19, 3 }
 0x4b1   : > { %17273 = vst [vmem:[#allocation96_spill] sm:$0xff] %v15460_v42  ;;  %v15463_v24 = vsel %vm17274_vm13, %v8524_v61, %v8526_v41  ;;  %vm17278_vm6 = vmmov %vm17270_vm0  ;;  %v8540_v14 = vrot.slane %v15356_v11, 3  ;;  %v8542_v61 = vrot.slane %v15363_v34, 3 }
 0x4b2   : > { %17275 = vst [vmem:[#allocation97_spill] sm:$0xff] %v15463_v24  ;;  %v15474_v31 = vsel %vm17278_vm6, %v8528_v17, %v8530_v29  ;;  %vm17282_vm10 = vmmov %vm17270_vm0 }
 0x4b3   : > { %10682 = vmatmul.mubr.msk.bf16.gmra.mrb[16].mxu1 %vm17267_vm7, %v14986_v21  ;;  %vm17276_vm7 = vmmov %vm17270_vm0  ;;  %17279 = vst [vmem:[#allocation99_spill] sm:$0xff] %v15474_v31  ;;  %v15489_v31 = vsel %vm17270_vm0, %v8532_v8, %v8534_v30 }
 0x4b4   : > { %10685 = vmatprep.mubr.msk.bf16.mxu1 %vm17269_vm9, %v14990_v49  ;;  %v15471_v60 = vsel %vm17276_vm7, %v8526_v41, %v8528_v17  ;;  %vm17280_vm9 = vmmov %vm17270_vm0  ;;  %v8544_v41 = vrot.slane %v15374_v27, 3  ;;  %v8546_v17 = vrot.slane %v15381_v63, 3 }
 0x4b5   : > { %17277 = vst [vmem:[#allocation98_spill] sm:$0xff] %v15471_v60  ;;  %v15479_v37 = vsel %vm17280_vm9, %v8530_v29, %v8532_v8  ;;  %v15492_v29 = vsel %vm17282_vm10, %v8534_v30, %v8536_v6  ;;  %vm17283_vm13 = vmmov %vm17270_vm0  ;;  %v8548_v60 = vrot.slane %v15386_v16, 3 }
 0x4b6   : > { %17281 = vst [vmem:[#allocation100_spill] sm:$0xff] %v15479_v37  ;;  %v15495_v37 = vsel %vm17283_vm13, %v8536_v6, %v8538_v4  ;;  %vm17284_vm4 = vmmov %vm17270_vm0  ;;  %v8550_v6 = vrot.slane %v15400_v7, 3 }
 0x4b7   : > { %v15499_v24 = vsel %vm17284_vm4, %v8538_v4, %v8540_v14  ;;  %vm17286_vm7 = vmmov %vm17270_vm0  ;;  %v8552_v4 = vrot.slane %v15402_v35, 3 }
 0x4b8   : > { %17285 = vst [vmem:[#allocation101_spill] sm:$0xff] %v15499_v24  ;;  %v15502_v42 = vsel %vm17286_vm7, %v8540_v14, %v8542_v61  ;;  %vm17288_vm6 = vmmov %vm17270_vm0  ;;  %v8554_v24 = vrot.slane %v15416_v58, 3  ;;  %v8556_v14 = vrot.slane %v15476_v53, 3 }
 0x4b9   : > { %17287 = vst [vmem:[#allocation102_spill] sm:$0xff] %v15502_v42  ;;  %v15505_v25 = vsel %vm17288_vm6, %v8542_v61, %v8544_v41  ;;  %vm17290_vm9 = vmmov %vm17270_vm0  ;;  %vm17292_vm0 = vcmask 64512   ;;  %v15522_v61 = vsel %vm17284_vm4, %v8548_v60, %v8550_v6 }
 0x4ba   : > { %17289 = vst [vmem:[#allocation103_spill] sm:$0xff] %v15505_v25  ;;  %v15508_v8 = vsel %vm17290_vm9, %v8544_v41, %v8546_v17  ;;  %vm17293_vm10 = vmmov %vm17284_vm4 }
 0x4bb   : > { %17291 = vst [vmem:[#allocation104_spill] sm:$0xff] %v15508_v8  ;;  %10686 = vmatmul.mubr.msk.bf16.gmra.mrb[20].mxu1 %vm17292_vm0, %v14992_v18  ;;  %v15513_v30 = vsel %vm17293_vm10, %v8546_v17, %v8548_v60  ;;  %vm17295_vm13 = vmmov %vm17292_vm0  ;;  %v6119_v8 = vld [vmem:[#allocation2] sm:$0xe]  ;;  %v11773_v60 = vld [vmem:[#allocation2 + $0x4] sm:$0xf] }
 0x4bc   : > { %17294 = vst [vmem:[#allocation105_spill] sm:$0xff] %v15513_v30  ;;  %10689 = vmatprep.mubr.msk.bf16.mxu1 %vm17295_vm13, %v14996_v46  ;;  %17296 = vst [vmem:[#allocation106_spill] sm:$0xff] %v15522_v61  ;;  %v9728_v61 = vcombine.low %v6119_v8, %v11773_v60 }
 0x4bd   : > { %vm17297_vm7 = vmmov %vm17284_vm4 }
 0x4be   : > { %v15525_v41 = vsel %vm17297_vm7, %v8550_v6, %v8552_v4  ;;  %vm17299_vm6 = vmmov %vm17284_vm4  ;;  %v6125_v6 = vrot.slane %v9728_v61, 1  ;;  %v9785_v61 = vld [vmem:[%s16343_s2 + $0x10] sm:$0xf] }
 0x4bf   : > { %17298 = vst [vmem:[#allocation107_spill] sm:$0xff] %v15525_v41  ;;  %v15528_v17 = vsel %vm17299_vm6, %v8552_v4, %v8554_v24  ;;  %vm17301_vm9 = vmmov %vm17284_vm4  ;;  %v11774_v4 = vld [vmem:[#allocation2 + $0x8] sm:$0xff]   ;;  %vm17307_vm6 = vcmask 1046528   ;;  %v11776_v41 = vld [vmem:[#allocation2 + $0x18] sm:$0xff]  }
 0x4c0   : > { %17300 = vst [vmem:[#allocation108_spill] sm:$0xff] %v15528_v17  ;;  %v15531_v30 = vsel %vm17301_vm9, %v8554_v24, %v8556_v14  ;;  %vm17303_vm10 = vmmov %vm17292_vm0  ;;  %v6126_v17 = vrot.slane %v11774_v4, 1  ;;  %v11775_v14 = vld [vmem:[#allocation2 + $0x10] sm:$0xff]   ;;  %v6130_v25 = vrot.slane %v11776_v41, 1 }
 0x4c1   : > { %17302 = vst [vmem:[#allocation109_spill] sm:$0xff] %v15531_v30  ;;  %vm17304_vm13 = vmmov %vm17292_vm0  ;;  %v6128_v30 = vrot.slane %v11775_v14, 1 }
 0x4c2   : > { %vm17305_vm4 = vmmov %vm17292_vm0  ;;  %v6127_v24 = vsel %vm17307_vm6, %v6125_v6, %v6126_v17  ;;  %v11777_v6 = vld [vmem:[#allocation2 + $0x20] sm:$0xff]  }
 0x4c3   : > { %10690 = vmatmul.mubr.msk.bf16.gmra.mrb[24].mxu1 %vm17292_vm0, %v14998_v22  ;;  %vm17306_vm7 = vmmov %vm17292_vm0  ;;  %v6132_v41 = vrot.slane %v11777_v6, 1  ;;  %v6142_v6 = vrot.slane %v14986_v21, 1  ;;  %v6148_v21 = vrot.slane %v14996_v46, 1 }
 0x4c4   : > { %10693 = vmatprep.mubr.msk.bf16.mxu1 %vm17303_vm10, %v15000_v23  ;;  %vm17308_vm9 = vmmov %vm17292_vm0  ;;  %vm17309_vm0 = vcmask 1043456  }
 0x4c5   : > { %v6656_v8 = vsel %vm17309_vm0, %v15299_v38, 0  ;;  %vm17310_vm10 = vmmov %vm17307_vm6 }
 0x4c6   : > { %v6129_v60 = vsel %vm17310_vm10, %v6126_v17, %v6128_v30 }
 0x4cb   : > { %10694 = vmatmul.mubr.msk.bf16.gmra.mrb[28].mxu1 %vm17304_vm13, %v15007_v12  ;;  %vm17311_vm13 = vmmov %vm17305_vm4 }
 0x4cc   : > { %10697 = vmatprep.mubr.msk.bf16.mxu1 %vm17305_vm4, %v15018_v62  ;;  %vm17312_vm4 = vmmov %vm17307_vm6 }
 0x4cd   : > { %v6131_v4 = vsel %vm17312_vm4, %v6128_v30, %v6130_v25  ;;  %vm17313_vm6 = vmmov %vm17309_vm0  ;;  %v6138_v30 = vrot.slane %v14979_v51, 1  ;;  %v6144_v51 = vrot.slane %v14990_v49, 1 }
 0x4ce   : > { %vm17315_vm0 = vmmov %vm17306_vm7 }
 0x4cf   : > { %vm17316_vm10 = vmmov %vm17312_vm4 }
 0x4d0   : > { %vm17317_vm12 = vmmov %vm17315_vm0 }
 0x4d3   : > { %10698 = vmatmul.mubr.msk.bf16.gmra.mrb[32].mxu1 %vm17306_vm7, %v15021_v56 }
 0x4d4   : > { %10703 = vmatprep.mubr.msk.bf16.mxu1 %vm17308_vm9, %v6127_v24  ;;  %v11778_v24 = vld [vmem:[#allocation2 + $0x28] sm:$0xff]   ;;  %vm17314_vm9 = vmmov %vm17312_vm4 }
 0x4d5   : > { %v6134_v14 = vrot.slane %v11778_v24, 1  ;;  %v6133_v38 = vsel %vm17314_vm9, %v6130_v25, %v6132_v41  ;;  %v6140_v25 = vrot.slane %v14984_v57, 1 }
 0x4d7   : > { %v6135_v17 = vsel %vm17316_vm10, %v6132_v41, %v6134_v14  ;;  %vm17324_vm10 = vmmov %vm17315_vm0 }
 0x4db   : > { %10704 = vmatmul.mubr.msk.bf16.vlgmr.msra.gmra.mrb[0].mxu1 %vm17311_vm13, %v6129_v60  ;;  %v11779_v60 = vld [vmem:[#allocation2 + $0x30] sm:$0xff]   ;;  %vm17318_vm13 = vmmov %vm17312_vm4 }
 0x4dc   : > { %10740 = vmatpush3.bf16.msra.mxu1 %v6656_v8  ;;  %10707 = vmatprep.mubr.msk.bf16.mxu1 %vm17306_vm7, %v6131_v4  ;;  %v6136_v42 = vrot.slane %v11779_v60, 1  ;;  %vm17319_vm4 = vmmov %vm17315_vm0  ;;  %v6154_v60 = vrot.slane %v15007_v12, 1  ;;  %v6160_v12 = vrot.slane %v15169_v54, 1 }
 0x4dd   : > { %11556 = vmatprep.subr.msk.bf16.mxu1 %vm17313_vm6, %v9785_v61  ;;  %vm17320_vm7 = vmmov %vm17314_vm9 }
 0x4de   : > { %v6137_v8 = vsel %vm17318_vm13, %v6134_v14, %v6136_v42  ;;  %v6139_v4 = vsel %vm17320_vm7, %v6136_v42, %v6138_v30  ;;  %vm17321_vm6 = vmmov %vm17315_vm0  ;;  %v6146_v14 = vrot.slane %v14992_v18, 1  ;;  %v6152_v18 = vrot.slane %v15000_v23, 1 }
 0x4df   : > { %vm17322_vm9 = vmmov %vm17320_vm7 }
 0x4e0   : > { %v6141_v41 = vsel %vm17322_vm9, %v6138_v30, %v6140_v25  ;;  %vm17325_vm13 = vmmov %vm17320_vm7  ;;  %v6147_v57 = vsel %vm17320_vm7, %v6144_v51, %v6146_v14  ;;  %v6155_v46 = vsel %vm17320_vm7, %v6152_v18, %v6154_v60 }
 0x4e1   : > { %v6145_v42 = vsel %vm17325_vm13, %v6142_v6, %v6144_v51  ;;  %vm17328_vm9 = vmmov %vm17320_vm7  ;;  %v6569_v51 = vrot.slane %v15052_v0, 1  ;;  %v6573_v0 = vrot.slane %v15075_v13, 1  ;;  %v6579_v13 = vrot.slane %v15092_v26, 1 }
 0x4e2   : > { %vm17331_vm13 = vmmov %vm17320_vm7 }
 0x4e3   : > { %10708 = vmatmul.mubr.msk.bf16.gmra.mrb[4].mxu1 %vm17315_vm0, %v6133_v38  ;;  %v6150_v38 = vrot.slane %v14998_v22, 1  ;;  %v6156_v22 = vrot.slane %v15018_v62, 1 }
 0x4e4   : > { %10711 = vmatprep.mubr.msk.bf16.mxu1 %vm17317_vm12, %v6135_v17  ;;  %vm17323_vm12 = vmmov %vm17320_vm7  ;;  %v6149_v17 = vsel %vm17328_vm9, %v6146_v14, %v6148_v21 }
 0x4e5   : > { %v6143_v24 = vsel %vm17323_vm12, %v6140_v25, %v6142_v6  ;;  %vm17329_vm12 = vmmov %vm17320_vm7  ;;  %v6153_v30 = vsel %vm17331_vm13, %v6150_v38, %v6152_v18  ;;  %v17337_v25 = vld [vmem:[#allocation43_spill] sm:$0xff] }
 0x4e6   : > { %v6151_v49 = vsel %vm17329_vm12, %v6148_v21, %v6150_v38  ;;  %vm17334_vm9 = vmmov %vm17320_vm7  ;;  %v6564_v6 = vrot.slane %v17337_v25, 1  ;;  %v6575_v21 = vrot.slane %v15080_v59, 1  ;;  %v6577_v38 = vrot.slane %v15088_v28, 1 }
 0x4e7   : > { %vm17335_vm12 = vmmov %vm17320_vm7  ;;  %v6583_v28 = vrot.slane %v15105_v20, 1 }
 0x4e8   : > { %vm17338_vm13 = vmmov %vm17320_vm7 }
 0x4eb   : > { %10712 = vmatmul.mubr.msk.bf16.gmra.mrb[8].mxu1 %vm17319_vm4, %v6137_v8  ;;  %vm17326_vm4 = vmmov %vm17315_vm0  ;;  %v6158_v8 = vrot.slane %v15021_v56, 1  ;;  %v6567_v56 = vrot.slane %v15044_v55, 1  ;;  %v6571_v55 = vrot.slane %v15068_v33, 1 }
 0x4ec   : > { %10715 = vmatprep.mubr.msk.bf16.mxu1 %vm17321_vm6, %v6139_v4  ;;  %vm17327_vm6 = vmmov %vm17315_vm0  ;;  %v6157_v4 = vsel %vm17334_vm9, %v6154_v60, %v6156_v22  ;;  %vm17341_vm9 = vcmask 1043456   ;;  %v17356_v60 = vld [vmem:[#allocation5_spill] sm:$0xff] }
 0x4ed   : > { %v6159_v23 = vsel %vm17335_vm12, %v6156_v22, %v6158_v8  ;;  %v7102_v14 = vsel %vm17341_vm9, %v9785_v61, 0 }
 0x4f3   : > { %10716 = vmatmul.mubr.msk.bf16.gmra.mrb[12].mxu1 %vm17315_vm0, %v6141_v41  ;;  %v6565_v41 = vrot.slane %v15042_v48, 1  ;;  %v9805_v48 = vld [vmem:[%s16343_s2 + $0x14] sm:$0xf] }
 0x4f4   : > { %10719 = vmatprep.mubr.msk.bf16.mxu1 %vm17324_vm10, %v6143_v24  ;;  %vm17330_vm10 = vmmov %vm17315_vm0  ;;  %v6161_v24 = vsel %vm17338_vm13, %v6158_v8, %v6160_v12  ;;  %v17362_v8 = vld [vmem:[#allocation47_spill] sm:$0xff]  ;;  %v17365_v12 = vld [vmem:[#allocation48_spill] sm:$0xff] }
 0x4f5   : > { %v6566_v62 = vsel %vm17320_vm7, %v6564_v6, %v6565_v41  ;;  %v6591_v25 = vrot.slane %v17365_v12, 1  ;;  %v17366_v6 = vld [vmem:[#allocation52_spill] sm:$0xff] }
 0x4fb   : > { %10720 = vmatmul.mubr.msk.bf16.gmra.mrb[16].mxu1 %vm17326_vm4, %v6145_v42  ;;  %vm17332_vm4 = vmmov %vm17315_vm0 }
 0x4fc   : > { %10723 = vmatprep.mubr.msk.bf16.mxu1 %vm17327_vm6, %v6147_v57  ;;  %vm17333_vm6 = vmmov %vm17315_vm0 }
 0x503   : > { %10724 = vmatmul.mubr.msk.bf16.gmra.mrb[20].mxu1 %vm17315_vm0, %v6149_v17 }
 0x504   : > { %10727 = vmatprep.mubr.msk.bf16.mxu1 %vm17330_vm10, %v6151_v49  ;;  %vm17336_vm10 = vmmov %vm17315_vm0  ;;  %v6581_v49 = vrot.slane %v15096_v40, 1  ;;  %v17361_v40 = vld [vmem:[#allocation26_spill] sm:$0xff] }
 0x505   : > { %v6587_v22 = vrot.slane %v17361_v40, 1  ;;  %v17401_v40 = vld [vmem:[#allocation59_spill] sm:$0xff] }
 0x50b   : > { %10728 = vmatmul.mubr.msk.bf16.gmra.mrb[24].mxu1 %vm17332_vm4, %v6153_v30  ;;  %vm17339_vm4 = vmmov %vm17315_vm0  ;;  %v6585_v30 = vrot.slane %v17356_v60, 1  ;;  %v17394_v60 = vld [vmem:[#allocation55_spill] sm:$0xff] }
 0x50c   : > { %10731 = vmatprep.mubr.msk.bf16.mxu1 %vm17333_vm6, %v6155_v46  ;;  %vm17340_vm6 = vmmov %vm17315_vm0 }
 0x50d   : > { %vm17343_vm12 = vmmov %vm17339_vm4 }
 0x50e   : > { %vm17345_vm13 = vmmov %vm17339_vm4 }
 0x513   : > { %10732 = vmatmul.mubr.msk.bf16.gmra.mrb[28].mxu1 %vm17315_vm0, %v6157_v4  ;;  %vm17342_vm0 = vmmov %vm17320_vm7  ;;  %v6589_v4 = vrot.slane %v17362_v8, 1  ;;  %v17405_v8 = vld [vmem:[#allocation61_spill] sm:$0xff] }
 0x514   : > { %10735 = vmatprep.mubr.msk.bf16.mxu1 %vm17336_vm10, %v6159_v23  ;;  %v6568_v54 = vsel %vm17342_vm0, %v6565_v41, %v6567_v56  ;;  %vm17344_vm10 = vmmov %vm17342_vm0  ;;  %v6593_v41 = vrot.slane %v17366_v6, 1  ;;  %v17408_v6 = vld [vmem:[#allocation62_spill] sm:$0xff] }
 0x515   : > { %v6570_v42 = vsel %vm17344_vm10, %v6567_v56, %v6569_v51  ;;  %vm17347_vm7 = vmmov %vm17342_vm0  ;;  %v17371_v56 = vld [vmem:[#allocation53_spill] sm:$0xff] }
 0x516   : > { %v6572_v61 = vsel %vm17347_vm7, %v6569_v51, %v6571_v55  ;;  %v6580_v18 = vsel %vm17347_vm7, %v6577_v38, %v6579_v13  ;;  %v6588_v23 = vsel %vm17347_vm7, %v6585_v30, %v6587_v22  ;;  %v6595_v51 = vrot.slane %v17371_v56, 1 }
 0x51b   : > { %10736 = vmatmul.mubr.msk.bf16.gmra.mrb[32].mxu1 %vm17339_vm4, %v6161_v24  ;;  %vm17346_vm4 = vmmov %vm17341_vm9 }
 0x51c   : > { %10741 = vmatprep.mubr.msk.bf16.mxu1 %vm17340_vm6, %v6566_v62  ;;  %vm17348_vm9 = vmmov %vm17342_vm0 }
 0x51d   : > { %v6574_v57 = vsel %vm17348_vm9, %v6571_v55, %v6573_v0  ;;  %vm17349_vm0 = vmmov %vm17340_vm6  ;;  %v11745_v55 = vld [vmem:[#allocation2 + $0x98] ss:$0 sps:$4 sm:$0x11]  }
 0x51e   : > { %vm17351_vm10 = vmmov %vm17349_vm0 }
 0x51f   : > { %vm17355_vm9 = vmmov %vm17347_vm7 }
 0x520   : > { %v6582_v59 = vsel %vm17355_vm9, %v6579_v13, %v6581_v49  ;;  %vm17364_vm9 = vmmov %vm17347_vm7  ;;  %v17382_v13 = vld [vmem:[#allocation7_spill] sm:$0xff] }
 0x521   : > { %v6590_v20 = vsel %vm17364_vm9, %v6587_v22, %v6589_v4  ;;  %vm17374_vm9 = vmmov %vm17347_vm7  ;;  %v17403_v22 = vld [vmem:[#allocation60_spill] sm:$0xff] }
 0x523   : > { %10742 = vmatmul.mubr.msk.bf16.vlgmr.msra.gmra.mrb[0].mxu1 %vm17343_vm12, %v6568_v54  ;;  %vm17350_vm12 = vmmov %vm17347_vm7 }
 0x524   : > { %10778 = vmatpush3.bf16.msra.mxu1 %v7102_v14  ;;  %10745 = vmatprep.mubr.msk.bf16.mxu1 %vm17345_vm13, %v6570_v42  ;;  %v6576_v17 = vsel %vm17350_vm12, %v6573_v0, %v6575_v21  ;;  %vm17352_vm13 = vmmov %vm17347_vm7  ;;  %v17372_v14 = vld [vmem:[#allocation54_spill] sm:$0xff]  ;;  %v6596_v42 = vsel %vm17347_vm7, %v6593_v41, %v6595_v51 }
 0x525   : > { %11557 = vmatprep.subr.msk.bf16.mxu1 %vm17346_vm4, %v9805_v48  ;;  %v6578_v33 = vsel %vm17352_vm13, %v6575_v21, %v6577_v38  ;;  %vm17353_vm4 = vmmov %vm17349_vm0  ;;  %v6597_v54 = vrot.slane %v17372_v14, 1  ;;  %v17377_v21 = vld [vmem:[#allocation45_spill] sm:$0xff] }
 0x526   : > { %vm17357_vm12 = vmmov %vm17347_vm7 }
 0x527   : > { %v6584_v46 = vsel %vm17357_vm12, %v6581_v49, %v6583_v28  ;;  %vm17359_vm13 = vmmov %vm17347_vm7  ;;  %v6598_v0 = vsel %vm17374_vm9, %v6595_v51, %v6597_v54  ;;  %v17385_v49 = vld [vmem:[#allocation41_spill] sm:$0xff]  ;;  %v17415_v51 = vld [vmem:[#allocation64_spill] sm:$0xff] }
 0x528   : > { %v6586_v26 = vsel %vm17359_vm13, %v6583_v28, %v6585_v30  ;;  %vm17367_vm12 = vmmov %vm17347_vm7  ;;  %v17392_v28 = vld [vmem:[#allocation51_spill] sm:$0xff]  ;;  %v17396_v30 = vld [vmem:[#allocation56_spill] sm:$0xff] }
 0x529   : > { %v6592_v24 = vsel %vm17367_vm12, %v6589_v4, %v6591_v25  ;;  %vm17369_vm13 = vmmov %vm17347_vm7  ;;  %v17407_v4 = vld [vmem:[#allocation70_spill] sm:$0xff] }
 0x52a   : > { %v6594_v62 = vsel %vm17369_vm13, %v6591_v25, %v6593_v41  ;;  %vm17375_vm12 = vmmov %vm17347_vm7  ;;  %v17410_v41 = vld [vmem:[#allocation66_spill] sm:$0xff] }
 0x52b   : > { %10746 = vmatmul.mubr.msk.bf16.gmra.mrb[4].mxu1 %vm17340_vm6, %v6572_v61  ;;  %vm17354_vm6 = vmmov %vm17349_vm0  ;;  %v6599_v61 = vrot.slane %v11745_v55, 1  ;;  %v17419_v55 = vld [vmem:[#allocation67_spill] sm:$0xff] }
 0x52c   : > { %10749 = vmatprep.mubr.msk.bf16.mxu1 %vm17349_vm0, %v6574_v57  ;;  %vm17378_vm13 = vmmov %vm17349_vm0 }
 0x52d   : > { %v6600_v57 = vsel %vm17375_vm12, %v6597_v54, %v6599_v61  ;;  %vm17381_vm7 = vmmov %vm17349_vm0  ;;  %v9863_v54 = vld [vmem:[%s16343_s2 + $0x1c] sm:$0xf]  ;;  %v17424_v61 = vld [vmem:[#allocation69_spill] sm:$0xff] }
 0x52e   : > { %vm17387_vm12 = vmmov %vm17349_vm0 }
 0x533   : > { %10750 = vmatmul.mubr.msk.bf16.gmra.mrb[8].mxu1 %vm17351_vm10, %v6576_v17  ;;  %vm17358_vm10 = vmmov %vm17349_vm0  ;;  %v9825_v17 = vld [vmem:[%s16343_s2 + $0x18] sm:$0xf] }
 0x534   : > { %10753 = vmatprep.mubr.msk.bf16.mxu1 %vm17353_vm4, %v6578_v33  ;;  %vm17360_vm4 = vmmov %vm17349_vm0  ;;  %v17380_v33 = vld [vmem:[#allocation25_spill] sm:$0xff] }
 0x53b   : > { %10754 = vmatmul.mubr.msk.bf16.gmra.mrb[12].mxu1 %vm17354_vm6, %v6580_v18  ;;  %vm17363_vm6 = vmmov %vm17349_vm0  ;;  %v17386_v18 = vld [vmem:[#allocation46_spill] sm:$0xff] }
 0x53c   : > { %10757 = vmatprep.mubr.msk.bf16.mxu1 %vm17349_vm0, %v6582_v59  ;;  %v17390_v59 = vld [vmem:[#allocation50_spill] sm:$0xff] }
 0x543   : > { %10758 = vmatmul.mubr.msk.bf16.gmra.mrb[16].mxu1 %vm17358_vm10, %v6584_v46  ;;  %vm17368_vm10 = vmmov %vm17349_vm0  ;;  %v17398_v46 = vld [vmem:[#allocation57_spill] sm:$0xff] }
 0x544   : > { %10761 = vmatprep.mubr.msk.bf16.mxu1 %vm17360_vm4, %v6586_v26  ;;  %vm17370_vm4 = vmmov %vm17349_vm0  ;;  %v17400_v26 = vld [vmem:[#allocation58_spill] sm:$0xff] }
 0x54b   : > { %10762 = vmatmul.mubr.msk.bf16.gmra.mrb[20].mxu1 %vm17363_vm6, %v6588_v23  ;;  %vm17373_vm6 = vmmov %vm17349_vm0  ;;  %v7039_v23 = vshrl.u32 %v17407_v4, 16 }
 0x54c   : > { %10765 = vmatprep.mubr.msk.bf16.mxu1 %vm17349_vm0, %v6590_v20  ;;  %v7042_v20 = vshll.u32 %v17407_v4, 16  ;;  %v7767_v4 = vrot.slane %v15312_v45, 2  ;;  %v7771_v45 = vrot.slane %v15321_v36, 2  ;;  %v7777_v36 = vrot.slane %v15340_v50, 2 }
 0x54d   : > { %v7041_v12 = vrot.slane %v7039_v23, 1 }
 0x54e   : > { %v7044_v25 = vrot.slane %v7042_v20, 2 }
 0x553   : > { %10766 = vmatmul.mubr.msk.bf16.gmra.mrb[24].mxu1 %vm17368_vm10, %v6592_v24  ;;  %vm17376_vm10 = vmmov %vm17349_vm0  ;;  %v7045_v24 = vor.u32 %v7044_v25, %v7041_v12  ;;  %v9883_v12 = vld [vmem:[%s16343_s2 + $0x20] sm:$0xf] }
 0x554   : > { %10769 = vmatprep.mubr.msk.bf16.mxu1 %vm17370_vm4, %v6594_v62  ;;  %vm17379_vm4 = vcmask 1043456   ;;  %v17412_v62 = vld [vmem:[#allocation63_spill] sm:$0xff] }
 0x555   : > { %v7415_v38 = vsel %vm17379_vm4, %v9805_v48, 0  ;;  %vm17384_vm9 = vmmov %vm17379_vm4  ;;  %v17388_v48 = vld [vmem:[#allocation49_spill] sm:$0xff] }
 0x556   : > { %vm17393_vm4 = vmmov %vm17349_vm0 }
 0x55b   : > { %10770 = vmatmul.mubr.msk.bf16.gmra.mrb[28].mxu1 %vm17373_vm6, %v6596_v42  ;;  %vm17383_vm6 = vmmov %vm17349_vm0  ;;  %v17417_v42 = vld [vmem:[#allocation65_spill] sm:$0xff] }
 0x55c   : > { %10773 = vmatprep.mubr.msk.bf16.mxu1 %vm17349_vm0, %v6598_v0  ;;  %v17422_v0 = vld [vmem:[#allocation68_spill] sm:$0xff] }
 0x563   : > { %10774 = vmatmul.mubr.msk.bf16.gmra.mrb[32].mxu1 %vm17376_vm10, %v6600_v57  ;;  %vm17389_vm10 = vmmov %vm17349_vm0  ;;  %v17426_v57 = vld [vmem:[#allocation71_spill] sm:$0xff] }
 0x564   : > { %10779 = vmatprep.mubr.msk.bf16.mxu1 %vm17378_vm13, %v17377_v21  ;;  %vm17391_vm13 = vmmov %vm17349_vm0  ;;  %v17428_v21 = vld [vmem:[#allocation72_spill] sm:$0xff] }
 0x56b   : > { %10780 = vmatmul.mubr.msk.bf16.vlgmr.msra.gmra.mrb[0].mxu1 %vm17381_vm7, %v17380_v33  ;;  %vm17395_vm7 = vmmov %vm17349_vm0  ;;  %v17433_v33 = vld [vmem:[#allocation75_spill] sm:$0xff] }
 0x56c   : > { %10816 = vmatpush3.bf16.msra.mxu1 %v7415_v38  ;;  %10783 = vmatprep.mubr.msk.bf16.mxu1 %vm17383_vm6, %v17382_v13  ;;  %vm17397_vm6 = vmmov %vm17349_vm0  ;;  %v17429_v38 = vld [vmem:[#allocation73_spill] sm:$0xff]  ;;  %v17435_v13 = vld [vmem:[#allocation76_spill] sm:$0xff] }
 0x56d   : > { %11558 = vmatprep.subr.msk.bf16.mxu1 %vm17384_vm9, %v9825_v17  ;;  %vm17399_vm9 = vmmov %vm17349_vm0 }
 0x573   : > { %10784 = vmatmul.mubr.msk.bf16.gmra.mrb[4].mxu1 %vm17349_vm0, %v17385_v49  ;;  %v17437_v49 = vld [vmem:[#allocation77_spill] sm:$0xff] }
 0x574   : > { %10787 = vmatprep.mubr.msk.bf16.mxu1 %vm17387_vm12, %v17386_v18  ;;  %vm17402_vm12 = vmmov %vm17349_vm0  ;;  %v17439_v18 = vld [vmem:[#allocation78_spill] sm:$0xff] }
 0x57b   : > { %10788 = vmatmul.mubr.msk.bf16.gmra.mrb[8].mxu1 %vm17389_vm10, %v17388_v48  ;;  %vm17404_vm10 = vmmov %vm17349_vm0  ;;  %v17441_v48 = vld [vmem:[#allocation79_spill] sm:$0xff] }
 0x57c   : > { %10791 = vmatprep.mubr.msk.bf16.mxu1 %vm17391_vm13, %v17390_v59  ;;  %vm17406_vm13 = vmmov %vm17349_vm0  ;;  %v17443_v59 = vld [vmem:[#allocation80_spill] sm:$0xff] }
 0x583   : > { %10792 = vmatmul.mubr.msk.bf16.gmra.mrb[12].mxu1 %vm17393_vm4, %v17392_v28  ;;  %vm17409_vm4 = vmmov %vm17349_vm0  ;;  %v17444_v28 = vld [vmem:[#allocation81_spill] sm:$0xff] }
 0x584   : > { %10795 = vmatprep.mubr.msk.bf16.mxu1 %vm17395_vm7, %v17394_v60  ;;  %vm17411_vm7 = vmmov %vm17349_vm0  ;;  %v17446_v60 = vld [vmem:[#allocation82_spill] sm:$0xff] }
 0x58b   : > { %10796 = vmatmul.mubr.msk.bf16.gmra.mrb[16].mxu1 %vm17397_vm6, %v17396_v30  ;;  %vm17413_vm6 = vsmask.f32 6400  ;;  %v17448_v30 = vld [vmem:[#allocation84_spill] sm:$0xff] }
 0x58c   : > { %10799 = vmatprep.mubr.msk.bf16.mxu1 %vm17399_vm9, %v17398_v46  ;;  %v7046_v56 = vsel %vm17413_vm6, %v17412_v62, %v7045_v24  ;;  %vm17414_vm9 = vmmov %vm17349_vm0  ;;  %v7762_v46 = vrot.slane %v17448_v30, 2  ;;  %v7775_v24 = vrot.slane %v15338_v15, 2  ;;  %v7781_v15 = vrot.slane %v15356_v11, 2  ;;  %v17500_v30 = vld [vmem:[#allocation94_spill] sm:$0xff] }
 0x58d   : > { %vm17425_vm6 = vmmov %vm17349_vm0 }
 0x593   : > { %10800 = vmatmul.mubr.msk.bf16.gmra.mrb[20].mxu1 %vm17349_vm0, %v17400_v26  ;;  %v7763_v26 = vrot.slane %v15306_v47, 2 }
 0x594   : > { %10803 = vmatprep.mubr.msk.bf16.mxu1 %vm17402_vm12, %v17401_v40  ;;  %vm17416_vm12 = vcmask 1043456   ;;  %v17449_v40 = vld [vmem:[#allocation83_spill] sm:$0xff] }
 0x595   : > { %v7854_v14 = vsel %vm17416_vm12, %v9825_v17, 0  ;;  %v17431_v17 = vld [vmem:[#allocation74_spill] sm:$0xff] }
 0x59b   : > { %10804 = vmatmul.mubr.msk.bf16.gmra.mrb[24].mxu1 %vm17404_vm10, %v17403_v22  ;;  %vm17418_vm10 = vmmov %vm17349_vm0 }
 0x59c   : > { %10807 = vmatprep.mubr.msk.bf16.mxu1 %vm17406_vm13, %v17405_v8  ;;  %vm17420_vm13 = vmmov %vm17349_vm0  ;;  %v7765_v8 = vrot.slane %v15308_v43, 2  ;;  %v7769_v43 = vrot.slane %v15316_v10, 2 }
 0x5a3   : > { %10808 = vmatmul.mubr.msk.bf16.gmra.mrb[28].mxu1 %vm17409_vm4, %v17408_v6  ;;  %vm17421_vm4 = vmmov %vm17416_vm12 }
 0x5a4   : > { %10811 = vmatprep.mubr.msk.bf16.mxu1 %vm17411_vm7, %v17410_v41  ;;  %vm17423_vm7 = vmmov %vm17349_vm0  ;;  %v7773_v41 = vrot.slane %v15326_v44, 2 }
 0x5a5   : > { %vm17430_vm12 = vmmov %vm17349_vm0 }
 0x5ab   : > { %10812 = vmatmul.mubr.msk.bf16.gmra.mrb[32].mxu1 %vm17414_vm9, %v7046_v56  ;;  %vm17427_vm9 = vmmov %vm17349_vm0  ;;  %v7779_v56 = vrot.slane %v15350_v19, 2  ;;  %v7785_v19 = vrot.slane %v15374_v27, 2 }
 0x5ac   : > { %10817 = vmatprep.mubr.msk.bf16.mxu1 %vm17349_vm0, %v17415_v51 }
 0x5b3   : > { %10818 = vmatmul.mubr.msk.bf16.vlgmr.msra.gmra.mrb[0].mxu1 %vm17418_vm10, %v17417_v42  ;;  %vm17432_vm10 = vmmov %vm17349_vm0  ;;  %v7787_v42 = vrot.slane %v15381_v63, 2  ;;  %v7793_v63 = vrot.slane %v15402_v35, 2 }
 0x5b4   : > { %10854 = vmatpush3.bf16.msra.mxu1 %v7854_v14  ;;  %10821 = vmatprep.mubr.msk.bf16.mxu1 %vm17420_vm13, %v17419_v55  ;;  %vm17434_vm13 = vmmov %vm17349_vm0  ;;  %v7783_v14 = vrot.slane %v15363_v34, 2  ;;  %v7789_v34 = vrot.slane %v15386_v16, 2 }
 0x5b5   : > { %11559 = vmatprep.subr.msk.bf16.mxu1 %vm17421_vm4, %v9863_v54  ;;  %vm17436_vm4 = vmmov %vm17349_vm0 }
 0x5bb   : > { %10822 = vmatmul.mubr.msk.bf16.gmra.mrb[4].mxu1 %vm17423_vm7, %v17422_v0  ;;  %vm17438_vm7 = vmmov %vm17349_vm0  ;;  %v7791_v0 = vrot.slane %v15400_v7, 2 }
 0x5bc   : > { %10825 = vmatprep.mubr.msk.bf16.mxu1 %vm17425_vm6, %v17424_v61  ;;  %vm17440_vm6 = vmmov %vm17349_vm0 }
 0x5c3   : > { %10826 = vmatmul.mubr.msk.bf16.gmra.mrb[8].mxu1 %vm17427_vm9, %v17426_v57  ;;  %vm17442_vm9 = vmmov %vm17349_vm0  ;;  %v7795_v57 = vrot.slane %v15416_v58, 2  ;;  %v17484_v58 = vld [vmem:[#allocation86_spill] sm:$0xff] }
 0x5c4   : > { %10829 = vmatprep.mubr.msk.bf16.mxu1 %vm17349_vm0, %v17428_v21 }
 0x5cb   : > { %10830 = vmatmul.mubr.msk.bf16.gmra.mrb[12].mxu1 %vm17430_vm12, %v17429_v38  ;;  %vm17445_vm12 = vmmov %vm17349_vm0  ;;  %v11766_v38 = vld [vmem:[#allocation2 + $0xa0] ss:$0 sps:$4 sm:$0x33]  }
 0x5cc   : > { %10833 = vmatprep.mubr.msk.bf16.mxu1 %vm17432_vm10, %v17431_v17  ;;  %vm17447_vm10 = vmmov %vm17349_vm0  ;;  %v7797_v7 = vrot.slane %v11766_v38, 2 }
 0x5d3   : > { %10834 = vmatmul.mubr.msk.bf16.gmra.mrb[16].mxu1 %vm17434_vm13, %v17433_v33  ;;  %vm17450_vm13 = vmmov %vm17349_vm0  ;;  %v17481_v33 = vld [vmem:[#allocation85_spill] sm:$0xff] }
 0x5d4   : > { %10837 = vmatprep.mubr.msk.bf16.mxu1 %vm17436_vm4, %v17435_v13  ;;  %vm17451_vm4 = vcmask 1045504   ;;  %v17486_v13 = vld [vmem:[#allocation87_spill] sm:$0xff] }
 0x5d5   : > { %v7764_v22 = vsel %vm17451_vm4, %v7762_v46, %v7763_v26  ;;  %v7770_v25 = vsel %vm17451_vm4, %v7767_v4, %v7769_v43  ;;  %v8237_v46 = vshrl.u32 %v15476_v53, 16 }
 0x5db   : > { %10838 = vmatmul.mubr.msk.bf16.gmra.mrb[20].mxu1 %vm17438_vm7, %v17437_v49  ;;  %vm17452_vm7 = vmmov %vm17349_vm0  ;;  %v17488_v49 = vld [vmem:[#allocation88_spill] sm:$0xff] }
 0x5dc   : > { %10841 = vmatprep.mubr.msk.bf16.mxu1 %vm17440_vm6, %v17439_v18  ;;  %vm17453_vm6 = vcmask 1043456   ;;  %v17490_v18 = vld [vmem:[#allocation89_spill] sm:$0xff] }
 0x5dd   : > { %v8300_v23 = vsel %vm17453_vm6, %v9863_v54, 0 }
 0x5e3   : > { %10842 = vmatmul.mubr.msk.bf16.gmra.mrb[24].mxu1 %vm17442_vm9, %v17441_v48  ;;  %vm17454_vm9 = vmmov %vm17451_vm4  ;;  %v17492_v48 = vld [vmem:[#allocation90_spill] sm:$0xff] }
 0x5e4   : > { %10845 = vmatprep.mubr.msk.bf16.mxu1 %vm17349_vm0, %v17443_v59  ;;  %v7766_v20 = vsel %vm17454_vm9, %v7763_v26, %v7765_v8  ;;  %vm17460_vm9 = vmmov %vm17349_vm0  ;;  %v17494_v59 = vld [vmem:[#allocation91_spill] sm:$0xff]  ;;  %v8240_v26 = vshll.u32 %v15476_v53, 16  ;;  %v17516_v53 = vld [vmem:[#allocation98_spill] sm:$0xff] }
 0x5eb   : > { %10846 = vmatmul.mubr.msk.bf16.gmra.mrb[28].mxu1 %vm17445_vm12, %v17444_v28  ;;  %vm17455_vm12 = vmmov %vm17451_vm4  ;;  %v17496_v28 = vld [vmem:[#allocation92_spill] sm:$0xff] }
 0x5ec   : > { %10849 = vmatprep.mubr.msk.bf16.mxu1 %vm17447_vm10, %v17446_v60  ;;  %v7768_v47 = vsel %vm17455_vm12, %v7765_v8, %v7767_v4  ;;  %vm17456_vm10 = vmmov %vm17349_vm0  ;;  %v17498_v60 = vld [vmem:[#allocation93_spill] sm:$0xff]  ;;  %v17526_v8 = vld [vmem:[#allocation102_spill] sm:$0xff] }
 0x5ed   : > { %v17528_v4 = vld [vmem:[#allocation103_spill] sm:$0xff] }
 0x5f3   : > { %10850 = vmatmul.mubr.msk.bf16.gmra.mrb[32].mxu1 %vm17450_vm13, %v17449_v40  ;;  %vm17457_vm13 = vmmov %vm17453_vm6  ;;  %v8239_v40 = vrot.slane %v8237_v46, 2 }
 0x5f4   : > { %10855 = vmatprep.mubr.msk.bf16.mxu1 %vm17452_vm7, %v7764_v22  ;;  %vm17458_vm7 = vmmov %vm17349_vm0  ;;  %v8242_v22 = vrot.slane %v8240_v26, 3  ;;  %v17561_v26 = vld [vmem:[#allocation9_spill] sm:$0xff] }
 0x5f5   : > { %vm17459_vm6 = vmmov %vm17451_vm4 }
 0x5f6   : > { %v7772_v6 = vsel %vm17459_vm6, %v7769_v43, %v7771_v45  ;;  %vm17462_vm12 = vmmov %vm17458_vm7 }
 0x5f7   : > { %vm17485_vm1 = vmmov %vm17458_vm7 }
 0x5fb   : > { %10856 = vmatmul.mubr.msk.bf16.vlgmr.msra.gmra.mrb[0].mxu1 %vm17349_vm0, %v7766_v20  ;;  %vm17461_vm0 = vmmov %vm17451_vm4  ;;  %v17532_v20 = vld [vmem:[#allocation105_spill] sm:$0xff] }
 0x5fc   : > { %10892 = vmatpush3.bf16.msra.mxu1 %v8300_v23  ;;  %10859 = vmatprep.mubr.msk.bf16.mxu1 %vm17456_vm10, %v7768_v47  ;;  %v7774_v62 = vsel %vm17461_vm0, %v7771_v45, %v7773_v41  ;;  %vm17463_vm10 = vmmov %vm17461_vm0  ;;  %v7782_v54 = vsel %vm17461_vm0, %v7779_v56, %v7781_v15  ;;  %v7790_v61 = vsel %vm17461_vm0, %v7787_v42, %v7789_v34  ;;  %v17530_v23 = vld [vmem:[#allocation104_spill] sm:$0xff] }
 0x5fd   : > { %11560 = vmatprep.subr.msk.bf16.mxu1 %vm17457_vm13, %v9883_v12  ;;  %v7776_v10 = vsel %vm17463_vm10, %v7773_v41, %v7775_v24  ;;  %vm17464_vm13 = vmmov %vm17458_vm7  ;;  %v7798_v17 = vsel %vm17461_vm0, %v7795_v57, %v7797_v7  ;;  %v17553_v7 = vld [vmem:[#allocation4_spill] sm:$0xff] }
 0x5fe   : > { %vm17465_vm4 = vmmov %vm17461_vm0 }
 0x5ff   : > { %v7778_v51 = vsel %vm17465_vm4, %v7775_v24, %v7777_v36  ;;  %vm17466_vm6 = vmmov %vm17461_vm0 }
 0x600   : > { %v7780_v44 = vsel %vm17466_vm6, %v7777_v36, %v7779_v56  ;;  %vm17469_vm10 = vmmov %vm17461_vm0 }
 0x601   : > { %v7784_v50 = vsel %vm17469_vm10, %v7781_v15, %v7783_v14  ;;  %vm17471_vm4 = vmmov %vm17461_vm0 }
 0x602   : > { %v7786_v55 = vsel %vm17471_vm4, %v7783_v14, %v7785_v19  ;;  %vm17472_vm6 = vmmov %vm17461_vm0 }
 0x603   : > { %10860 = vmatmul.mubr.msk.bf16.gmra.mrb[4].mxu1 %vm17458_vm7, %v7770_v25  ;;  %v7788_v11 = vsel %vm17472_vm6, %v7785_v19, %v7787_v42  ;;  %vm17475_vm10 = vmmov %vm17461_vm0 }
 0x604   : > { %10863 = vmatprep.mubr.msk.bf16.mxu1 %vm17460_vm9, %v7772_v6  ;;  %vm17467_vm9 = vmmov %vm17458_vm7  ;;  %v7792_v27 = vsel %vm17475_vm10, %v7789_v34, %v7791_v0 }
 0x605   : > { %vm17477_vm4 = vmmov %vm17461_vm0 }
 0x606   : > { %v7794_v21 = vsel %vm17477_vm4, %v7791_v0, %v7793_v63  ;;  %vm17478_vm6 = vmmov %vm17461_vm0 }
 0x607   : > { %v7796_v16 = vsel %vm17478_vm6, %v7793_v63, %v7795_v57  ;;  %vm17482_vm10 = vmmov %vm17458_vm7 }
 0x608   : > { %vm17487_vm4 = vmmov %vm17485_vm1 }
 0x609   : > { %vm17491_vm6 = vmmov %vm17485_vm1 }
 0x60a   : > { %vm17495_vm0 = vmmov %vm17485_vm1 }
 0x60b   : > { %10864 = vmatmul.mubr.msk.bf16.gmra.mrb[8].mxu1 %vm17462_vm12, %v7774_v62  ;;  %vm17468_vm12 = vmmov %vm17458_vm7 }
 0x60c   : > { %10867 = vmatprep.mubr.msk.bf16.mxu1 %vm17464_vm13, %v7776_v10  ;;  %vm17470_vm13 = vmmov %vm17458_vm7 }
 0x613   : > { %10868 = vmatmul.mubr.msk.bf16.gmra.mrb[12].mxu1 %vm17458_vm7, %v7778_v51  ;;  %v17544_v51 = vld [vmem:[#allocation31_spill] sm:$0xff] }
 0x614   : > { %10871 = vmatprep.mubr.msk.bf16.mxu1 %vm17467_vm9, %v7780_v44  ;;  %vm17473_vm9 = vmmov %vm17458_vm7 }
 0x61b   : > { %10872 = vmatmul.mubr.msk.bf16.gmra.mrb[16].mxu1 %vm17468_vm12, %v7782_v54  ;;  %vm17474_vm12 = vmmov %vm17458_vm7 }
 0x61c   : > { %10875 = vmatprep.mubr.msk.bf16.mxu1 %vm17470_vm13, %v7784_v50  ;;  %vm17476_vm13 = vmmov %vm17458_vm7 }
 0x623   : > { %10876 = vmatmul.mubr.msk.bf16.gmra.mrb[20].mxu1 %vm17458_vm7, %v7786_v55 }
 0x624   : > { %10879 = vmatprep.mubr.msk.bf16.mxu1 %vm17473_vm9, %v7788_v11  ;;  %vm17479_vm9 = vmmov %vm17458_vm7 }
 0x62b   : > { %10880 = vmatmul.mubr.msk.bf16.gmra.mrb[24].mxu1 %vm17474_vm12, %v7790_v61  ;;  %vm17480_vm12 = vmmov %vm17458_vm7 }
 0x62c   : > { %10883 = vmatprep.mubr.msk.bf16.mxu1 %vm17476_vm13, %v7792_v27  ;;  %vm17483_vm13 = vcmask 1043456  }
 0x62d   : > { %v8613_v35 = vsel %vm17483_vm13, %v9883_v12, 0  ;;  %vm17502_vm13 = vmmov %vm17495_vm0  ;;  %v17539_v12 = vld [vmem:[#allocation109_spill] sm:$0xff] }
 0x633   : > { %10884 = vmatmul.mubr.msk.bf16.gmra.mrb[28].mxu1 %vm17458_vm7, %v7794_v21  ;;  %vm17489_vm7 = vmmov %vm17485_vm1 }
 0x634   : > { %10887 = vmatprep.mubr.msk.bf16.mxu1 %vm17479_vm9, %v7796_v16  ;;  %vm17493_vm9 = vmmov %vm17485_vm1 }
 0x63b   : > { %10888 = vmatmul.mubr.msk.bf16.gmra.mrb[32].mxu1 %vm17480_vm12, %v7798_v17  ;;  %vm17497_vm12 = vmmov %vm17495_vm0 }
 0x63c   : > { %10893 = vmatprep.mubr.msk.bf16.mxu1 %vm17482_vm10, %v17481_v33  ;;  %vm17501_vm10 = vmmov %vm17495_vm0 }
 0x643   : > { %10894 = vmatmul.mubr.msk.bf16.vlgmr.msra.gmra.mrb[0].mxu1 %vm17485_vm1, %v17484_v58  ;;  %vm17499_vm1 = vmmov %vm17495_vm0 }
 0x644   : > { %10930 = vmatpush3.bf16.msra.mxu1 %v8613_v35  ;;  %10897 = vmatprep.mubr.msk.bf16.mxu1 %vm17487_vm4, %v17486_v13  ;;  %vm17503_vm4 = vmmov %vm17495_vm0  ;;  %v17555_v35 = vld [vmem:[#allocation8_spill] sm:$0xff] }
 0x64b   : > { %10898 = vmatmul.mubr.msk.bf16.gmra.mrb[4].mxu1 %vm17489_vm7, %v17488_v49  ;;  %vm17504_vm7 = vmmov %vm17495_vm0 }
 0x64c   : > { %10901 = vmatprep.mubr.msk.bf16.mxu1 %vm17491_vm6, %v17490_v18  ;;  %vm17505_vm6 = vmmov %vm17495_vm0 }
 0x653   : > { %10902 = vmatmul.mubr.msk.bf16.gmra.mrb[8].mxu1 %vm17493_vm9, %v17492_v48  ;;  %vm17506_vm9 = vmmov %vm17495_vm0 }
 0x654   : > { %10905 = vmatprep.mubr.msk.bf16.mxu1 %vm17495_vm0, %v17494_v59 }
 0x65b   : > { %10906 = vmatmul.mubr.msk.bf16.gmra.mrb[12].mxu1 %vm17497_vm12, %v17496_v28  ;;  %vm17507_vm12 = vmmov %vm17495_vm0 }
 0x65c   : > { %10909 = vmatprep.mubr.msk.bf16.mxu1 %vm17499_vm1, %v17498_v60  ;;  %vm17508_vm1 = vsmask.f32 5376 }
 0x663   : > { %10910 = vmatmul.mubr.msk.bf16.gmra.mrb[16].mxu1 %vm17501_vm10, %v17500_v30  ;;  %vm17509_vm10 = vmmov %vm17495_vm0  ;;  %v17559_v30 = vld [vmem:[#allocation10_spill] sm:$0xff] }
 0x664   : > { %10913 = vmatprep.mubr.msk.bf16.mxu1 %vm17502_vm13, %v15425_v32  ;;  %v8243_v32 = vor.u32 %v8242_v22, %v8239_v40  ;;  %vm17511_vm13 = vmmov %vm17495_vm0 }
 0x66b   : > { %10914 = vmatmul.mubr.msk.bf16.gmra.mrb[20].mxu1 %vm17503_vm4, %v15429_v5  ;;  %v8244_v5 = vsel %vm17508_vm1, %v15452_v52, %v8243_v32  ;;  %vm17513_vm4 = vmmov %vm17495_vm0  ;;  %v17524_v52 = vld [vmem:[#allocation101_spill] sm:$0xff] }
 0x66c   : > { %10917 = vmatprep.mubr.msk.bf16.mxu1 %vm17504_vm7, %v15432_v2  ;;  %v17510_v2 = vld [vmem:[#allocation95_spill] sm:$0xff]  ;;  %vm17515_vm7 = vmmov %vm17495_vm0 }
 0x66d   : > { %vm17522_vm1 = vmmov %vm17495_vm0 }
 0x673   : > { %10918 = vmatmul.mubr.msk.bf16.gmra.mrb[24].mxu1 %vm17505_vm6, %v15437_v1  ;;  %v17512_v1 = vld [vmem:[#allocation96_spill] sm:$0xff]  ;;  %vm17517_vm6 = vmmov %vm17495_vm0 }
 0x674   : > { %10921 = vmatprep.mubr.msk.bf16.mxu1 %vm17506_vm9, %v15440_v39  ;;  %v17514_v39 = vld [vmem:[#allocation97_spill] sm:$0xff]  ;;  %vm17519_vm9 = vmmov %vm17495_vm0 }
 0x67b   : > { %10922 = vmatmul.mubr.msk.bf16.gmra.mrb[28].mxu1 %vm17495_vm0, %v15445_v3  ;;  %v17518_v3 = vld [vmem:[#allocation99_spill] sm:$0xff] }
 0x67c   : > { %10925 = vmatprep.mubr.msk.bf16.mxu1 %vm17507_vm12, %v15468_v9  ;;  %v17520_v9 = vld [vmem:[#allocation100_spill] sm:$0xff]  ;;  %vm17521_vm12 = vmmov %vm17495_vm0 }
 0x683   : > { %10926 = vmatmul.mubr.msk.bf16.gmra.mrb[32].mxu1 %vm17509_vm10, %v8244_v5  ;;  %vm17523_vm10 = vmmov %vm17495_vm0 }
 0x684   : > { %10931 = vmatprep.mubr.msk.bf16.mxu1 %vm17511_vm13, %v17510_v2  ;;  %vm17525_vm13 = vmmov %vm17495_vm0 }
 0x68b   : > { %10932 = vmatmul.mubr.msk.bf16.vlgmr.msra.gmra.mrb[0].mxu1 %vm17513_vm4, %v17512_v1  ;;  %vm17527_vm4 = vmmov %vm17495_vm0 }
 0x68c   : > { %10935 = vmatprep.mubr.msk.bf16.mxu1 %vm17515_vm7, %v17514_v39  ;;  %vm17529_vm7 = vmmov %vm17495_vm0 }
 0x693   : > { %10936 = vmatmul.mubr.msk.bf16.gmra.mrb[4].mxu1 %vm17517_vm6, %v17516_v53  ;;  %vm17531_vm6 = vmmov %vm17495_vm0 }
 0x694   : > { %10939 = vmatprep.mubr.msk.bf16.mxu1 %vm17519_vm9, %v17518_v3  ;;  %vm17533_vm9 = vmmov %vm17495_vm0 }
 0x69b   : > { %10940 = vmatmul.mubr.msk.bf16.gmra.mrb[8].mxu1 %vm17495_vm0, %v17520_v9 }
 0x69c   : > { %10943 = vmatprep.mubr.msk.bf16.mxu1 %vm17521_vm12, %v15489_v31  ;;  %v17534_v31 = vld [vmem:[#allocation106_spill] sm:$0xff]  ;;  %vm17536_vm12 = vmmov %vm17495_vm0 }
 0x6a3   : > { %10944 = vmatmul.mubr.msk.bf16.gmra.mrb[12].mxu1 %vm17522_vm1, %v15492_v29  ;;  %v17535_v29 = vld [vmem:[#allocation107_spill] sm:$0xff]  ;;  %vm17538_vm1 = vmmov %vm17495_vm0 }
 0x6a4   : > { %10947 = vmatprep.mubr.msk.bf16.mxu1 %vm17523_vm10, %v15495_v37  ;;  %v17537_v37 = vld [vmem:[#allocation108_spill] sm:$0xff]  ;;  %vm17540_vm10 = vmmov %vm17495_vm0 }
 0x6ab   : > { %10948 = vmatmul.mubr.msk.bf16.gmra.mrb[16].mxu1 %vm17525_vm13, %v17524_v52  ;;  %vm17545_vm13 = vnez %v17544_v51  ;;  %v17574_v51 = vld [vmem:[#allocation6_spill] sm:$0xff] }
 0x6ac   : > { %10951 = vmatprep.mubr.msk.bf16.mxu1 %vm17527_vm4, %v17526_v8  ;;  %vm17546_vm4 = vmmov %vm17495_vm0 }
 0x6b3   : > { %10952 = vmatmul.mubr.msk.bf16.gmra.mrb[20].mxu1 %vm17529_vm7, %v17528_v4  ;;  %vm17549_vm7 = vmmov %vm17495_vm0 }
 0x6b4   : > { %10955 = vmatprep.mubr.msk.bf16.mxu1 %vm17531_vm6, %v17530_v23  ;;  %vm17550_vm6 = vmmov %vm17495_vm0 }
 0x6bb   : > { %10956 = vmatmul.mubr.msk.bf16.gmra.mrb[24].mxu1 %vm17533_vm9, %v17532_v20  ;;  %vm17552_vm9 = vmmov %vm17495_vm0 }
 0x6bc   : > { %10959 = vmatprep.mubr.msk.bf16.mxu1 %vm17495_vm0, %v17534_v31  ;;  %v17568_v31 = vld [vmem:[#allocation12_spill] sm:$0xff] }
 0x6c3   : > { %10960 = vmatmul.mubr.msk.bf16.gmra.mrb[28].mxu1 %vm17536_vm12, %v17535_v29  ;;  %vm17554_vm12 = vnez %v17553_v7 }
 0x6c4   : > { %10963 = vmatprep.mubr.msk.bf16.mxu1 %vm17538_vm1, %v17537_v37  ;;  %vm17556_vm1 = vnez %v17555_v35  ;;  %v17570_v37 = vld [vmem:[#allocation11_spill] sm:$0xff] }
 0x6cb   : > { %10964 = vmatmul.mubr.msk.bf16.gmra.mrb[32].mxu1 %vm17540_vm10, %v17539_v12  ;;  %vm17557_vm10 = vmmov %vm17495_vm0 }
 0x75e   : > { %v15876_v47 = vpop.f32.mrb[0].mxu1 }
 0x75f   : > { %v15878_v43 = vpop.f32.mrb[1].mxu1  ;;  %v8830_v25 = vsel %vm17035_vm15, %v15876_v47, 0.0  ;;  %vm17547_vm15 = vmmov %vm17495_vm0 }
 0x760   : > { %v8828_v41 = vsel %vm17031_vm3, %v15878_v43, 0.0  ;;  %v15886_v24 = vpop.f32.mrb[2].mxu1  ;;  %v8944_v15 = vmul.f32 %v8830_v25, %v8830_v25  ;;  %vm17548_vm3 = vmmov %vm17495_vm0 }
 0x761   : > { %v8942_v62 = vmul.f32 %v8828_v41, %v8828_v41  ;;  %v8831_v36 = vsel %vm17037_vm2, %v15886_v24, 0.0  ;;  %v15891_v56 = vpop.f32.mrb[3].mxu1  ;;  %v8864_v14 = vsel %vm17546_vm4, %v8828_v41, 0.0  ;;  %v8867_v55 = vsel %vm17548_vm3, %v8830_v25, 0.0  ;;  %vm17551_vm2 = vmmov %vm17495_vm0 }
 0x762   : > { %v8829_v44 = vsel %vm17545_vm13, %v15891_v56, 0.0  ;;  %v8945_v19 = vmul.f32 %v8831_v36, %v8831_v36  ;;  %v8981_v63 = vsel %vm17551_vm2, %v8944_v15, 0.0  ;;  %v8869_v21 = vsel %vm17552_vm9, %v8831_v36, 0.0  ;;  %vm17558_vm13 = vmmov %vm17495_vm0 }
 0x763   : > { %v8865_v54 = vsel %vm17547_vm15, %v8829_v44, 0.0  ;;  %v8943_v50 = vmul.f32 %v8829_v44, %v8829_v44  ;;  %v8978_v11 = vsel %vm17549_vm7, %v8942_v62, 0.0  ;;  %vm17560_vm4 = vnez %v17559_v30  ;;  %vm17563_vm3 = vmmov %vm17495_vm0 }
 0x764   : > { %v8866_v42 = vadd.f32 %v8865_v54, %v8864_v14  ;;  %v8983_v38 = vsel %vm17495_vm0, %v8945_v19, 0.0  ;;  %vm17562_vm15 = vnez %v17561_v26  ;;  %vm17564_vm7 = vmmov %vm17495_vm0 }
 0x765   : > { %v8979_v34 = vsel %vm17550_vm6, %v8943_v50, 0.0  ;;  %vm17565_vm6 = vmmov %vm17495_vm0  ;;  %v17577_v50 = vld [vmem:[#allocation15_spill] sm:$0xff] }
 0x766   : > { %v8868_v0 = vadd.f32 %v8867_v55, %v8866_v42  ;;  %v8980_v61 = vadd.f32 %v8979_v34, %v8978_v11  ;;  %v15901_v27 = vpop.f32.mrb[4].mxu1  ;;  %vm17566_vm2 = vmmov %vm17495_vm0 }
 0x767   : > { %v15904_v57 = vpop.f32.mrb[5].mxu1  ;;  %v8834_v58 = vsel %vm17556_vm1, %v15901_v27, 0.0  ;;  %vm17567_vm9 = vmmov %vm17495_vm0  ;;  %vm17569_vm0 = vnez %v17568_v31 }
 0x768   : > { %v8982_v16 = vadd.f32 %v8981_v63, %v8980_v61  ;;  %v8832_v17 = vsel %vm17554_vm12, %v15904_v57, 0.0  ;;  %v15911_v33 = vpop.f32.mrb[6].mxu1  ;;  %v8870_v13 = vadd.f32 %v8869_v21, %v8868_v0  ;;  %v8948_v22 = vmul.f32 %v8834_v58, %v8834_v58  ;;  %vm17572_vm1 = vmmov %vm17566_vm2 }
 0x769   : > { %v8871_v49 = vsel %vm17557_vm10, %v8832_v17, 0.0  ;;  %v8946_v18 = vmul.f32 %v8832_v17, %v8832_v17  ;;  %v15917_v48 = vpop.f32.mrb[7].mxu1  ;;  %v8835_v46 = vsel %vm17560_vm4, %v15911_v33, 0.0  ;;  %v8875_v39 = vsel %vm17564_vm7, %v8834_v58, 0.0  ;;  %vm17573_vm10 = vmmov %vm17572_vm1 }
 0x76a   : > { %v8984_v59 = vadd.f32 %v8983_v38, %v8982_v16  ;;  %v8872_v28 = vadd.f32 %v8871_v49, %v8870_v13  ;;  %v8833_v40 = vsel %vm17562_vm15, %v15917_v48, 0.0  ;;  %v8949_v53 = vmul.f32 %v8835_v46, %v8835_v46  ;;  %vm17576_vm4 = vmmov %vm17572_vm1 }
 0x76b   : > { %v8985_v60 = vsel %vm17558_vm13, %v8946_v18, 0.0  ;;  %v8873_v5 = vsel %vm17563_vm3, %v8833_v40, 0.0  ;;  %v8947_v2 = vmul.f32 %v8833_v40, %v8833_v40  ;;  %v8989_v23 = vsel %vm17566_vm2, %v8948_v22, 0.0  ;;  %vm17579_vm3 = vmmov %vm17572_vm1  ;;  %v17585_v18 = vld [vmem:[#allocation14_spill] sm:$0xff] }
 0x76c   : > { %v8986_v32 = vadd.f32 %v8985_v60, %v8984_v59  ;;  %v8874_v1 = vadd.f32 %v8873_v5, %v8872_v28  ;;  %v8877_v20 = vsel %vm17567_vm9, %v8835_v46, 0.0  ;;  %vm17571_vm12 = vnez %v17570_v37  ;;  %vm17580_vm7 = vmmov %vm17572_vm1 }
 0x76d   : > { %v8987_v3 = vsel %vm17565_vm6, %v8947_v2, 0.0  ;;  %v8991_v36 = vsel %vm17573_vm10, %v8949_v53, 0.0  ;;  %vm17575_vm13 = vnez %v17574_v51  ;;  %vm17578_vm15 = vnez %v17577_v50  ;;  %vm17581_vm6 = vmmov %vm17572_vm1  ;;  %v17591_v53 = vld [vmem:[#allocation16_spill] sm:$0xff] }
 0x76e   : > { %v15929_v9 = vpop.f32.mrb[8].mxu1  ;;  %v8876_v52 = vadd.f32 %v8875_v39, %v8874_v1  ;;  %v8988_v8 = vadd.f32 %v8987_v3, %v8986_v32  ;;  %vm17582_vm2 = vmmov %vm17572_vm1  ;;  %v17588_v32 = vld [vmem:[#allocation44_spill] sm:$0xff] }
 0x76f   : > { %v15931_v4 = vpop.f32.mrb[9].mxu1  ;;  %v8838_v29 = vsel %vm17569_vm0, %v15929_v9, 0.0  ;;  %vm17583_vm9 = vmmov %vm17572_vm1  ;;  %vm17586_vm0 = vnez %v17585_v18  ;;  %vm17589_vm10 = vnez %v17588_v32 }
 0x770   : > { %v8836_v12 = vsel %vm17571_vm12, %v15931_v4, 0.0  ;;  %v15941_v45 = vpop.f32.mrb[10].mxu1  ;;  %v8990_v25 = vadd.f32 %v8989_v23, %v8988_v8  ;;  %v8878_v6 = vadd.f32 %v8877_v20, %v8876_v52  ;;  %v8952_v42 = vmul.f32 %v8838_v29, %v8838_v29  ;;  %vm17587_vm12 = vmmov %vm17572_vm1 }
 0x771   : > { %v8879_v41 = vsel %vm17572_vm1, %v8836_v12, 0.0  ;;  %v8950_v62 = vmul.f32 %v8836_v12, %v8836_v12  ;;  %v15944_v10 = vpop.f32.mrb[11].mxu1  ;;  %v8839_v19 = vsel %vm17578_vm15, %v15941_v45, 0.0  ;;  %v8883_v61 = vsel %vm17580_vm7, %v8838_v29, 0.0  ;;  %vm17594_vm15 = vmmov %vm17572_vm1 }
 0x772   : > { %v8837_v44 = vsel %vm17575_vm13, %v15944_v10, 0.0  ;;  %v8880_v15 = vadd.f32 %v8879_v41, %v8878_v6  ;;  %v8992_v14 = vadd.f32 %v8991_v36, %v8990_v25  ;;  %v8953_v63 = vmul.f32 %v8839_v19, %v8839_v19  ;;  %vm17596_vm7 = vmmov %vm17572_vm1 }
 0x773   : > { %v8993_v54 = vsel %vm17576_vm4, %v8950_v62, 0.0  ;;  %v8881_v55 = vsel %vm17579_vm3, %v8837_v44, 0.0  ;;  %v8951_v11 = vmul.f32 %v8837_v44, %v8837_v44  ;;  %v8997_v35 = vsel %vm17582_vm2, %v8952_v42, 0.0  ;;  %vm17593_vm4 = vmmov %vm17572_vm1 }
 0x774   : > { %v8994_v34 = vadd.f32 %v8993_v54, %v8992_v14  ;;  %v8882_v0 = vadd.f32 %v8881_v55, %v8880_v15  ;;  %v8885_v58 = vsel %vm17583_vm9, %v8839_v19, 0.0  ;;  %v8999_v22 = vsel %vm17572_vm1, %v8953_v63, 0.0  ;;  %vm17595_vm3 = vmmov %vm17572_vm1  ;;  %v17620_v14 = vld [vmem:[#allocation33_spill] sm:$0xff] }
 0x775   : > { %v8995_v21 = vsel %vm17581_vm6, %v8951_v11, 0.0  ;;  %vm17592_vm13 = vnez %v17591_v53  ;;  %vm17597_vm6 = vmmov %vm17572_vm1  ;;  %v17611_v53 = vld [vmem:[#allocation3_spill] sm:$0xff] }
 0x776   : > { %v15957_v38 = vpop.f32.mrb[12].mxu1  ;;  %v8884_v16 = vadd.f32 %v8883_v61, %v8882_v0  ;;  %v8996_v7 = vadd.f32 %v8995_v21, %v8994_v34  ;;  %vm17600_vm2 = vmmov %vm17572_vm1 }
 0x777   : > { %v15959_v17 = vpop.f32.mrb[13].mxu1  ;;  %v8842_v49 = vsel %vm17059_vm11, %v15957_v38, 0.0  ;;  %vm17590_vm11 = vmmov %vm17572_vm1 }
 0x778   : > { %v8840_v59 = vsel %vm17586_vm0, %v15959_v17, 0.0  ;;  %v15969_v28 = vpop.f32.mrb[14].mxu1  ;;  %v8998_v60 = vadd.f32 %v8997_v35, %v8996_v7  ;;  %v8886_v30 = vadd.f32 %v8885_v58, %v8884_v16  ;;  %v8956_v52 = vmul.f32 %v8842_v49, %v8842_v49  ;;  %vm17601_vm9 = vmmov %vm17572_vm1  ;;  %v17604_v35 = vld [vmem:[#allocation20_spill] sm:$0xff] }
 0x779   : > { %v8887_v46 = vsel %vm17587_vm12, %v8840_v59, 0.0  ;;  %v8954_v26 = vmul.f32 %v8840_v59, %v8840_v59  ;;  %v15972_v40 = vpop.f32.mrb[15].mxu1  ;;  %v8843_v3 = vsel %vm17592_vm13, %v15969_v28, 0.0  ;;  %v8891_v29 = vsel %vm17594_vm15, %v8842_v49, 0.0  ;;  %vm17606_vm0 = vmmov %vm17572_vm1 }
 0x77a   : > { %v8841_v5 = vsel %vm17589_vm10, %v15972_v40, 0.0  ;;  %v8888_v2 = vadd.f32 %v8887_v46, %v8886_v30  ;;  %v9000_v1 = vadd.f32 %v8999_v22, %v8998_v60  ;;  %v8957_v37 = vmul.f32 %v8843_v3, %v8843_v3  ;;  %vm17607_vm12 = vmmov %vm17606_vm0 }
 0x77b   : > { %v9001_v39 = vsel %vm17590_vm11, %v8954_v26, 0.0  ;;  %v8889_v8 = vsel %vm17593_vm4, %v8841_v5, 0.0  ;;  %v8955_v23 = vmul.f32 %v8841_v5, %v8841_v5  ;;  %v9005_v36 = vsel %vm17596_vm7, %v8956_v52, 0.0  ;;  %vm17610_vm10 = vmmov %vm17606_vm0  ;;  %v17613_v52 = vld [vmem:[#allocation30_spill] sm:$0xff] }
 0x77c   : > { %v9002_v20 = vadd.f32 %v9001_v39, %v9000_v1  ;;  %v8890_v31 = vadd.f32 %v8889_v8, %v8888_v2  ;;  %v8893_v51 = vsel %vm17597_vm6, %v8843_v3, 0.0  ;;  %v9007_v0 = vsel %vm17601_vm9, %v8957_v37, 0.0  ;;  %vm17615_vm4 = vmmov %vm17606_vm0 }
 0x77d   : > { %v9003_v12 = vsel %vm17595_vm3, %v8955_v23, 0.0  ;;  %vm17612_vm11 = vnez %v17611_v53  ;;  %vm17614_vm13 = vnez %v17613_v52  ;;  %vm17616_vm15 = vmmov %vm17606_vm0  ;;  %vm17621_vm6 = vnez %v17620_v14 }
 0x77e   : > { %v15985_v25 = vpop.f32.mrb[16].mxu1  ;;  %v8892_v6 = vadd.f32 %v8891_v29, %v8890_v31  ;;  %v9004_v41 = vadd.f32 %v9003_v12, %v9002_v20  ;;  %vm17619_vm7 = vmmov %vm17606_vm0 }
 0x77f   : > { %v15987_v62 = vpop.f32.mrb[17].mxu1  ;;  %v8846_v15 = vsel %vm17066_vm5, %v15985_v25, 0.0  ;;  %vm17603_vm5 = vmmov %vm17572_vm1 }
 0x780   : > { %v8844_v54 = vsel %vm17063_vm8, %v15987_v62, 0.0  ;;  %v15997_v50 = vpop.f32.mrb[18].mxu1  ;;  %v9006_v19 = vadd.f32 %v9005_v36, %v9004_v41  ;;  %v8894_v42 = vadd.f32 %v8893_v51, %v8892_v6  ;;  %vm17605_vm8 = vnez %v17604_v35  ;;  %vm17608_vm1 = vmmov %vm17606_vm0  ;;  %v17617_v41 = vld [vmem:[#allocation21_spill] sm:$0xff] }
 0x781   : > { %v8895_v55 = vsel %vm17600_vm2, %v8844_v54, 0.0  ;;  %v8958_v11 = vmul.f32 %v8844_v54, %v8844_v54  ;;  %v16000_v34 = vpop.f32.mrb[19].mxu1  ;;  %v8847_v58 = vsel %vm17605_vm8, %v15997_v50, 0.0  ;;  %v8960_v13 = vmul.f32 %v8846_v15, %v8846_v15  ;;  %vm17622_vm2 = vmmov %vm17606_vm0 }
 0x782   : > { %v8845_v63 = vsel %vm17064_vm14, %v16000_v34, 0.0  ;;  %v8896_v21 = vadd.f32 %v8895_v55, %v8894_v42  ;;  %v9008_v16 = vadd.f32 %v9007_v0, %v9006_v19  ;;  %v8899_v30 = vsel %vm17607_vm12, %v8846_v15, 0.0  ;;  %vm17609_vm14 = vmmov %vm17606_vm0 }
 0x783   : > { %v9009_v7 = vsel %vm17603_vm5, %v8958_v11, 0.0  ;;  %v8897_v49 = vsel %vm17606_vm0, %v8845_v63, 0.0  ;;  %v8959_v18 = vmul.f32 %v8845_v63, %v8845_v63  ;;  %v8961_v46 = vmul.f32 %v8847_v58, %v8847_v58  ;;  %vm17623_vm9 = vmmov %vm17606_vm0 }
 0x784   : > { %v9010_v59 = vadd.f32 %v9009_v7, %v9008_v16  ;;  %v8898_v60 = vadd.f32 %v8897_v49, %v8896_v21  ;;  %v9013_v1 = vsel %vm17609_vm14, %v8960_v13, 0.0  ;;  %v8901_v39 = vsel %vm17610_vm10, %v8847_v58, 0.0  ;;  %vm17624_vm5 = vmmov %vm17606_vm0 }
 0x785   : > { %v9011_v26 = vsel %vm17608_vm1, %v8959_v18, 0.0  ;;  %v9015_v6 = vsel %vm17616_vm15, %v8961_v46, 0.0  ;;  %vm17618_vm3 = vnez %v17617_v41  ;;  %vm17625_vm8 = vmmov %vm17606_vm0  ;;  %v17626_v18 = vld [vmem:[#allocation32_spill] sm:$0xff] }
 0x786   : > { %v16013_v22 = vpop.f32.mrb[20].mxu1  ;;  %v8900_v32 = vadd.f32 %v8899_v30, %v8898_v60  ;;  %v9012_v5 = vadd.f32 %v9011_v26, %v9010_v59  ;;  %vm17627_vm12 = vnez %v17626_v18  ;;  %v17628_v60 = vld [vmem:[#allocation22_spill] sm:$0xff]  ;;  %vm17630_vm14 = vmmov %vm17606_vm0 }
 0x787   : > { %v16015_v2 = vpop.f32.mrb[21].mxu1  ;;  %v8850_v3 = vsel %vm17612_vm11, %v16013_v22, 0.0  ;;  %vm17629_vm1 = vnez %v17628_v60  ;;  %vm17631_vm10 = vmmov %vm17606_vm0 }
 0x788   : > { %v8848_v8 = vsel %vm17614_vm13, %v16015_v2, 0.0  ;;  %v16025_v23 = vpop.f32.mrb[22].mxu1  ;;  %v9014_v20 = vadd.f32 %v9013_v1, %v9012_v5  ;;  %v8902_v31 = vadd.f32 %v8901_v39, %v8900_v32  ;;  %v8964_v19 = vmul.f32 %v8850_v3, %v8850_v3  ;;  %vm17634_vm13 = vmmov %vm17606_vm0 }
 0x789   : > { %v8903_v29 = vsel %vm17615_vm4, %v8848_v8, 0.0  ;;  %v8962_v37 = vmul.f32 %v8848_v8, %v8848_v8  ;;  %v16028_v12 = vpop.f32.mrb[23].mxu1  ;;  %v8851_v54 = vsel %vm17621_vm6, %v16025_v23, 0.0  ;;  %v8907_v61 = vsel %vm17623_vm9, %v8850_v3, 0.0  ;;  %v17632_v3 = vld [vmem:[#allocation42_spill] sm:$0xff]  ;;  %vm17637_vm15 = vmmov %vm17606_vm0 }
 0x78a   : > { %v8849_v36 = vsel %vm17618_vm3, %v16028_v12, 0.0  ;;  %v8904_v51 = vadd.f32 %v8903_v29, %v8902_v31  ;;  %v9016_v44 = vadd.f32 %v9015_v6, %v9014_v20  ;;  %v8965_v63 = vmul.f32 %v8851_v54, %v8851_v54  ;;  %v17635_v29 = vld [vmem:[#allocation37_spill] sm:$0xff]  ;;  %vm17638_vm3 = vmmov %vm17606_vm0 }
 0x78b   : > { %v9017_v15 = vsel %vm17619_vm7, %v8962_v37, 0.0  ;;  %v8905_v42 = vsel %vm17622_vm2, %v8849_v36, 0.0  ;;  %v8963_v55 = vmul.f32 %v8849_v36, %v8849_v36  ;;  %v9021_v13 = vsel %vm17625_vm8, %v8964_v19, 0.0  ;;  %vm17639_vm7 = vmmov %vm17606_vm0 }
 0x78c   : > { %v9018_v11 = vadd.f32 %v9017_v15, %v9016_v44  ;;  %v8906_v0 = vadd.f32 %v8905_v42, %v8904_v51  ;;  %v8909_v49 = vsel %vm17606_vm0, %v8851_v54, 0.0  ;;  %v9023_v53 = vsel %vm17631_vm10, %v8965_v63, 0.0  ;;  %vm17640_vm6 = vmmov %vm17606_vm0  ;;  %v17642_v63 = vld [vmem:[#allocation36_spill] sm:$0xff] }
 0x78d   : > { %v9019_v21 = vsel %vm17624_vm5, %v8963_v55, 0.0  ;;  %vm17633_vm11 = vnez %v17632_v3  ;;  %vm17636_vm4 = vnez %v17635_v29  ;;  %vm17641_vm2 = vmmov %vm17606_vm0  ;;  %vm17643_vm9 = vnez %v17642_v63  ;;  %v17659_v63 = vld [vmem:[#allocation23_spill] sm:$0xff] }
 0x78e   : > { %v16041_v16 = vpop.f32.mrb[24].mxu1  ;;  %v8908_v7 = vadd.f32 %v8907_v61, %v8906_v0  ;;  %v9020_v35 = vadd.f32 %v9019_v21, %v9018_v11  ;;  %vm17646_vm8 = vmmov %vm17606_vm0 }
 0x78f   : > { %v16043_v58 = vpop.f32.mrb[25].mxu1  ;;  %v8854_v59 = vsel %vm17627_vm12, %v16041_v16, 0.0  ;;  %vm17652_vm10 = vmmov %vm17606_vm0 }
 0x790   : > { %v8852_v30 = vsel %vm17629_vm1, %v16043_v58, 0.0  ;;  %v16053_v46 = vpop.f32.mrb[26].mxu1  ;;  %v9022_v26 = vadd.f32 %v9021_v13, %v9020_v35  ;;  %v8910_v32 = vadd.f32 %v8909_v49, %v8908_v7  ;;  %v8968_v6 = vmul.f32 %v8854_v59, %v8854_v59  ;;  %v17644_v7 = vld [vmem:[#allocation24_spill] sm:$0xff]  ;;  %vm17649_vm1 = vmmov %vm17606_vm0 }
 0x791   : > { %v8911_v5 = vsel %vm17630_vm14, %v8852_v30, 0.0  ;;  %v8966_v1 = vmul.f32 %v8852_v30, %v8852_v30  ;;  %v16056_v39 = vpop.f32.mrb[27].mxu1  ;;  %v8855_v37 = vsel %vm17636_vm4, %v16053_v46, 0.0  ;;  %v8915_v15 = vsel %vm17638_vm3, %v8854_v59, 0.0  ;;  %vm17655_vm4 = vmmov %vm17606_vm0 }
 0x792   : > { %v8853_v52 = vsel %vm17633_vm11, %v16056_v39, 0.0  ;;  %v8912_v8 = vadd.f32 %v8911_v5, %v8910_v32  ;;  %v9024_v20 = vadd.f32 %v9023_v53, %v9022_v26  ;;  %v8969_v14 = vmul.f32 %v8855_v37, %v8855_v37  ;;  %v17647_v32 = vld [vmem:[#allocation34_spill] sm:$0xff]  ;;  %vm17653_vm11 = vmmov %vm17606_vm0 }
 0x793   : > { %v9025_v31 = vsel %vm17634_vm13, %v8966_v1, 0.0  ;;  %v8913_v41 = vsel %vm17637_vm15, %v8853_v52, 0.0  ;;  %v8967_v36 = vmul.f32 %v8853_v52, %v8853_v52  ;;  %v9029_v0 = vsel %vm17640_vm6, %v8968_v6, 0.0  ;;  %v17650_v52 = vld [vmem:[#allocation40_spill] sm:$0xff]  ;;  %vm17654_vm13 = vmmov %vm17606_vm0 }
 0x794   : > { %v9026_v51 = vadd.f32 %v9025_v31, %v9024_v20  ;;  %v8914_v44 = vadd.f32 %v8913_v41, %v8912_v8  ;;  %v8917_v61 = vsel %vm17641_vm2, %v8855_v37, 0.0  ;;  %vm17645_vm5 = vnez %v17644_v7  ;;  %vm17656_vm15 = vmmov %vm17606_vm0 }
 0x795   : > { %v9027_v54 = vsel %vm17639_vm7, %v8967_v36, 0.0  ;;  %v9031_v26 = vsel %vm17606_vm0, %v8969_v14, 0.0  ;;  %vm17648_vm12 = vnez %v17647_v32  ;;  %vm17651_vm14 = vnez %v17650_v52  ;;  %vm17661_vm6 = vmmov %vm17606_vm0  ;;  %v17663_v32 = vld [vmem:[#allocation38_spill] sm:$0xff]  ;;  %v17666_v52 = vld [vmem:[#allocation39_spill] sm:$0xff] }
 0x796   : > { %v16069_v19 = vpop.f32.mrb[28].mxu1  ;;  %v8916_v42 = vadd.f32 %v8915_v15, %v8914_v44  ;;  %v9028_v55 = vadd.f32 %v9027_v54, %v9026_v51  ;;  %vm17660_vm7 = vnez %v17659_v63  ;;  %vm17662_vm2 = vmmov %vm17606_vm0 }
 0x797   : > { %v16071_v11 = vpop.f32.mrb[29].mxu1  ;;  %v8858_v21 = vsel %vm17643_vm9, %v16069_v19, 0.0  ;;  %vm17664_vm9 = vnez %v17663_v32 }
 0x798   : > { %v8856_v35 = vsel %vm17645_vm5, %v16071_v11, 0.0  ;;  %v16081_v13 = vpop.f32.mrb[30].mxu1  ;;  %v9030_v49 = vadd.f32 %v9029_v0, %v9028_v55  ;;  %v8918_v18 = vadd.f32 %v8917_v61, %v8916_v42  ;;  %v8972_v20 = vmul.f32 %v8858_v21, %v8858_v21  ;;  %v17657_v0 = vld [vmem:[#allocation35_spill] sm:$0xff]  ;;  %vm17665_vm5 = vmmov %vm17606_vm0 }
 0x799   : > { %v8919_v59 = vsel %vm17646_vm8, %v8856_v35, 0.0  ;;  %v8970_v60 = vmul.f32 %v8856_v35, %v8856_v35  ;;  %v16084_v30 = vpop.f32.mrb[31].mxu1  ;;  %v8859_v8 = vsel %vm17651_vm14, %v16081_v13, 0.0  ;;  %v8923_v41 = vsel %vm17653_vm11, %v8858_v21, 0.0  ;;  %vm17670_vm14 = vmmov %vm17606_vm0 }
 0x79a   : > { %v8857_v5 = vsel %vm17648_vm12, %v16084_v30, 0.0  ;;  %v8920_v1 = vadd.f32 %v8919_v59, %v8918_v18  ;;  %v9032_v53 = vadd.f32 %v9031_v26, %v9030_v49  ;;  %v8973_v36 = vmul.f32 %v8859_v8, %v8859_v8  ;;  %vm17668_vm12 = vmmov %vm17606_vm0 }
 0x79b   : > { %v9033_v3 = vsel %vm17649_vm1, %v8970_v60, 0.0  ;;  %v8921_v31 = vsel %vm17652_vm10, %v8857_v5, 0.0  ;;  %v8971_v29 = vmul.f32 %v8857_v5, %v8857_v5  ;;  %v9037_v42 = vsel %vm17655_vm4, %v8972_v20, 0.0  ;;  %vm17669_vm1 = vmmov %vm17606_vm0 }
 0x79c   : > { %v9034_v37 = vadd.f32 %v9033_v3, %v9032_v53  ;;  %v8922_v6 = vadd.f32 %v8921_v31, %v8920_v1  ;;  %v8925_v55 = vsel %vm17656_vm15, %v8859_v8, 0.0  ;;  %vm17658_vm3 = vnez %v17657_v0  ;;  %vm17671_vm10 = vmmov %vm17606_vm0 }
 0x79d   : > { %v9035_v51 = vsel %vm17654_vm13, %v8971_v29, 0.0  ;;  %v9039_v26 = vsel %vm17662_vm2, %v8973_v36, 0.0  ;;  %vm17667_vm8 = vnez %v17666_v52  ;;  %vm17672_vm11 = vmmov %vm17606_vm0 }
 0x79e   : > { %v16097_v44 = vpop.f32.mrb[32].mxu1  ;;  %v8924_v15 = vadd.f32 %v8923_v41, %v8922_v6  ;;  %v9036_v14 = vadd.f32 %v9035_v51, %v9034_v37 }
 0x79f   : > { %v16099_v54 = vpop.f32.mrb[33].mxu1  ;;  %v8862_v61 = vsel %vm17658_vm3, %v16097_v44, 0.0 }
 0x7a0   : > { %v8860_v21 = vsel %vm17660_vm7, %v16099_v54, 0.0  ;;  %v16109_v7 = vpop.f32.mrb[34].mxu1  ;;  %v9038_v35 = vadd.f32 %v9037_v42, %v9036_v14  ;;  %v8926_v49 = vadd.f32 %v8925_v55, %v8924_v15  ;;  %v8976_v20 = vmul.f32 %v8862_v61, %v8862_v61 }
 0x7a1   : > { %v8927_v18 = vsel %vm17661_vm6, %v8860_v21, 0.0  ;;  %v8974_v59 = vmul.f32 %v8860_v21, %v8860_v21  ;;  %v16112_v60 = vpop.f32.mrb[35].mxu1  ;;  %v8863_v8 = vsel %vm17667_vm8, %v16109_v7, 0.0  ;;  %v8931_v41 = vsel %vm17668_vm12, %v8862_v61, 0.0 }
 0x7a2   : > { %v8861_v5 = vsel %vm17664_vm9, %v16112_v60, 0.0  ;;  %v8928_v1 = vadd.f32 %v8927_v18, %v8926_v49  ;;  %v9040_v53 = vadd.f32 %v9039_v26, %v9038_v35  ;;  %v8977_v36 = vmul.f32 %v8863_v8, %v8863_v8 }
 0x7a3   : > { %v9041_v3 = vsel %vm17665_vm5, %v8974_v59, 0.0  ;;  %v8929_v31 = vsel %vm17606_vm0, %v8861_v5, 0.0  ;;  %v8975_v29 = vmul.f32 %v8861_v5, %v8861_v5  ;;  %v9045_v42 = vsel %vm17670_vm14, %v8976_v20, 0.0 }
 0x7a4   : > { %v9042_v37 = vadd.f32 %v9041_v3, %v9040_v53  ;;  %v8930_v6 = vadd.f32 %v8929_v31, %v8928_v1  ;;  %v8933_v55 = vsel %vm17671_vm10, %v8863_v8, 0.0  ;;  %v9047_v21 = vsel %vm17672_vm11, %v8977_v36, 0.0 }
 0x7a5   : > { %v9043_v51 = vsel %vm17669_vm1, %v8975_v29, 0.0 }
 0x7a6   : > { %v8932_v15 = vadd.f32 %v8931_v41, %v8930_v6  ;;  %v9044_v14 = vadd.f32 %v9043_v51, %v9042_v37 }
 0x7a8   : > { %v8934_v0 = vadd.f32 %v8933_v55, %v8932_v15  ;;  %v9046_v63 = vadd.f32 %v9045_v42, %v9044_v14 }
 0x7aa   : > { %v8935_v35 = vrot.slane %v8934_v0, 4  ;;  %v9048_v49 = vadd.f32 %v9047_v21, %v9046_v63 }
 0x7ac   : > { %v8936_v18 = vadd.f32 %v8935_v35, %v8934_v0  ;;  %v9049_v59 = vrot.slane %v9048_v49, 4 }
 0x7ae   : > { %v8937_v26 = vrot.slane %v8936_v18, 2  ;;  %v9050_v32 = vadd.f32 %v9049_v59, %v9048_v49 }
 0x7b0   : > { %v8938_v61 = vadd.f32 %v8937_v26, %v8936_v18  ;;  %v9051_v5 = vrot.slane %v9050_v32, 2 }
 0x7b2   : > { %v8939_v1 = vrot.slane %v8938_v61, 1  ;;  %v9052_v53 = vadd.f32 %v9051_v5, %v9050_v32 }
 0x7b4   : > { %v8940_v3 = vadd.f32 %v8939_v1, %v8938_v61  ;;  %v9053_v52 = vrot.slane %v9052_v53, 1 }
 0x7b6   : > { %v16128_v31 = vmul.f32 0.00390625, %v8940_v3  ;;  %v9054_v20 = vadd.f32 %v9053_v52, %v9052_v53 }
 0x7b8   : > { %v9055_v8 = vmul.f32 0.00390625, %v9054_v20  ;;  %v9056_v29 = vmul.f32 %v16128_v31, %v16128_v31  ;;  %v9092_v37 = vsub.f32 %v16112_v60, %v16128_v31  ;;  %v9059_v6 = vsub.f32 %v15878_v43, %v16128_v31 }
 0x7b9   : > { %v9060_v41 = vsub.f32 %v15891_v56, %v16128_v31  ;;  %v9061_v36 = vsub.f32 %v15876_v47, %v16128_v31  ;;  %v9062_v51 = vsub.f32 %v15886_v24, %v16128_v31  ;;  %v9063_v15 = vsub.f32 %v15904_v57, %v16128_v31 }
 0x7ba   : > { %v9057_v14 = vsub.f32 %v9055_v8, %v9056_v29  ;;  %v9064_v42 = vsub.f32 %v15917_v48, %v16128_v31  ;;  %v9065_v60 = vsub.f32 %v15901_v27, %v16128_v31  ;;  %v9066_v43 = vsub.f32 %v15911_v33, %v16128_v31 }
 0x7bb   : > { %v9067_v56 = vsub.f32 %v15931_v4, %v16128_v31  ;;  %v9068_v47 = vsub.f32 %v15944_v10, %v16128_v31  ;;  %v9069_v24 = vsub.f32 %v15929_v9, %v16128_v31  ;;  %v9070_v57 = vsub.f32 %v15941_v45, %v16128_v31 }
 0x7bc   : > { %v9058_v55 = vmax.f32 %v9057_v14, 0.0  ;;  %v9071_v48 = vsub.f32 %v15959_v17, %v16128_v31  ;;  %v9072_v27 = vsub.f32 %v15972_v40, %v16128_v31  ;;  %v9073_v33 = vsub.f32 %v15957_v38, %v16128_v31 }
 0x7bd   : > { %v9074_v4 = vsub.f32 %v15969_v28, %v16128_v31  ;;  %v9075_v10 = vsub.f32 %v15987_v62, %v16128_v31  ;;  %v9076_v9 = vsub.f32 %v16000_v34, %v16128_v31  ;;  %v9077_v45 = vsub.f32 %v15985_v25, %v16128_v31 }
 0x7be   : > { %v9095_v0 = vadd.f32 1e-05, %v9058_v55  ;;  %v9078_v17 = vsub.f32 %v15997_v50, %v16128_v31  ;;  %v9079_v40 = vsub.f32 %v16015_v2, %v16128_v31  ;;  %v9080_v38 = vsub.f32 %v16028_v12, %v16128_v31 }
 0x7bf   : > { %v9081_v28 = vsub.f32 %v16013_v22, %v16128_v31  ;;  %v9082_v62 = vsub.f32 %v16025_v23, %v16128_v31  ;;  %v9083_v34 = vsub.f32 %v16043_v58, %v16128_v31  ;;  %v9084_v25 = vsub.f32 %v16056_v39, %v16128_v31 }
 0x7c0   : > { %11770 = vrsqrt.f32 %v9095_v0  ;;  %v9085_v50 = vsub.f32 %v16041_v16, %v16128_v31  ;;  %v9086_v2 = vsub.f32 %v16053_v46, %v16128_v31  ;;  %v9087_v12 = vsub.f32 %v16071_v11, %v16128_v31 }
 0x7c1   : > { %v9088_v22 = vsub.f32 %v16084_v30, %v16128_v31  ;;  %v9089_v23 = vsub.f32 %v16069_v19, %v16128_v31  ;;  %v9090_v58 = vsub.f32 %v16081_v13, %v16128_v31  ;;  %v9091_v39 = vsub.f32 %v16099_v54, %v16128_v31 }
 0x7c2   : > { %v9093_v16 = vsub.f32 %v16097_v44, %v16128_v31  ;;  %v9094_v46 = vsub.f32 %v16109_v7, %v16128_v31 }
 0x7ca   : > { %v11771_v63 = vpop.eup %11770 }
 0x7cb   : > { %v16204_v11 = vmul.f32 %v11771_v63, %v9092_v37  ;;  %v9113_v21 = vmul.f32 %v11771_v63, %v9075_v10  ;;  %v9097_v30 = vmul.f32 %v11771_v63, %v9059_v6  ;;  %v9098_v35 = vmul.f32 %v11771_v63, %v9060_v41 }
 0x7cc   : > { %v9099_v49 = vmul.f32 %v11771_v63, %v9061_v36  ;;  %v16206_v19 = vmul.f32 %v11771_v63, %v9062_v51  ;;  %v16208_v18 = vmul.f32 %v11771_v63, %v9063_v15  ;;  %v16210_v13 = vmul.f32 %v11771_v63, %v9064_v42 }
 0x7cd   : > { %vm9149_vm13 = vcmp.gt.f32.partialorder %v9113_v21, 0.0  ;;  %v9185_v54 = vmul.f32 0.01, %v9113_v21  ;;  %v16212_v59 = vmul.f32 %v11771_v63, %v9065_v60  ;;  %v16214_v44 = vmul.f32 %v11771_v63, %v9066_v43 }
 0x7ce   : > { %v16216_v7 = vmul.f32 %v11771_v63, %v9067_v56  ;;  %v16218_v26 = vmul.f32 %v11771_v63, %v9068_v47  ;;  %v16220_v32 = vmul.f32 %v11771_v63, %v9069_v24  ;;  %v16222_v61 = vmul.f32 %v11771_v63, %v9070_v57 }
 0x7cf   : > { %v9221_v5 = vsel %vm9149_vm13, %v9113_v21, %v9185_v54  ;;  %v16224_v1 = vmul.f32 %v11771_v63, %v9071_v48  ;;  %v16226_v53 = vmul.f32 %v11771_v63, %v9072_v27  ;;  %v16228_v3 = vmul.f32 %v11771_v63, %v9073_v33 }
 0x7d0   : > { %9273 = vxpose.xlu1.b32.start [1/16] (narrow) %v9221_v5, 8  ;;  %v16230_v52 = vmul.f32 %v11771_v63, %v9074_v4  ;;  %v9114_v31 = vmul.f32 %v11771_v63, %v9076_v9  ;;  %v9115_v20 = vmul.f32 %v11771_v63, %v9077_v45  ;;  %v9116_v8 = vmul.f32 %v11771_v63, %v9078_v17 }
 0x7d1   : > { %v9117_v29 = vmul.f32 %v11771_v63, %v9079_v40  ;;  %v9118_v37 = vmul.f32 %v11771_v63, %v9080_v38  ;;  %v9119_v6 = vmul.f32 %v11771_v63, %v9081_v28  ;;  %v16232_v41 = vmul.f32 %v11771_v63, %v9082_v62 }
 0x7d2   : > { %v16234_v36 = vmul.f32 %v11771_v63, %v9083_v34  ;;  %v16236_v51 = vmul.f32 %v11771_v63, %v9084_v25  ;;  %v16238_v15 = vmul.f32 %v11771_v63, %v9085_v50  ;;  %v16240_v14 = vmul.f32 %v11771_v63, %v9086_v2 }
 0x7d3   : > { %v16242_v42 = vmul.f32 %v11771_v63, %v9087_v12  ;;  %v16244_v60 = vmul.f32 %v11771_v63, %v9088_v22  ;;  %v16246_v43 = vmul.f32 %v11771_v63, %v9089_v23  ;;  %v16248_v56 = vmul.f32 %v11771_v63, %v9090_v58 }
 0x7d4   : > { %v16250_v47 = vmul.f32 %v11771_v63, %v9091_v39  ;;  %v16252_v24 = vmul.f32 %v11771_v63, %v9093_v16  ;;  %v16254_v57 = vmul.f32 %v11771_v63, %v9094_v46  ;;  %vm9133_vm4 = vcmp.gt.f32.partialorder %v9097_v30, 0.0 }
 0x7d5   : > { %v9169_v55 = vmul.f32 0.01, %v9097_v30  ;;  %vm9150_vm15 = vcmp.gt.f32.partialorder %v9114_v31, 0.0  ;;  %v9186_v48 = vmul.f32 0.01, %v9114_v31  ;;  %vm9134_vm3 = vcmp.gt.f32.partialorder %v9098_v35, 0.0 }
 0x7d6   : > { %v9170_v4 = vmul.f32 0.01, %v9098_v35  ;;  %v9187_v10 = vmul.f32 0.01, %v9115_v20  ;;  %vm9151_vm7 = vcmp.gt.f32.partialorder %v9115_v20, 0.0  ;;  %vm9135_vm6 = vcmp.gt.f32.partialorder %v9099_v49, 0.0 }
 0x7d7   : > { %v9205_v27 = vsel %vm9133_vm4, %v9097_v30, %v9169_v55  ;;  %v9222_v33 = vsel %vm9150_vm15, %v9114_v31, %v9186_v48  ;;  %v9171_v0 = vmul.f32 0.01, %v9099_v49  ;;  %v9188_v17 = vmul.f32 0.01, %v9116_v8 }
 0x7d8   : > { %9241 = vxpose.xlu0.b32.start [1/16] (narrow) %v9205_v27, 8  ;;  %9274 = vxpose.xlu1.b32.cont [2/16] (narrow) %v9222_v33, 8  ;;  %v9206_v9 = vsel %vm9134_vm3, %v9098_v35, %v9170_v4  ;;  %v9223_v45 = vsel %vm9151_vm7, %v9115_v20, %v9187_v10  ;;  %vm9152_vm2 = vcmp.gt.f32.partialorder %v9116_v8, 0.0  ;;  %v9172_v28 = vmul.f32 0.01, %v16206_v19 }
 0x7d9   : > { %v9207_v40 = vsel %vm9135_vm6, %v9099_v49, %v9171_v0  ;;  %v9224_v38 = vsel %vm9152_vm2, %v9116_v8, %v9188_v17  ;;  %v9189_v62 = vmul.f32 0.01, %v9117_v29  ;;  %vm9136_vm9 = vcmp.gt.f32.partialorder %v16206_v19, 0.0 }
 0x7da   : > { %vm9153_vm5 = vcmp.gt.f32.partialorder %v9117_v29, 0.0  ;;  %v9208_v34 = vsel %vm9136_vm9, %v16206_v19, %v9172_v28  ;;  %v9173_v50 = vmul.f32 0.01, %v16208_v18  ;;  %v9190_v2 = vmul.f32 0.01, %v9118_v37 }
 0x7db   : > { %v9225_v25 = vsel %vm9153_vm5, %v9117_v29, %v9189_v62  ;;  %vm9137_vm8 = vcmp.gt.f32.partialorder %v16208_v18, 0.0  ;;  %vm9154_vm0 = vcmp.gt.f32.partialorder %v9118_v37, 0.0  ;;  %v9174_v23 = vmul.f32 0.01, %v16210_v13 }
 0x7dc   : > { %9242 = vxpose.xlu0.b32.cont [2/16] (narrow) %v9206_v9, 8  ;;  %9275 = vxpose.xlu1.b32.cont [3/16] (narrow) %v9223_v45, 8  ;;  %v9209_v12 = vsel %vm9137_vm8, %v16208_v18, %v9173_v50  ;;  %v9226_v22 = vsel %vm9154_vm0, %v9118_v37, %v9190_v2  ;;  %v9191_v58 = vmul.f32 0.01, %v9119_v6  ;;  %vm9138_vm12 = vcmp.gt.f32.partialorder %v16210_v13, 0.0 }
 0x7dd   : > { %vm9155_vm1 = vcmp.gt.f32.partialorder %v9119_v6, 0.0  ;;  %v9210_v39 = vsel %vm9138_vm12, %v16210_v13, %v9174_v23  ;;  %v9175_v46 = vmul.f32 0.01, %v16212_v59  ;;  %v9192_v63 = vmul.f32 0.01, %v16232_v41 }
 0x7de   : > { %v9227_v16 = vsel %vm9155_vm1, %v9119_v6, %v9191_v58  ;;  %vm9139_vm14 = vcmp.gt.f32.partialorder %v16212_v59, 0.0  ;;  %vm9156_vm10 = vcmp.gt.f32.partialorder %v16232_v41, 0.0  ;;  %v9176_v35 = vmul.f32 0.01, %v16214_v44 }
 0x7df   : > { %v9211_v21 = vsel %vm9139_vm14, %v16212_v59, %v9175_v46  ;;  %v9228_v30 = vsel %vm9156_vm10, %v16232_v41, %v9192_v63  ;;  %v9193_v49 = vmul.f32 0.01, %v16234_v36  ;;  %vm9140_vm11 = vcmp.gt.f32.partialorder %v16214_v44, 0.0 }
 0x7e0   : > { %9243 = vxpose.xlu0.b32.cont [3/16] (narrow) %v9207_v40, 8  ;;  %9276 = vxpose.xlu1.b32.cont [4/16] (narrow) %v9224_v38, 8  ;;  %vm9157_vm13 = vcmp.gt.f32.partialorder %v16234_v36, 0.0  ;;  %v9212_v19 = vsel %vm9140_vm11, %v16214_v44, %v9176_v35  ;;  %v9177_v13 = vmul.f32 0.01, %v16216_v7  ;;  %vm9141_vm4 = vcmp.gt.f32.partialorder %v16216_v7, 0.0 }
 0x7e1   : > { %v9229_v18 = vsel %vm9157_vm13, %v16234_v36, %v9193_v49  ;;  %v9194_v54 = vmul.f32 0.01, %v16236_v51  ;;  %vm9158_vm15 = vcmp.gt.f32.partialorder %v16236_v51, 0.0  ;;  %v9178_v31 = vmul.f32 0.01, %v16218_v26 }
 0x7e2   : > { %v9213_v59 = vsel %vm9141_vm4, %v16216_v7, %v9177_v13  ;;  %v9195_v44 = vmul.f32 0.01, %v16238_v15  ;;  %vm9142_vm3 = vcmp.gt.f32.partialorder %v16218_v26, 0.0  ;;  %vm9159_vm7 = vcmp.gt.f32.partialorder %v16238_v15, 0.0 }
 0x7e3   : > { %v9230_v5 = vsel %vm9158_vm15, %v16236_v51, %v9194_v54  ;;  %v9214_v20 = vsel %vm9142_vm3, %v16218_v26, %v9178_v31  ;;  %v9179_v29 = vmul.f32 0.01, %v16220_v32  ;;  %v9196_v7 = vmul.f32 0.01, %v16240_v14 }
 0x7e4   : > { %9244 = vxpose.xlu0.b32.cont [4/16] (narrow) %v9208_v34, 8  ;;  %9277 = vxpose.xlu1.b32.cont [5/16] (narrow) %v9225_v25, 8  ;;  %v9231_v8 = vsel %vm9159_vm7, %v16238_v15, %v9195_v44  ;;  %vm9143_vm6 = vcmp.gt.f32.partialorder %v16220_v32, 0.0  ;;  %vm9160_vm2 = vcmp.gt.f32.partialorder %v16240_v14, 0.0  ;;  %v9180_v41 = vmul.f32 0.01, %v16222_v61 }
 0x7e5   : > { %v9215_v37 = vsel %vm9143_vm6, %v16220_v32, %v9179_v29  ;;  %v9232_v6 = vsel %vm9160_vm2, %v16240_v14, %v9196_v7  ;;  %v9197_v26 = vmul.f32 0.01, %v16242_v42  ;;  %vm9144_vm9 = vcmp.gt.f32.partialorder %v16222_v61, 0.0 }
 0x7e6   : > { %vm9161_vm5 = vcmp.gt.f32.partialorder %v16242_v42, 0.0  ;;  %v9216_v36 = vsel %vm9144_vm9, %v16222_v61, %v9180_v41  ;;  %v9181_v15 = vmul.f32 0.01, %v16224_v1  ;;  %v9198_v32 = vmul.f32 0.01, %v16244_v60 }
 0x7e7   : > { %v9233_v51 = vsel %vm9161_vm5, %v16242_v42, %v9197_v26  ;;  %vm9145_vm8 = vcmp.gt.f32.partialorder %v16224_v1, 0.0  ;;  %vm9162_vm0 = vcmp.gt.f32.partialorder %v16244_v60, 0.0  ;;  %v9182_v48 = vmul.f32 0.01, %v16226_v53 }
 0x7e8   : > { %9245 = vxpose.xlu0.b32.cont [5/16] (narrow) %v9209_v12, 8  ;;  %9278 = vxpose.xlu1.b32.cont [6/16] (narrow) %v9226_v22, 8  ;;  %v9217_v14 = vsel %vm9145_vm8, %v16224_v1, %v9181_v15  ;;  %v9234_v55 = vsel %vm9162_vm0, %v16244_v60, %v9198_v32  ;;  %v9199_v61 = vmul.f32 0.01, %v16246_v43  ;;  %vm9146_vm12 = vcmp.gt.f32.partialorder %v16226_v53, 0.0 }
 0x7e9   : > { %vm9163_vm1 = vcmp.gt.f32.partialorder %v16246_v43, 0.0  ;;  %v9218_v42 = vsel %vm9146_vm12, %v16226_v53, %v9182_v48  ;;  %v9183_v33 = vmul.f32 0.01, %v16228_v3  ;;  %v9200_v1 = vmul.f32 0.01, %v16248_v56 }
 0x7ea   : > { %v9235_v27 = vsel %vm9163_vm1, %v16246_v43, %v9199_v61  ;;  %vm9147_vm14 = vcmp.gt.f32.partialorder %v16228_v3, 0.0  ;;  %vm9164_vm10 = vcmp.gt.f32.partialorder %v16248_v56, 0.0  ;;  %v9184_v10 = vmul.f32 0.01, %v16230_v52 }
 0x7eb   : > { %v9219_v60 = vsel %vm9147_vm14, %v16228_v3, %v9183_v33  ;;  %v9236_v4 = vsel %vm9164_vm10, %v16248_v56, %v9200_v1  ;;  %vm9148_vm11 = vcmp.gt.f32.partialorder %v16230_v52, 0.0  ;;  %v9201_v43 = vmul.f32 0.01, %v16250_v47 }
 0x7ec   : > { %9246 = vxpose.xlu0.b32.cont [6/16] (narrow) %v9210_v39, 8  ;;  %9279 = vxpose.xlu1.b32.cont [7/16] (narrow) %v9227_v16, 8  ;;  %v9220_v53 = vsel %vm9148_vm11, %v16230_v52, %v9184_v10  ;;  %vm9165_vm13 = vcmp.gt.f32.partialorder %v16250_v47, 0.0  ;;  %v9202_v3 = vmul.f32 0.01, %v16204_v11  ;;  %vm9166_vm4 = vcmp.gt.f32.partialorder %v16204_v11, 0.0 }
 0x7ed   : > { %v9237_v9 = vsel %vm9165_vm13, %v16250_v47, %v9201_v43  ;;  %v9203_v45 = vmul.f32 0.01, %v16252_v24  ;;  %vm9167_vm15 = vcmp.gt.f32.partialorder %v16252_v24, 0.0  ;;  %v9204_v0 = vmul.f32 0.01, %v16254_v57 }
 0x7ee   : > { %v9238_v56 = vsel %vm9166_vm4, %v16204_v11, %v9202_v3  ;;  %vm9168_vm3 = vcmp.gt.f32.partialorder %v16254_v57, 0.0  ;;  %vm9339_vm7 = vcmask 261120  }
 0x7ef   : > { %v9239_v52 = vsel %vm9167_vm15, %v16252_v24, %v9203_v45  ;;  %v9240_v47 = vsel %vm9168_vm3, %v16254_v57, %v9204_v0 }
 0x7f0   : > { %9247 = vxpose.xlu0.b32.cont [7/16] (narrow) %v9211_v21, 8  ;;  %9280 = vxpose.xlu1.b32.cont [8/16] (narrow) %v9228_v30, 8 }
 0x7f4   : > { %9248 = vxpose.xlu0.b32.cont [8/16] (narrow) %v9212_v19, 8  ;;  %9281 = vxpose.xlu1.b32.cont [9/16] (narrow) %v9229_v18, 8 }
 0x7f8   : > { %9249 = vxpose.xlu0.b32.cont [9/16] (narrow) %v9213_v59, 8  ;;  %9282 = vxpose.xlu1.b32.cont [10/16] (narrow) %v9230_v5, 8 }
 0x7fc   : > { %9250 = vxpose.xlu0.b32.cont [10/16] (narrow) %v9214_v20, 8  ;;  %9283 = vxpose.xlu1.b32.cont [11/16] (narrow) %v9231_v8, 8 }
 0x800   : > { %9251 = vxpose.xlu0.b32.cont [11/16] (narrow) %v9215_v37, 8  ;;  %9284 = vxpose.xlu1.b32.cont [12/16] (narrow) %v9232_v6, 8 }
 0x804   : > { %9252 = vxpose.xlu0.b32.cont [12/16] (narrow) %v9216_v36, 8  ;;  %9285 = vxpose.xlu1.b32.cont [13/16] (narrow) %v9233_v51, 8 }
 0x808   : > { %9253 = vxpose.xlu0.b32.cont [13/16] (narrow) %v9217_v14, 8  ;;  %9286 = vxpose.xlu1.b32.cont [14/16] (narrow) %v9234_v55, 8 }
 0x80c   : > { %9254 = vxpose.xlu0.b32.cont [14/16] (narrow) %v9218_v42, 8  ;;  %9287 = vxpose.xlu1.b32.cont [15/16] (narrow) %v9235_v27, 8 }
 0x810   : > { %9255 = vxpose.xlu0.b32.cont [15/16] (narrow) %v9219_v60, 8  ;;  %9288 = vxpose.xlu1.b32.end [16/16] (narrow) %v9236_v4, 8 }
 0x814   : > { %9256 = vxpose.xlu0.b32.end [16/16] (narrow) %v9220_v53, 8 }
 0x818   : > { %9305 = vxpose.xlu0.b32.start [1/4] (short) (narrow) %v9237_v9, 8 }
 0x81c   : > { %9306 = vxpose.xlu0.b32.cont [2/4] (short) (narrow) %v9238_v56, 8 }
 0x820   : > { %9307 = vxpose.xlu0.b32.cont [3/4] (short) (narrow) %v9239_v52, 8 }
 0x824   : > { %9308 = vxpose.xlu0.b32.end [4/4] (short) (narrow) %v9240_v47, 8 }
 0x854   : > { %v9289_v11 = vpop.trf.xlu1 }
 0x855   : > { %9338 = vst [vmem:[%s170_s7 + $0x8] sm:$0xff] %v9289_v11 }
 0x858   : > { %v9257_v17 = vpop.trf.xlu0 }
 0x859   : > { %9337 = vst [vmem:[%s170_s7] sm:$0xff] %v9257_v17 }
 0x898   : > { %v9321_v40 = vpop.trf.xlu0 }
 0x899   : > { %9340 = vst.msk [vmem:[%s170_s7 + $0x10] sm:$0xff] %vm9339_vm7, %v9321_v40 }
 0x89a PF: > { %s13_s12 = sadd.s32 1, %s11786_s12  }
 0x89b   : > { %p10_p4 = scmp.ge.s32.totalorder %s13_s12, 4  }
 0x89d   :  { %12 = sbr.rel (!%p10_p4) target bundleno = 1 (0x1), region = 78 }

</bundles_post_ra>
